<compile_context>
chip_gen: v5e
topology: v5e:2x2
jax: 0.10.0
libtpu: 0.0.40
codegen_flags: <defaults>
</compile_context>

<pallas_src>
import functools

import jax
import jax.numpy as jnp
from jax import lax
from jax.experimental import pallas as pl
from jax.experimental.pallas import tpu as pltpu


# ------------------------- helpers -------------------------

def _row_tile(m):
    """Largest row-tile that evenly divides m (keeps blocks (8,128)-friendly)."""
    for t in (512, 256, 128, 64, 32, 16, 8):
        if m % t == 0:
            return t
    return m


def _ln(x, g, b, eps):
    mu = jnp.mean(x, axis=-1, keepdims=True)
    var = jnp.mean(jnp.square(x - mu), axis=-1, keepdims=True)
    return (x - mu) * lax.rsqrt(var + eps) * g + b


_PARALLEL1 = pltpu.CompilerParams(dimension_semantics=("parallel",))


# ------------------------- Pallas kernels -------------------------

def _linear_kernel(x_ref, w_ref, b_ref, o_ref):
    y = jnp.dot(x_ref[...], w_ref[...], preferred_element_type=jnp.float32) + b_ref[...]
    o_ref[...] = y.astype(o_ref.dtype)


def linear(x, w, b):
    """M-tiled dense layer; used for the fused QKV projection."""
    m, k = x.shape
    n = w.shape[1]
    tm = _row_tile(m)
    return pl.pallas_call(
        _linear_kernel,
        out_shape=jax.ShapeDtypeStruct((m, n), x.dtype),
        grid=(m // tm,),
        in_specs=[pl.BlockSpec((tm, k), lambda i: (i, 0)),
                  pl.BlockSpec((k, n), lambda i: (0, 0)),
                  pl.BlockSpec((1, n), lambda i: (0, 0))],
        out_specs=pl.BlockSpec((tm, n), lambda i: (i, 0)),
        compiler_params=_PARALLEL1,
    )(x, w, b.reshape(1, n))


def _layernorm_kernel(x_ref, g_ref, b_ref, o_ref, *, eps):
    o_ref[...] = _ln(x_ref[...], g_ref[...], b_ref[...], eps).astype(o_ref.dtype)


def layernorm(x, g, b, eps=1e-5):
    m, h = x.shape
    tm = _row_tile(m)
    return pl.pallas_call(
        functools.partial(_layernorm_kernel, eps=eps),
        out_shape=jax.ShapeDtypeStruct((m, h), x.dtype),
        grid=(m // tm,),
        in_specs=[pl.BlockSpec((tm, h), lambda i: (i, 0)),
                  pl.BlockSpec((1, h), lambda i: (0, 0)),
                  pl.BlockSpec((1, h), lambda i: (0, 0))],
        out_specs=pl.BlockSpec((tm, h), lambda i: (i, 0)),
        compiler_params=_PARALLEL1,
    )(x, g.reshape(1, h), b.reshape(1, h))


def _attn_block_kernel(qkv_ref, bias_ref, res_ref, wo_ref, bo_ref, g_ref, bln_ref, o_ref,
                       *, n_heads, d_head, scale, eps):
    """Multi-head attention for one batch element + out-proj + residual + LayerNorm."""
    h = n_heads * d_head
    qkv = qkv_ref[0]                 # [S, 3H]
    bias = bias_ref[0]               # [1, S] additive mask
    q = qkv[:, 0:h]
    k = qkv[:, h:2 * h]
    v = qkv[:, 2 * h:3 * h]

    ctx_heads = []
    for hd in range(n_heads):        # static unroll over heads; output stays lane-dense
        lo, hi = hd * d_head, (hd + 1) * d_head
        qh, kh, vh = q[:, lo:hi], k[:, lo:hi], v[:, lo:hi]
        s = lax.dot_general(qh, kh, (((1,), (1,)), ((), ())),
                            preferred_element_type=jnp.float32) * scale + bias   # [S, S]
        s = s - jnp.max(s, axis=-1, keepdims=True)
        p = jnp.exp(s)
        p = p * pl.reciprocal(jnp.sum(p, axis=-1, keepdims=True), approx=True)
        ctx_heads.append(jnp.dot(p, vh, preferred_element_type=jnp.float32))
    ctx = jnp.concatenate(ctx_heads, axis=-1)                                     # [S, H]

    attn = (jnp.dot(ctx, wo_ref[...], preferred_element_type=jnp.float32)
            + bo_ref[...] + res_ref[0])
    o_ref[0] = _ln(attn, g_ref[...], bln_ref[...], eps).astype(o_ref.dtype)


def attention_block(qkv, bias, x_res, wo, bo, g, bln, *, n_heads, eps):
    b, s, h3 = qkv.shape
    h = h3 // 3
    d_h = h // n_heads
    return pl.pallas_call(
        functools.partial(_attn_block_kernel, n_heads=n_heads, d_head=d_h,
                          scale=float(d_h) ** -0.5, eps=eps),
        out_shape=jax.ShapeDtypeStruct((b, s, h), qkv.dtype),
        grid=(b,),
        in_specs=[pl.BlockSpec((1, s, h3), lambda i: (i, 0, 0)),
                  pl.BlockSpec((1, 1, s), lambda i: (i, 0, 0)),
                  pl.BlockSpec((1, s, h), lambda i: (i, 0, 0)),
                  pl.BlockSpec((h, h), lambda i: (0, 0)),
                  pl.BlockSpec((1, h), lambda i: (0, 0)),
                  pl.BlockSpec((1, h), lambda i: (0, 0)),
                  pl.BlockSpec((1, h), lambda i: (0, 0))],
        out_specs=pl.BlockSpec((1, s, h), lambda i: (i, 0, 0)),
        compiler_params=_PARALLEL1,
    )(qkv, bias, x_res, wo, bo.reshape(1, h), g.reshape(1, h), bln.reshape(1, h))


def _ffn_kernel(x_ref, w1_ref, b1_ref, w2_ref, b2_ref, g_ref, bln_ref, o_ref, *, eps):
    x = x_ref[...]
    h1 = jnp.dot(x, w1_ref[...], preferred_element_type=jnp.float32) + b1_ref[...]
    # TODO(synk): HF RoBERTa uses exact (erf) GELU; tanh approximation used here.
    h1 = jax.nn.gelu(h1, approximate=True)
    h2 = (jnp.dot(h1, w2_ref[...], preferred_element_type=jnp.float32)
          + b2_ref[...] + x)
    o_ref[...] = _ln(h2, g_ref[...], bln_ref[...], eps).astype(o_ref.dtype)


def ffn_block(x, w1, b1, w2, b2, g, bln, *, eps):
    m, h = x.shape
    f = w1.shape[1]
    tm = _row_tile(m)
    return pl.pallas_call(
        functools.partial(_ffn_kernel, eps=eps),
        out_shape=jax.ShapeDtypeStruct((m, h), x.dtype),
        grid=(m // tm,),
        in_specs=[pl.BlockSpec((tm, h), lambda i: (i, 0)),
                  pl.BlockSpec((h, f), lambda i: (0, 0)),
                  pl.BlockSpec((1, f), lambda i: (0, 0)),
                  pl.BlockSpec((f, h), lambda i: (0, 0)),
                  pl.BlockSpec((1, h), lambda i: (0, 0)),
                  pl.BlockSpec((1, h), lambda i: (0, 0)),
                  pl.BlockSpec((1, h), lambda i: (0, 0))],
        out_specs=pl.BlockSpec((tm, h), lambda i: (i, 0)),
        compiler_params=_PARALLEL1,
    )(x, w1, b1.reshape(1, f), w2, b2.reshape(1, h), g.reshape(1, h), bln.reshape(1, h))


def _bilstm_head_kernel(x_ref, wih_ref, b_ref, whhf_ref, whhb_ref, cw_ref, cb_ref,
                        o_ref, gx_ref, *, seq_len, batch, hidden):
    """Fused bidirectional LSTM (final hidden states) + concat + classifier.

    x_ref is time-major flattened [S*B, H].  The input projection for BOTH directions
    is hoisted out of the recurrence as one matmul into a VMEM scratch; the time loop
    only carries the h @ W_hh matmuls and elementwise gate math.
    """
    H = hidden
    gx_ref[...] = (jnp.dot(x_ref[...], wih_ref[...], preferred_element_type=jnp.float32)
                   + b_ref[...])                                   # [S*B, 8H]

    whh_f = whhf_ref[...]
    whh_b = whhb_ref[...]

    def gate(gates, c):                # PyTorch gate order: i, f, g, o
        i = jax.nn.sigmoid(gates[:, 0:H])
        f = jax.nn.sigmoid(gates[:, H:2 * H])
        g = jnp.tanh(gates[:, 2 * H:3 * H])
        o = jax.nn.sigmoid(gates[:, 3 * H:4 * H])
        c = f * c + i * g
        return o * jnp.tanh(c), c

    z = jnp.zeros((batch, H), jnp.float32)
    hf, cf, hb, cb = z, z, z, z
    # seq_len is static & small -> full unroll gives the scheduler visibility to overlap
    # the recurrent matmuls with the previous step's VPU gate math.
    for t in range(seq_len):
        gx_f = gx_ref[t * batch:(t + 1) * batch, 0:4 * H]
        gx_b = gx_ref[(seq_len - 1 - t) * batch:(seq_len - t) * batch, 4 * H:8 * H]
        hf, cf = gate(gx_f + jnp.dot(hf, whh_f, preferred_element_type=jnp.float32), cf)
        hb, cb = gate(gx_b + jnp.dot(hb, whh_b, preferred_element_type=jnp.float32), cb)

    hidden_cat = jnp.concatenate([hf, hb], axis=1)                 # [B, 2H]
    logits = (jnp.dot(hidden_cat, cw_ref[...], preferred_element_type=jnp.float32)
              + cb_ref[...])
    o_ref[...] = logits.astype(o_ref.dtype)


def bilstm_classifier(x_tm, w_ih, b, w_hh_f, w_hh_b, cls_w, cls_b):
    # x_tm: [S, B, H] time-major. Returns logits [B, out].
    s, bsz, h = x_tm.shape
    hidden = w_hh_f.shape[0]
    nout = cls_w.shape[1]
    x2d = x_tm.reshape(s * bsz, h)     # free metadata reshape (row-major leading merge)
    return pl.pallas_call(
        functools.partial(_bilstm_head_kernel, seq_len=s, batch=bsz, hidden=hidden),
        out_shape=jax.ShapeDtypeStruct((bsz, nout), x_tm.dtype),
        scratch_shapes=[pltpu.VMEM((s * bsz, 8 * hidden), jnp.float32)],
    )(x2d, w_ih, b.reshape(1, 8 * hidden), w_hh_f, w_hh_b, cls_w, cls_b.reshape(1, nout))


# ------------------------- model glue (plain JAX) -------------------------

CFG = dict(hidden=128, heads=4, ffn=256, layers=2, vocab=64,
           max_pos=16, pad_idx=1, out_channels=3, eps=1e-5)


def init_params(key, cfg):
    h, ff, nl = cfg["hidden"], cfg["ffn"], cfg["layers"]

    def nrm(k, shape):
        return 0.02 * jax.random.normal(k, shape, jnp.float32)

    keys = iter(jax.random.split(key, 64))
    p = {
        "word_emb": nrm(next(keys), (cfg["vocab"], h)),
        "pos_emb": nrm(next(keys), (cfg["max_pos"], h)),
        "type_emb": nrm(next(keys), (1, h)),
        "emb_ln_g": jnp.ones((h,), jnp.float32),
        "emb_ln_b": jnp.zeros((h,), jnp.float32),
        "layers": [],
    }
    for _ in range(nl):
        p["layers"].append({
            "qkv_w": nrm(next(keys), (h, 3 * h)),            # [Wq | Wk | Wv]
            "qkv_b": jnp.zeros((3 * h,), jnp.float32),
            "o_w": nrm(next(keys), (h, h)), "o_b": jnp.zeros((h,), jnp.float32),
            "attn_ln_g": jnp.ones((h,), jnp.float32),
            "attn_ln_b": jnp.zeros((h,), jnp.float32),
            "ffn_w1": nrm(next(keys), (h, ff)), "ffn_b1": jnp.zeros((ff,), jnp.float32),
            "ffn_w2": nrm(next(keys), (ff, h)), "ffn_b2": jnp.zeros((h,), jnp.float32),
            "ffn_ln_g": jnp.ones((h,), jnp.float32),
            "ffn_ln_b": jnp.zeros((h,), jnp.float32),
        })
    p["lstm"] = {
        # PyTorch weight_ih_l0.T (fwd) and weight_ih_l0_reverse.T (bwd), gate order i,f,g,o,
        # concatenated along the output axis so one matmul feeds both directions.
        "w_ih": nrm(next(keys), (h, 8 * h)),
        "b": jnp.zeros((8 * h,), jnp.float32),               # (b_ih + b_hh) fwd | bwd
        "w_hh_f": nrm(next(keys), (h, 4 * h)),
        "w_hh_b": nrm(next(keys), (h, 4 * h)),
    }
    p["cls_w"] = nrm(next(keys), (2 * h, cfg["out_channels"]))
    p["cls_b"] = jnp.zeros((cfg["out_channels"],), jnp.float32)
    return p


def forward(params, input_ids, attn_mask, cfg=CFG):
    b, s = input_ids.shape
    h = cfg["hidden"]
    n_h = cfg["heads"]

    # --- RoBERTa embeddings (gathers stay in plain JAX) ---
    mask_f = attn_mask.astype(jnp.float32)
    pos_ids = jnp.cumsum(attn_mask, axis=1) * attn_mask + cfg["pad_idx"]  # RoBERTa positions
    x = (jnp.take(params["word_emb"], input_ids, axis=0)
         + jnp.take(params["pos_emb"], pos_ids, axis=0)
         + params["type_emb"][0])
    x = layernorm(x.reshape(b * s, h), params["emb_ln_g"], params["emb_ln_b"], cfg["eps"])

    # additive attention bias, one copy per batch (broadcast over heads inside kernel)
    bias = ((1.0 - mask_f) * -1e9).reshape(b, 1, s)

    # --- transformer encoder layers: 3 pallas_calls per layer ---
    for lp in params["layers"]:
        qkv = linear(x, lp["qkv_w"], lp["qkv_b"])                         # [B*S, 3H]
        x = attention_block(qkv.reshape(b, s, 3 * h), bias, x.reshape(b, s, h),
                            lp["o_w"], lp["o_b"], lp["attn_ln_g"], lp["attn_ln_b"],
                            n_heads=n_h, eps=cfg["eps"]).reshape(b * s, h)
        x = ffn_block(x, lp["ffn_w1"], lp["ffn_b1"], lp["ffn_w2"], lp["ffn_b2"],
                      lp["ffn_ln_g"], lp["ffn_ln_b"], eps=cfg["eps"])

    seq_out = x.reshape(b, s, h)          # bert(...)[0]  (last hidden state)

    # --- fused bidirectional LSTM (final hidden states) + concat + classifier ---
    # dropout -> identity in eval mode; LogSoftmax (self.act) is never applied in forward()
    x_tm = seq_out.transpose(1, 0, 2)     # [S, B, H] time-major
    logits = bilstm_classifier(x_tm, params["lstm"]["w_ih"], params["lstm"]["b"],
                               params["lstm"]["w_hh_f"], params["lstm"]["w_hh_b"],
                               params["cls_w"], params["cls_b"])
    return logits


if __name__ == "__main__":
    key = jax.random.PRNGKey(0)
    pkey, ikey = jax.random.split(key)
    params = init_params(pkey, CFG)

    B, S = 2, 8
    input_ids = jax.random.randint(ikey, (B, S), 0, CFG["vocab"], dtype=jnp.int32)
    attn_mask = jnp.array([[1] * 8, [1] * 6 + [0] * 2], dtype=jnp.int32)

    logits = jax.jit(forward)(params, input_ids, attn_mask)
    jax.block_until_ready(logits)
    assert logits.shape == (B, CFG["out_channels"]), logits.shape
    assert logits.dtype == jnp.float32
    print("KERNEL_OK")
</pallas_src>

<mosaic_0001>
module attributes {stable_mosaic.version = 11 : i64} {
  func.func @_linear_kernel(%arg0: i32, %arg1: memref<16x128xf32, #tpu.memory_space<vmem>>, %arg2: memref<128x384xf32, #tpu.memory_space<vmem>>, %arg3: memref<1x384xf32, #tpu.memory_space<vmem>>, %arg4: memref<16x384xf32, #tpu.memory_space<vmem>>) attributes {dimension_semantics = [#tpu.dimension_semantics<parallel>], iteration_bounds = array<i64: 1>, scalar_prefetch = 0 : i64, scratch_operands = 0 : i64, tpu.core_type = #tpu.core_type<tc>, window_params = [{transform_indices = @transform_0, window_bounds = array<i64: 16, 128>}, {pipeline_mode = #tpu.pipeline_mode<synchronous>, transform_indices = @transform_1, window_bounds = array<i64: 128, 384>}, {pipeline_mode = #tpu.pipeline_mode<synchronous>, transform_indices = @transform_2, window_bounds = array<i64: 1, 384>}, {transform_indices = @transform_3, window_bounds = array<i64: 16, 384>}]} {
    %c0 = arith.constant 0 : index
    %c0_0 = arith.constant 0 : index
    %0 = vector.load %arg1[%c0, %c0_0] : memref<16x128xf32, #tpu.memory_space<vmem>>, vector<16x128xf32>
    %c0_1 = arith.constant 0 : index
    %c0_2 = arith.constant 0 : index
    %1 = vector.load %arg2[%c0_1, %c0_2] : memref<128x384xf32, #tpu.memory_space<vmem>>, vector<128x384xf32>
    %cst = arith.constant dense<0.000000e+00> : vector<16x384xf32>
    %2 = tpu.matmul %0, %1, %cst {dimension_numbers = #tpu.dot_dimension_numbers<[1], [0], [0], [1], [0, 0, 1, 1], [], []>} : vector<16x128xf32>, vector<128x384xf32>, vector<16x384xf32> -> vector<16x384xf32>
    %c0_3 = arith.constant 0 : index
    %c0_4 = arith.constant 0 : index
    %3 = vector.load %arg3[%c0_3, %c0_4] : memref<1x384xf32, #tpu.memory_space<vmem>>, vector<1x384xf32>
    %4 = vector.broadcast %3 : vector<1x384xf32> to vector<16x384xf32>
    %5 = arith.addf %2, %4 : vector<16x384xf32>
    %c0_5 = arith.constant 0 : index
    %c0_6 = arith.constant 0 : index
    %6 = vector.load %arg4[%c0_5, %c0_6] : memref<16x384xf32, #tpu.memory_space<vmem>>, vector<16x384xf32>
    tpu.vector_store %arg4[%c0_5, %c0_6], %5 {strides = array<i32>} : memref<16x384xf32, #tpu.memory_space<vmem>>, vector<16x384xf32>,
    return
  }
  func.func @transform_0(%arg0: i32) -> (i32, i32) {
    %c0_i32 = arith.constant 0 : i32
    %c0_i32_0 = arith.constant 0 : i32
    return %arg0, %c0_i32 : i32, i32
  }
  func.func @transform_1(%arg0: i32) -> (i32, i32) {
    %c0_i32 = arith.constant 0 : i32
    %c0_i32_0 = arith.constant 0 : i32
    %c0_i32_1 = arith.constant 0 : i32
    return %c0_i32, %c0_i32_0 : i32, i32
  }
  func.func @transform_2(%arg0: i32) -> (i32, i32) {
    %c0_i32 = arith.constant 0 : i32
    %c0_i32_0 = arith.constant 0 : i32
    %c0_i32_1 = arith.constant 0 : i32
    return %c0_i32, %c0_i32_0 : i32, i32
  }
  func.func @transform_3(%arg0: i32) -> (i32, i32) {
    %c0_i32 = arith.constant 0 : i32
    %c0_i32_0 = arith.constant 0 : i32
    return %arg0, %c0_i32 : i32, i32
  }
}

module attributes {stable_mosaic.version = 11 : i64} {
  func.func @_layernorm_kernel(%arg0: i32, %arg1: memref<16x128xf32, #tpu.memory_space<vmem>>, %arg2: memref<1x128xf32, #tpu.memory_space<vmem>>, %arg3: memref<1x128xf32, #tpu.memory_space<vmem>>, %arg4: memref<16x128xf32, #tpu.memory_space<vmem>>) attributes {dimension_semantics = [#tpu.dimension_semantics<parallel>], iteration_bounds = array<i64: 1>, scalar_prefetch = 0 : i64, scratch_operands = 0 : i64, tpu.core_type = #tpu.core_type<tc>, window_params = [{transform_indices = @transform_0, window_bounds = array<i64: 16, 128>}, {pipeline_mode = #tpu.pipeline_mode<synchronous>, transform_indices = @transform_1, window_bounds = array<i64: 1, 128>}, {pipeline_mode = #tpu.pipeline_mode<synchronous>, transform_indices = @transform_2, window_bounds = array<i64: 1, 128>}, {transform_indices = @transform_3, window_bounds = array<i64: 16, 128>}]} {
    %c0 = arith.constant 0 : index
    %c0_0 = arith.constant 0 : index
    %0 = vector.load %arg1[%c0, %c0_0] : memref<16x128xf32, #tpu.memory_space<vmem>>, vector<16x128xf32>
    %c0_1 = arith.constant 0 : index
    %c0_2 = arith.constant 0 : index
    %1 = vector.load %arg2[%c0_1, %c0_2] : memref<1x128xf32, #tpu.memory_space<vmem>>, vector<1x128xf32>
    %c0_3 = arith.constant 0 : index
    %c0_4 = arith.constant 0 : index
    %2 = vector.load %arg3[%c0_3, %c0_4] : memref<1x128xf32, #tpu.memory_space<vmem>>, vector<1x128xf32>
    %cst = arith.constant dense<0.000000e+00> : vector<16xf32>
    %3 = vector.multi_reduction <add>, %0, %cst [1] : vector<16x128xf32> to vector<16xf32>
    %4 = vector.shape_cast %3 : vector<16xf32> to vector<16x1xf32>
    %cst_5 = arith.constant 1.280000e+02 : f32
    %5 = vector.broadcast %cst_5 : f32 to vector<16x1xf32>
    %6 = arith.divf %4, %5 : vector<16x1xf32>
    %7 = vector.broadcast %6 : vector<16x1xf32> to vector<16x128xf32>
    %8 = arith.subf %0, %7 : vector<16x128xf32>
    %9 = arith.mulf %8, %8 : vector<16x128xf32>
    %cst_6 = arith.constant dense<0.000000e+00> : vector<16xf32>
    %10 = vector.multi_reduction <add>, %9, %cst_6 [1] : vector<16x128xf32> to vector<16xf32>
    %11 = vector.shape_cast %10 : vector<16xf32> to vector<16x1xf32>
    %cst_7 = arith.constant 1.280000e+02 : f32
    %12 = vector.broadcast %cst_7 : f32 to vector<16x1xf32>
    %13 = arith.divf %11, %12 : vector<16x1xf32>
    %14 = vector.broadcast %6 : vector<16x1xf32> to vector<16x128xf32>
    %15 = arith.subf %0, %14 : vector<16x128xf32>
    %cst_8 = arith.constant 9.99999974E-6 : f32
    %16 = vector.broadcast %cst_8 : f32 to vector<16x1xf32>
    %17 = arith.addf %13, %16 : vector<16x1xf32>
    %18 = math.rsqrt %17 : vector<16x1xf32>
    %19 = vector.broadcast %18 : vector<16x1xf32> to vector<16x128xf32>
    %20 = arith.mulf %15, %19 : vector<16x128xf32>
    %21 = vector.broadcast %1 : vector<1x128xf32> to vector<16x128xf32>
    %22 = arith.mulf %20, %21 : vector<16x128xf32>
    %23 = vector.broadcast %2 : vector<1x128xf32> to vector<16x128xf32>
    %24 = arith.addf %22, %23 : vector<16x128xf32>
    %c0_9 = arith.constant 0 : index
    %c0_10 = arith.constant 0 : index
    %25 = vector.load %arg4[%c0_9, %c0_10] : memref<16x128xf32, #tpu.memory_space<vmem>>, vector<16x128xf32>
    tpu.vector_store %arg4[%c0_9, %c0_10], %24 {strides = array<i32>} : memref<16x128xf32, #tpu.memory_space<vmem>>, vector<16x128xf32>,
    return
  }
  func.func @transform_0(%arg0: i32) -> (i32, i32) {
    %c0_i32 = arith.constant 0 : i32
    %c0_i32_0 = arith.constant 0 : i32
    return %arg0, %c0_i32 : i32, i32
  }
  func.func @transform_1(%arg0: i32) -> (i32, i32) {
    %c0_i32 = arith.constant 0 : i32
    %c0_i32_0 = arith.constant 0 : i32
    %c0_i32_1 = arith.constant 0 : i32
    return %c0_i32, %c0_i32_0 : i32, i32
  }
  func.func @transform_2(%arg0: i32) -> (i32, i32) {
    %c0_i32 = arith.constant 0 : i32
    %c0_i32_0 = arith.constant 0 : i32
    %c0_i32_1 = arith.constant 0 : i32
    return %c0_i32, %c0_i32_0 : i32, i32
  }
  func.func @transform_3(%arg0: i32) -> (i32, i32) {
    %c0_i32 = arith.constant 0 : i32
    %c0_i32_0 = arith.constant 0 : i32
    return %arg0, %c0_i32 : i32, i32
  }
}

module attributes {stable_mosaic.version = 11 : i64} {
  func.func @_attn_block_kernel(%arg0: i32, %arg1: memref<1x8x384xf32, #tpu.memory_space<vmem>>, %arg2: memref<1x1x8xf32, #tpu.memory_space<vmem>>, %arg3: memref<1x8x128xf32, #tpu.memory_space<vmem>>, %arg4: memref<128x128xf32, #tpu.memory_space<vmem>>, %arg5: memref<1x128xf32, #tpu.memory_space<vmem>>, %arg6: memref<1x128xf32, #tpu.memory_space<vmem>>, %arg7: memref<1x128xf32, #tpu.memory_space<vmem>>, %arg8: memref<1x8x128xf32, #tpu.memory_space<vmem>>) attributes {dimension_semantics = [#tpu.dimension_semantics<parallel>], iteration_bounds = array<i64: 2>, scalar_prefetch = 0 : i64, scratch_operands = 0 : i64, tpu.core_type = #tpu.core_type<tc>, window_params = [{transform_indices = @transform_0, window_bounds = array<i64: 1, 8, 384>}, {transform_indices = @transform_1, window_bounds = array<i64: 1, 1, 8>}, {transform_indices = @transform_2, window_bounds = array<i64: 1, 8, 128>}, {pipeline_mode = #tpu.pipeline_mode<synchronous>, transform_indices = @transform_3, window_bounds = array<i64: 128, 128>}, {pipeline_mode = #tpu.pipeline_mode<synchronous>, transform_indices = @transform_4, window_bounds = array<i64: 1, 128>}, {pipeline_mode = #tpu.pipeline_mode<synchronous>, transform_indices = @transform_5, window_bounds = array<i64: 1, 128>}, {pipeline_mode = #tpu.pipeline_mode<synchronous>, transform_indices = @transform_6, window_bounds = array<i64: 1, 128>}, {transform_indices = @transform_7, window_bounds = array<i64: 1, 8, 128>}]} {
    %c0 = arith.constant 0 : index
    %c0_0 = arith.constant 0 : index
    %c0_1 = arith.constant 0 : index
    %0 = vector.load %arg1[%c0, %c0_0, %c0_1] : memref<1x8x384xf32, #tpu.memory_space<vmem>>, vector<1x8x384xf32>
    %1 = vector.shape_cast %0 : vector<1x8x384xf32> to vector<8x384xf32>
    %c0_2 = arith.constant 0 : index
    %c0_3 = arith.constant 0 : index
    %c0_4 = arith.constant 0 : index
    %2 = vector.load %arg2[%c0_2, %c0_3, %c0_4] : memref<1x1x8xf32, #tpu.memory_space<vmem>>, vector<1x1x8xf32>
    %3 = vector.shape_cast %2 : vector<1x1x8xf32> to vector<1x8xf32>
    %4 = vector.extract_strided_slice %1 {offsets = [0, 0], sizes = [8, 128], strides = [1, 1]} : vector<8x384xf32> to vector<8x128xf32>
    %5 = vector.extract_strided_slice %1 {offsets = [0, 128], sizes = [8, 128], strides = [1, 1]} : vector<8x384xf32> to vector<8x128xf32>
    %6 = vector.extract_strided_slice %1 {offsets = [0, 256], sizes = [8, 128], strides = [1, 1]} : vector<8x384xf32> to vector<8x128xf32>
    %7 = vector.extract_strided_slice %4 {offsets = [0, 0], sizes = [8, 32], strides = [1, 1]} : vector<8x128xf32> to vector<8x32xf32>
    %8 = vector.extract_strided_slice %5 {offsets = [0, 0], sizes = [8, 32], strides = [1, 1]} : vector<8x128xf32> to vector<8x32xf32>
    %9 = vector.extract_strided_slice %6 {offsets = [0, 0], sizes = [8, 32], strides = [1, 1]} : vector<8x128xf32> to vector<8x32xf32>
    %cst = arith.constant dense<0.000000e+00> : vector<8x8xf32>
    %10 = tpu.matmul %7, %8, %cst {dimension_numbers = #tpu.dot_dimension_numbers<[1], [1], [0], [0], [0, 0, 1, 0], [], []>} : vector<8x32xf32>, vector<8x32xf32>, vector<8x8xf32> -> vector<8x8xf32>
    %cst_5 = arith.constant 0.176776692 : f32
    %11 = vector.broadcast %cst_5 : f32 to vector<8x8xf32>
    %12 = arith.mulf %10, %11 : vector<8x8xf32>
    %13 = vector.broadcast %3 : vector<1x8xf32> to vector<8x8xf32>
    %14 = arith.addf %12, %13 : vector<8x8xf32>
    %cst_6 = arith.constant dense<0xFF800000> : vector<8xf32>
    %15 = vector.multi_reduction <maximumf>, %14, %cst_6 [1] : vector<8x8xf32> to vector<8xf32>
    %16 = vector.shape_cast %15 : vector<8xf32> to vector<8x1xf32>
    %17 = vector.broadcast %16 : vector<8x1xf32> to vector<8x8xf32>
    %18 = arith.subf %14, %17 : vector<8x8xf32>
    %19 = math.exp %18 : vector<8x8xf32>
    %cst_7 = arith.constant dense<0.000000e+00> : vector<8xf32>
    %20 = vector.multi_reduction <add>, %19, %cst_7 [1] : vector<8x8xf32> to vector<8xf32>
    %21 = vector.shape_cast %20 : vector<8xf32> to vector<8x1xf32>
    %22 = tpu.reciprocal %21 {approx = true} : vector<8x1xf32> -> vector<8x1xf32>
    %23 = vector.broadcast %22 : vector<8x1xf32> to vector<8x8xf32>
    %24 = arith.mulf %19, %23 : vector<8x8xf32>
    %cst_8 = arith.constant dense<0.000000e+00> : vector<8x32xf32>
    %25 = tpu.matmul %24, %9, %cst_8 {dimension_numbers = #tpu.dot_dimension_numbers<[1], [0], [0], [1], [0, 0, 1, 1], [], []>} : vector<8x8xf32>, vector<8x32xf32>, vector<8x32xf32> -> vector<8x32xf32>
    %26 = vector.extract_strided_slice %4 {offsets = [0, 32], sizes = [8, 32], strides = [1, 1]} : vector<8x128xf32> to vector<8x32xf32>
    %27 = vector.extract_strided_slice %5 {offsets = [0, 32], sizes = [8, 32], strides = [1, 1]} : vector<8x128xf32> to vector<8x32xf32>
    %28 = vector.extract_strided_slice %6 {offsets = [0, 32], sizes = [8, 32], strides = [1, 1]} : vector<8x128xf32> to vector<8x32xf32>
    %cst_9 = arith.constant dense<0.000000e+00> : vector<8x8xf32>
    %29 = tpu.matmul %26, %27, %cst_9 {dimension_numbers = #tpu.dot_dimension_numbers<[1], [1], [0], [0], [0, 0, 1, 0], [], []>} : vector<8x32xf32>, vector<8x32xf32>, vector<8x8xf32> -> vector<8x8xf32>
    %cst_10 = arith.constant 0.176776692 : f32
    %30 = vector.broadcast %cst_10 : f32 to vector<8x8xf32>
    %31 = arith.mulf %29, %30 : vector<8x8xf32>
    %32 = vector.broadcast %3 : vector<1x8xf32> to vector<8x8xf32>
    %33 = arith.addf %31, %32 : vector<8x8xf32>
    %cst_11 = arith.constant dense<0xFF800000> : vector<8xf32>
    %34 = vector.multi_reduction <maximumf>, %33, %cst_11 [1] : vector<8x8xf32> to vector<8xf32>
    %35 = vector.shape_cast %34 : vector<8xf32> to vector<8x1xf32>
    %36 = vector.broadcast %35 : vector<8x1xf32> to vector<8x8xf32>
    %37 = arith.subf %33, %36 : vector<8x8xf32>
    %38 = math.exp %37 : vector<8x8xf32>
    %cst_12 = arith.constant dense<0.000000e+00> : vector<8xf32>
    %39 = vector.multi_reduction <add>, %38, %cst_12 [1] : vector<8x8xf32> to vector<8xf32>
    %40 = vector.shape_cast %39 : vector<8xf32> to vector<8x1xf32>
    %41 = tpu.reciprocal %40 {approx = true} : vector<8x1xf32> -> vector<8x1xf32>
    %42 = vector.broadcast %41 : vector<8x1xf32> to vector<8x8xf32>
    %43 = arith.mulf %38, %42 : vector<8x8xf32>
    %cst_13 = arith.constant dense<0.000000e+00> : vector<8x32xf32>
    %44 = tpu.matmul %43, %28, %cst_13 {dimension_numbers = #tpu.dot_dimension_numbers<[1], [0], [0], [1], [0, 0, 1, 1], [], []>} : vector<8x8xf32>, vector<8x32xf32>, vector<8x32xf32> -> vector<8x32xf32>
    %45 = vector.extract_strided_slice %4 {offsets = [0, 64], sizes = [8, 32], strides = [1, 1]} : vector<8x128xf32> to vector<8x32xf32>
    %46 = vector.extract_strided_slice %5 {offsets = [0, 64], sizes = [8, 32], strides = [1, 1]} : vector<8x128xf32> to vector<8x32xf32>
    %47 = vector.extract_strided_slice %6 {offsets = [0, 64], sizes = [8, 32], strides = [1, 1]} : vector<8x128xf32> to vector<8x32xf32>
    %cst_14 = arith.constant dense<0.000000e+00> : vector<8x8xf32>
    %48 = tpu.matmul %45, %46, %cst_14 {dimension_numbers = #tpu.dot_dimension_numbers<[1], [1], [0], [0], [0, 0, 1, 0], [], []>} : vector<8x32xf32>, vector<8x32xf32>, vector<8x8xf32> -> vector<8x8xf32>
    %cst_15 = arith.constant 0.176776692 : f32
    %49 = vector.broadcast %cst_15 : f32 to vector<8x8xf32>
    %50 = arith.mulf %48, %49 : vector<8x8xf32>
    %51 = vector.broadcast %3 : vector<1x8xf32> to vector<8x8xf32>
    %52 = arith.addf %50, %51 : vector<8x8xf32>
    %cst_16 = arith.constant dense<0xFF800000> : vector<8xf32>
    %53 = vector.multi_reduction <maximumf>, %52, %cst_16 [1] : vector<8x8xf32> to vector<8xf32>
    %54 = vector.shape_cast %53 : vector<8xf32> to vector<8x1xf32>
    %55 = vector.broadcast %54 : vector<8x1xf32> to vector<8x8xf32>
    %56 = arith.subf %52, %55 : vector<8x8xf32>
    %57 = math.exp %56 : vector<8x8xf32>
    %cst_17 = arith.constant dense<0.000000e+00> : vector<8xf32>
    %58 = vector.multi_reduction <add>, %57, %cst_17 [1] : vector<8x8xf32> to vector<8xf32>
    %59 = vector.shape_cast %58 : vector<8xf32> to vector<8x1xf32>
    %60 = tpu.reciprocal %59 {approx = true} : vector<8x1xf32> -> vector<8x1xf32>
    %61 = vector.broadcast %60 : vector<8x1xf32> to vector<8x8xf32>
    %62 = arith.mulf %57, %61 : vector<8x8xf32>
    %cst_18 = arith.constant dense<0.000000e+00> : vector<8x32xf32>
    %63 = tpu.matmul %62, %47, %cst_18 {dimension_numbers = #tpu.dot_dimension_numbers<[1], [0], [0], [1], [0, 0, 1, 1], [], []>} : vector<8x8xf32>, vector<8x32xf32>, vector<8x32xf32> -> vector<8x32xf32>
    %64 = vector.extract_strided_slice %4 {offsets = [0, 96], sizes = [8, 32], strides = [1, 1]} : vector<8x128xf32> to vector<8x32xf32>
    %65 = vector.extract_strided_slice %5 {offsets = [0, 96], sizes = [8, 32], strides = [1, 1]} : vector<8x128xf32> to vector<8x32xf32>
    %66 = vector.extract_strided_slice %6 {offsets = [0, 96], sizes = [8, 32], strides = [1, 1]} : vector<8x128xf32> to vector<8x32xf32>
    %cst_19 = arith.constant dense<0.000000e+00> : vector<8x8xf32>
    %67 = tpu.matmul %64, %65, %cst_19 {dimension_numbers = #tpu.dot_dimension_numbers<[1], [1], [0], [0], [0, 0, 1, 0], [], []>} : vector<8x32xf32>, vector<8x32xf32>, vector<8x8xf32> -> vector<8x8xf32>
    %cst_20 = arith.constant 0.176776692 : f32
    %68 = vector.broadcast %cst_20 : f32 to vector<8x8xf32>
    %69 = arith.mulf %67, %68 : vector<8x8xf32>
    %70 = vector.broadcast %3 : vector<1x8xf32> to vector<8x8xf32>
    %71 = arith.addf %69, %70 : vector<8x8xf32>
    %cst_21 = arith.constant dense<0xFF800000> : vector<8xf32>
    %72 = vector.multi_reduction <maximumf>, %71, %cst_21 [1] : vector<8x8xf32> to vector<8xf32>
    %73 = vector.shape_cast %72 : vector<8xf32> to vector<8x1xf32>
    %74 = vector.broadcast %73 : vector<8x1xf32> to vector<8x8xf32>
    %75 = arith.subf %71, %74 : vector<8x8xf32>
    %76 = math.exp %75 : vector<8x8xf32>
    %cst_22 = arith.constant dense<0.000000e+00> : vector<8xf32>
    %77 = vector.multi_reduction <add>, %76, %cst_22 [1] : vector<8x8xf32> to vector<8xf32>
    %78 = vector.shape_cast %77 : vector<8xf32> to vector<8x1xf32>
    %79 = tpu.reciprocal %78 {approx = true} : vector<8x1xf32> -> vector<8x1xf32>
    %80 = vector.broadcast %79 : vector<8x1xf32> to vector<8x8xf32>
    %81 = arith.mulf %76, %80 : vector<8x8xf32>
    %cst_23 = arith.constant dense<0.000000e+00> : vector<8x32xf32>
    %82 = tpu.matmul %81, %66, %cst_23 {dimension_numbers = #tpu.dot_dimension_numbers<[1], [0], [0], [1], [0, 0, 1, 1], [], []>} : vector<8x8xf32>, vector<8x32xf32>, vector<8x32xf32> -> vector<8x32xf32>
    %83 = tpu.concatenate %25, %44, %63, %82 in 1 : vector<8x32xf32>, vector<8x32xf32>, vector<8x32xf32>, vector<8x32xf32> -> vector<8x128xf32>
    %c0_24 = arith.constant 0 : index
    %c0_25 = arith.constant 0 : index
    %84 = vector.load %arg4[%c0_24, %c0_25] : memref<128x128xf32, #tpu.memory_space<vmem>>, vector<128x128xf32>
    %cst_26 = arith.constant dense<0.000000e+00> : vector<8x128xf32>
    %85 = tpu.matmul %83, %84, %cst_26 {dimension_numbers = #tpu.dot_dimension_numbers<[1], [0], [0], [1], [0, 0, 1, 1], [], []>} : vector<8x128xf32>, vector<128x128xf32>, vector<8x128xf32> -> vector<8x128xf32>
    %c0_27 = arith.constant 0 : index
    %c0_28 = arith.constant 0 : index
    %86 = vector.load %arg5[%c0_27, %c0_28] : memref<1x128xf32, #tpu.memory_space<vmem>>, vector<1x128xf32>
    %87 = vector.broadcast %86 : vector<1x128xf32> to vector<8x128xf32>
    %88 = arith.addf %85, %87 : vector<8x128xf32>
    %c0_29 = arith.constant 0 : index
    %c0_30 = arith.constant 0 : index
    %c0_31 = arith.constant 0 : index
    %89 = vector.load %arg3[%c0_29, %c0_30, %c0_31] : memref<1x8x128xf32, #tpu.memory_space<vmem>>, vector<1x8x128xf32>
    %90 = vector.shape_cast %89 : vector<1x8x128xf32> to vector<8x128xf32>
    %91 = arith.addf %88, %90 : vector<8x128xf32>
    %c0_32 = arith.constant 0 : index
    %c0_33 = arith.constant 0 : index
    %92 = vector.load %arg6[%c0_32, %c0_33] : memref<1x128xf32, #tpu.memory_space<vmem>>, vector<1x128xf32>
    %c0_34 = arith.constant 0 : index
    %c0_35 = arith.constant 0 : index
    %93 = vector.load %arg7[%c0_34, %c0_35] : memref<1x128xf32, #tpu.memory_space<vmem>>, vector<1x128xf32>
    %cst_36 = arith.constant dense<0.000000e+00> : vector<8xf32>
    %94 = vector.multi_reduction <add>, %91, %cst_36 [1] : vector<8x128xf32> to vector<8xf32>
    %95 = vector.shape_cast %94 : vector<8xf32> to vector<8x1xf32>
    %cst_37 = arith.constant 1.280000e+02 : f32
    %96 = vector.broadcast %cst_37 : f32 to vector<8x1xf32>
    %97 = arith.divf %95, %96 : vector<8x1xf32>
    %98 = vector.broadcast %97 : vector<8x1xf32> to vector<8x128xf32>
    %99 = arith.subf %91, %98 : vector<8x128xf32>
    %100 = arith.mulf %99, %99 : vector<8x128xf32>
    %cst_38 = arith.constant dense<0.000000e+00> : vector<8xf32>
    %101 = vector.multi_reduction <add>, %100, %cst_38 [1] : vector<8x128xf32> to vector<8xf32>
    %102 = vector.shape_cast %101 : vector<8xf32> to vector<8x1xf32>
    %cst_39 = arith.constant 1.280000e+02 : f32
    %103 = vector.broadcast %cst_39 : f32 to vector<8x1xf32>
    %104 = arith.divf %102, %103 : vector<8x1xf32>
    %105 = vector.broadcast %97 : vector<8x1xf32> to vector<8x128xf32>
    %106 = arith.subf %91, %105 : vector<8x128xf32>
    %cst_40 = arith.constant 9.99999974E-6 : f32
    %107 = vector.broadcast %cst_40 : f32 to vector<8x1xf32>
    %108 = arith.addf %104, %107 : vector<8x1xf32>
    %109 = math.rsqrt %108 : vector<8x1xf32>
    %110 = vector.broadcast %109 : vector<8x1xf32> to vector<8x128xf32>
    %111 = arith.mulf %106, %110 : vector<8x128xf32>
    %112 = vector.broadcast %92 : vector<1x128xf32> to vector<8x128xf32>
    %113 = arith.mulf %111, %112 : vector<8x128xf32>
    %114 = vector.broadcast %93 : vector<1x128xf32> to vector<8x128xf32>
    %115 = arith.addf %113, %114 : vector<8x128xf32>
    %c0_41 = arith.constant 0 : index
    %c0_42 = arith.constant 0 : index
    %c0_43 = arith.constant 0 : index
    %116 = vector.load %arg8[%c0_41, %c0_42, %c0_43] : memref<1x8x128xf32, #tpu.memory_space<vmem>>, vector<1x8x128xf32>
    %117 = vector.shape_cast %116 : vector<1x8x128xf32> to vector<8x128xf32>
    %118 = vector.shape_cast %115 : vector<8x128xf32> to vector<1x8x128xf32>
    tpu.vector_store %arg8[%c0_41, %c0_42, %c0_43], %118 {strides = array<i32>} : memref<1x8x128xf32, #tpu.memory_space<vmem>>, vector<1x8x128xf32>,
    return
  }
  func.func @transform_0(%arg0: i32) -> (i32, i32, i32) {
    %c0_i32 = arith.constant 0 : i32
    %c0_i32_0 = arith.constant 0 : i32
    %c0_i32_1 = arith.constant 0 : i32
    return %arg0, %c0_i32, %c0_i32_0 : i32, i32, i32
  }
  func.func @transform_1(%arg0: i32) -> (i32, i32, i32) {
    %c0_i32 = arith.constant 0 : i32
    %c0_i32_0 = arith.constant 0 : i32
    %c0_i32_1 = arith.constant 0 : i32
    return %arg0, %c0_i32, %c0_i32_0 : i32, i32, i32
  }
  func.func @transform_2(%arg0: i32) -> (i32, i32, i32) {
    %c0_i32 = arith.constant 0 : i32
    %c0_i32_0 = arith.constant 0 : i32
    %c0_i32_1 = arith.constant 0 : i32
    return %arg0, %c0_i32, %c0_i32_0 : i32, i32, i32
  }
  func.func @transform_3(%arg0: i32) -> (i32, i32) {
    %c0_i32 = arith.constant 0 : i32
    %c0_i32_0 = arith.constant 0 : i32
    %c0_i32_1 = arith.constant 0 : i32
    return %c0_i32, %c0_i32_0 : i32, i32
  }
  func.func @transform_4(%arg0: i32) -> (i32, i32) {
    %c0_i32 = arith.constant 0 : i32
    %c0_i32_0 = arith.constant 0 : i32
    %c0_i32_1 = arith.constant 0 : i32
    return %c0_i32, %c0_i32_0 : i32, i32
  }
  func.func @transform_5(%arg0: i32) -> (i32, i32) {
    %c0_i32 = arith.constant 0 : i32
    %c0_i32_0 = arith.constant 0 : i32
    %c0_i32_1 = arith.constant 0 : i32
    return %c0_i32, %c0_i32_0 : i32, i32
  }
  func.func @transform_6(%arg0: i32) -> (i32, i32) {
    %c0_i32 = arith.constant 0 : i32
    %c0_i32_0 = arith.constant 0 : i32
    %c0_i32_1 = arith.constant 0 : i32
    return %c0_i32, %c0_i32_0 : i32, i32
  }
  func.func @transform_7(%arg0: i32) -> (i32, i32, i32) {
    %c0_i32 = arith.constant 0 : i32
    %c0_i32_0 = arith.constant 0 : i32
    %c0_i32_1 = arith.constant 0 : i32
    return %arg0, %c0_i32, %c0_i32_0 : i32, i32, i32
  }
}

module attributes {stable_mosaic.version = 11 : i64} {
  func.func @_ffn_kernel(%arg0: i32, %arg1: memref<16x128xf32, #tpu.memory_space<vmem>>, %arg2: memref<128x256xf32, #tpu.memory_space<vmem>>, %arg3: memref<1x256xf32, #tpu.memory_space<vmem>>, %arg4: memref<256x128xf32, #tpu.memory_space<vmem>>, %arg5: memref<1x128xf32, #tpu.memory_space<vmem>>, %arg6: memref<1x128xf32, #tpu.memory_space<vmem>>, %arg7: memref<1x128xf32, #tpu.memory_space<vmem>>, %arg8: memref<16x128xf32, #tpu.memory_space<vmem>>) attributes {dimension_semantics = [#tpu.dimension_semantics<parallel>], iteration_bounds = array<i64: 1>, scalar_prefetch = 0 : i64, scratch_operands = 0 : i64, tpu.core_type = #tpu.core_type<tc>, window_params = [{transform_indices = @transform_0, window_bounds = array<i64: 16, 128>}, {pipeline_mode = #tpu.pipeline_mode<synchronous>, transform_indices = @transform_1, window_bounds = array<i64: 128, 256>}, {pipeline_mode = #tpu.pipeline_mode<synchronous>, transform_indices = @transform_2, window_bounds = array<i64: 1, 256>}, {pipeline_mode = #tpu.pipeline_mode<synchronous>, transform_indices = @transform_3, window_bounds = array<i64: 256, 128>}, {pipeline_mode = #tpu.pipeline_mode<synchronous>, transform_indices = @transform_4, window_bounds = array<i64: 1, 128>}, {pipeline_mode = #tpu.pipeline_mode<synchronous>, transform_indices = @transform_5, window_bounds = array<i64: 1, 128>}, {pipeline_mode = #tpu.pipeline_mode<synchronous>, transform_indices = @transform_6, window_bounds = array<i64: 1, 128>}, {transform_indices = @transform_7, window_bounds = array<i64: 16, 128>}]} {
    %c0 = arith.constant 0 : index
    %c0_0 = arith.constant 0 : index
    %0 = vector.load %arg1[%c0, %c0_0] : memref<16x128xf32, #tpu.memory_space<vmem>>, vector<16x128xf32>
    %c0_1 = arith.constant 0 : index
    %c0_2 = arith.constant 0 : index
    %1 = vector.load %arg2[%c0_1, %c0_2] : memref<128x256xf32, #tpu.memory_space<vmem>>, vector<128x256xf32>
    %cst = arith.constant dense<0.000000e+00> : vector<16x256xf32>
    %2 = tpu.matmul %0, %1, %cst {dimension_numbers = #tpu.dot_dimension_numbers<[1], [0], [0], [1], [0, 0, 1, 1], [], []>} : vector<16x128xf32>, vector<128x256xf32>, vector<16x256xf32> -> vector<16x256xf32>
    %c0_3 = arith.constant 0 : index
    %c0_4 = arith.constant 0 : index
    %3 = vector.load %arg3[%c0_3, %c0_4] : memref<1x256xf32, #tpu.memory_space<vmem>>, vector<1x256xf32>
    %4 = vector.broadcast %3 : vector<1x256xf32> to vector<16x256xf32>
    %5 = arith.addf %2, %4 : vector<16x256xf32>
    %6 = arith.mulf %5, %5 : vector<16x256xf32>
    %7 = arith.mulf %5, %6 : vector<16x256xf32>
    %cst_5 = arith.constant 4.471500e-02 : f32
    %8 = vector.broadcast %cst_5 : f32 to vector<16x256xf32>
    %9 = arith.mulf %8, %7 : vector<16x256xf32>
    %10 = arith.addf %5, %9 : vector<16x256xf32>
    %cst_6 = arith.constant 0.797884583 : f32
    %11 = vector.broadcast %cst_6 : f32 to vector<16x256xf32>
    %12 = arith.mulf %11, %10 : vector<16x256xf32>
    %13 = math.tanh %12 : vector<16x256xf32>
    %cst_7 = arith.constant 1.000000e+00 : f32
    %14 = vector.broadcast %cst_7 : f32 to vector<16x256xf32>
    %15 = arith.addf %14, %13 : vector<16x256xf32>
    %cst_8 = arith.constant 5.000000e-01 : f32
    %16 = vector.broadcast %cst_8 : f32 to vector<16x256xf32>
    %17 = arith.mulf %16, %15 : vector<16x256xf32>
    %18 = arith.mulf %5, %17 : vector<16x256xf32>
    %c0_9 = arith.constant 0 : index
    %c0_10 = arith.constant 0 : index
    %19 = vector.load %arg4[%c0_9, %c0_10] : memref<256x128xf32, #tpu.memory_space<vmem>>, vector<256x128xf32>
    %cst_11 = arith.constant dense<0.000000e+00> : vector<16x128xf32>
    %20 = tpu.matmul %18, %19, %cst_11 {dimension_numbers = #tpu.dot_dimension_numbers<[1], [0], [0], [1], [0, 0, 1, 1], [], []>} : vector<16x256xf32>, vector<256x128xf32>, vector<16x128xf32> -> vector<16x128xf32>
    %c0_12 = arith.constant 0 : index
    %c0_13 = arith.constant 0 : index
    %21 = vector.load %arg5[%c0_12, %c0_13] : memref<1x128xf32, #tpu.memory_space<vmem>>, vector<1x128xf32>
    %22 = vector.broadcast %21 : vector<1x128xf32> to vector<16x128xf32>
    %23 = arith.addf %20, %22 : vector<16x128xf32>
    %24 = arith.addf %23, %0 : vector<16x128xf32>
    %c0_14 = arith.constant 0 : index
    %c0_15 = arith.constant 0 : index
    %25 = vector.load %arg6[%c0_14, %c0_15] : memref<1x128xf32, #tpu.memory_space<vmem>>, vector<1x128xf32>
    %c0_16 = arith.constant 0 : index
    %c0_17 = arith.constant 0 : index
    %26 = vector.load %arg7[%c0_16, %c0_17] : memref<1x128xf32, #tpu.memory_space<vmem>>, vector<1x128xf32>
    %cst_18 = arith.constant dense<0.000000e+00> : vector<16xf32>
    %27 = vector.multi_reduction <add>, %24, %cst_18 [1] : vector<16x128xf32> to vector<16xf32>
    %28 = vector.shape_cast %27 : vector<16xf32> to vector<16x1xf32>
    %cst_19 = arith.constant 1.280000e+02 : f32
    %29 = vector.broadcast %cst_19 : f32 to vector<16x1xf32>
    %30 = arith.divf %28, %29 : vector<16x1xf32>
    %31 = vector.broadcast %30 : vector<16x1xf32> to vector<16x128xf32>
    %32 = arith.subf %24, %31 : vector<16x128xf32>
    %33 = arith.mulf %32, %32 : vector<16x128xf32>
    %cst_20 = arith.constant dense<0.000000e+00> : vector<16xf32>
    %34 = vector.multi_reduction <add>, %33, %cst_20 [1] : vector<16x128xf32> to vector<16xf32>
    %35 = vector.shape_cast %34 : vector<16xf32> to vector<16x1xf32>
    %cst_21 = arith.constant 1.280000e+02 : f32
    %36 = vector.broadcast %cst_21 : f32 to vector<16x1xf32>
    %37 = arith.divf %35, %36 : vector<16x1xf32>
    %38 = vector.broadcast %30 : vector<16x1xf32> to vector<16x128xf32>
    %39 = arith.subf %24, %38 : vector<16x128xf32>
    %cst_22 = arith.constant 9.99999974E-6 : f32
    %40 = vector.broadcast %cst_22 : f32 to vector<16x1xf32>
    %41 = arith.addf %37, %40 : vector<16x1xf32>
    %42 = math.rsqrt %41 : vector<16x1xf32>
    %43 = vector.broadcast %42 : vector<16x1xf32> to vector<16x128xf32>
    %44 = arith.mulf %39, %43 : vector<16x128xf32>
    %45 = vector.broadcast %25 : vector<1x128xf32> to vector<16x128xf32>
    %46 = arith.mulf %44, %45 : vector<16x128xf32>
    %47 = vector.broadcast %26 : vector<1x128xf32> to vector<16x128xf32>
    %48 = arith.addf %46, %47 : vector<16x128xf32>
    %c0_23 = arith.constant 0 : index
    %c0_24 = arith.constant 0 : index
    %49 = vector.load %arg8[%c0_23, %c0_24] : memref<16x128xf32, #tpu.memory_space<vmem>>, vector<16x128xf32>
    tpu.vector_store %arg8[%c0_23, %c0_24], %48 {strides = array<i32>} : memref<16x128xf32, #tpu.memory_space<vmem>>, vector<16x128xf32>,
    return
  }
  func.func @transform_0(%arg0: i32) -> (i32, i32) {
    %c0_i32 = arith.constant 0 : i32
    %c0_i32_0 = arith.constant 0 : i32
    return %arg0, %c0_i32 : i32, i32
  }
  func.func @transform_1(%arg0: i32) -> (i32, i32) {
    %c0_i32 = arith.constant 0 : i32
    %c0_i32_0 = arith.constant 0 : i32
    %c0_i32_1 = arith.constant 0 : i32
    return %c0_i32, %c0_i32_0 : i32, i32
  }
  func.func @transform_2(%arg0: i32) -> (i32, i32) {
    %c0_i32 = arith.constant 0 : i32
    %c0_i32_0 = arith.constant 0 : i32
    %c0_i32_1 = arith.constant 0 : i32
    return %c0_i32, %c0_i32_0 : i32, i32
  }
  func.func @transform_3(%arg0: i32) -> (i32, i32) {
    %c0_i32 = arith.constant 0 : i32
    %c0_i32_0 = arith.constant 0 : i32
    %c0_i32_1 = arith.constant 0 : i32
    return %c0_i32, %c0_i32_0 : i32, i32
  }
  func.func @transform_4(%arg0: i32) -> (i32, i32) {
    %c0_i32 = arith.constant 0 : i32
    %c0_i32_0 = arith.constant 0 : i32
    %c0_i32_1 = arith.constant 0 : i32
    return %c0_i32, %c0_i32_0 : i32, i32
  }
  func.func @transform_5(%arg0: i32) -> (i32, i32) {
    %c0_i32 = arith.constant 0 : i32
    %c0_i32_0 = arith.constant 0 : i32
    %c0_i32_1 = arith.constant 0 : i32
    return %c0_i32, %c0_i32_0 : i32, i32
  }
  func.func @transform_6(%arg0: i32) -> (i32, i32) {
    %c0_i32 = arith.constant 0 : i32
    %c0_i32_0 = arith.constant 0 : i32
    %c0_i32_1 = arith.constant 0 : i32
    return %c0_i32, %c0_i32_0 : i32, i32
  }
  func.func @transform_7(%arg0: i32) -> (i32, i32) {
    %c0_i32 = arith.constant 0 : i32
    %c0_i32_0 = arith.constant 0 : i32
    return %arg0, %c0_i32 : i32, i32
  }
}

module attributes {stable_mosaic.version = 11 : i64} {
  func.func @_ffn_kernel(%arg0: i32, %arg1: memref<16x128xf32, #tpu.memory_space<vmem>>, %arg2: memref<128x256xf32, #tpu.memory_space<vmem>>, %arg3: memref<1x256xf32, #tpu.memory_space<vmem>>, %arg4: memref<256x128xf32, #tpu.memory_space<vmem>>, %arg5: memref<1x128xf32, #tpu.memory_space<vmem>>, %arg6: memref<1x128xf32, #tpu.memory_space<vmem>>, %arg7: memref<1x128xf32, #tpu.memory_space<vmem>>, %arg8: memref<16x128xf32, #tpu.memory_space<vmem>>) attributes {dimension_semantics = [#tpu.dimension_semantics<parallel>], iteration_bounds = array<i64: 1>, scalar_prefetch = 0 : i64, scratch_operands = 0 : i64, tpu.core_type = #tpu.core_type<tc>, window_params = [{transform_indices = @transform_0, window_bounds = array<i64: 16, 128>}, {pipeline_mode = #tpu.pipeline_mode<synchronous>, transform_indices = @transform_1, window_bounds = array<i64: 128, 256>}, {pipeline_mode = #tpu.pipeline_mode<synchronous>, transform_indices = @transform_2, window_bounds = array<i64: 1, 256>}, {pipeline_mode = #tpu.pipeline_mode<synchronous>, transform_indices = @transform_3, window_bounds = array<i64: 256, 128>}, {pipeline_mode = #tpu.pipeline_mode<synchronous>, transform_indices = @transform_4, window_bounds = array<i64: 1, 128>}, {pipeline_mode = #tpu.pipeline_mode<synchronous>, transform_indices = @transform_5, window_bounds = array<i64: 1, 128>}, {pipeline_mode = #tpu.pipeline_mode<synchronous>, transform_indices = @transform_6, window_bounds = array<i64: 1, 128>}, {transform_indices = @transform_7, window_bounds = array<i64: 16, 128>}]} {
    %c0 = arith.constant 0 : index
    %c0_0 = arith.constant 0 : index
    %0 = vector.load %arg1[%c0, %c0_0] : memref<16x128xf32, #tpu.memory_space<vmem>>, vector<16x128xf32>
    %c0_1 = arith.constant 0 : index
    %c0_2 = arith.constant 0 : index
    %1 = vector.load %arg2[%c0_1, %c0_2] : memref<128x256xf32, #tpu.memory_space<vmem>>, vector<128x256xf32>
    %cst = arith.constant dense<0.000000e+00> : vector<16x256xf32>
    %2 = tpu.matmul %0, %1, %cst {dimension_numbers = #tpu.dot_dimension_numbers<[1], [0], [0], [1], [0, 0, 1, 1], [], []>} : vector<16x128xf32>, vector<128x256xf32>, vector<16x256xf32> -> vector<16x256xf32>
    %c0_3 = arith.constant 0 : index
    %c0_4 = arith.constant 0 : index
    %3 = vector.load %arg3[%c0_3, %c0_4] : memref<1x256xf32, #tpu.memory_space<vmem>>, vector<1x256xf32>
    %4 = vector.broadcast %3 : vector<1x256xf32> to vector<16x256xf32>
    %5 = arith.addf %2, %4 : vector<16x256xf32>
    %6 = arith.mulf %5, %5 : vector<16x256xf32>
    %7 = arith.mulf %5, %6 : vector<16x256xf32>
    %cst_5 = arith.constant 4.471500e-02 : f32
    %8 = vector.broadcast %cst_5 : f32 to vector<16x256xf32>
    %9 = arith.mulf %8, %7 : vector<16x256xf32>
    %10 = arith.addf %5, %9 : vector<16x256xf32>
    %cst_6 = arith.constant 0.797884583 : f32
    %11 = vector.broadcast %cst_6 : f32 to vector<16x256xf32>
    %12 = arith.mulf %11, %10 : vector<16x256xf32>
    %13 = math.tanh %12 : vector<16x256xf32>
    %cst_7 = arith.constant 1.000000e+00 : f32
    %14 = vector.broadcast %cst_7 : f32 to vector<16x256xf32>
    %15 = arith.addf %14, %13 : vector<16x256xf32>
    %cst_8 = arith.constant 5.000000e-01 : f32
    %16 = vector.broadcast %cst_8 : f32 to vector<16x256xf32>
    %17 = arith.mulf %16, %15 : vector<16x256xf32>
    %18 = arith.mulf %5, %17 : vector<16x256xf32>
    %c0_9 = arith.constant 0 : index
    %c0_10 = arith.constant 0 : index
    %19 = vector.load %arg4[%c0_9, %c0_10] : memref<256x128xf32, #tpu.memory_space<vmem>>, vector<256x128xf32>
    %cst_11 = arith.constant dense<0.000000e+00> : vector<16x128xf32>
    %20 = tpu.matmul %18, %19, %cst_11 {dimension_numbers = #tpu.dot_dimension_numbers<[1], [0], [0], [1], [0, 0, 1, 1], [], []>} : vector<16x256xf32>, vector<256x128xf32>, vector<16x128xf32> -> vector<16x128xf32>
    %c0_12 = arith.constant 0 : index
    %c0_13 = arith.constant 0 : index
    %21 = vector.load %arg5[%c0_12, %c0_13] : memref<1x128xf32, #tpu.memory_space<vmem>>, vector<1x128xf32>
    %22 = vector.broadcast %21 : vector<1x128xf32> to vector<16x128xf32>
    %23 = arith.addf %20, %22 : vector<16x128xf32>
    %24 = arith.addf %23, %0 : vector<16x128xf32>
    %c0_14 = arith.constant 0 : index
    %c0_15 = arith.constant 0 : index
    %25 = vector.load %arg6[%c0_14, %c0_15] : memref<1x128xf32, #tpu.memory_space<vmem>>, vector<1x128xf32>
    %c0_16 = arith.constant 0 : index
    %c0_17 = arith.constant 0 : index
    %26 = vector.load %arg7[%c0_16, %c0_17] : memref<1x128xf32, #tpu.memory_space<vmem>>, vector<1x128xf32>
    %cst_18 = arith.constant dense<0.000000e+00> : vector<16xf32>
    %27 = vector.multi_reduction <add>, %24, %cst_18 [1] : vector<16x128xf32> to vector<16xf32>
    %28 = vector.shape_cast %27 : vector<16xf32> to vector<16x1xf32>
    %cst_19 = arith.constant 1.280000e+02 : f32
    %29 = vector.broadcast %cst_19 : f32 to vector<16x1xf32>
    %30 = arith.divf %28, %29 : vector<16x1xf32>
    %31 = vector.broadcast %30 : vector<16x1xf32> to vector<16x128xf32>
    %32 = arith.subf %24, %31 : vector<16x128xf32>
    %33 = arith.mulf %32, %32 : vector<16x128xf32>
    %cst_20 = arith.constant dense<0.000000e+00> : vector<16xf32>
    %34 = vector.multi_reduction <add>, %33, %cst_20 [1] : vector<16x128xf32> to vector<16xf32>
    %35 = vector.shape_cast %34 : vector<16xf32> to vector<16x1xf32>
    %cst_21 = arith.constant 1.280000e+02 : f32
    %36 = vector.broadcast %cst_21 : f32 to vector<16x1xf32>
    %37 = arith.divf %35, %36 : vector<16x1xf32>
    %38 = vector.broadcast %30 : vector<16x1xf32> to vector<16x128xf32>
    %39 = arith.subf %24, %38 : vector<16x128xf32>
    %cst_22 = arith.constant 9.99999974E-6 : f32
    %40 = vector.broadcast %cst_22 : f32 to vector<16x1xf32>
    %41 = arith.addf %37, %40 : vector<16x1xf32>
    %42 = math.rsqrt %41 : vector<16x1xf32>
    %43 = vector.broadcast %42 : vector<16x1xf32> to vector<16x128xf32>
    %44 = arith.mulf %39, %43 : vector<16x128xf32>
    %45 = vector.broadcast %25 : vector<1x128xf32> to vector<16x128xf32>
    %46 = arith.mulf %44, %45 : vector<16x128xf32>
    %47 = vector.broadcast %26 : vector<1x128xf32> to vector<16x128xf32>
    %48 = arith.addf %46, %47 : vector<16x128xf32>
    %c0_23 = arith.constant 0 : index
    %c0_24 = arith.constant 0 : index
    %49 = vector.load %arg8[%c0_23, %c0_24] : memref<16x128xf32, #tpu.memory_space<vmem>>, vector<16x128xf32>
    tpu.vector_store %arg8[%c0_23, %c0_24], %48 {strides = array<i32>} : memref<16x128xf32, #tpu.memory_space<vmem>>, vector<16x128xf32>,
    return
  }
  func.func @transform_0(%arg0: i32) -> (i32, i32) {
    %c0_i32 = arith.constant 0 : i32
    %c0_i32_0 = arith.constant 0 : i32
    return %arg0, %c0_i32 : i32, i32
  }
  func.func @transform_1(%arg0: i32) -> (i32, i32) {
    %c0_i32 = arith.constant 0 : i32
    %c0_i32_0 = arith.constant 0 : i32
    %c0_i32_1 = arith.constant 0 : i32
    return %c0_i32, %c0_i32_0 : i32, i32
  }
  func.func @transform_2(%arg0: i32) -> (i32, i32) {
    %c0_i32 = arith.constant 0 : i32
    %c0_i32_0 = arith.constant 0 : i32
    %c0_i32_1 = arith.constant 0 : i32
    return %c0_i32, %c0_i32_0 : i32, i32
  }
  func.func @transform_3(%arg0: i32) -> (i32, i32) {
    %c0_i32 = arith.constant 0 : i32
    %c0_i32_0 = arith.constant 0 : i32
    %c0_i32_1 = arith.constant 0 : i32
    return %c0_i32, %c0_i32_0 : i32, i32
  }
  func.func @transform_4(%arg0: i32) -> (i32, i32) {
    %c0_i32 = arith.constant 0 : i32
    %c0_i32_0 = arith.constant 0 : i32
    %c0_i32_1 = arith.constant 0 : i32
    return %c0_i32, %c0_i32_0 : i32, i32
  }
  func.func @transform_5(%arg0: i32) -> (i32, i32) {
    %c0_i32 = arith.constant 0 : i32
    %c0_i32_0 = arith.constant 0 : i32
    %c0_i32_1 = arith.constant 0 : i32
    return %c0_i32, %c0_i32_0 : i32, i32
  }
  func.func @transform_6(%arg0: i32) -> (i32, i32) {
    %c0_i32 = arith.constant 0 : i32
    %c0_i32_0 = arith.constant 0 : i32
    %c0_i32_1 = arith.constant 0 : i32
    return %c0_i32, %c0_i32_0 : i32, i32
  }
  func.func @transform_7(%arg0: i32) -> (i32, i32) {
    %c0_i32 = arith.constant 0 : i32
    %c0_i32_0 = arith.constant 0 : i32
    return %arg0, %c0_i32 : i32, i32
  }
}

module attributes {stable_mosaic.version = 11 : i64} {
  func.func @_bilstm_head_kernel(%arg0: memref<16x128xf32, #tpu.memory_space<vmem>>, %arg1: memref<128x1024xf32, #tpu.memory_space<vmem>>, %arg2: memref<1x1024xf32, #tpu.memory_space<vmem>>, %arg3: memref<128x512xf32, #tpu.memory_space<vmem>>, %arg4: memref<128x512xf32, #tpu.memory_space<vmem>>, %arg5: memref<256x3xf32, #tpu.memory_space<vmem>>, %arg6: memref<1x3xf32, #tpu.memory_space<vmem>>, %arg7: memref<2x3xf32, #tpu.memory_space<vmem>>, %arg8: memref<16x1024xf32, #tpu.memory_space<vmem>>) attributes {dimension_semantics = [], scalar_prefetch = 0 : i64, scratch_operands = 1 : i64, tpu.core_type = #tpu.core_type<tc>} {
    %c0 = arith.constant 0 : index
    %c0_0 = arith.constant 0 : index
    %0 = vector.load %arg0[%c0, %c0_0] : memref<16x128xf32, #tpu.memory_space<vmem>>, vector<16x128xf32>
    %c0_1 = arith.constant 0 : index
    %c0_2 = arith.constant 0 : index
    %1 = vector.load %arg1[%c0_1, %c0_2] : memref<128x1024xf32, #tpu.memory_space<vmem>>, vector<128x1024xf32>
    %cst = arith.constant dense<0.000000e+00> : vector<16x1024xf32>
    %2 = tpu.matmul %0, %1, %cst {dimension_numbers = #tpu.dot_dimension_numbers<[1], [0], [0], [1], [0, 0, 1, 1], [], []>} : vector<16x128xf32>, vector<128x1024xf32>, vector<16x1024xf32> -> vector<16x1024xf32>
    %c0_3 = arith.constant 0 : index
    %c0_4 = arith.constant 0 : index
    %3 = vector.load %arg2[%c0_3, %c0_4] : memref<1x1024xf32, #tpu.memory_space<vmem>>, vector<1x1024xf32>
    %4 = vector.broadcast %3 : vector<1x1024xf32> to vector<16x1024xf32>
    %5 = arith.addf %2, %4 : vector<16x1024xf32>
    %c0_5 = arith.constant 0 : index
    %c0_6 = arith.constant 0 : index
    %6 = vector.load %arg8[%c0_5, %c0_6] : memref<16x1024xf32, #tpu.memory_space<vmem>>, vector<16x1024xf32>
    tpu.vector_store %arg8[%c0_5, %c0_6], %5 {strides = array<i32>} : memref<16x1024xf32, #tpu.memory_space<vmem>>, vector<16x1024xf32>,
    %c0_7 = arith.constant 0 : index
    %c0_8 = arith.constant 0 : index
    %7 = vector.load %arg3[%c0_7, %c0_8] : memref<128x512xf32, #tpu.memory_space<vmem>>, vector<128x512xf32>
    %c0_9 = arith.constant 0 : index
    %c0_10 = arith.constant 0 : index
    %8 = vector.load %arg4[%c0_9, %c0_10] : memref<128x512xf32, #tpu.memory_space<vmem>>, vector<128x512xf32>
    %cst_11 = arith.constant 0.000000e+00 : f32
    %9 = vector.broadcast %cst_11 : f32 to vector<2x128xf32>
    %c0_12 = arith.constant 0 : index
    %c0_13 = arith.constant 0 : index
    %10 = vector.load %arg8[%c0_12, %c0_13] : memref<16x1024xf32, #tpu.memory_space<vmem>>, vector<2x512xf32>
    %c14 = arith.constant 14 : index
    %c512 = arith.constant 512 : index
    %11 = vector.load %arg8[%c14, %c512] : memref<16x1024xf32, #tpu.memory_space<vmem>>, vector<2x512xf32>
    %cst_14 = arith.constant dense<0.000000e+00> : vector<2x512xf32>
    %12 = tpu.matmul %9, %7, %cst_14 {dimension_numbers = #tpu.dot_dimension_numbers<[1], [0], [0], [1], [0, 0, 1, 1], [], []>} : vector<2x128xf32>, vector<128x512xf32>, vector<2x512xf32> -> vector<2x512xf32>
    %13 = arith.addf %10, %12 : vector<2x512xf32>
    %14 = vector.extract_strided_slice %13 {offsets = [0, 0], sizes = [2, 128], strides = [1, 1]} : vector<2x512xf32> to vector<2x128xf32>
    %15 = arith.negf %14 : vector<2x128xf32>
    %16 = math.exp %15 : vector<2x128xf32>
    %cst_15 = arith.constant 1.000000e+00 : f32
    %17 = vector.broadcast %cst_15 : f32 to vector<2x128xf32>
    %18 = arith.addf %17, %16 : vector<2x128xf32>
    %19 = arith.divf %17, %18 : vector<2x128xf32>
    %20 = vector.extract_strided_slice %13 {offsets = [0, 128], sizes = [2, 128], strides = [1, 1]} : vector<2x512xf32> to vector<2x128xf32>
    %21 = arith.negf %20 : vector<2x128xf32>
    %22 = math.exp %21 : vector<2x128xf32>
    %cst_16 = arith.constant 1.000000e+00 : f32
    %23 = vector.broadcast %cst_16 : f32 to vector<2x128xf32>
    %24 = arith.addf %23, %22 : vector<2x128xf32>
    %25 = arith.divf %23, %24 : vector<2x128xf32>
    %26 = vector.extract_strided_slice %13 {offsets = [0, 256], sizes = [2, 128], strides = [1, 1]} : vector<2x512xf32> to vector<2x128xf32>
    %27 = math.tanh %26 : vector<2x128xf32>
    %28 = vector.extract_strided_slice %13 {offsets = [0, 384], sizes = [2, 128], strides = [1, 1]} : vector<2x512xf32> to vector<2x128xf32>
    %29 = arith.negf %28 : vector<2x128xf32>
    %30 = math.exp %29 : vector<2x128xf32>
    %cst_17 = arith.constant 1.000000e+00 : f32
    %31 = vector.broadcast %cst_17 : f32 to vector<2x128xf32>
    %32 = arith.addf %31, %30 : vector<2x128xf32>
    %33 = arith.divf %31, %32 : vector<2x128xf32>
    %34 = arith.mulf %25, %9 : vector<2x128xf32>
    %35 = arith.mulf %19, %27 : vector<2x128xf32>
    %36 = arith.addf %34, %35 : vector<2x128xf32>
    %37 = math.tanh %36 : vector<2x128xf32>
    %38 = arith.mulf %33, %37 : vector<2x128xf32>
    %cst_18 = arith.constant dense<0.000000e+00> : vector<2x512xf32>
    %39 = tpu.matmul %9, %8, %cst_18 {dimension_numbers = #tpu.dot_dimension_numbers<[1], [0], [0], [1], [0, 0, 1, 1], [], []>} : vector<2x128xf32>, vector<128x512xf32>, vector<2x512xf32> -> vector<2x512xf32>
    %40 = arith.addf %11, %39 : vector<2x512xf32>
    %41 = vector.extract_strided_slice %40 {offsets = [0, 0], sizes = [2, 128], strides = [1, 1]} : vector<2x512xf32> to vector<2x128xf32>
    %42 = arith.negf %41 : vector<2x128xf32>
    %43 = math.exp %42 : vector<2x128xf32>
    %cst_19 = arith.constant 1.000000e+00 : f32
    %44 = vector.broadcast %cst_19 : f32 to vector<2x128xf32>
    %45 = arith.addf %44, %43 : vector<2x128xf32>
    %46 = arith.divf %44, %45 : vector<2x128xf32>
    %47 = vector.extract_strided_slice %40 {offsets = [0, 128], sizes = [2, 128], strides = [1, 1]} : vector<2x512xf32> to vector<2x128xf32>
    %48 = arith.negf %47 : vector<2x128xf32>
    %49 = math.exp %48 : vector<2x128xf32>
    %cst_20 = arith.constant 1.000000e+00 : f32
    %50 = vector.broadcast %cst_20 : f32 to vector<2x128xf32>
    %51 = arith.addf %50, %49 : vector<2x128xf32>
    %52 = arith.divf %50, %51 : vector<2x128xf32>
    %53 = vector.extract_strided_slice %40 {offsets = [0, 256], sizes = [2, 128], strides = [1, 1]} : vector<2x512xf32> to vector<2x128xf32>
    %54 = math.tanh %53 : vector<2x128xf32>
    %55 = vector.extract_strided_slice %40 {offsets = [0, 384], sizes = [2, 128], strides = [1, 1]} : vector<2x512xf32> to vector<2x128xf32>
    %56 = arith.negf %55 : vector<2x128xf32>
    %57 = math.exp %56 : vector<2x128xf32>
    %cst_21 = arith.constant 1.000000e+00 : f32
    %58 = vector.broadcast %cst_21 : f32 to vector<2x128xf32>
    %59 = arith.addf %58, %57 : vector<2x128xf32>
    %60 = arith.divf %58, %59 : vector<2x128xf32>
    %61 = arith.mulf %52, %9 : vector<2x128xf32>
    %62 = arith.mulf %46, %54 : vector<2x128xf32>
    %63 = arith.addf %61, %62 : vector<2x128xf32>
    %64 = math.tanh %63 : vector<2x128xf32>
    %65 = arith.mulf %60, %64 : vector<2x128xf32>
    %c2 = arith.constant 2 : index
    %c0_22 = arith.constant 0 : index
    %66 = vector.load %arg8[%c2, %c0_22] : memref<16x1024xf32, #tpu.memory_space<vmem>>, vector<2x512xf32>
    %c12 = arith.constant 12 : index
    %c512_23 = arith.constant 512 : index
    %67 = vector.load %arg8[%c12, %c512_23] : memref<16x1024xf32, #tpu.memory_space<vmem>>, vector<2x512xf32>
    %cst_24 = arith.constant dense<0.000000e+00> : vector<2x512xf32>
    %68 = tpu.matmul %38, %7, %cst_24 {dimension_numbers = #tpu.dot_dimension_numbers<[1], [0], [0], [1], [0, 0, 1, 1], [], []>} : vector<2x128xf32>, vector<128x512xf32>, vector<2x512xf32> -> vector<2x512xf32>
    %69 = arith.addf %66, %68 : vector<2x512xf32>
    %70 = vector.extract_strided_slice %69 {offsets = [0, 0], sizes = [2, 128], strides = [1, 1]} : vector<2x512xf32> to vector<2x128xf32>
    %71 = arith.negf %70 : vector<2x128xf32>
    %72 = math.exp %71 : vector<2x128xf32>
    %cst_25 = arith.constant 1.000000e+00 : f32
    %73 = vector.broadcast %cst_25 : f32 to vector<2x128xf32>
    %74 = arith.addf %73, %72 : vector<2x128xf32>
    %75 = arith.divf %73, %74 : vector<2x128xf32>
    %76 = vector.extract_strided_slice %69 {offsets = [0, 128], sizes = [2, 128], strides = [1, 1]} : vector<2x512xf32> to vector<2x128xf32>
    %77 = arith.negf %76 : vector<2x128xf32>
    %78 = math.exp %77 : vector<2x128xf32>
    %cst_26 = arith.constant 1.000000e+00 : f32
    %79 = vector.broadcast %cst_26 : f32 to vector<2x128xf32>
    %80 = arith.addf %79, %78 : vector<2x128xf32>
    %81 = arith.divf %79, %80 : vector<2x128xf32>
    %82 = vector.extract_strided_slice %69 {offsets = [0, 256], sizes = [2, 128], strides = [1, 1]} : vector<2x512xf32> to vector<2x128xf32>
    %83 = math.tanh %82 : vector<2x128xf32>
    %84 = vector.extract_strided_slice %69 {offsets = [0, 384], sizes = [2, 128], strides = [1, 1]} : vector<2x512xf32> to vector<2x128xf32>
    %85 = arith.negf %84 : vector<2x128xf32>
    %86 = math.exp %85 : vector<2x128xf32>
    %cst_27 = arith.constant 1.000000e+00 : f32
    %87 = vector.broadcast %cst_27 : f32 to vector<2x128xf32>
    %88 = arith.addf %87, %86 : vector<2x128xf32>
    %89 = arith.divf %87, %88 : vector<2x128xf32>
    %90 = arith.mulf %81, %36 : vector<2x128xf32>
    %91 = arith.mulf %75, %83 : vector<2x128xf32>
    %92 = arith.addf %90, %91 : vector<2x128xf32>
    %93 = math.tanh %92 : vector<2x128xf32>
    %94 = arith.mulf %89, %93 : vector<2x128xf32>
    %cst_28 = arith.constant dense<0.000000e+00> : vector<2x512xf32>
    %95 = tpu.matmul %65, %8, %cst_28 {dimension_numbers = #tpu.dot_dimension_numbers<[1], [0], [0], [1], [0, 0, 1, 1], [], []>} : vector<2x128xf32>, vector<128x512xf32>, vector<2x512xf32> -> vector<2x512xf32>
    %96 = arith.addf %67, %95 : vector<2x512xf32>
    %97 = vector.extract_strided_slice %96 {offsets = [0, 0], sizes = [2, 128], strides = [1, 1]} : vector<2x512xf32> to vector<2x128xf32>
    %98 = arith.negf %97 : vector<2x128xf32>
    %99 = math.exp %98 : vector<2x128xf32>
    %cst_29 = arith.constant 1.000000e+00 : f32
    %100 = vector.broadcast %cst_29 : f32 to vector<2x128xf32>
    %101 = arith.addf %100, %99 : vector<2x128xf32>
    %102 = arith.divf %100, %101 : vector<2x128xf32>
    %103 = vector.extract_strided_slice %96 {offsets = [0, 128], sizes = [2, 128], strides = [1, 1]} : vector<2x512xf32> to vector<2x128xf32>
    %104 = arith.negf %103 : vector<2x128xf32>
    %105 = math.exp %104 : vector<2x128xf32>
    %cst_30 = arith.constant 1.000000e+00 : f32
    %106 = vector.broadcast %cst_30 : f32 to vector<2x128xf32>
    %107 = arith.addf %106, %105 : vector<2x128xf32>
    %108 = arith.divf %106, %107 : vector<2x128xf32>
    %109 = vector.extract_strided_slice %96 {offsets = [0, 256], sizes = [2, 128], strides = [1, 1]} : vector<2x512xf32> to vector<2x128xf32>
    %110 = math.tanh %109 : vector<2x128xf32>
    %111 = vector.extract_strided_slice %96 {offsets = [0, 384], sizes = [2, 128], strides = [1, 1]} : vector<2x512xf32> to vector<2x128xf32>
    %112 = arith.negf %111 : vector<2x128xf32>
    %113 = math.exp %112 : vector<2x128xf32>
    %cst_31 = arith.constant 1.000000e+00 : f32
    %114 = vector.broadcast %cst_31 : f32 to vector<2x128xf32>
    %115 = arith.addf %114, %113 : vector<2x128xf32>
    %116 = arith.divf %114, %115 : vector<2x128xf32>
    %117 = arith.mulf %108, %63 : vector<2x128xf32>
    %118 = arith.mulf %102, %110 : vector<2x128xf32>
    %119 = arith.addf %117, %118 : vector<2x128xf32>
    %120 = math.tanh %119 : vector<2x128xf32>
    %121 = arith.mulf %116, %120 : vector<2x128xf32>
    %c4 = arith.constant 4 : index
    %c0_32 = arith.constant 0 : index
    %122 = vector.load %arg8[%c4, %c0_32] : memref<16x1024xf32, #tpu.memory_space<vmem>>, vector<2x512xf32>
    %c10 = arith.constant 10 : index
    %c512_33 = arith.constant 512 : index
    %123 = vector.load %arg8[%c10, %c512_33] : memref<16x1024xf32, #tpu.memory_space<vmem>>, vector<2x512xf32>
    %cst_34 = arith.constant dense<0.000000e+00> : vector<2x512xf32>
    %124 = tpu.matmul %94, %7, %cst_34 {dimension_numbers = #tpu.dot_dimension_numbers<[1], [0], [0], [1], [0, 0, 1, 1], [], []>} : vector<2x128xf32>, vector<128x512xf32>, vector<2x512xf32> -> vector<2x512xf32>
    %125 = arith.addf %122, %124 : vector<2x512xf32>
    %126 = vector.extract_strided_slice %125 {offsets = [0, 0], sizes = [2, 128], strides = [1, 1]} : vector<2x512xf32> to vector<2x128xf32>
    %127 = arith.negf %126 : vector<2x128xf32>
    %128 = math.exp %127 : vector<2x128xf32>
    %cst_35 = arith.constant 1.000000e+00 : f32
    %129 = vector.broadcast %cst_35 : f32 to vector<2x128xf32>
    %130 = arith.addf %129, %128 : vector<2x128xf32>
    %131 = arith.divf %129, %130 : vector<2x128xf32>
    %132 = vector.extract_strided_slice %125 {offsets = [0, 128], sizes = [2, 128], strides = [1, 1]} : vector<2x512xf32> to vector<2x128xf32>
    %133 = arith.negf %132 : vector<2x128xf32>
    %134 = math.exp %133 : vector<2x128xf32>
    %cst_36 = arith.constant 1.000000e+00 : f32
    %135 = vector.broadcast %cst_36 : f32 to vector<2x128xf32>
    %136 = arith.addf %135, %134 : vector<2x128xf32>
    %137 = arith.divf %135, %136 : vector<2x128xf32>
    %138 = vector.extract_strided_slice %125 {offsets = [0, 256], sizes = [2, 128], strides = [1, 1]} : vector<2x512xf32> to vector<2x128xf32>
    %139 = math.tanh %138 : vector<2x128xf32>
    %140 = vector.extract_strided_slice %125 {offsets = [0, 384], sizes = [2, 128], strides = [1, 1]} : vector<2x512xf32> to vector<2x128xf32>
    %141 = arith.negf %140 : vector<2x128xf32>
    %142 = math.exp %141 : vector<2x128xf32>
    %cst_37 = arith.constant 1.000000e+00 : f32
    %143 = vector.broadcast %cst_37 : f32 to vector<2x128xf32>
    %144 = arith.addf %143, %142 : vector<2x128xf32>
    %145 = arith.divf %143, %144 : vector<2x128xf32>
    %146 = arith.mulf %137, %92 : vector<2x128xf32>
    %147 = arith.mulf %131, %139 : vector<2x128xf32>
    %148 = arith.addf %146, %147 : vector<2x128xf32>
    %149 = math.tanh %148 : vector<2x128xf32>
    %150 = arith.mulf %145, %149 : vector<2x128xf32>
    %cst_38 = arith.constant dense<0.000000e+00> : vector<2x512xf32>
    %151 = tpu.matmul %121, %8, %cst_38 {dimension_numbers = #tpu.dot_dimension_numbers<[1], [0], [0], [1], [0, 0, 1, 1], [], []>} : vector<2x128xf32>, vector<128x512xf32>, vector<2x512xf32> -> vector<2x512xf32>
    %152 = arith.addf %123, %151 : vector<2x512xf32>
    %153 = vector.extract_strided_slice %152 {offsets = [0, 0], sizes = [2, 128], strides = [1, 1]} : vector<2x512xf32> to vector<2x128xf32>
    %154 = arith.negf %153 : vector<2x128xf32>
    %155 = math.exp %154 : vector<2x128xf32>
    %cst_39 = arith.constant 1.000000e+00 : f32
    %156 = vector.broadcast %cst_39 : f32 to vector<2x128xf32>
    %157 = arith.addf %156, %155 : vector<2x128xf32>
    %158 = arith.divf %156, %157 : vector<2x128xf32>
    %159 = vector.extract_strided_slice %152 {offsets = [0, 128], sizes = [2, 128], strides = [1, 1]} : vector<2x512xf32> to vector<2x128xf32>
    %160 = arith.negf %159 : vector<2x128xf32>
    %161 = math.exp %160 : vector<2x128xf32>
    %cst_40 = arith.constant 1.000000e+00 : f32
    %162 = vector.broadcast %cst_40 : f32 to vector<2x128xf32>
    %163 = arith.addf %162, %161 : vector<2x128xf32>
    %164 = arith.divf %162, %163 : vector<2x128xf32>
    %165 = vector.extract_strided_slice %152 {offsets = [0, 256], sizes = [2, 128], strides = [1, 1]} : vector<2x512xf32> to vector<2x128xf32>
    %166 = math.tanh %165 : vector<2x128xf32>
    %167 = vector.extract_strided_slice %152 {offsets = [0, 384], sizes = [2, 128], strides = [1, 1]} : vector<2x512xf32> to vector<2x128xf32>
    %168 = arith.negf %167 : vector<2x128xf32>
    %169 = math.exp %168 : vector<2x128xf32>
    %cst_41 = arith.constant 1.000000e+00 : f32
    %170 = vector.broadcast %cst_41 : f32 to vector<2x128xf32>
    %171 = arith.addf %170, %169 : vector<2x128xf32>
    %172 = arith.divf %170, %171 : vector<2x128xf32>
    %173 = arith.mulf %164, %119 : vector<2x128xf32>
    %174 = arith.mulf %158, %166 : vector<2x128xf32>
    %175 = arith.addf %173, %174 : vector<2x128xf32>
    %176 = math.tanh %175 : vector<2x128xf32>
    %177 = arith.mulf %172, %176 : vector<2x128xf32>
    %c6 = arith.constant 6 : index
    %c0_42 = arith.constant 0 : index
    %178 = vector.load %arg8[%c6, %c0_42] : memref<16x1024xf32, #tpu.memory_space<vmem>>, vector<2x512xf32>
    %c8 = arith.constant 8 : index
    %c512_43 = arith.constant 512 : index
    %179 = vector.load %arg8[%c8, %c512_43] : memref<16x1024xf32, #tpu.memory_space<vmem>>, vector<2x512xf32>
    %cst_44 = arith.constant dense<0.000000e+00> : vector<2x512xf32>
    %180 = tpu.matmul %150, %7, %cst_44 {dimension_numbers = #tpu.dot_dimension_numbers<[1], [0], [0], [1], [0, 0, 1, 1], [], []>} : vector<2x128xf32>, vector<128x512xf32>, vector<2x512xf32> -> vector<2x512xf32>
    %181 = arith.addf %178, %180 : vector<2x512xf32>
    %182 = vector.extract_strided_slice %181 {offsets = [0, 0], sizes = [2, 128], strides = [1, 1]} : vector<2x512xf32> to vector<2x128xf32>
    %183 = arith.negf %182 : vector<2x128xf32>
    %184 = math.exp %183 : vector<2x128xf32>
    %cst_45 = arith.constant 1.000000e+00 : f32
    %185 = vector.broadcast %cst_45 : f32 to vector<2x128xf32>
    %186 = arith.addf %185, %184 : vector<2x128xf32>
    %187 = arith.divf %185, %186 : vector<2x128xf32>
    %188 = vector.extract_strided_slice %181 {offsets = [0, 128], sizes = [2, 128], strides = [1, 1]} : vector<2x512xf32> to vector<2x128xf32>
    %189 = arith.negf %188 : vector<2x128xf32>
    %190 = math.exp %189 : vector<2x128xf32>
    %cst_46 = arith.constant 1.000000e+00 : f32
    %191 = vector.broadcast %cst_46 : f32 to vector<2x128xf32>
    %192 = arith.addf %191, %190 : vector<2x128xf32>
    %193 = arith.divf %191, %192 : vector<2x128xf32>
    %194 = vector.extract_strided_slice %181 {offsets = [0, 256], sizes = [2, 128], strides = [1, 1]} : vector<2x512xf32> to vector<2x128xf32>
    %195 = math.tanh %194 : vector<2x128xf32>
    %196 = vector.extract_strided_slice %181 {offsets = [0, 384], sizes = [2, 128], strides = [1, 1]} : vector<2x512xf32> to vector<2x128xf32>
    %197 = arith.negf %196 : vector<2x128xf32>
    %198 = math.exp %197 : vector<2x128xf32>
    %cst_47 = arith.constant 1.000000e+00 : f32
    %199 = vector.broadcast %cst_47 : f32 to vector<2x128xf32>
    %200 = arith.addf %199, %198 : vector<2x128xf32>
    %201 = arith.divf %199, %200 : vector<2x128xf32>
    %202 = arith.mulf %193, %148 : vector<2x128xf32>
    %203 = arith.mulf %187, %195 : vector<2x128xf32>
    %204 = arith.addf %202, %203 : vector<2x128xf32>
    %205 = math.tanh %204 : vector<2x128xf32>
    %206 = arith.mulf %201, %205 : vector<2x128xf32>
    %cst_48 = arith.constant dense<0.000000e+00> : vector<2x512xf32>
    %207 = tpu.matmul %177, %8, %cst_48 {dimension_numbers = #tpu.dot_dimension_numbers<[1], [0], [0], [1], [0, 0, 1, 1], [], []>} : vector<2x128xf32>, vector<128x512xf32>, vector<2x512xf32> -> vector<2x512xf32>
    %208 = arith.addf %179, %207 : vector<2x512xf32>
    %209 = vector.extract_strided_slice %208 {offsets = [0, 0], sizes = [2, 128], strides = [1, 1]} : vector<2x512xf32> to vector<2x128xf32>
    %210 = arith.negf %209 : vector<2x128xf32>
    %211 = math.exp %210 : vector<2x128xf32>
    %cst_49 = arith.constant 1.000000e+00 : f32
    %212 = vector.broadcast %cst_49 : f32 to vector<2x128xf32>
    %213 = arith.addf %212, %211 : vector<2x128xf32>
    %214 = arith.divf %212, %213 : vector<2x128xf32>
    %215 = vector.extract_strided_slice %208 {offsets = [0, 128], sizes = [2, 128], strides = [1, 1]} : vector<2x512xf32> to vector<2x128xf32>
    %216 = arith.negf %215 : vector<2x128xf32>
    %217 = math.exp %216 : vector<2x128xf32>
    %cst_50 = arith.constant 1.000000e+00 : f32
    %218 = vector.broadcast %cst_50 : f32 to vector<2x128xf32>
    %219 = arith.addf %218, %217 : vector<2x128xf32>
    %220 = arith.divf %218, %219 : vector<2x128xf32>
    %221 = vector.extract_strided_slice %208 {offsets = [0, 256], sizes = [2, 128], strides = [1, 1]} : vector<2x512xf32> to vector<2x128xf32>
    %222 = math.tanh %221 : vector<2x128xf32>
    %223 = vector.extract_strided_slice %208 {offsets = [0, 384], sizes = [2, 128], strides = [1, 1]} : vector<2x512xf32> to vector<2x128xf32>
    %224 = arith.negf %223 : vector<2x128xf32>
    %225 = math.exp %224 : vector<2x128xf32>
    %cst_51 = arith.constant 1.000000e+00 : f32
    %226 = vector.broadcast %cst_51 : f32 to vector<2x128xf32>
    %227 = arith.addf %226, %225 : vector<2x128xf32>
    %228 = arith.divf %226, %227 : vector<2x128xf32>
    %229 = arith.mulf %220, %175 : vector<2x128xf32>
    %230 = arith.mulf %214, %222 : vector<2x128xf32>
    %231 = arith.addf %229, %230 : vector<2x128xf32>
    %232 = math.tanh %231 : vector<2x128xf32>
    %233 = arith.mulf %228, %232 : vector<2x128xf32>
    %c8_52 = arith.constant 8 : index
    %c0_53 = arith.constant 0 : index
    %234 = vector.load %arg8[%c8_52, %c0_53] : memref<16x1024xf32, #tpu.memory_space<vmem>>, vector<2x512xf32>
    %c6_54 = arith.constant 6 : index
    %c512_55 = arith.constant 512 : index
    %235 = vector.load %arg8[%c6_54, %c512_55] : memref<16x1024xf32, #tpu.memory_space<vmem>>, vector<2x512xf32>
    %cst_56 = arith.constant dense<0.000000e+00> : vector<2x512xf32>
    %236 = tpu.matmul %206, %7, %cst_56 {dimension_numbers = #tpu.dot_dimension_numbers<[1], [0], [0], [1], [0, 0, 1, 1], [], []>} : vector<2x128xf32>, vector<128x512xf32>, vector<2x512xf32> -> vector<2x512xf32>
    %237 = arith.addf %234, %236 : vector<2x512xf32>
    %238 = vector.extract_strided_slice %237 {offsets = [0, 0], sizes = [2, 128], strides = [1, 1]} : vector<2x512xf32> to vector<2x128xf32>
    %239 = arith.negf %238 : vector<2x128xf32>
    %240 = math.exp %239 : vector<2x128xf32>
    %cst_57 = arith.constant 1.000000e+00 : f32
    %241 = vector.broadcast %cst_57 : f32 to vector<2x128xf32>
    %242 = arith.addf %241, %240 : vector<2x128xf32>
    %243 = arith.divf %241, %242 : vector<2x128xf32>
    %244 = vector.extract_strided_slice %237 {offsets = [0, 128], sizes = [2, 128], strides = [1, 1]} : vector<2x512xf32> to vector<2x128xf32>
    %245 = arith.negf %244 : vector<2x128xf32>
    %246 = math.exp %245 : vector<2x128xf32>
    %cst_58 = arith.constant 1.000000e+00 : f32
    %247 = vector.broadcast %cst_58 : f32 to vector<2x128xf32>
    %248 = arith.addf %247, %246 : vector<2x128xf32>
    %249 = arith.divf %247, %248 : vector<2x128xf32>
    %250 = vector.extract_strided_slice %237 {offsets = [0, 256], sizes = [2, 128], strides = [1, 1]} : vector<2x512xf32> to vector<2x128xf32>
    %251 = math.tanh %250 : vector<2x128xf32>
    %252 = vector.extract_strided_slice %237 {offsets = [0, 384], sizes = [2, 128], strides = [1, 1]} : vector<2x512xf32> to vector<2x128xf32>
    %253 = arith.negf %252 : vector<2x128xf32>
    %254 = math.exp %253 : vector<2x128xf32>
    %cst_59 = arith.constant 1.000000e+00 : f32
    %255 = vector.broadcast %cst_59 : f32 to vector<2x128xf32>
    %256 = arith.addf %255, %254 : vector<2x128xf32>
    %257 = arith.divf %255, %256 : vector<2x128xf32>
    %258 = arith.mulf %249, %204 : vector<2x128xf32>
    %259 = arith.mulf %243, %251 : vector<2x128xf32>
    %260 = arith.addf %258, %259 : vector<2x128xf32>
    %261 = math.tanh %260 : vector<2x128xf32>
    %262 = arith.mulf %257, %261 : vector<2x128xf32>
    %cst_60 = arith.constant dense<0.000000e+00> : vector<2x512xf32>
    %263 = tpu.matmul %233, %8, %cst_60 {dimension_numbers = #tpu.dot_dimension_numbers<[1], [0], [0], [1], [0, 0, 1, 1], [], []>} : vector<2x128xf32>, vector<128x512xf32>, vector<2x512xf32> -> vector<2x512xf32>
    %264 = arith.addf %235, %263 : vector<2x512xf32>
    %265 = vector.extract_strided_slice %264 {offsets = [0, 0], sizes = [2, 128], strides = [1, 1]} : vector<2x512xf32> to vector<2x128xf32>
    %266 = arith.negf %265 : vector<2x128xf32>
    %267 = math.exp %266 : vector<2x128xf32>
    %cst_61 = arith.constant 1.000000e+00 : f32
    %268 = vector.broadcast %cst_61 : f32 to vector<2x128xf32>
    %269 = arith.addf %268, %267 : vector<2x128xf32>
    %270 = arith.divf %268, %269 : vector<2x128xf32>
    %271 = vector.extract_strided_slice %264 {offsets = [0, 128], sizes = [2, 128], strides = [1, 1]} : vector<2x512xf32> to vector<2x128xf32>
    %272 = arith.negf %271 : vector<2x128xf32>
    %273 = math.exp %272 : vector<2x128xf32>
    %cst_62 = arith.constant 1.000000e+00 : f32
    %274 = vector.broadcast %cst_62 : f32 to vector<2x128xf32>
    %275 = arith.addf %274, %273 : vector<2x128xf32>
    %276 = arith.divf %274, %275 : vector<2x128xf32>
    %277 = vector.extract_strided_slice %264 {offsets = [0, 256], sizes = [2, 128], strides = [1, 1]} : vector<2x512xf32> to vector<2x128xf32>
    %278 = math.tanh %277 : vector<2x128xf32>
    %279 = vector.extract_strided_slice %264 {offsets = [0, 384], sizes = [2, 128], strides = [1, 1]} : vector<2x512xf32> to vector<2x128xf32>
    %280 = arith.negf %279 : vector<2x128xf32>
    %281 = math.exp %280 : vector<2x128xf32>
    %cst_63 = arith.constant 1.000000e+00 : f32
    %282 = vector.broadcast %cst_63 : f32 to vector<2x128xf32>
    %283 = arith.addf %282, %281 : vector<2x128xf32>
    %284 = arith.divf %282, %283 : vector<2x128xf32>
    %285 = arith.mulf %276, %231 : vector<2x128xf32>
    %286 = arith.mulf %270, %278 : vector<2x128xf32>
    %287 = arith.addf %285, %286 : vector<2x128xf32>
    %288 = math.tanh %287 : vector<2x128xf32>
    %289 = arith.mulf %284, %288 : vector<2x128xf32>
    %c10_64 = arith.constant 10 : index
    %c0_65 = arith.constant 0 : index
    %290 = vector.load %arg8[%c10_64, %c0_65] : memref<16x1024xf32, #tpu.memory_space<vmem>>, vector<2x512xf32>
    %c4_66 = arith.constant 4 : index
    %c512_67 = arith.constant 512 : index
    %291 = vector.load %arg8[%c4_66, %c512_67] : memref<16x1024xf32, #tpu.memory_space<vmem>>, vector<2x512xf32>
    %cst_68 = arith.constant dense<0.000000e+00> : vector<2x512xf32>
    %292 = tpu.matmul %262, %7, %cst_68 {dimension_numbers = #tpu.dot_dimension_numbers<[1], [0], [0], [1], [0, 0, 1, 1], [], []>} : vector<2x128xf32>, vector<128x512xf32>, vector<2x512xf32> -> vector<2x512xf32>
    %293 = arith.addf %290, %292 : vector<2x512xf32>
    %294 = vector.extract_strided_slice %293 {offsets = [0, 0], sizes = [2, 128], strides = [1, 1]} : vector<2x512xf32> to vector<2x128xf32>
    %295 = arith.negf %294 : vector<2x128xf32>
    %296 = math.exp %295 : vector<2x128xf32>
    %cst_69 = arith.constant 1.000000e+00 : f32
    %297 = vector.broadcast %cst_69 : f32 to vector<2x128xf32>
    %298 = arith.addf %297, %296 : vector<2x128xf32>
    %299 = arith.divf %297, %298 : vector<2x128xf32>
    %300 = vector.extract_strided_slice %293 {offsets = [0, 128], sizes = [2, 128], strides = [1, 1]} : vector<2x512xf32> to vector<2x128xf32>
    %301 = arith.negf %300 : vector<2x128xf32>
    %302 = math.exp %301 : vector<2x128xf32>
    %cst_70 = arith.constant 1.000000e+00 : f32
    %303 = vector.broadcast %cst_70 : f32 to vector<2x128xf32>
    %304 = arith.addf %303, %302 : vector<2x128xf32>
    %305 = arith.divf %303, %304 : vector<2x128xf32>
    %306 = vector.extract_strided_slice %293 {offsets = [0, 256], sizes = [2, 128], strides = [1, 1]} : vector<2x512xf32> to vector<2x128xf32>
    %307 = math.tanh %306 : vector<2x128xf32>
    %308 = vector.extract_strided_slice %293 {offsets = [0, 384], sizes = [2, 128], strides = [1, 1]} : vector<2x512xf32> to vector<2x128xf32>
    %309 = arith.negf %308 : vector<2x128xf32>
    %310 = math.exp %309 : vector<2x128xf32>
    %cst_71 = arith.constant 1.000000e+00 : f32
    %311 = vector.broadcast %cst_71 : f32 to vector<2x128xf32>
    %312 = arith.addf %311, %310 : vector<2x128xf32>
    %313 = arith.divf %311, %312 : vector<2x128xf32>
    %314 = arith.mulf %305, %260 : vector<2x128xf32>
    %315 = arith.mulf %299, %307 : vector<2x128xf32>
    %316 = arith.addf %314, %315 : vector<2x128xf32>
    %317 = math.tanh %316 : vector<2x128xf32>
    %318 = arith.mulf %313, %317 : vector<2x128xf32>
    %cst_72 = arith.constant dense<0.000000e+00> : vector<2x512xf32>
    %319 = tpu.matmul %289, %8, %cst_72 {dimension_numbers = #tpu.dot_dimension_numbers<[1], [0], [0], [1], [0, 0, 1, 1], [], []>} : vector<2x128xf32>, vector<128x512xf32>, vector<2x512xf32> -> vector<2x512xf32>
    %320 = arith.addf %291, %319 : vector<2x512xf32>
    %321 = vector.extract_strided_slice %320 {offsets = [0, 0], sizes = [2, 128], strides = [1, 1]} : vector<2x512xf32> to vector<2x128xf32>
    %322 = arith.negf %321 : vector<2x128xf32>
    %323 = math.exp %322 : vector<2x128xf32>
    %cst_73 = arith.constant 1.000000e+00 : f32
    %324 = vector.broadcast %cst_73 : f32 to vector<2x128xf32>
    %325 = arith.addf %324, %323 : vector<2x128xf32>
    %326 = arith.divf %324, %325 : vector<2x128xf32>
    %327 = vector.extract_strided_slice %320 {offsets = [0, 128], sizes = [2, 128], strides = [1, 1]} : vector<2x512xf32> to vector<2x128xf32>
    %328 = arith.negf %327 : vector<2x128xf32>
    %329 = math.exp %328 : vector<2x128xf32>
    %cst_74 = arith.constant 1.000000e+00 : f32
    %330 = vector.broadcast %cst_74 : f32 to vector<2x128xf32>
    %331 = arith.addf %330, %329 : vector<2x128xf32>
    %332 = arith.divf %330, %331 : vector<2x128xf32>
    %333 = vector.extract_strided_slice %320 {offsets = [0, 256], sizes = [2, 128], strides = [1, 1]} : vector<2x512xf32> to vector<2x128xf32>
    %334 = math.tanh %333 : vector<2x128xf32>
    %335 = vector.extract_strided_slice %320 {offsets = [0, 384], sizes = [2, 128], strides = [1, 1]} : vector<2x512xf32> to vector<2x128xf32>
    %336 = arith.negf %335 : vector<2x128xf32>
    %337 = math.exp %336 : vector<2x128xf32>
    %cst_75 = arith.constant 1.000000e+00 : f32
    %338 = vector.broadcast %cst_75 : f32 to vector<2x128xf32>
    %339 = arith.addf %338, %337 : vector<2x128xf32>
    %340 = arith.divf %338, %339 : vector<2x128xf32>
    %341 = arith.mulf %332, %287 : vector<2x128xf32>
    %342 = arith.mulf %326, %334 : vector<2x128xf32>
    %343 = arith.addf %341, %342 : vector<2x128xf32>
    %344 = math.tanh %343 : vector<2x128xf32>
    %345 = arith.mulf %340, %344 : vector<2x128xf32>
    %c12_76 = arith.constant 12 : index
    %c0_77 = arith.constant 0 : index
    %346 = vector.load %arg8[%c12_76, %c0_77] : memref<16x1024xf32, #tpu.memory_space<vmem>>, vector<2x512xf32>
    %c2_78 = arith.constant 2 : index
    %c512_79 = arith.constant 512 : index
    %347 = vector.load %arg8[%c2_78, %c512_79] : memref<16x1024xf32, #tpu.memory_space<vmem>>, vector<2x512xf32>
    %cst_80 = arith.constant dense<0.000000e+00> : vector<2x512xf32>
    %348 = tpu.matmul %318, %7, %cst_80 {dimension_numbers = #tpu.dot_dimension_numbers<[1], [0], [0], [1], [0, 0, 1, 1], [], []>} : vector<2x128xf32>, vector<128x512xf32>, vector<2x512xf32> -> vector<2x512xf32>
    %349 = arith.addf %346, %348 : vector<2x512xf32>
    %350 = vector.extract_strided_slice %349 {offsets = [0, 0], sizes = [2, 128], strides = [1, 1]} : vector<2x512xf32> to vector<2x128xf32>
    %351 = arith.negf %350 : vector<2x128xf32>
    %352 = math.exp %351 : vector<2x128xf32>
    %cst_81 = arith.constant 1.000000e+00 : f32
    %353 = vector.broadcast %cst_81 : f32 to vector<2x128xf32>
    %354 = arith.addf %353, %352 : vector<2x128xf32>
    %355 = arith.divf %353, %354 : vector<2x128xf32>
    %356 = vector.extract_strided_slice %349 {offsets = [0, 128], sizes = [2, 128], strides = [1, 1]} : vector<2x512xf32> to vector<2x128xf32>
    %357 = arith.negf %356 : vector<2x128xf32>
    %358 = math.exp %357 : vector<2x128xf32>
    %cst_82 = arith.constant 1.000000e+00 : f32
    %359 = vector.broadcast %cst_82 : f32 to vector<2x128xf32>
    %360 = arith.addf %359, %358 : vector<2x128xf32>
    %361 = arith.divf %359, %360 : vector<2x128xf32>
    %362 = vector.extract_strided_slice %349 {offsets = [0, 256], sizes = [2, 128], strides = [1, 1]} : vector<2x512xf32> to vector<2x128xf32>
    %363 = math.tanh %362 : vector<2x128xf32>
    %364 = vector.extract_strided_slice %349 {offsets = [0, 384], sizes = [2, 128], strides = [1, 1]} : vector<2x512xf32> to vector<2x128xf32>
    %365 = arith.negf %364 : vector<2x128xf32>
    %366 = math.exp %365 : vector<2x128xf32>
    %cst_83 = arith.constant 1.000000e+00 : f32
    %367 = vector.broadcast %cst_83 : f32 to vector<2x128xf32>
    %368 = arith.addf %367, %366 : vector<2x128xf32>
    %369 = arith.divf %367, %368 : vector<2x128xf32>
    %370 = arith.mulf %361, %316 : vector<2x128xf32>
    %371 = arith.mulf %355, %363 : vector<2x128xf32>
    %372 = arith.addf %370, %371 : vector<2x128xf32>
    %373 = math.tanh %372 : vector<2x128xf32>
    %374 = arith.mulf %369, %373 : vector<2x128xf32>
    %cst_84 = arith.constant dense<0.000000e+00> : vector<2x512xf32>
    %375 = tpu.matmul %345, %8, %cst_84 {dimension_numbers = #tpu.dot_dimension_numbers<[1], [0], [0], [1], [0, 0, 1, 1], [], []>} : vector<2x128xf32>, vector<128x512xf32>, vector<2x512xf32> -> vector<2x512xf32>
    %376 = arith.addf %347, %375 : vector<2x512xf32>
    %377 = vector.extract_strided_slice %376 {offsets = [0, 0], sizes = [2, 128], strides = [1, 1]} : vector<2x512xf32> to vector<2x128xf32>
    %378 = arith.negf %377 : vector<2x128xf32>
    %379 = math.exp %378 : vector<2x128xf32>
    %cst_85 = arith.constant 1.000000e+00 : f32
    %380 = vector.broadcast %cst_85 : f32 to vector<2x128xf32>
    %381 = arith.addf %380, %379 : vector<2x128xf32>
    %382 = arith.divf %380, %381 : vector<2x128xf32>
    %383 = vector.extract_strided_slice %376 {offsets = [0, 128], sizes = [2, 128], strides = [1, 1]} : vector<2x512xf32> to vector<2x128xf32>
    %384 = arith.negf %383 : vector<2x128xf32>
    %385 = math.exp %384 : vector<2x128xf32>
    %cst_86 = arith.constant 1.000000e+00 : f32
    %386 = vector.broadcast %cst_86 : f32 to vector<2x128xf32>
    %387 = arith.addf %386, %385 : vector<2x128xf32>
    %388 = arith.divf %386, %387 : vector<2x128xf32>
    %389 = vector.extract_strided_slice %376 {offsets = [0, 256], sizes = [2, 128], strides = [1, 1]} : vector<2x512xf32> to vector<2x128xf32>
    %390 = math.tanh %389 : vector<2x128xf32>
    %391 = vector.extract_strided_slice %376 {offsets = [0, 384], sizes = [2, 128], strides = [1, 1]} : vector<2x512xf32> to vector<2x128xf32>
    %392 = arith.negf %391 : vector<2x128xf32>
    %393 = math.exp %392 : vector<2x128xf32>
    %cst_87 = arith.constant 1.000000e+00 : f32
    %394 = vector.broadcast %cst_87 : f32 to vector<2x128xf32>
    %395 = arith.addf %394, %393 : vector<2x128xf32>
    %396 = arith.divf %394, %395 : vector<2x128xf32>
    %397 = arith.mulf %388, %343 : vector<2x128xf32>
    %398 = arith.mulf %382, %390 : vector<2x128xf32>
    %399 = arith.addf %397, %398 : vector<2x128xf32>
    %400 = math.tanh %399 : vector<2x128xf32>
    %401 = arith.mulf %396, %400 : vector<2x128xf32>
    %c14_88 = arith.constant 14 : index
    %c0_89 = arith.constant 0 : index
    %402 = vector.load %arg8[%c14_88, %c0_89] : memref<16x1024xf32, #tpu.memory_space<vmem>>, vector<2x512xf32>
    %c0_90 = arith.constant 0 : index
    %c512_91 = arith.constant 512 : index
    %403 = vector.load %arg8[%c0_90, %c512_91] : memref<16x1024xf32, #tpu.memory_space<vmem>>, vector<2x512xf32>
    %cst_92 = arith.constant dense<0.000000e+00> : vector<2x512xf32>
    %404 = tpu.matmul %374, %7, %cst_92 {dimension_numbers = #tpu.dot_dimension_numbers<[1], [0], [0], [1], [0, 0, 1, 1], [], []>} : vector<2x128xf32>, vector<128x512xf32>, vector<2x512xf32> -> vector<2x512xf32>
    %405 = arith.addf %402, %404 : vector<2x512xf32>
    %406 = vector.extract_strided_slice %405 {offsets = [0, 0], sizes = [2, 128], strides = [1, 1]} : vector<2x512xf32> to vector<2x128xf32>
    %407 = arith.negf %406 : vector<2x128xf32>
    %408 = math.exp %407 : vector<2x128xf32>
    %cst_93 = arith.constant 1.000000e+00 : f32
    %409 = vector.broadcast %cst_93 : f32 to vector<2x128xf32>
    %410 = arith.addf %409, %408 : vector<2x128xf32>
    %411 = arith.divf %409, %410 : vector<2x128xf32>
    %412 = vector.extract_strided_slice %405 {offsets = [0, 128], sizes = [2, 128], strides = [1, 1]} : vector<2x512xf32> to vector<2x128xf32>
    %413 = arith.negf %412 : vector<2x128xf32>
    %414 = math.exp %413 : vector<2x128xf32>
    %cst_94 = arith.constant 1.000000e+00 : f32
    %415 = vector.broadcast %cst_94 : f32 to vector<2x128xf32>
    %416 = arith.addf %415, %414 : vector<2x128xf32>
    %417 = arith.divf %415, %416 : vector<2x128xf32>
    %418 = vector.extract_strided_slice %405 {offsets = [0, 256], sizes = [2, 128], strides = [1, 1]} : vector<2x512xf32> to vector<2x128xf32>
    %419 = math.tanh %418 : vector<2x128xf32>
    %420 = vector.extract_strided_slice %405 {offsets = [0, 384], sizes = [2, 128], strides = [1, 1]} : vector<2x512xf32> to vector<2x128xf32>
    %421 = arith.negf %420 : vector<2x128xf32>
    %422 = math.exp %421 : vector<2x128xf32>
    %cst_95 = arith.constant 1.000000e+00 : f32
    %423 = vector.broadcast %cst_95 : f32 to vector<2x128xf32>
    %424 = arith.addf %423, %422 : vector<2x128xf32>
    %425 = arith.divf %423, %424 : vector<2x128xf32>
    %426 = arith.mulf %417, %372 : vector<2x128xf32>
    %427 = arith.mulf %411, %419 : vector<2x128xf32>
    %428 = arith.addf %426, %427 : vector<2x128xf32>
    %429 = math.tanh %428 : vector<2x128xf32>
    %430 = arith.mulf %425, %429 : vector<2x128xf32>
    %cst_96 = arith.constant dense<0.000000e+00> : vector<2x512xf32>
    %431 = tpu.matmul %401, %8, %cst_96 {dimension_numbers = #tpu.dot_dimension_numbers<[1], [0], [0], [1], [0, 0, 1, 1], [], []>} : vector<2x128xf32>, vector<128x512xf32>, vector<2x512xf32> -> vector<2x512xf32>
    %432 = arith.addf %403, %431 : vector<2x512xf32>
    %433 = vector.extract_strided_slice %432 {offsets = [0, 0], sizes = [2, 128], strides = [1, 1]} : vector<2x512xf32> to vector<2x128xf32>
    %434 = arith.negf %433 : vector<2x128xf32>
    %435 = math.exp %434 : vector<2x128xf32>
    %cst_97 = arith.constant 1.000000e+00 : f32
    %436 = vector.broadcast %cst_97 : f32 to vector<2x128xf32>
    %437 = arith.addf %436, %435 : vector<2x128xf32>
    %438 = arith.divf %436, %437 : vector<2x128xf32>
    %439 = vector.extract_strided_slice %432 {offsets = [0, 128], sizes = [2, 128], strides = [1, 1]} : vector<2x512xf32> to vector<2x128xf32>
    %440 = arith.negf %439 : vector<2x128xf32>
    %441 = math.exp %440 : vector<2x128xf32>
    %cst_98 = arith.constant 1.000000e+00 : f32
    %442 = vector.broadcast %cst_98 : f32 to vector<2x128xf32>
    %443 = arith.addf %442, %441 : vector<2x128xf32>
    %444 = arith.divf %442, %443 : vector<2x128xf32>
    %445 = vector.extract_strided_slice %432 {offsets = [0, 256], sizes = [2, 128], strides = [1, 1]} : vector<2x512xf32> to vector<2x128xf32>
    %446 = math.tanh %445 : vector<2x128xf32>
    %447 = vector.extract_strided_slice %432 {offsets = [0, 384], sizes = [2, 128], strides = [1, 1]} : vector<2x512xf32> to vector<2x128xf32>
    %448 = arith.negf %447 : vector<2x128xf32>
    %449 = math.exp %448 : vector<2x128xf32>
    %cst_99 = arith.constant 1.000000e+00 : f32
    %450 = vector.broadcast %cst_99 : f32 to vector<2x128xf32>
    %451 = arith.addf %450, %449 : vector<2x128xf32>
    %452 = arith.divf %450, %451 : vector<2x128xf32>
    %453 = arith.mulf %444, %399 : vector<2x128xf32>
    %454 = arith.mulf %438, %446 : vector<2x128xf32>
    %455 = arith.addf %453, %454 : vector<2x128xf32>
    %456 = math.tanh %455 : vector<2x128xf32>
    %457 = arith.mulf %452, %456 : vector<2x128xf32>
    %458 = tpu.concatenate %430, %457 in 1 : vector<2x128xf32>, vector<2x128xf32> -> vector<2x256xf32>
    %c0_100 = arith.constant 0 : index
    %c0_101 = arith.constant 0 : index
    %459 = vector.load %arg5[%c0_100, %c0_101] : memref<256x3xf32, #tpu.memory_space<vmem>>, vector<256x3xf32>
    %cst_102 = arith.constant dense<0.000000e+00> : vector<2x3xf32>
    %460 = tpu.matmul %458, %459, %cst_102 {dimension_numbers = #tpu.dot_dimension_numbers<[1], [0], [0], [1], [0, 0, 1, 1], [], []>} : vector<2x256xf32>, vector<256x3xf32>, vector<2x3xf32> -> vector<2x3xf32>
    %c0_103 = arith.constant 0 : index
    %c0_104 = arith.constant 0 : index
    %461 = vector.load %arg6[%c0_103, %c0_104] : memref<1x3xf32, #tpu.memory_space<vmem>>, vector<1x3xf32>
    %462 = vector.broadcast %461 : vector<1x3xf32> to vector<2x3xf32>
    %463 = arith.addf %460, %462 : vector<2x3xf32>
    %c0_105 = arith.constant 0 : index
    %c0_106 = arith.constant 0 : index
    %464 = vector.load %arg7[%c0_105, %c0_106] : memref<2x3xf32, #tpu.memory_space<vmem>>, vector<2x3xf32>
    tpu.vector_store %arg7[%c0_105, %c0_106], %463 {strides = array<i32>} : memref<2x3xf32, #tpu.memory_space<vmem>>, vector<2x3xf32>,
    return
  }
}

</mosaic_0001>

<bundles_post_ra>
// kernel: forward.9
= control target key start
LH: loop header
LB: loop body
LE: loop exit
PB: predicated region body
PF: predicated region fallthrough
CT: control target
= control target key end

     0   :  { %8 = vsyncpa [#allocation3], 0  ;;  %s213_s15 = smov [#allocation2]   ;;  %s214_s17 = smov 384   ;;  %s266_s0 = inlined_call_operand.vmem [shape: f32[16,128], index: 0, kind: input, shape index: {}]   ;;  %s267_s1 = inlined_call_operand.hbm [shape: f32[128,384], index: 1, kind: input, shape index: {}]   ;;  %s268_s2 = inlined_call_operand.vmem [shape: f32[1,384], index: 2, kind: input, shape index: {}]   ;;  %s269_s3 = inlined_call_operand.vmem [shape: f32[16,384], index: 3, kind: output, shape index: {}]  }
   0x1   :  { %s15_s14 = sshll.u32 %s267_s1, 4  ;;  %s17_s16 = sshll.u32 %s213_s15, 4  ;;  %s16_s14 = int_to_ptr.hbm [resolvable:$true] %s15_s14  ;;  %s18_s16 = int_to_ptr.vmem [resolvable:$true] %s17_s16 }
   0x2   :  { %s215_s18 = smov 24  }
   0x3   :  { %23 = dma.hbm_to_vmem [thread:$0]  %s16_s14, 6144, %s18_s16, [#allocation3], %s214_s17, %s214_s17, %s215_s18  }
   0x4   :  { %211 = dma.done.wait [#allocation3], 6144  }
   0x5   :  { %212 = vsyncadd [#allocation3], 4294961152  ;;  %v79_v0 = vld [vmem:[#allocation2 + $0x178] sm:$0xff]  ;;  %v76_v1 = vld [vmem:[#allocation2 + $0x160] sm:$0xff] }
   0x6   :  { %134 = vmatpush.msra.mxu2 %v79_v0  ;;  %v78_v2 = vld [vmem:[#allocation2 + $0x170] sm:$0xff]  ;;  %v77_v3 = vld [vmem:[#allocation2 + $0x168] sm:$0xff]  ;;  %v75_v5 = vld [vmem:[#allocation2 + $0x158] sm:$0xff] }
   0x7   :  { %v73_v4 = vld [vmem:[#allocation2 + $0x148] sm:$0xff]  ;;  %111 = vmatpush.msra.mxu1 %v78_v2  ;;  %168 = vmatpush.msra.mxu3 %v77_v3  ;;  %v74_v6 = vld [vmem:[#allocation2 + $0x150] sm:$0xff]  ;;  %v72_v7 = vld [vmem:[#allocation2 + $0x140] sm:$0xff] }
   0x8   :  { %135 = vmatpush.msra.mxu2 %v76_v1  ;;  %v71_v8 = vld [vmem:[#allocation2 + $0x138] sm:$0xff]  ;;  %88 = vmatpush.msra.mxu0 %v77_v3  ;;  %v70_v9 = vld [vmem:[#allocation2 + $0x130] sm:$0xff]  ;;  %v69_v10 = vld [vmem:[#allocation2 + $0x128] sm:$0xff] }
   0x9   :  { %112 = vmatpush.msra.mxu1 %v75_v5  ;;  %169 = vmatpush.msra.mxu3 %v74_v6  ;;  %v68_v11 = vld [vmem:[#allocation2 + $0x120] sm:$0xff]  ;;  %v67_v12 = vld [vmem:[#allocation2 + $0x118] sm:$0xff]  ;;  %v66_v13 = vld [vmem:[#allocation2 + $0x110] sm:$0xff] }
   0xa   :  { %136 = vmatpush.msra.mxu2 %v73_v4  ;;  %89 = vmatpush.msra.mxu0 %v74_v6  ;;  %v65_v14 = vld [vmem:[#allocation2 + $0x108] sm:$0xff]  ;;  %v64_v15 = vld [vmem:[#allocation2 + $0x100] sm:$0xff]  ;;  %v63_v16 = vld [vmem:[#allocation2 + $0xf8] sm:$0xff] }
   0xb   :  { %113 = vmatpush.msra.mxu1 %v72_v7  ;;  %170 = vmatpush.msra.mxu3 %v71_v8  ;;  %v62_v17 = vld [vmem:[#allocation2 + $0xf0] sm:$0xff]  ;;  %v61_v18 = vld [vmem:[#allocation2 + $0xe8] sm:$0xff]  ;;  %v60_v19 = vld [vmem:[#allocation2 + $0xe0] sm:$0xff] }
   0xc   :  { %137 = vmatpush.msra.mxu2 %v70_v9  ;;  %90 = vmatpush.msra.mxu0 %v71_v8  ;;  %v59_v20 = vld [vmem:[#allocation2 + $0xd8] sm:$0xff]  ;;  %v58_v21 = vld [vmem:[#allocation2 + $0xd0] sm:$0xff]  ;;  %v57_v22 = vld [vmem:[#allocation2 + $0xc8] sm:$0xff] }
   0xd   :  { %114 = vmatpush.msra.mxu1 %v69_v10  ;;  %171 = vmatpush.msra.mxu3 %v68_v11  ;;  %v56_v23 = vld [vmem:[#allocation2 + $0xc0] sm:$0xff]  ;;  %v55_v24 = vld [vmem:[#allocation2 + $0xb8] sm:$0xff]  ;;  %v54_v25 = vld [vmem:[#allocation2 + $0xb0] sm:$0xff] }
   0xe   :  { %138 = vmatpush.msra.mxu2 %v67_v12  ;;  %91 = vmatpush.msra.mxu0 %v68_v11  ;;  %v53_v26 = vld [vmem:[#allocation2 + $0xa8] sm:$0xff]  ;;  %v52_v27 = vld [vmem:[#allocation2 + $0xa0] sm:$0xff]  ;;  %v51_v28 = vld [vmem:[#allocation2 + $0x98] sm:$0xff] }
   0xf   :  { %115 = vmatpush.msra.mxu1 %v66_v13  ;;  %172 = vmatpush.msra.mxu3 %v65_v14  ;;  %v50_v29 = vld [vmem:[#allocation2 + $0x90] sm:$0xff]  ;;  %v49_v30 = vld [vmem:[#allocation2 + $0x88] sm:$0xff]  ;;  %v48_v31 = vld [vmem:[#allocation2 + $0x80] sm:$0xff] }
  0x10   :  { %139 = vmatpush.msra.mxu2 %v64_v15  ;;  %92 = vmatpush.msra.mxu0 %v65_v14  ;;  %v47_v32 = vld [vmem:[#allocation2 + $0x78] sm:$0xff]  ;;  %v46_v33 = vld [vmem:[#allocation2 + $0x70] sm:$0xff]  ;;  %v45_v34 = vld [vmem:[#allocation2 + $0x68] sm:$0xff] }
  0x11   :  { %116 = vmatpush.msra.mxu1 %v63_v16  ;;  %173 = vmatpush.msra.mxu3 %v62_v17  ;;  %v44_v35 = vld [vmem:[#allocation2 + $0x60] sm:$0xff]  ;;  %v43_v36 = vld [vmem:[#allocation2 + $0x58] sm:$0xff]  ;;  %v42_v37 = vld [vmem:[#allocation2 + $0x50] sm:$0xff] }
  0x12   :  { %140 = vmatpush.msra.mxu2 %v61_v18  ;;  %93 = vmatpush.msra.mxu0 %v62_v17  ;;  %v41_v38 = vld [vmem:[#allocation2 + $0x48] sm:$0xff]  ;;  %v40_v39 = vld [vmem:[#allocation2 + $0x40] sm:$0xff]  ;;  %v39_v40 = vld [vmem:[#allocation2 + $0x38] sm:$0xff] }
  0x13   :  { %117 = vmatpush.msra.mxu1 %v60_v19  ;;  %174 = vmatpush.msra.mxu3 %v59_v20  ;;  %v38_v41 = vld [vmem:[#allocation2 + $0x30] sm:$0xff]  ;;  %v37_v42 = vld [vmem:[#allocation2 + $0x28] sm:$0xff]  ;;  %v36_v43 = vld [vmem:[#allocation2 + $0x20] sm:$0xff] }
  0x14   :  { %141 = vmatpush.msra.mxu2 %v58_v21  ;;  %94 = vmatpush.msra.mxu0 %v59_v20  ;;  %v35_v44 = vld [vmem:[#allocation2 + $0x18] sm:$0xff]  ;;  %v34_v45 = vld [vmem:[#allocation2 + $0x10] sm:$0xff]  ;;  %v30_v46 = vld [vmem:[%s266_s0] sm:$0xff] }
  0x15   :  { %118 = vmatpush.msra.mxu1 %v57_v22  ;;  %175 = vmatpush.msra.mxu3 %v56_v23  ;;  %v33_v47 = vld [vmem:[#allocation2 + $0x8] sm:$0xff]  ;;  %v32_v48 = vld [vmem:[#allocation2] sm:$0xff] }
  0x16   :  { %142 = vmatpush.msra.mxu2 %v55_v24  ;;  %95 = vmatpush.msra.mxu0 %v56_v23  ;;  %v31_v49 = vld [vmem:[%s266_s0 + $0x8] sm:$0xff]  ;;  %v80_v50 = vld [vmem:[%s268_s2] sm:$0x7] }
  0x17   :  { %119 = vmatpush.msra.mxu1 %v54_v25  ;;  %176 = vmatpush.msra.mxu3 %v53_v26  ;;  %v83_v51 = vperm.slane %v80_v50, 1  ;;  %v82_v52 = vperm.slane %v80_v50, 0  ;;  %v84_v55 = vperm.slane %v80_v50, 2 }
  0x18   :  { %143 = vmatpush.msra.mxu2 %v52_v27  ;;  %96 = vmatpush.msra.mxu0 %v53_v26 }
  0x19   :  { %120 = vmatpush.msra.mxu1 %v51_v28  ;;  %177 = vmatpush.msra.mxu3 %v50_v29 }
  0x1a   :  { %144 = vmatpush.msra.mxu2 %v49_v30  ;;  %97 = vmatpush.msra.mxu0 %v50_v29 }
  0x1b   :  { %121 = vmatpush.msra.mxu1 %v48_v31  ;;  %178 = vmatpush.msra.mxu3 %v47_v32 }
  0x1c   :  { %145 = vmatpush.msra.mxu2 %v46_v33  ;;  %98 = vmatpush.msra.mxu0 %v47_v32 }
  0x1d   :  { %122 = vmatpush.msra.mxu1 %v45_v34  ;;  %179 = vmatpush.msra.mxu3 %v44_v35 }
  0x1e   :  { %146 = vmatpush.msra.mxu2 %v43_v36  ;;  %99 = vmatpush.msra.mxu0 %v44_v35 }
  0x1f   :  { %123 = vmatpush.msra.mxu1 %v42_v37  ;;  %180 = vmatpush.msra.mxu3 %v41_v38 }
  0x20   :  { %147 = vmatpush.msra.mxu2 %v40_v39  ;;  %100 = vmatpush.msra.mxu0 %v41_v38 }
  0x21   :  { %124 = vmatpush.msra.mxu1 %v39_v40  ;;  %181 = vmatpush.msra.mxu3 %v38_v41 }
  0x22   :  { %148 = vmatpush.msra.mxu2 %v37_v42  ;;  %101 = vmatpush.msra.mxu0 %v38_v41 }
  0x23   :  { %125 = vmatpush.msra.mxu1 %v36_v43  ;;  %182 = vmatpush.msra.mxu3 %v35_v44 }
  0x24   :  { %149 = vmatpush.msra.mxu2 %v34_v45  ;;  %102 = vmatpush.msra.mxu0 %v35_v44 }
  0x25   :  { %150 = vmatmul.f32.vlgmr.msra.gmra.mxu2 %v30_v46  ;;  %126 = vmatpush.msra.mxu1 %v33_v47 }
  0x26   :  { %127 = vmatmul.f32.vlgmr.msra.gmra.mxu1 %v30_v46  ;;  %183 = vmatpush.msra.mxu3 %v32_v48 }
  0x27   :  { %107 = vmatmul.f32.vlgmr.msra.gmra.mxu3 %v31_v49  ;;  %103 = vmatpush.msra.mxu0 %v32_v48 }
  0x28   :  { %104 = vmatmul.f32.vlgmr.msra.gmra.mxu0 %v30_v46 }
  0x2d   :  { %153 = vmatmul.f32.gmra.mxu2 %v31_v49 }
  0x2e   :  { %130 = vmatmul.f32.gmra.mxu1 %v31_v49 }
  0xa3   :  { %v128_v53 = vpop.f32.mrf.mxu1 }
  0xa4   :  { %v129_v54 = vadd.f32 %v128_v53, %v83_v51 }
  0xa5   :  { %v105_v56 = vpop.f32.mrf.mxu0 }
  0xa6   :  { %158 = vst [vmem:[%s269_s3 + $0x8] sm:$0xff] %v129_v54  ;;  %v106_v57 = vadd.f32 %v105_v56, %v82_v52 }
  0xa8   :  { %v151_v58 = vpop.f32.mrf.mxu2  ;;  %157 = vst [vmem:[%s269_s3] sm:$0xff] %v106_v57 }
  0xa9   :  { %v152_v59 = vadd.f32 %v151_v58, %v84_v55 }
  0xaa   :  { %v108_v60 = vpop.f32.mrf.mxu3 }
  0xab   :  { %159 = vst [vmem:[%s269_s3 + $0x10] sm:$0xff] %v152_v59  ;;  %v109_v61 = vadd.f32 %v108_v60, %v82_v52  ;;  %v131_v62 = vpop.f32.mrf.mxu1 }
  0xac   :  { %v132_v63 = vadd.f32 %v131_v62, %v83_v51 }
  0xad   :  { %160 = vst [vmem:[%s269_s3 + $0x18] sm:$0xff] %v109_v61 }
  0xae   :  { %161 = vst [vmem:[%s269_s3 + $0x20] sm:$0xff] %v132_v63 }
  0xb0   :  { %v154_v0 = vpop.f32.mrf.mxu2 }
  0xb1   :  { %v155_v1 = vadd.f32 %v154_v0, %v84_v55 }
  0xb3   :  { %162 = vst [vmem:[%s269_s3 + $0x28] sm:$0xff] %v155_v1 }
  0xb4   :  { %167 = vsyncpa [#allocation3], 1 }

// kernel: forward.8
= control target key start
LH: loop header
LB: loop body
LE: loop exit
PB: predicated region body
PF: predicated region fallthrough
CT: control target
= control target key end

     0   :  { %v90_v2 = vmov 128.0   ;;  %s129_s0 = inlined_call_operand.vmem [shape: f32[16,128], index: 0, kind: input, shape index: {}]   ;;  %s130_s1 = inlined_call_operand.vmem [shape: f32[1,128], index: 1, kind: input, shape index: {}]   ;;  %s131_s2 = inlined_call_operand.vmem [shape: f32[1,128], index: 2, kind: input, shape index: {}]   ;;  %s132_s3 = inlined_call_operand.vmem [shape: f32[16,128], index: 3, kind: output, shape index: {}]  }
   0x1   :  { %v14_v0 = vld [vmem:[%s129_s0] sm:$0xff]  ;;  %v15_v1 = vld [vmem:[%s129_s0 + $0x8] sm:$0xff]  ;;  %84 = vrcp.f32 %v90_v2 }
   0x2   :  { %18 = vadd.xlane.f32.xlu0 %v14_v0  ;;  %v82_v31 = vld [vmem:[%s130_s1] ss:$0 sm:$0xff] }
   0x3   :  { %v83_v34 = vld [vmem:[%s131_s2] ss:$0 sm:$0xff] }
   0x7   :  { %v85_v3 = vpop.eup %84 }
   0x8   :  { %v23_v4 = vmul.f32 128.0, %v85_v3  ;;  %vm27_vm0 = vweird.f32 %v85_v3 }
   0xa   :  { %20 = vadd.xlane.f32.xlu0 %v15_v1  ;;  %v24_v5 = vsub.f32 1.0, %v23_v4 }
   0xc   :  { %v25_v6 = vmul.f32 %v85_v3, %v24_v5 }
   0xe   :  { %v26_v7 = vadd.f32 %v85_v3, %v25_v6 }
  0x10   :  { %v28_v8 = vsel %vm27_vm0, %v85_v3, %v26_v7 }
  0x75   :  { %v19_v9 = vpop.xlane.xlu0 %18 }
  0x76   :  { %v29_v10 = vmul.f32 %v28_v8, %v19_v9 }
  0x78   :  { %v31_v11 = vsub.f32 %v14_v0, %v29_v10 }
  0x7a   :  { %v33_v12 = vmul.f32 %v31_v11, %v31_v11 }
  0x7c   :  { %35 = vadd.xlane.f32.xlu1 %v33_v12 }
  0x7d   :  { %v21_v13 = vpop.xlane.xlu0 %20 }
  0x7e   :  { %v30_v14 = vmul.f32 %v28_v8, %v21_v13 }
  0x80   :  { %v32_v15 = vsub.f32 %v15_v1, %v30_v14 }
  0x82   :  { %v34_v16 = vmul.f32 %v32_v15, %v32_v15 }
  0x84   :  { %37 = vadd.xlane.f32.xlu1 %v34_v16 }
  0xef   :  { %v36_v17 = vpop.xlane.xlu1 %35 }
  0xf0   :  { %v39_v18 = vmul.f32 %v36_v17, %v28_v8 }
  0xf2   :  { %v41_v19 = vadd.f32 1e-05, %v39_v18 }
  0xf4   :  { %86 = vrsqrt.f32 %v41_v19  ;;  %vm49_vm2 = vweird.f32 %v41_v19 }
  0xf7   :  { %v38_v20 = vpop.xlane.xlu1 %37 }
  0xf8   :  { %v40_v21 = vmul.f32 %v38_v20, %v28_v8 }
  0xfa   :  { %v87_v22 = vpop.eup %86  ;;  %v42_v23 = vadd.f32 1e-05, %v40_v21 }
  0xfb   :  { %v44_v24 = vmul.f32 %v87_v22, %v41_v19  ;;  %vm50_vm1 = vweird.f32 %v87_v22 }
  0xfc   :  { %88 = vrsqrt.f32 %v42_v23  ;;  %vm51_vm3 = vmor %vm49_vm2, %vm50_vm1  ;;  %vm59_vm5 = vweird.f32 %v42_v23 }
  0xfd   :  { %v45_v25 = vmul.f32 %v87_v22, %v44_v24 }
  0xff   :  { %v46_v26 = vmul.f32 0.5, %v45_v25 }
 0x101   :  { %v47_v27 = vsub.f32 1.5, %v46_v26 }
 0x102   :  { %v89_v28 = vpop.eup %88 }
 0x103   :  { %v48_v29 = vmul.f32 %v87_v22, %v47_v27  ;;  %v54_v30 = vmul.f32 %v89_v28, %v42_v23  ;;  %vm60_vm4 = vweird.f32 %v89_v28 }
 0x104   :  { %vm61_vm6 = vmor %vm59_vm5, %vm60_vm4 }
 0x105   :  { %v52_v32 = vsel %vm51_vm3, %v87_v22, %v48_v29  ;;  %v55_v33 = vmul.f32 %v89_v28, %v54_v30 }
 0x106   :  { %v63_v35 = vmul.f32 %v52_v32, %v31_v11 }
 0x107   :  { %v56_v36 = vmul.f32 0.5, %v55_v33 }
 0x108   :  { %v68_v37 = vmul.f32 %v82_v31, %v63_v35 }
 0x109   :  { %v57_v38 = vsub.f32 1.5, %v56_v36 }
 0x10a   :  { %v73_v39 = vadd.f32 %v83_v34, %v68_v37 }
 0x10b   :  { %v58_v40 = vmul.f32 %v89_v28, %v57_v38 }
 0x10c   :  { %75 = vst [vmem:[%s132_s3] sm:$0xff] %v73_v39 }
 0x10d   :  { %v62_v41 = vsel %vm61_vm6, %v89_v28, %v58_v40 }
 0x10e   :  { %v64_v42 = vmul.f32 %v62_v41, %v32_v15 }
 0x110   :  { %v69_v43 = vmul.f32 %v82_v31, %v64_v42 }
 0x112   :  { %v74_v44 = vadd.f32 %v83_v34, %v69_v43 }
 0x114   :  { %76 = vst [vmem:[%s132_s3 + $0x8] sm:$0xff] %v74_v44 }

// kernel: forward.11
= control target key start
LH: loop header
LB: loop body
LE: loop exit
PB: predicated region body
PF: predicated region fallthrough
CT: control target
= control target key end

     0   :  { %12 = vsyncpa [#allocation3], 0  ;;  %s361_s27 = smov [#allocation2]   ;;  %s362_s29 = smov 128   ;;  %s538_s0 = inlined_call_operand.vmem [shape: f32[16,128], index: 0, kind: input, shape index: {}]   ;;  %s539_s1 = inlined_call_operand.vmem [shape: f32[128,256], index: 1, kind: input, shape index: {}]   ;;  %s540_s2 = inlined_call_operand.vmem [shape: f32[1,256], index: 2, kind: input, shape index: {}]   ;;  %s541_s3 = inlined_call_operand.hbm [shape: f32[256,128], index: 3, kind: input, shape index: {}]   ;;  %s542_s4 = inlined_call_operand.vmem [shape: f32[1,128], index: 4, kind: input, shape index: {}]   ;;  %s543_s5 = inlined_call_operand.vmem [shape: f32[1,128], index: 5, kind: input, shape index: {}]   ;;  %s544_s6 = inlined_call_operand.vmem [shape: f32[1,128], index: 6, kind: input, shape index: {}]   ;;  %s545_s7 = inlined_call_operand.vmem [shape: f32[16,128], index: 7, kind: output, shape index: {}]  }
   0x1   :  { %s23_s26 = sshll.u32 %s541_s3, 4  ;;  %s25_s28 = sshll.u32 %s361_s27, 4  ;;  %s24_s26 = int_to_ptr.hbm [resolvable:$true] %s23_s26  ;;  %s26_s28 = int_to_ptr.vmem [resolvable:$true] %s25_s28 }
   0x2   :  { %s363_s30 = smov 8  }
   0x3   :  { %31 = dma.hbm_to_vmem [thread:$0]  %s24_s26, 4096, %s26_s28, [#allocation3], %s362_s29, %s362_s29, %s363_s30  }
   0x4   :  { %359 = dma.done.wait [#allocation3], 4096  }
   0x5   :  { %360 = vsyncadd [#allocation3], 4294963200  ;;  %v74_v0 = vld [vmem:[%s539_s1 + $0xf0] sm:$0xff]  ;;  %v75_v1 = vld [vmem:[%s539_s1 + $0xf8] sm:$0xff] }
   0x6   :  { %v72_v2 = vld [vmem:[%s539_s1 + $0xe0] sm:$0xff]  ;;  %82 = vmatpush.msra.mxu0 %v74_v0  ;;  %105 = vmatpush.msra.mxu1 %v75_v1  ;;  %v73_v3 = vld [vmem:[%s539_s1 + $0xe8] sm:$0xff]  ;;  %v70_v4 = vld [vmem:[%s539_s1 + $0xd0] sm:$0xff] }
   0x7   :  { %v71_v5 = vld [vmem:[%s539_s1 + $0xd8] sm:$0xff]  ;;  %v68_v6 = vld [vmem:[%s539_s1 + $0xc0] sm:$0xff]  ;;  %v69_v7 = vld [vmem:[%s539_s1 + $0xc8] sm:$0xff] }
   0x8   :  { %83 = vmatpush.msra.mxu0 %v72_v2  ;;  %106 = vmatpush.msra.mxu1 %v73_v3  ;;  %v66_v8 = vld [vmem:[%s539_s1 + $0xb0] sm:$0xff]  ;;  %v67_v9 = vld [vmem:[%s539_s1 + $0xb8] sm:$0xff]  ;;  %v64_v10 = vld [vmem:[%s539_s1 + $0xa0] sm:$0xff] }
   0x9   :  { %v65_v11 = vld [vmem:[%s539_s1 + $0xa8] sm:$0xff]  ;;  %v62_v12 = vld [vmem:[%s539_s1 + $0x90] sm:$0xff]  ;;  %v63_v13 = vld [vmem:[%s539_s1 + $0x98] sm:$0xff] }
   0xa   :  { %84 = vmatpush.msra.mxu0 %v70_v4  ;;  %107 = vmatpush.msra.mxu1 %v71_v5  ;;  %v60_v14 = vld [vmem:[%s539_s1 + $0x80] sm:$0xff]  ;;  %v61_v15 = vld [vmem:[%s539_s1 + $0x88] sm:$0xff]  ;;  %v179_v16 = vld [vmem:[#allocation2 + $0x78] sm:$0xff] }
   0xb   :  { %v195_v17 = vld [vmem:[#allocation2 + $0xf8] sm:$0xff]  ;;  %v58_v18 = vld [vmem:[%s539_s1 + $0x70] sm:$0xff]  ;;  %200 = vmatpush.msra.mxu2 %v179_v16  ;;  %v177_v21 = vld [vmem:[#allocation2 + $0x68] sm:$0xff] }
   0xc   :  { %85 = vmatpush.msra.mxu0 %v68_v6  ;;  %108 = vmatpush.msra.mxu1 %v69_v7  ;;  %v178_v19 = vld [vmem:[#allocation2 + $0x70] sm:$0xff]  ;;  %v193_v22 = vld [vmem:[#allocation2 + $0xe8] sm:$0xff]  ;;  %v59_v23 = vld [vmem:[%s539_s1 + $0x78] sm:$0xff] }
   0xd   :  { %223 = vmatpush.msra.mxu3 %v195_v17  ;;  %v194_v20 = vld [vmem:[#allocation2 + $0xf0] sm:$0xff]  ;;  %201 = vmatpush.msra.mxu2 %v178_v19  ;;  %v56_v24 = vld [vmem:[%s539_s1 + $0x60] sm:$0xff]  ;;  %v57_v25 = vld [vmem:[%s539_s1 + $0x68] sm:$0xff] }
   0xe   :  { %86 = vmatpush.msra.mxu0 %v66_v8  ;;  %109 = vmatpush.msra.mxu1 %v67_v9  ;;  %v54_v26 = vld [vmem:[%s539_s1 + $0x50] sm:$0xff]  ;;  %v55_v27 = vld [vmem:[%s539_s1 + $0x58] sm:$0xff]  ;;  %v52_v28 = vld [vmem:[%s539_s1 + $0x40] sm:$0xff] }
   0xf   :  { %224 = vmatpush.msra.mxu3 %v194_v20  ;;  %202 = vmatpush.msra.mxu2 %v177_v21  ;;  %v53_v29 = vld [vmem:[%s539_s1 + $0x48] sm:$0xff]  ;;  %v50_v30 = vld [vmem:[%s539_s1 + $0x30] sm:$0xff]  ;;  %v51_v31 = vld [vmem:[%s539_s1 + $0x38] sm:$0xff] }
  0x10   :  { %87 = vmatpush.msra.mxu0 %v64_v10  ;;  %110 = vmatpush.msra.mxu1 %v65_v11  ;;  %v48_v32 = vld [vmem:[%s539_s1 + $0x20] sm:$0xff]  ;;  %v49_v33 = vld [vmem:[%s539_s1 + $0x28] sm:$0xff]  ;;  %v46_v34 = vld [vmem:[%s539_s1 + $0x10] sm:$0xff] }
  0x11   :  { %225 = vmatpush.msra.mxu3 %v193_v22  ;;  %v47_v35 = vld [vmem:[%s539_s1 + $0x18] sm:$0xff]  ;;  %v44_v36 = vld [vmem:[%s539_s1] sm:$0xff]  ;;  %v45_v37 = vld [vmem:[%s539_s1 + $0x8] sm:$0xff] }
  0x12   :  { %88 = vmatpush.msra.mxu0 %v62_v12  ;;  %111 = vmatpush.msra.mxu1 %v63_v13  ;;  %v507_v38 = vld [vmem:[%s538_s0] sm:$0xff]  ;;  %v514_v39 = vld [vmem:[%s538_s0 + $0x8] sm:$0xff]  ;;  %v175_v42 = vld [vmem:[#allocation2 + $0x58] sm:$0xff] }
  0x13   :  { %v176_v40 = vld [vmem:[#allocation2 + $0x60] sm:$0xff]  ;;  %v191_v43 = vld [vmem:[#allocation2 + $0xd8] sm:$0xff]  ;;  %v174_v44 = vld [vmem:[#allocation2 + $0x50] sm:$0xff] }
  0x14   :  { %89 = vmatpush.msra.mxu0 %v60_v14  ;;  %112 = vmatpush.msra.mxu1 %v61_v15  ;;  %v192_v41 = vld [vmem:[#allocation2 + $0xe0] sm:$0xff]  ;;  %v190_v45 = vld [vmem:[#allocation2 + $0xd0] sm:$0xff]  ;;  %v173_v46 = vld [vmem:[#allocation2 + $0x48] sm:$0xff] }
  0x15   :  { %203 = vmatpush.msra.mxu2 %v176_v40  ;;  %226 = vmatpush.msra.mxu3 %v192_v41  ;;  %v189_v47 = vld [vmem:[#allocation2 + $0xc8] sm:$0xff]  ;;  %v172_v48 = vld [vmem:[#allocation2 + $0x40] sm:$0xff]  ;;  %v171_v50 = vld [vmem:[#allocation2 + $0x38] sm:$0xff] }
  0x16   :  { %90 = vmatpush.msra.mxu0 %v58_v18  ;;  %113 = vmatpush.msra.mxu1 %v59_v23  ;;  %v188_v49 = vld [vmem:[#allocation2 + $0xc0] sm:$0xff]  ;;  %v187_v51 = vld [vmem:[#allocation2 + $0xb8] sm:$0xff]  ;;  %v170_v52 = vld [vmem:[#allocation2 + $0x30] sm:$0xff] }
  0x17   :  { %204 = vmatpush.msra.mxu2 %v175_v42  ;;  %227 = vmatpush.msra.mxu3 %v191_v43  ;;  %v186_v53 = vld [vmem:[#allocation2 + $0xb0] sm:$0xff]  ;;  %v169_v54 = vld [vmem:[#allocation2 + $0x28] sm:$0xff]  ;;  %v168_v56 = vld [vmem:[#allocation2 + $0x20] sm:$0xff] }
  0x18   :  { %91 = vmatpush.msra.mxu0 %v56_v24  ;;  %114 = vmatpush.msra.mxu1 %v57_v25  ;;  %v185_v55 = vld [vmem:[#allocation2 + $0xa8] sm:$0xff]  ;;  %v184_v57 = vld [vmem:[#allocation2 + $0xa0] sm:$0xff]  ;;  %v167_v58 = vld [vmem:[#allocation2 + $0x18] sm:$0xff] }
  0x19   :  { %205 = vmatpush.msra.mxu2 %v174_v44  ;;  %228 = vmatpush.msra.mxu3 %v190_v45  ;;  %v183_v59 = vld [vmem:[#allocation2 + $0x98] sm:$0xff]  ;;  %v166_v60 = vld [vmem:[#allocation2 + $0x10] sm:$0xff]  ;;  %v165_v62 = vld [vmem:[#allocation2 + $0x8] sm:$0xff] }
  0x1a   :  { %92 = vmatpush.msra.mxu0 %v54_v26  ;;  %115 = vmatpush.msra.mxu1 %v55_v27  ;;  %v182_v61 = vld [vmem:[#allocation2 + $0x90] sm:$0xff]  ;;  %v181_v63 = vld [vmem:[#allocation2 + $0x88] sm:$0xff]  ;;  %v164_v0 = vld [vmem:[#allocation2] sm:$0xff] }
  0x1b   :  { %206 = vmatpush.msra.mxu2 %v173_v46  ;;  %229 = vmatpush.msra.mxu3 %v189_v47  ;;  %v180_v1 = vld [vmem:[#allocation2 + $0x80] sm:$0xff] }
  0x1c   :  { %93 = vmatpush.msra.mxu0 %v52_v28  ;;  %116 = vmatpush.msra.mxu1 %v53_v29  ;;  %v76_v2 = vld [vmem:[%s540_s2] sm:$0x3] }
  0x1d   :  { %207 = vmatpush.msra.mxu2 %v172_v48  ;;  %230 = vmatpush.msra.mxu3 %v188_v49  ;;  %v78_v3 = vperm.slane %v76_v2, 0  ;;  %v79_v4 = vperm.slane %v76_v2, 1 }
  0x1e   :  { %94 = vmatpush.msra.mxu0 %v50_v30  ;;  %117 = vmatpush.msra.mxu1 %v51_v31 }
  0x1f   :  { %208 = vmatpush.msra.mxu2 %v171_v50  ;;  %231 = vmatpush.msra.mxu3 %v187_v51  ;;  %v318_v51 = vld [vmem:[%s542_s4] ss:$0 sm:$0xff] }
  0x20   :  { %95 = vmatpush.msra.mxu0 %v48_v32  ;;  %118 = vmatpush.msra.mxu1 %v49_v33 }
  0x21   :  { %209 = vmatpush.msra.mxu2 %v170_v52  ;;  %232 = vmatpush.msra.mxu3 %v186_v53 }
  0x22   :  { %96 = vmatpush.msra.mxu0 %v46_v34  ;;  %119 = vmatpush.msra.mxu1 %v47_v35 }
  0x23   :  { %210 = vmatpush.msra.mxu2 %v169_v54  ;;  %233 = vmatpush.msra.mxu3 %v185_v55 }
  0x24   :  { %97 = vmatpush.msra.mxu0 %v44_v36  ;;  %120 = vmatpush.msra.mxu1 %v45_v37 }
  0x25   :  { %98 = vmatmul.f32.vlgmr.msra.gmra.mxu0 %v507_v38  ;;  %121 = vmatmul.f32.vlgmr.msra.gmra.mxu1 %v507_v38 }
  0x26   :  { %211 = vmatpush.msra.mxu2 %v168_v56  ;;  %234 = vmatpush.msra.mxu3 %v184_v57 }
  0x28   :  { %212 = vmatpush.msra.mxu2 %v167_v58  ;;  %235 = vmatpush.msra.mxu3 %v183_v59 }
  0x2a   :  { %213 = vmatpush.msra.mxu2 %v166_v60  ;;  %236 = vmatpush.msra.mxu3 %v182_v61 }
  0x2c   :  { %214 = vmatpush.msra.mxu2 %v165_v62  ;;  %237 = vmatpush.msra.mxu3 %v181_v63  ;;  %v364_v62 = vmov 128.0  }
  0x2d   :  { %101 = vmatmul.f32.gmra.mxu0 %v514_v39  ;;  %124 = vmatmul.f32.gmra.mxu1 %v514_v39 }
  0x2e   :  { %215 = vmatpush.msra.mxu2 %v164_v0  ;;  %238 = vmatpush.msra.mxu3 %v180_v1 }
  0xa2   :  { %v99_v5 = vpop.f32.mrf.mxu0  ;;  %v122_v6 = vpop.f32.mrf.mxu1 }
  0xa3   :  { %v100_v7 = vadd.f32 %v99_v5, %v78_v3  ;;  %v123_v8 = vadd.f32 %v122_v6, %v79_v4 }
  0xa5   :  { %v128_v9 = vmul.f32 %v100_v7, %v100_v7  ;;  %v129_v10 = vmul.f32 %v123_v8, %v123_v8 }
  0xa7   :  { %v132_v11 = vmul.f32 %v128_v9, %v100_v7  ;;  %v133_v12 = vmul.f32 %v129_v10, %v123_v8 }
  0xa9   :  { %v136_v13 = vmul.f32 0.044715, %v132_v11  ;;  %v137_v14 = vmul.f32 0.044715, %v133_v12 }
  0xaa   :  { %v102_v15 = vpop.f32.mrf.mxu0  ;;  %v125_v16 = vpop.f32.mrf.mxu1 }
  0xab   :  { %v103_v17 = vadd.f32 %v102_v15, %v78_v3  ;;  %v126_v18 = vadd.f32 %v125_v16, %v79_v4  ;;  %v140_v19 = vadd.f32 %v136_v13, %v100_v7  ;;  %v141_v20 = vadd.f32 %v137_v14, %v123_v8 }
  0xad   :  { %v130_v21 = vmul.f32 %v103_v17, %v103_v17  ;;  %v131_v22 = vmul.f32 %v126_v18, %v126_v18  ;;  %v144_v23 = vmul.f32 0.7978846, %v140_v19  ;;  %v145_v24 = vmul.f32 0.7978846, %v141_v20 }
  0xaf   :  { %v134_v25 = vmul.f32 %v130_v21, %v103_v17  ;;  %v135_v26 = vmul.f32 %v131_v22, %v126_v18  ;;  %321 = vtanh.f32 %v144_v23 }
  0xb0   :  { %323 = vtanh.f32 %v145_v24 }
  0xb1   :  { %v138_v27 = vmul.f32 0.044715, %v134_v25  ;;  %v139_v28 = vmul.f32 0.044715, %v135_v26  ;;  %v319_v25 = vld [vmem:[%s543_s5] ss:$0 sm:$0xff] }
  0xb3   :  { %v142_v29 = vadd.f32 %v138_v27, %v103_v17  ;;  %v143_v30 = vadd.f32 %v139_v28, %v126_v18  ;;  %v320_v28 = vld [vmem:[%s544_s6] ss:$0 sm:$0xff] }
  0xb5   :  { %v322_v31 = vpop.eup %321  ;;  %v146_v32 = vmul.f32 0.7978846, %v142_v29  ;;  %v147_v33 = vmul.f32 0.7978846, %v143_v30 }
  0xb6   :  { %v324_v34 = vpop.eup %323  ;;  %v152_v35 = vadd.f32 1.0, %v322_v31 }
  0xb7   :  { %v153_v36 = vadd.f32 1.0, %v324_v34  ;;  %325 = vtanh.f32 %v146_v32 }
  0xb8   :  { %v156_v37 = vmul.f32 0.5, %v152_v35  ;;  %327 = vtanh.f32 %v147_v33 }
  0xb9   :  { %v157_v40 = vmul.f32 0.5, %v153_v36  ;;  %329 = vrcp.f32 %v364_v62 }
  0xba   :  { %v160_v41 = vmul.f32 %v156_v37, %v100_v7 }
  0xbb   :  { %v161_v42 = vmul.f32 %v157_v40, %v123_v8 }
  0xbc   :  { %216 = vmatmul.f32.vlgmr.msra.gmra.mxu2 %v160_v41 }
  0xbd   :  { %v326_v43 = vpop.eup %325  ;;  %239 = vmatmul.f32.vlgmr.msra.gmra.mxu3 %v161_v42 }
  0xbe   :  { %v328_v44 = vpop.eup %327  ;;  %v154_v45 = vadd.f32 1.0, %v326_v43 }
  0xbf   :  { %v155_v46 = vadd.f32 1.0, %v328_v44  ;;  %v330_v63 = vpop.eup %329 }
  0xc0   :  { %v158_v47 = vmul.f32 0.5, %v154_v45  ;;  %v255_v0 = vmul.f32 128.0, %v330_v63  ;;  %vm259_vm0 = vweird.f32 %v330_v63 }
  0xc1   :  { %v159_v48 = vmul.f32 0.5, %v155_v46 }
  0xc2   :  { %v162_v49 = vmul.f32 %v158_v47, %v103_v17  ;;  %v256_v1 = vsub.f32 1.0, %v255_v0 }
  0xc3   :  { %v163_v50 = vmul.f32 %v159_v48, %v126_v18 }
  0xc4   :  { %219 = vmatmul.f32.gmra.mxu2 %v162_v49  ;;  %v257_v2 = vmul.f32 %v330_v63, %v256_v1 }
  0xc5   :  { %242 = vmatmul.f32.gmra.mxu3 %v163_v50 }
  0xc6   :  { %v258_v3 = vadd.f32 %v330_v63, %v257_v2 }
  0xc8   :  { %v260_v4 = vsel %vm259_vm0, %v330_v63, %v258_v3 }
 0x13f   :  { %v217_v52 = vpop.f32.mrf.mxu2 }
 0x140   :  { %v218_v53 = vadd.f32 %v318_v51, %v217_v52  ;;  %v240_v54 = vpop.f32.mrf.mxu3 }
 0x142   :  { %v241_v55 = vadd.f32 %v240_v54, %v218_v53 }
 0x144   :  { %v246_v56 = vadd.f32 %v241_v55, %v507_v38 }
 0x146   :  { %250 = vadd.xlane.f32.xlu0 %v246_v56 }
 0x147   :  { %v220_v57 = vpop.f32.mrf.mxu2 }
 0x148   :  { %v221_v58 = vadd.f32 %v318_v51, %v220_v57  ;;  %v243_v59 = vpop.f32.mrf.mxu3 }
 0x14a   :  { %v244_v60 = vadd.f32 %v243_v59, %v221_v58 }
 0x14c   :  { %v247_v61 = vadd.f32 %v244_v60, %v514_v39 }
 0x14e   :  { %252 = vadd.xlane.f32.xlu0 %v247_v61 }
 0x1b9   :  { %v251_v5 = vpop.xlane.xlu0 %250 }
 0x1ba   :  { %v261_v6 = vmul.f32 %v260_v4, %v251_v5 }
 0x1bc   :  { %v263_v38 = vsub.f32 %v246_v56, %v261_v6 }
 0x1be   :  { %v265_v7 = vmul.f32 %v263_v38, %v263_v38 }
 0x1c0   :  { %267 = vadd.xlane.f32.xlu1 %v265_v7 }
 0x1c1   :  { %v253_v8 = vpop.xlane.xlu0 %252 }
 0x1c2   :  { %v262_v9 = vmul.f32 %v260_v4, %v253_v8 }
 0x1c4   :  { %v264_v10 = vsub.f32 %v247_v61, %v262_v9 }
 0x1c6   :  { %v266_v11 = vmul.f32 %v264_v10, %v264_v10 }
 0x1c8   :  { %269 = vadd.xlane.f32.xlu1 %v266_v11 }
 0x233   :  { %v268_v39 = vpop.xlane.xlu1 %267 }
 0x234   :  { %v271_v12 = vmul.f32 %v268_v39, %v260_v4 }
 0x236   :  { %v273_v13 = vadd.f32 1e-05, %v271_v12 }
 0x238   :  { %331 = vrsqrt.f32 %v273_v13  ;;  %vm281_vm2 = vweird.f32 %v273_v13 }
 0x23b   :  { %v270_v14 = vpop.xlane.xlu1 %269 }
 0x23c   :  { %v272_v15 = vmul.f32 %v270_v14, %v260_v4 }
 0x23e   :  { %v332_v16 = vpop.eup %331  ;;  %v274_v17 = vadd.f32 1e-05, %v272_v15 }
 0x23f   :  { %v276_v18 = vmul.f32 %v332_v16, %v273_v13  ;;  %vm282_vm1 = vweird.f32 %v332_v16 }
 0x240   :  { %333 = vrsqrt.f32 %v274_v17  ;;  %vm283_vm3 = vmor %vm281_vm2, %vm282_vm1  ;;  %vm291_vm5 = vweird.f32 %v274_v17 }
 0x241   :  { %v277_v19 = vmul.f32 %v332_v16, %v276_v18 }
 0x243   :  { %v278_v20 = vmul.f32 0.5, %v277_v19 }
 0x245   :  { %v279_v21 = vsub.f32 1.5, %v278_v20 }
 0x246   :  { %v334_v22 = vpop.eup %333 }
 0x247   :  { %v280_v23 = vmul.f32 %v332_v16, %v279_v21  ;;  %v286_v24 = vmul.f32 %v334_v22, %v274_v17  ;;  %vm292_vm4 = vweird.f32 %v334_v22 }
 0x248   :  { %vm293_vm6 = vmor %vm291_vm5, %vm292_vm4 }
 0x249   :  { %v284_v26 = vsel %vm283_vm3, %v332_v16, %v280_v23  ;;  %v287_v27 = vmul.f32 %v334_v22, %v286_v24 }
 0x24a   :  { %v295_v29 = vmul.f32 %v284_v26, %v263_v38 }
 0x24b   :  { %v288_v30 = vmul.f32 0.5, %v287_v27 }
 0x24c   :  { %v300_v31 = vmul.f32 %v319_v25, %v295_v29 }
 0x24d   :  { %v289_v32 = vsub.f32 1.5, %v288_v30 }
 0x24e   :  { %v305_v33 = vadd.f32 %v320_v28, %v300_v31 }
 0x24f   :  { %v290_v34 = vmul.f32 %v334_v22, %v289_v32 }
 0x250   :  { %307 = vst [vmem:[%s545_s7] sm:$0xff] %v305_v33 }
 0x251   :  { %v294_v35 = vsel %vm293_vm6, %v334_v22, %v290_v34 }
 0x252   :  { %v296_v36 = vmul.f32 %v294_v35, %v264_v10 }
 0x254   :  { %v301_v37 = vmul.f32 %v319_v25, %v296_v36 }
 0x256   :  { %v306_v40 = vadd.f32 %v320_v28, %v301_v37 }
 0x258   :  { %308 = vst [vmem:[%s545_s7 + $0x8] sm:$0xff] %v306_v40 }
 0x259   :  { %313 = vsyncpa [#allocation3], 1 }

// kernel: forward.10
= control target key start
LH: loop header
LB: loop body
LE: loop exit
PB: predicated region body
PF: predicated region fallthrough
CT: control target
= control target key end

     0   :  { %12 = vsyncpa [#allocation3], 0  ;;  %s944_s24 = smov 0   ;;  %s1036_s0 = inlined_call_operand.vmem [shape: f32[2,8,384], index: 0, kind: input, shape index: {}]   ;;  %s1037_s1 = inlined_call_operand.vmem [shape: f32[2,1,8], index: 1, kind: input, shape index: {}]   ;;  %s1038_s2 = inlined_call_operand.vmem [shape: f32[2,8,128], index: 2, kind: input, shape index: {}]   ;;  %s1039_s3 = inlined_call_operand.hbm [shape: f32[128,128], index: 3, kind: input, shape index: {}]   ;;  %s1040_s4 = inlined_call_operand.vmem [shape: f32[1,128], index: 4, kind: input, shape index: {}]   ;;  %s1041_s5 = inlined_call_operand.vmem [shape: f32[1,128], index: 5, kind: input, shape index: {}]   ;;  %s1042_s6 = inlined_call_operand.vmem [shape: f32[1,128], index: 6, kind: input, shape index: {}]   ;;  %s1043_s7 = inlined_call_operand.vmem [shape: f32[2,8,128], index: 7, kind: output, shape index: {}]  }
   0x1 LB: > { %s222_s27 = sshll.u32 %s1039_s3, 4  ;;  %s781_s28 = sadd.s32 4294967295, %s895_s24   ;;  %s895_s24 = sphi %s944_s24, %s18_s24   ;;  %s223_s27 = int_to_ptr.hbm [resolvable:$true] %s222_s27 }
   0x2   : > { %p783_p0 = scmp.ge.s32.totalorder %s895_s24, 1  ;;  %p211_p1 = scmp.lt.s32.totalorder %s895_s24, 3 }
   0x3   : > { %p814_p2 = scmp.eq.s32.totalorder %s781_s28, 0  ;;  %s897_s29 = smov [#allocation2]  }
   0x4   : > { %p212_p3 = pnand %p783_p0, %p211_p1  ;;  %s224_s30 = sshll.u32 %s897_s29, 4  ;;  %s225_s30 = int_to_ptr.vmem [resolvable:$true] %s224_s30 }
   0x5   : > { %s898_s8 = smov 128   ;;  %s899_s9 = smov 8  }
   0x6   : > { %p810_p4 = pneg %p212_p3  ;;  %270 = sbr.rel (%p212_p3) target bundleno = 1607 (0x647), region = 48 }
   0x8   : > { %p811_p5 = pnand %p814_p2, %p810_p4 }
   0xa   : > { %813 = dma.hbm_to_vmem [thread:$0]  (!%p811_p5), %s223_s27, 2048, %s225_s30, [#allocation3], %s898_s8, %s898_s8, %s899_s9  }
   0xb   : > { %890 = dma.done.wait (%p814_p2), [#allocation3], 2048  }
   0xc   : > { %892 = vsyncadd (%p814_p2), [#allocation3], 4294965248  ;;  %p309_p6 = scmp.lt.s32.totalorder %s781_s28, 1  ;;  %s900_s14 = smov 96   ;;  %vm329_vm0 = vcmask 261120   ;;  %vm361_vm1 = vcmask 64512  }
   0xd   : > { %s901_s18 = smov 64   ;;  %s902_s19 = smov 32   ;;  %v630_v63 = vld [vmem:[#allocation2 + $0x78] sm:$0xff]  ;;  %vm611_vm2 = vcmask 523264   ;;  %vm613_vm3 = vcmask 785408  }
   0xe   : > { %s1045_s28 = smov (!%p309_p6, %s781_s28), 1  ;;  %635 = vmatpush.msra.mxu1 %v630_v63 }
   0xf   : > { %s805_s10 = smul.u32 24, %s1045_s28  ;;  %s316_s17 = scalar_lea.vmem %s1037_s1, %s1045_s28 }
  0x10   : > { %v971_v4 = vld [vmem:[%s316_s17] ss:$0 sm:$0xff]  ;;  %s789_s20 = sshll.u32 %s1045_s28, 3 }
  0x11   : > { %s313_s13 = scalar_lea.vmem %s1036_s0, %s805_s10  ;;  %s320_s26 = scalar_lea.vmem %s1038_s2, %s789_s20 }
  0x12   : > { %v326_v0 = vld [vmem:[%s313_s13 + $0x8] sm:$0xff]  ;;  %v325_v1 = vld [vmem:[%s313_s13] sm:$0xff]  ;;  %v978_v13 = vld [vmem:[%s313_s13 + $0x10] sm:$0xff]  ;;  %s324_s11 = scalar_lea.vmem %s1043_s7, %s789_s20 }
  0x13   : > { %398 = vrot.lane.b32.xlu0 %v326_v0, %s900_s14  ;;  %791 = vmatpush.xpose.msk.msra.mxu0 %vm329_vm0, %v326_v0 }
  0x16   : > { %792 = vmatmul.msk.f32.vlgmr.msra.gmra.mxu0 %vm329_vm0, %v325_v1 }
  0x17   : > { %391 = vmatpush.msrb.mxu0 %v978_v13 }
  0x1b   : > { %396 = vrot.lane.b32.xlu0 %v325_v1, %s900_s14 }
  0x23   : > { %438 = vrot.lane.b32.xlu0 %v978_v13, %s900_s14 }
  0x2b   : > { %533 = vrot.lane.b32.xlu0 %v326_v0, %s902_s19 }
  0x33   : > { %531 = vrot.lane.b32.xlu0 %v325_v1, %s902_s19 }
  0x85   : > { %v399_v2 = vpop.permute.xlu0 %398 }
  0x86   : > { %794 = vmatpush.xpose.msk.msra.mxu2 %vm329_vm0, %v399_v2  ;;  %v627_v2 = vld [vmem:[#allocation2 + $0x60] sm:$0xff] }
  0x8d   : > { %v397_v3 = vpop.permute.xlu0 %396 }
  0x8e   : > { %795 = vmatmul.msk.f32.vlgmr.msra.gmra.mxu2 %vm329_vm0, %v397_v3  ;;  %v626_v3 = vld [vmem:[#allocation2 + $0x58] sm:$0xff] }
  0x93   : > { %v353_v6 = vpop.f32.mrf.mxu0 }
  0x94   : > { %v356_v9 = vmul.f32 0.17677669, %v353_v6 }
  0x95   : > { %v439_v24 = vpop.permute.xlu0 %438 }
  0x96   : > { %v360_v11 = vadd.f32 %v971_v4, %v356_v9  ;;  %459 = vmatpush.msra.mxu3 %v439_v24  ;;  %v622_v9 = vld [vmem:[#allocation2 + $0x38] sm:$0xff] }
  0x98   : > { %v362_v12 = vsel %vm361_vm1, %v360_v11, -inf }
  0x9d   : > { %v534_v25 = vpop.permute.xlu0 %533 }
  0x9e   : > { %800 = vmatpush.xpose.msk.msra.mxu0 %vm329_vm0, %v534_v25  ;;  %v655_v25 = vld [vmem:[%s320_s26] sm:$0xff] }
  0xa5   : > { %v532_v32 = vpop.permute.xlu0 %531 }
 0x111   : > { %v421_v5 = vpop.f32.mrf.mxu2 }
 0x112   : > { %v424_v7 = vmul.f32 0.17677669, %v421_v5  ;;  %v624_v5 = vld [vmem:[#allocation2 + $0x48] sm:$0xff] }
 0x114   : > { %v425_v8 = vadd.f32 %v971_v4, %v424_v7 }
 0x116   : > { %v426_v10 = vsel %vm361_vm1, %v425_v8, -inf }
 0x117   : > { %427 = vmax.xlane.f32.xlu1 %v426_v10  ;;  %v621_v10 = vld [vmem:[#allocation2 + $0x30] sm:$0xff] }
 0x11f   : > { %363 = vmax.xlane.f32.xlu1 %v362_v12  ;;  %v619_v12 = vld [vmem:[#allocation2 + $0x20] sm:$0xff] }
 0x138   : > { %466 = vrot.lane.b32.xlu1 %v326_v0, %s901_s18  ;;  %v629_v0 = vld [vmem:[#allocation2 + $0x70] sm:$0xff] }
 0x139   : > { %636 = vmatpush.msra.mxu1 %v629_v0 }
 0x18a   : > { %v428_v14 = vpop.xlane.xlu1 %427 }
 0x18b   : > { %v429_v17 = vsub.f32 %v425_v8, %v428_v14  ;;  %v623_v8 = vld [vmem:[#allocation2 + $0x40] sm:$0xff]  ;;  %v617_v14 = vld [vmem:[#allocation2 + $0x10] sm:$0xff] }
 0x18d   : > { %v430_v19 = vmul.f32 1.442695, %v429_v17 }
 0x192   : > { %v364_v15 = vpop.xlane.xlu1 %363 }
 0x193   : > { %v365_v16 = vsub.f32 %v360_v11, %v364_v15  ;;  %v620_v11 = vld [vmem:[#allocation2 + $0x28] sm:$0xff] }
 0x194   : > { %v616_v15 = vld [vmem:[#allocation2 + $0x8] sm:$0xff] }
 0x195   : > { %v366_v18 = vmul.f32 1.442695, %v365_v16  ;;  %v615_v16 = vld [vmem:[#allocation2] sm:$0xff] }
 0x197   : > { %835 = vpow2.f32 %v366_v18 }
 0x198   : > { %837 = vpow2.f32 %v430_v19 }
 0x19d   : > { %v836_v20 = vpop.eup %835 }
 0x19e   : > { %v368_v21 = vsel %vm361_vm1, %v836_v20, 0.0  ;;  %v838_v22 = vpop.eup %837 }
 0x19f   : > { %369 = vadd.xlane.f32.xlu2 %v368_v21  ;;  %v432_v23 = vsel %vm361_vm1, %v838_v22, 0.0 }
 0x1a7   : > { %433 = vadd.xlane.f32.xlu2 %v432_v23  ;;  %v832_v23 = vld [vmem:[%s1040_s4] ss:$0 sm:$0xff] }
 0x1aa   : > { %v467_v26 = vpop.permute.xlu1 %466 }
 0x1ab   : > { %797 = vmatpush.xpose.msk.msrb.mxu3 %vm329_vm0, %v467_v26 }
 0x1bf   : > { %464 = vrot.lane.b32.xlu2 %v325_v1, %s901_s18  ;;  %v628_v1 = vld [vmem:[#allocation2 + $0x68] sm:$0xff] }
 0x1c0   : > { %637 = vmatpush.msra.mxu1 %v628_v1 }
 0x1c2   : > { %638 = vmatpush.msra.mxu1 %v627_v2 }
 0x1c4   : > { %639 = vmatpush.msra.mxu1 %v626_v3 }
 0x212   : > { %v370_v27 = vpop.xlane.xlu2 %369 }
 0x213   : > { %839 = vrcp.f32 %v370_v27 }
 0x219   : > { %v840_v28 = vpop.eup %839 }
 0x21a   : > { %v434_v29 = vpop.xlane.xlu2 %433  ;;  %v372_v30 = vmul.f32 %v840_v28, %v836_v20  ;;  %v903_v28 = vmov 128.0  }
 0x21b   : > { %841 = vrcp.f32 %v434_v29 }
 0x21c   : > { %793 = vmatmul.msk.f32.vlgmr.msrb.gmra.mxu0 %vm361_vm1, %v372_v30 }
 0x221   : > { %v842_v31 = vpop.eup %841 }
 0x222   : > { %v436_v33 = vmul.f32 %v842_v31, %v838_v22  ;;  %v465_v34 = vpop.permute.xlu2 %464 }
 0x224   : > { %796 = vmatmul.msk.f32.vlgmr.msra.gmra.mxu3 %vm361_vm1, %v436_v33  ;;  %801 = vmatmul.msk.f32.vlgmr.msra.gmra.mxu0 %vm329_vm0, %v532_v32 }
 0x22c   : > { %798 = vmatmul.msk.f32.vlgmr.msrb.gmra.mxu3 %vm329_vm0, %v465_v34 }
 0x299   : > { %v994_v35 = vpop.f32.mrf.mxu0 }
 0x2a1   : > { %v556_v36 = vpop.f32.mrf.mxu0 }
 0x2a2   : > { %v559_v37 = vmul.f32 0.17677669, %v556_v36 }
 0x2a4   : > { %v560_v38 = vadd.f32 %v971_v4, %v559_v37 }
 0x2a6   : > { %v561_v39 = vsel %vm361_vm1, %v560_v38, -inf }
 0x2a7   : > { %562 = vmax.xlane.f32.xlu2 %v561_v39  ;;  %v461_v40 = vpop.f32.mrf.mxu3 }
 0x2af   : > { %v489_v41 = vpop.f32.mrf.mxu3 }
 0x2b0   : > { %v492_v42 = vmul.f32 0.17677669, %v489_v41 }
 0x2b2   : > { %v493_v43 = vadd.f32 %v971_v4, %v492_v42  ;;  %v625_v4 = vld [vmem:[#allocation2 + $0x50] sm:$0xff] }
 0x2b3   : > { %640 = vmatpush.msra.mxu1 %v625_v4 }
 0x2b4   : > { %v494_v44 = vsel %vm361_vm1, %v493_v43, -inf }
 0x2b5   : > { %495 = vmax.xlane.f32.xlu0 %v494_v44  ;;  %641 = vmatpush.msra.mxu1 %v624_v5 }
 0x2b7   : > { %642 = vmatpush.msra.mxu1 %v623_v8 }
 0x2b9   : > { %643 = vmatpush.msra.mxu1 %v622_v9 }
 0x2bb   : > { %644 = vmatpush.msra.mxu1 %v621_v10 }
 0x2bd   : > { %645 = vmatpush.msra.mxu1 %v620_v11 }
 0x2bf   : > { %646 = vmatpush.msra.mxu1 %v619_v12 }
 0x2c9   : > { %505 = vrot.lane.b32.xlu0 %v978_v13, %s901_s18 }
 0x31a   : > { %v563_v45 = vpop.xlane.xlu2 %562 }
 0x31b   : > { %v564_v46 = vsub.f32 %v560_v38, %v563_v45 }
 0x31d   : > { %v565_v47 = vmul.f32 1.442695, %v564_v46 }
 0x31f   : > { %843 = vpow2.f32 %v565_v47 }
 0x325   : > { %v844_v48 = vpop.eup %843 }
 0x326   : > { %v567_v49 = vsel %vm361_vm1, %v844_v48, 0.0 }
 0x327   : > { %568 = vadd.xlane.f32.xlu2 %v567_v49 }
 0x328   : > { %v496_v50 = vpop.xlane.xlu0 %495 }
 0x329   : > { %v497_v51 = vsub.f32 %v493_v43, %v496_v50  ;;  %v834_v50 = vld [vmem:[%s1042_s6] ss:$0 sm:$0xff] }
 0x32b   : > { %v498_v52 = vmul.f32 1.442695, %v497_v51 }
 0x32d   : > { %845 = vpow2.f32 %v498_v52 }
 0x333   : > { %v846_v53 = vpop.eup %845 }
 0x334   : > { %v500_v54 = vsel %vm361_vm1, %v846_v53, 0.0 }
 0x335   : > { %501 = vadd.xlane.f32.xlu1 %v500_v54 }
 0x33b   : > { %v506_v55 = vpop.permute.xlu0 %505 }
 0x33c   : > { %526 = vmatpush.msra.mxu3 %v506_v55 }
 0x33f   : > { %599 = vrot.lane.b32.xlu2 %v461_v40, %s902_s19 }
 0x34e   : > { %572 = vrot.lane.b32.xlu1 %v978_v13, %s902_s19  ;;  %v618_v13 = vld [vmem:[#allocation2 + $0x18] sm:$0xff] }
 0x34f   : > { %647 = vmatpush.msra.mxu1 %v618_v13 }
 0x351   : > { %648 = vmatpush.msra.mxu1 %v617_v14 }
 0x353   : > { %649 = vmatpush.msra.mxu1 %v616_v15 }
 0x355   : > { %650 = vmatpush.msra.mxu1 %v615_v16 }
 0x39a   : > { %v569_v59 = vpop.xlane.xlu2 %568 }
 0x3a2   : > { %v600_v17 = vpop.permute.xlu2 %599 }
 0x3a3   : > { %v610_v19 = vsel %vm329_vm0, %v994_v35, %v600_v17 }
 0x3a8   : > { %v502_v56 = vpop.xlane.xlu1 %501 }
 0x3a9   : > { %847 = vrcp.f32 %v502_v56 }
 0x3aa   : > { %849 = vrcp.f32 %v569_v59 }
 0x3ab   : > { %851 = vrcp.f32 %v903_v28 }
 0x3af   : > { %v848_v57 = vpop.eup %847 }
 0x3b0   : > { %v504_v58 = vmul.f32 %v848_v57, %v846_v53  ;;  %v850_v60 = vpop.eup %849 }
 0x3b1   : > { %v571_v62 = vmul.f32 %v850_v60, %v844_v48  ;;  %v852_v29 = vpop.eup %851  ;;  %v833_v48 = vld [vmem:[%s1041_s5] ss:$0 sm:$0xff] }
 0x3b2   : > { %799 = vmatmul.msk.f32.vlgmr.msra.gmra.mxu3 %vm361_vm1, %v504_v58  ;;  %v662_v30 = vmul.f32 128.0, %v852_v29  ;;  %vm666_vm4 = vweird.f32 %v852_v29 }
 0x3b4   : > { %v663_v31 = vsub.f32 1.0, %v662_v30 }
 0x3b6   : > { %v664_v32 = vmul.f32 %v852_v29, %v663_v31 }
 0x3b8   : > { %v665_v33 = vadd.f32 %v852_v29, %v664_v32 }
 0x3ba   : > { %v667_v34 = vsel %vm666_vm4, %v852_v29, %v665_v33 }
 0x3c0   : > { %v573_v61 = vpop.permute.xlu1 %572 }
 0x3c1   : > { %593 = vmatpush.msrb.mxu2 %v573_v61 }
 0x3c2   : > { %802 = vmatmul.msk.f32.vlgmr.msrb.gmra.mxu2 %vm361_vm1, %v571_v62 }
 0x435   : > { %v528_v6 = vpop.f32.mrf.mxu3 }
 0x436   : > { %603 = vrot.lane.b32.xlu0 %v528_v6, %s901_s18 }
 0x445   : > { %v595_v7 = vpop.f32.mrf.mxu2 }
 0x446   : > { %607 = vrot.lane.b32.xlu1 %v595_v7, %s900_s14 }
 0x4a8   : > { %v604_v18 = vpop.permute.xlu0 %603 }
 0x4a9   : > { %v612_v20 = vsel %vm611_vm2, %v610_v19, %v604_v18 }
 0x4b8   : > { %v608_v21 = vpop.permute.xlu1 %607 }
 0x4b9   : > { %v614_v22 = vsel %vm613_vm3, %v612_v20, %v608_v21 }
 0x4ba   : > { %651 = vmatmul.f32.vlgmr.msra.gmra.mxu1 %v614_v22 }
 0x537   : > { %v652_v24 = vpop.f32.mrf.mxu1 }
 0x538   : > { %v653_v26 = vadd.f32 %v832_v23, %v652_v24 }
 0x53a   : > { %v656_v27 = vadd.f32 %v655_v25, %v653_v26 }
 0x53c   : > { %659 = vadd.xlane.f32.xlu0 %v656_v27 }
 0x5af   : > { %v660_v35 = vpop.xlane.xlu0 %659 }
 0x5b0   : > { %v668_v36 = vmul.f32 %v667_v34, %v660_v35 }
 0x5b2   : > { %v669_v37 = vsub.f32 %v656_v27, %v668_v36 }
 0x5b4   : > { %v670_v38 = vmul.f32 %v669_v37, %v669_v37 }
 0x5b6   : > { %671 = vadd.xlane.f32.xlu2 %v670_v38 }
 0x629   : > { %v672_v39 = vpop.xlane.xlu2 %671 }
 0x62a   : > { %v673_v40 = vmul.f32 %v672_v39, %v667_v34 }
 0x62c   : > { %v674_v41 = vadd.f32 1e-05, %v673_v40 }
 0x62e   : > { %853 = vrsqrt.f32 %v674_v41  ;;  %vm681_vm6 = vweird.f32 %v674_v41 }
 0x634   : > { %v854_v42 = vpop.eup %853 }
 0x635   : > { %v676_v43 = vmul.f32 %v854_v42, %v674_v41  ;;  %vm682_vm5 = vweird.f32 %v854_v42 }
 0x636   : > { %vm683_vm7 = vmor %vm681_vm6, %vm682_vm5 }
 0x637   : > { %v677_v44 = vmul.f32 %v854_v42, %v676_v43 }
 0x639   : > { %v678_v45 = vmul.f32 0.5, %v677_v44 }
 0x63b   : > { %v679_v46 = vsub.f32 1.5, %v678_v45 }
 0x63d   : > { %v680_v47 = vmul.f32 %v854_v42, %v679_v46 }
 0x63f   : > { %v684_v49 = vsel %vm683_vm7, %v854_v42, %v680_v47 }
 0x640   : > { %v685_v51 = vmul.f32 %v684_v49, %v669_v37 }
 0x642   : > { %v689_v52 = vmul.f32 %v833_v48, %v685_v51 }
 0x644   : > { %v693_v53 = vadd.f32 %v834_v50, %v689_v52 }
 0x646   : > { %694 = vst [vmem:[%s324_s11] sm:$0xff] %v693_v53 }
 0x647 PF: > { %s18_s24 = sadd.s32 1, %s895_s24  }
 0x648   : > { %p15_p7 = scmp.ge.s32.totalorder %s18_s24, 4  }
 0x64a   :  { %17 = sbr.rel (!%p15_p7) target bundleno = 1 (0x1), region = 89 }
 0x64f   :  { %714 = vsyncpa [#allocation3], 1 }
 0x650   :  { %716 = vsyncpa [#allocation3 + $0x1], 1 }

// kernel: forward.14
= control target key start
LH: loop header
LB: loop body
LE: loop exit
PB: predicated region body
PF: predicated region fallthrough
CT: control target
= control target key end

     0   :  { %12 = vsyncpa [#allocation3], 0  ;;  %s494_s0 = inlined_call_operand.vmem [shape: f32[16,128], index: 0, kind: input, shape index: {}]   ;;  %s495_s1 = inlined_call_operand.hbm [shape: f32[128,256], index: 1, kind: input, shape index: {}]   ;;  %s496_s2 = inlined_call_operand.vmem [shape: f32[1,256], index: 2, kind: input, shape index: {}]   ;;  %s497_s3 = inlined_call_operand.hbm [shape: f32[256,128], index: 3, kind: input, shape index: {}]   ;;  %s498_s4 = inlined_call_operand.vmem [shape: f32[1,128], index: 4, kind: input, shape index: {}]   ;;  %s499_s5 = inlined_call_operand.vmem [shape: f32[1,128], index: 5, kind: input, shape index: {}]   ;;  %s500_s6 = inlined_call_operand.vmem [shape: f32[1,128], index: 6, kind: input, shape index: {}]   ;;  %s501_s7 = inlined_call_operand.vmem [shape: f32[16,128], index: 7, kind: output, shape index: {}]  }
   0x1   :  { %s20_s26 = sshll.u32 %s495_s1, 4  ;;  %s21_s26 = int_to_ptr.hbm [resolvable:$true] %s20_s26 }
   0x2   :  { %13 = vsyncpa [#allocation5], 0  ;;  %s407_s27 = smov [#allocation2]   ;;  %s35_s8 = sshll.u32 %s497_s3, 4  ;;  %s36_s8 = int_to_ptr.hbm [resolvable:$true] %s35_s8 }
   0x3   :  { %s22_s28 = sshll.u32 %s407_s27, 4  ;;  %s408_s9 = smov 256   ;;  %s23_s28 = int_to_ptr.vmem [resolvable:$true] %s22_s28 }
   0x4   :  { %s409_s10 = smov 16   ;;  %s410_s11 = smov [#allocation4]  }
   0x5   :  { %28 = dma.hbm_to_vmem [thread:$0]  %s21_s26, 4096, %s23_s28, [#allocation3], %s408_s9, %s408_s9, %s409_s10  }
   0x6   :  { %s37_s12 = sshll.u32 %s410_s11, 4  ;;  %s411_s13 = smov 128   ;;  %s38_s12 = int_to_ptr.vmem [resolvable:$true] %s37_s12 }
   0x7   :  { %s412_s14 = smov 8  }
   0x8   :  { %43 = dma.hbm_to_vmem [thread:$0]  %s36_s8, 4096, %s38_s12, [#allocation5], %s411_s13, %s411_s13, %s412_s14  }
   0x9   :  { %403 = dma.done.wait [#allocation3], 4096  }
   0xa   :  { %404 = vsyncadd [#allocation3], 4294963200 }
   0xb   :  { %405 = dma.done.wait [#allocation5], 4096  }
   0xc   :  { %406 = vsyncadd [#allocation5], 4294963200  ;;  %v90_v0 = vld [vmem:[#allocation2 + $0xf0] sm:$0xff]  ;;  %v91_v1 = vld [vmem:[#allocation2 + $0xf8] sm:$0xff] }
   0xd   :  { %v88_v2 = vld [vmem:[#allocation2 + $0xe0] sm:$0xff]  ;;  %98 = vmatpush.msra.mxu0 %v90_v0  ;;  %121 = vmatpush.msra.mxu1 %v91_v1  ;;  %v89_v3 = vld [vmem:[#allocation2 + $0xe8] sm:$0xff]  ;;  %v86_v4 = vld [vmem:[#allocation2 + $0xd0] sm:$0xff] }
   0xe   :  { %v87_v5 = vld [vmem:[#allocation2 + $0xd8] sm:$0xff]  ;;  %v84_v6 = vld [vmem:[#allocation2 + $0xc0] sm:$0xff]  ;;  %v85_v7 = vld [vmem:[#allocation2 + $0xc8] sm:$0xff] }
   0xf   :  { %99 = vmatpush.msra.mxu0 %v88_v2  ;;  %122 = vmatpush.msra.mxu1 %v89_v3  ;;  %v82_v8 = vld [vmem:[#allocation2 + $0xb0] sm:$0xff]  ;;  %v83_v9 = vld [vmem:[#allocation2 + $0xb8] sm:$0xff]  ;;  %v80_v10 = vld [vmem:[#allocation2 + $0xa0] sm:$0xff] }
  0x10   :  { %v81_v11 = vld [vmem:[#allocation2 + $0xa8] sm:$0xff]  ;;  %v78_v12 = vld [vmem:[#allocation2 + $0x90] sm:$0xff]  ;;  %v79_v13 = vld [vmem:[#allocation2 + $0x98] sm:$0xff] }
  0x11   :  { %100 = vmatpush.msra.mxu0 %v86_v4  ;;  %123 = vmatpush.msra.mxu1 %v87_v5  ;;  %v76_v14 = vld [vmem:[#allocation2 + $0x80] sm:$0xff]  ;;  %v77_v15 = vld [vmem:[#allocation2 + $0x88] sm:$0xff]  ;;  %v195_v16 = vld [vmem:[#allocation4 + $0x78] sm:$0xff] }
  0x12   :  { %v211_v17 = vld [vmem:[#allocation4 + $0xf8] sm:$0xff]  ;;  %v74_v18 = vld [vmem:[#allocation2 + $0x70] sm:$0xff]  ;;  %216 = vmatpush.msra.mxu2 %v195_v16  ;;  %v193_v21 = vld [vmem:[#allocation4 + $0x68] sm:$0xff] }
  0x13   :  { %101 = vmatpush.msra.mxu0 %v84_v6  ;;  %124 = vmatpush.msra.mxu1 %v85_v7  ;;  %v194_v19 = vld [vmem:[#allocation4 + $0x70] sm:$0xff]  ;;  %v209_v22 = vld [vmem:[#allocation4 + $0xe8] sm:$0xff]  ;;  %v75_v23 = vld [vmem:[#allocation2 + $0x78] sm:$0xff] }
  0x14   :  { %239 = vmatpush.msra.mxu3 %v211_v17  ;;  %v210_v20 = vld [vmem:[#allocation4 + $0xf0] sm:$0xff]  ;;  %217 = vmatpush.msra.mxu2 %v194_v19  ;;  %v72_v24 = vld [vmem:[#allocation2 + $0x60] sm:$0xff]  ;;  %v73_v25 = vld [vmem:[#allocation2 + $0x68] sm:$0xff] }
  0x15   :  { %102 = vmatpush.msra.mxu0 %v82_v8  ;;  %125 = vmatpush.msra.mxu1 %v83_v9  ;;  %v70_v26 = vld [vmem:[#allocation2 + $0x50] sm:$0xff]  ;;  %v71_v27 = vld [vmem:[#allocation2 + $0x58] sm:$0xff]  ;;  %v68_v28 = vld [vmem:[#allocation2 + $0x40] sm:$0xff] }
  0x16   :  { %240 = vmatpush.msra.mxu3 %v210_v20  ;;  %218 = vmatpush.msra.mxu2 %v193_v21  ;;  %v69_v29 = vld [vmem:[#allocation2 + $0x48] sm:$0xff]  ;;  %v66_v30 = vld [vmem:[#allocation2 + $0x30] sm:$0xff]  ;;  %v67_v31 = vld [vmem:[#allocation2 + $0x38] sm:$0xff] }
  0x17   :  { %103 = vmatpush.msra.mxu0 %v80_v10  ;;  %126 = vmatpush.msra.mxu1 %v81_v11  ;;  %v64_v32 = vld [vmem:[#allocation2 + $0x20] sm:$0xff]  ;;  %v65_v33 = vld [vmem:[#allocation2 + $0x28] sm:$0xff]  ;;  %v62_v34 = vld [vmem:[#allocation2 + $0x10] sm:$0xff] }
  0x18   :  { %241 = vmatpush.msra.mxu3 %v209_v22  ;;  %v63_v35 = vld [vmem:[#allocation2 + $0x18] sm:$0xff]  ;;  %v60_v36 = vld [vmem:[#allocation2] sm:$0xff]  ;;  %v61_v37 = vld [vmem:[#allocation2 + $0x8] sm:$0xff] }
  0x19   :  { %104 = vmatpush.msra.mxu0 %v78_v12  ;;  %127 = vmatpush.msra.mxu1 %v79_v13  ;;  %v463_v38 = vld [vmem:[%s494_s0] sm:$0xff]  ;;  %v470_v39 = vld [vmem:[%s494_s0 + $0x8] sm:$0xff]  ;;  %v191_v42 = vld [vmem:[#allocation4 + $0x58] sm:$0xff] }
  0x1a   :  { %v192_v40 = vld [vmem:[#allocation4 + $0x60] sm:$0xff]  ;;  %v207_v43 = vld [vmem:[#allocation4 + $0xd8] sm:$0xff]  ;;  %v190_v44 = vld [vmem:[#allocation4 + $0x50] sm:$0xff] }
  0x1b   :  { %105 = vmatpush.msra.mxu0 %v76_v14  ;;  %128 = vmatpush.msra.mxu1 %v77_v15  ;;  %v208_v41 = vld [vmem:[#allocation4 + $0xe0] sm:$0xff]  ;;  %v206_v45 = vld [vmem:[#allocation4 + $0xd0] sm:$0xff]  ;;  %v189_v46 = vld [vmem:[#allocation4 + $0x48] sm:$0xff] }
  0x1c   :  { %219 = vmatpush.msra.mxu2 %v192_v40  ;;  %242 = vmatpush.msra.mxu3 %v208_v41  ;;  %v205_v47 = vld [vmem:[#allocation4 + $0xc8] sm:$0xff]  ;;  %v188_v48 = vld [vmem:[#allocation4 + $0x40] sm:$0xff]  ;;  %v187_v50 = vld [vmem:[#allocation4 + $0x38] sm:$0xff] }
  0x1d   :  { %106 = vmatpush.msra.mxu0 %v74_v18  ;;  %129 = vmatpush.msra.mxu1 %v75_v23  ;;  %v204_v49 = vld [vmem:[#allocation4 + $0xc0] sm:$0xff]  ;;  %v203_v51 = vld [vmem:[#allocation4 + $0xb8] sm:$0xff]  ;;  %v186_v52 = vld [vmem:[#allocation4 + $0x30] sm:$0xff] }
  0x1e   :  { %220 = vmatpush.msra.mxu2 %v191_v42  ;;  %243 = vmatpush.msra.mxu3 %v207_v43  ;;  %v202_v53 = vld [vmem:[#allocation4 + $0xb0] sm:$0xff]  ;;  %v185_v54 = vld [vmem:[#allocation4 + $0x28] sm:$0xff]  ;;  %v184_v56 = vld [vmem:[#allocation4 + $0x20] sm:$0xff] }
  0x1f   :  { %107 = vmatpush.msra.mxu0 %v72_v24  ;;  %130 = vmatpush.msra.mxu1 %v73_v25  ;;  %v201_v55 = vld [vmem:[#allocation4 + $0xa8] sm:$0xff]  ;;  %v200_v57 = vld [vmem:[#allocation4 + $0xa0] sm:$0xff]  ;;  %v183_v58 = vld [vmem:[#allocation4 + $0x18] sm:$0xff] }
  0x20   :  { %221 = vmatpush.msra.mxu2 %v190_v44  ;;  %244 = vmatpush.msra.mxu3 %v206_v45  ;;  %v199_v59 = vld [vmem:[#allocation4 + $0x98] sm:$0xff]  ;;  %v182_v60 = vld [vmem:[#allocation4 + $0x10] sm:$0xff]  ;;  %v181_v62 = vld [vmem:[#allocation4 + $0x8] sm:$0xff] }
  0x21   :  { %108 = vmatpush.msra.mxu0 %v70_v26  ;;  %131 = vmatpush.msra.mxu1 %v71_v27  ;;  %v198_v61 = vld [vmem:[#allocation4 + $0x90] sm:$0xff]  ;;  %v197_v63 = vld [vmem:[#allocation4 + $0x88] sm:$0xff]  ;;  %v180_v0 = vld [vmem:[#allocation4] sm:$0xff] }
  0x22   :  { %222 = vmatpush.msra.mxu2 %v189_v46  ;;  %245 = vmatpush.msra.mxu3 %v205_v47  ;;  %v196_v1 = vld [vmem:[#allocation4 + $0x80] sm:$0xff] }
  0x23   :  { %109 = vmatpush.msra.mxu0 %v68_v28  ;;  %132 = vmatpush.msra.mxu1 %v69_v29  ;;  %v92_v2 = vld [vmem:[%s496_s2] sm:$0x3] }
  0x24   :  { %223 = vmatpush.msra.mxu2 %v188_v48  ;;  %246 = vmatpush.msra.mxu3 %v204_v49  ;;  %v94_v3 = vperm.slane %v92_v2, 0  ;;  %v95_v4 = vperm.slane %v92_v2, 1 }
  0x25   :  { %110 = vmatpush.msra.mxu0 %v66_v30  ;;  %133 = vmatpush.msra.mxu1 %v67_v31 }
  0x26   :  { %224 = vmatpush.msra.mxu2 %v187_v50  ;;  %247 = vmatpush.msra.mxu3 %v203_v51  ;;  %v338_v51 = vld [vmem:[%s498_s4] ss:$0 sm:$0xff] }
  0x27   :  { %111 = vmatpush.msra.mxu0 %v64_v32  ;;  %134 = vmatpush.msra.mxu1 %v65_v33 }
  0x28   :  { %225 = vmatpush.msra.mxu2 %v186_v52  ;;  %248 = vmatpush.msra.mxu3 %v202_v53 }
  0x29   :  { %112 = vmatpush.msra.mxu0 %v62_v34  ;;  %135 = vmatpush.msra.mxu1 %v63_v35 }
  0x2a   :  { %226 = vmatpush.msra.mxu2 %v185_v54  ;;  %249 = vmatpush.msra.mxu3 %v201_v55 }
  0x2b   :  { %113 = vmatpush.msra.mxu0 %v60_v36  ;;  %136 = vmatpush.msra.mxu1 %v61_v37 }
  0x2c   :  { %114 = vmatmul.f32.vlgmr.msra.gmra.mxu0 %v463_v38  ;;  %137 = vmatmul.f32.vlgmr.msra.gmra.mxu1 %v463_v38 }
  0x2d   :  { %227 = vmatpush.msra.mxu2 %v184_v56  ;;  %250 = vmatpush.msra.mxu3 %v200_v57 }
  0x2f   :  { %228 = vmatpush.msra.mxu2 %v183_v58  ;;  %251 = vmatpush.msra.mxu3 %v199_v59 }
  0x31   :  { %229 = vmatpush.msra.mxu2 %v182_v60  ;;  %252 = vmatpush.msra.mxu3 %v198_v61 }
  0x33   :  { %230 = vmatpush.msra.mxu2 %v181_v62  ;;  %253 = vmatpush.msra.mxu3 %v197_v63  ;;  %v413_v62 = vmov 128.0  }
  0x34   :  { %117 = vmatmul.f32.gmra.mxu0 %v470_v39  ;;  %140 = vmatmul.f32.gmra.mxu1 %v470_v39 }
  0x35   :  { %231 = vmatpush.msra.mxu2 %v180_v0  ;;  %254 = vmatpush.msra.mxu3 %v196_v1 }
  0xa9   :  { %v115_v5 = vpop.f32.mrf.mxu0  ;;  %v138_v6 = vpop.f32.mrf.mxu1 }
  0xaa   :  { %v116_v7 = vadd.f32 %v115_v5, %v94_v3  ;;  %v139_v8 = vadd.f32 %v138_v6, %v95_v4 }
  0xac   :  { %v144_v9 = vmul.f32 %v116_v7, %v116_v7  ;;  %v145_v10 = vmul.f32 %v139_v8, %v139_v8 }
  0xae   :  { %v148_v11 = vmul.f32 %v144_v9, %v116_v7  ;;  %v149_v12 = vmul.f32 %v145_v10, %v139_v8 }
  0xb0   :  { %v152_v13 = vmul.f32 0.044715, %v148_v11  ;;  %v153_v14 = vmul.f32 0.044715, %v149_v12 }
  0xb1   :  { %v118_v15 = vpop.f32.mrf.mxu0  ;;  %v141_v16 = vpop.f32.mrf.mxu1 }
  0xb2   :  { %v119_v17 = vadd.f32 %v118_v15, %v94_v3  ;;  %v142_v18 = vadd.f32 %v141_v16, %v95_v4  ;;  %v156_v19 = vadd.f32 %v152_v13, %v116_v7  ;;  %v157_v20 = vadd.f32 %v153_v14, %v139_v8 }
  0xb4   :  { %v146_v21 = vmul.f32 %v119_v17, %v119_v17  ;;  %v147_v22 = vmul.f32 %v142_v18, %v142_v18  ;;  %v160_v23 = vmul.f32 0.7978846, %v156_v19  ;;  %v161_v24 = vmul.f32 0.7978846, %v157_v20 }
  0xb6   :  { %v150_v25 = vmul.f32 %v146_v21, %v119_v17  ;;  %v151_v26 = vmul.f32 %v147_v22, %v142_v18  ;;  %341 = vtanh.f32 %v160_v23 }
  0xb7   :  { %343 = vtanh.f32 %v161_v24 }
  0xb8   :  { %v154_v27 = vmul.f32 0.044715, %v150_v25  ;;  %v155_v28 = vmul.f32 0.044715, %v151_v26  ;;  %v339_v25 = vld [vmem:[%s499_s5] ss:$0 sm:$0xff] }
  0xba   :  { %v158_v29 = vadd.f32 %v154_v27, %v119_v17  ;;  %v159_v30 = vadd.f32 %v155_v28, %v142_v18  ;;  %v340_v28 = vld [vmem:[%s500_s6] ss:$0 sm:$0xff] }
  0xbc   :  { %v342_v31 = vpop.eup %341  ;;  %v162_v32 = vmul.f32 0.7978846, %v158_v29  ;;  %v163_v33 = vmul.f32 0.7978846, %v159_v30 }
  0xbd   :  { %v344_v34 = vpop.eup %343  ;;  %v168_v35 = vadd.f32 1.0, %v342_v31 }
  0xbe   :  { %v169_v36 = vadd.f32 1.0, %v344_v34  ;;  %345 = vtanh.f32 %v162_v32 }
  0xbf   :  { %v172_v37 = vmul.f32 0.5, %v168_v35  ;;  %347 = vtanh.f32 %v163_v33 }
  0xc0   :  { %v173_v40 = vmul.f32 0.5, %v169_v36  ;;  %349 = vrcp.f32 %v413_v62 }
  0xc1   :  { %v176_v41 = vmul.f32 %v172_v37, %v116_v7 }
  0xc2   :  { %v177_v42 = vmul.f32 %v173_v40, %v139_v8 }
  0xc3   :  { %232 = vmatmul.f32.vlgmr.msra.gmra.mxu2 %v176_v41 }
  0xc4   :  { %v346_v43 = vpop.eup %345  ;;  %255 = vmatmul.f32.vlgmr.msra.gmra.mxu3 %v177_v42 }
  0xc5   :  { %v348_v44 = vpop.eup %347  ;;  %v170_v45 = vadd.f32 1.0, %v346_v43 }
  0xc6   :  { %v171_v46 = vadd.f32 1.0, %v348_v44  ;;  %v350_v63 = vpop.eup %349 }
  0xc7   :  { %v174_v47 = vmul.f32 0.5, %v170_v45  ;;  %v271_v0 = vmul.f32 128.0, %v350_v63  ;;  %vm275_vm0 = vweird.f32 %v350_v63 }
  0xc8   :  { %v175_v48 = vmul.f32 0.5, %v171_v46 }
  0xc9   :  { %v178_v49 = vmul.f32 %v174_v47, %v119_v17  ;;  %v272_v1 = vsub.f32 1.0, %v271_v0 }
  0xca   :  { %v179_v50 = vmul.f32 %v175_v48, %v142_v18 }
  0xcb   :  { %235 = vmatmul.f32.gmra.mxu2 %v178_v49  ;;  %v273_v2 = vmul.f32 %v350_v63, %v272_v1 }
  0xcc   :  { %258 = vmatmul.f32.gmra.mxu3 %v179_v50 }
  0xcd   :  { %v274_v3 = vadd.f32 %v350_v63, %v273_v2 }
  0xcf   :  { %v276_v4 = vsel %vm275_vm0, %v350_v63, %v274_v3 }
 0x146   :  { %v233_v52 = vpop.f32.mrf.mxu2 }
 0x147   :  { %v234_v53 = vadd.f32 %v338_v51, %v233_v52  ;;  %v256_v54 = vpop.f32.mrf.mxu3 }
 0x149   :  { %v257_v55 = vadd.f32 %v256_v54, %v234_v53 }
 0x14b   :  { %v262_v56 = vadd.f32 %v257_v55, %v463_v38 }
 0x14d   :  { %266 = vadd.xlane.f32.xlu0 %v262_v56 }
 0x14e   :  { %v236_v57 = vpop.f32.mrf.mxu2 }
 0x14f   :  { %v237_v58 = vadd.f32 %v338_v51, %v236_v57  ;;  %v259_v59 = vpop.f32.mrf.mxu3 }
 0x151   :  { %v260_v60 = vadd.f32 %v259_v59, %v237_v58 }
 0x153   :  { %v263_v61 = vadd.f32 %v260_v60, %v470_v39 }
 0x155   :  { %268 = vadd.xlane.f32.xlu0 %v263_v61 }
 0x1c0   :  { %v267_v5 = vpop.xlane.xlu0 %266 }
 0x1c1   :  { %v277_v6 = vmul.f32 %v276_v4, %v267_v5 }
 0x1c3   :  { %v279_v38 = vsub.f32 %v262_v56, %v277_v6 }
 0x1c5   :  { %v281_v7 = vmul.f32 %v279_v38, %v279_v38 }
 0x1c7   :  { %283 = vadd.xlane.f32.xlu1 %v281_v7 }
 0x1c8   :  { %v269_v8 = vpop.xlane.xlu0 %268 }
 0x1c9   :  { %v278_v9 = vmul.f32 %v276_v4, %v269_v8 }
 0x1cb   :  { %v280_v10 = vsub.f32 %v263_v61, %v278_v9 }
 0x1cd   :  { %v282_v11 = vmul.f32 %v280_v10, %v280_v10 }
 0x1cf   :  { %285 = vadd.xlane.f32.xlu1 %v282_v11 }
 0x23a   :  { %v284_v39 = vpop.xlane.xlu1 %283 }
 0x23b   :  { %v287_v12 = vmul.f32 %v284_v39, %v276_v4 }
 0x23d   :  { %v289_v13 = vadd.f32 1e-05, %v287_v12 }
 0x23f   :  { %351 = vrsqrt.f32 %v289_v13  ;;  %vm297_vm2 = vweird.f32 %v289_v13 }
 0x242   :  { %v286_v14 = vpop.xlane.xlu1 %285 }
 0x243   :  { %v288_v15 = vmul.f32 %v286_v14, %v276_v4 }
 0x245   :  { %v352_v16 = vpop.eup %351  ;;  %v290_v17 = vadd.f32 1e-05, %v288_v15 }
 0x246   :  { %v292_v18 = vmul.f32 %v352_v16, %v289_v13  ;;  %vm298_vm1 = vweird.f32 %v352_v16 }
 0x247   :  { %353 = vrsqrt.f32 %v290_v17  ;;  %vm299_vm3 = vmor %vm297_vm2, %vm298_vm1  ;;  %vm307_vm5 = vweird.f32 %v290_v17 }
 0x248   :  { %v293_v19 = vmul.f32 %v352_v16, %v292_v18 }
 0x24a   :  { %v294_v20 = vmul.f32 0.5, %v293_v19 }
 0x24c   :  { %v295_v21 = vsub.f32 1.5, %v294_v20 }
 0x24d   :  { %v354_v22 = vpop.eup %353 }
 0x24e   :  { %v296_v23 = vmul.f32 %v352_v16, %v295_v21  ;;  %v302_v24 = vmul.f32 %v354_v22, %v290_v17  ;;  %vm308_vm4 = vweird.f32 %v354_v22 }
 0x24f   :  { %vm309_vm6 = vmor %vm307_vm5, %vm308_vm4 }
 0x250   :  { %v300_v26 = vsel %vm299_vm3, %v352_v16, %v296_v23  ;;  %v303_v27 = vmul.f32 %v354_v22, %v302_v24 }
 0x251   :  { %v311_v29 = vmul.f32 %v300_v26, %v279_v38 }
 0x252   :  { %v304_v30 = vmul.f32 0.5, %v303_v27 }
 0x253   :  { %v316_v31 = vmul.f32 %v339_v25, %v311_v29 }
 0x254   :  { %v305_v32 = vsub.f32 1.5, %v304_v30 }
 0x255   :  { %v321_v33 = vadd.f32 %v340_v28, %v316_v31 }
 0x256   :  { %v306_v34 = vmul.f32 %v354_v22, %v305_v32 }
 0x257   :  { %323 = vst [vmem:[%s501_s7] sm:$0xff] %v321_v33 }
 0x258   :  { %v310_v35 = vsel %vm309_vm6, %v354_v22, %v306_v34 }
 0x259   :  { %v312_v36 = vmul.f32 %v310_v35, %v280_v10 }
 0x25b   :  { %v317_v37 = vmul.f32 %v339_v25, %v312_v36 }
 0x25d   :  { %v322_v40 = vadd.f32 %v340_v28, %v317_v37 }
 0x25f   :  { %324 = vst [vmem:[%s501_s7 + $0x8] sm:$0xff] %v322_v40 }
 0x260   :  { %329 = vsyncpa [#allocation3], 1 }
 0x261   :  { %330 = vsyncpa [#allocation5], 1 }

// kernel: forward.15
= control target key start
LH: loop header
LB: loop body
LE: loop exit
PB: predicated region body
PF: predicated region fallthrough
CT: control target
= control target key end

     0   :  { %12 = vsyncpa [#allocation4], 0  ;;  %s6644_s0 = inlined_call_operand.vmem [shape: f32[16,128], index: 0, kind: input, shape index: {}]   ;;  %s6645_s1 = inlined_call_operand.hbm [shape: f32[128,1024], index: 1, kind: input, shape index: {}]   ;;  %s6646_s2 = inlined_call_operand.vmem [shape: f32[1,1024], index: 2, kind: input, shape index: {}]   ;;  %s6647_s3 = inlined_call_operand.hbm [shape: f32[128,512], index: 3, kind: input, shape index: {}]   ;;  %s6648_s4 = inlined_call_operand.hbm [shape: f32[128,512], index: 4, kind: input, shape index: {}]   ;;  %s6649_s5 = inlined_call_operand.vmem [shape: f32[256,3], index: 5, kind: input, shape index: {}]   ;;  %s6650_s6 = inlined_call_operand.vmem [shape: f32[1,3], index: 6, kind: input, shape index: {}]   ;;  %s6651_s7 = inlined_call_operand.hbm [shape: f32[2,3], index: 7, kind: output, shape index: {}]  }
   0x1   :  { %13 = vsyncpa [#allocation7], 0  ;;  %s36_s26 = sshll.u32 %s6647_s3, 4  ;;  %s37_s26 = int_to_ptr.hbm [resolvable:$true] %s36_s26 }
   0x2   :  { %14 = vsyncpa [#allocation5], 0  ;;  %s4089_s27 = smov [#allocation6]   ;;  %s21_s8 = sshll.u32 %s6645_s1, 4  ;;  %s22_s8 = int_to_ptr.hbm [resolvable:$true] %s21_s8 }
   0x3   :  { %s38_s28 = sshll.u32 %s4089_s27, 4  ;;  %s4090_s9 = smov 512   ;;  %s39_s28 = int_to_ptr.vmem [resolvable:$true] %s38_s28 }
   0x4   :  { %s4091_s10 = smov 32   ;;  %s4092_s11 = smov [#allocation3]  }
   0x5   :  { %44 = dma.hbm_to_vmem [thread:$0]  %s37_s26, 8192, %s39_s28, [#allocation7], %s4090_s9, %s4090_s9, %s4091_s10  }
   0x6   :  { %s23_s12 = sshll.u32 %s4092_s11, 4  ;;  %s4093_s13 = smov 1024   ;;  %s24_s12 = int_to_ptr.vmem [resolvable:$true] %s23_s12 }
   0x7   :  { %s4094_s14 = smov 64   ;;  %s49_s16 = sshll.u32 %s6648_s4, 4  ;;  %s50_s16 = int_to_ptr.hbm [resolvable:$true] %s49_s16 }
   0x8   :  { %29 = dma.hbm_to_vmem [thread:$0]  %s22_s8, 16384, %s24_s12, [#allocation4], %s4093_s13, %s4093_s13, %s4094_s14  }
   0x9   :  { %s4095_s17 = smov [#allocation8]  }
   0xa   :  { %s51_s18 = sshll.u32 %s4095_s17, 4  ;;  %s52_s18 = int_to_ptr.vmem [resolvable:$true] %s51_s18 }
   0xb   :  { %57 = dma.hbm_to_vmem [thread:$0]  %s50_s16, 8192, %s52_s18, [#allocation7], %s4090_s9, %s4090_s9, %s4091_s10  }
   0xc   :  { %4083 = dma.done.wait [#allocation4], 16384  }
   0xd   :  { %4084 = vsyncadd [#allocation4], 4294950912 }
   0xe   :  { %4085 = dma.done.wait [#allocation7], 16384  }
   0xf   :  { %4086 = vsyncadd [#allocation7], 4294950912  ;;  %v196_v0 = vld [vmem:[#allocation3 + $0x3c0] sm:$0xff]  ;;  %v197_v1 = vld [vmem:[#allocation3 + $0x3c8] sm:$0xff]  ;;  %s4097_s30 = smov [#allocation9]   ;;  %s3277_s11 = sshll.u32 %s6651_s7, 4  ;;  %s3278_s11 = int_to_ptr.hbm [resolvable:$true] %s3277_s11 }
  0x10   :  { %v198_v2 = vld [vmem:[#allocation3 + $0x3d0] sm:$0xff]  ;;  %222 = vmatpush.msra.mxu0 %v196_v0  ;;  %245 = vmatpush.msra.mxu1 %v197_v1  ;;  %v199_v3 = vld [vmem:[#allocation3 + $0x3d8] sm:$0xff]  ;;  %v188_v4 = vld [vmem:[#allocation3 + $0x380] sm:$0xff]  ;;  %s3275_s8 = sshll.u32 %s4097_s30, 4  ;;  %s3276_s8 = int_to_ptr.vmem [resolvable:$true] %s3275_s8 }
  0x11   :  { %v189_v5 = vld [vmem:[#allocation3 + $0x388] sm:$0xff]  ;;  %268 = vmatpush.msra.mxu2 %v198_v2  ;;  %291 = vmatpush.msra.mxu3 %v199_v3  ;;  %v190_v6 = vld [vmem:[#allocation3 + $0x390] sm:$0xff]  ;;  %v191_v7 = vld [vmem:[#allocation3 + $0x398] sm:$0xff] }
  0x12   :  { %v180_v8 = vld [vmem:[#allocation3 + $0x340] sm:$0xff]  ;;  %223 = vmatpush.msra.mxu0 %v188_v4  ;;  %246 = vmatpush.msra.mxu1 %v189_v5  ;;  %v181_v9 = vld [vmem:[#allocation3 + $0x348] sm:$0xff]  ;;  %v182_v10 = vld [vmem:[#allocation3 + $0x350] sm:$0xff] }
  0x13   :  { %v183_v11 = vld [vmem:[#allocation3 + $0x358] sm:$0xff]  ;;  %269 = vmatpush.msra.mxu2 %v190_v6  ;;  %292 = vmatpush.msra.mxu3 %v191_v7  ;;  %v172_v12 = vld [vmem:[#allocation3 + $0x300] sm:$0xff]  ;;  %v173_v13 = vld [vmem:[#allocation3 + $0x308] sm:$0xff] }
  0x14   :  { %224 = vmatpush.msra.mxu0 %v180_v8  ;;  %247 = vmatpush.msra.mxu1 %v181_v9  ;;  %v174_v14 = vld [vmem:[#allocation3 + $0x310] sm:$0xff]  ;;  %v175_v15 = vld [vmem:[#allocation3 + $0x318] sm:$0xff]  ;;  %v164_v16 = vld [vmem:[#allocation3 + $0x2c0] sm:$0xff] }
  0x15   :  { %270 = vmatpush.msra.mxu2 %v182_v10  ;;  %293 = vmatpush.msra.mxu3 %v183_v11  ;;  %v165_v17 = vld [vmem:[#allocation3 + $0x2c8] sm:$0xff]  ;;  %v166_v18 = vld [vmem:[#allocation3 + $0x2d0] sm:$0xff]  ;;  %v167_v19 = vld [vmem:[#allocation3 + $0x2d8] sm:$0xff] }
  0x16   :  { %225 = vmatpush.msra.mxu0 %v172_v12  ;;  %248 = vmatpush.msra.mxu1 %v173_v13  ;;  %v156_v20 = vld [vmem:[#allocation3 + $0x280] sm:$0xff]  ;;  %v157_v21 = vld [vmem:[#allocation3 + $0x288] sm:$0xff]  ;;  %v158_v22 = vld [vmem:[#allocation3 + $0x290] sm:$0xff] }
  0x17   :  { %271 = vmatpush.msra.mxu2 %v174_v14  ;;  %294 = vmatpush.msra.mxu3 %v175_v15  ;;  %v159_v23 = vld [vmem:[#allocation3 + $0x298] sm:$0xff]  ;;  %v148_v24 = vld [vmem:[#allocation3 + $0x240] sm:$0xff]  ;;  %v149_v25 = vld [vmem:[#allocation3 + $0x248] sm:$0xff] }
  0x18   :  { %226 = vmatpush.msra.mxu0 %v164_v16  ;;  %249 = vmatpush.msra.mxu1 %v165_v17  ;;  %v150_v26 = vld [vmem:[#allocation3 + $0x250] sm:$0xff]  ;;  %v151_v27 = vld [vmem:[#allocation3 + $0x258] sm:$0xff]  ;;  %v140_v28 = vld [vmem:[#allocation3 + $0x200] sm:$0xff] }
  0x19   :  { %272 = vmatpush.msra.mxu2 %v166_v18  ;;  %295 = vmatpush.msra.mxu3 %v167_v19  ;;  %v141_v29 = vld [vmem:[#allocation3 + $0x208] sm:$0xff]  ;;  %v142_v30 = vld [vmem:[#allocation3 + $0x210] sm:$0xff]  ;;  %v143_v31 = vld [vmem:[#allocation3 + $0x218] sm:$0xff] }
  0x1a   :  { %227 = vmatpush.msra.mxu0 %v156_v20  ;;  %250 = vmatpush.msra.mxu1 %v157_v21  ;;  %v132_v32 = vld [vmem:[#allocation3 + $0x1c0] sm:$0xff]  ;;  %v133_v33 = vld [vmem:[#allocation3 + $0x1c8] sm:$0xff]  ;;  %v134_v34 = vld [vmem:[#allocation3 + $0x1d0] sm:$0xff] }
  0x1b   :  { %273 = vmatpush.msra.mxu2 %v158_v22  ;;  %296 = vmatpush.msra.mxu3 %v159_v23  ;;  %v135_v35 = vld [vmem:[#allocation3 + $0x1d8] sm:$0xff]  ;;  %v124_v36 = vld [vmem:[#allocation3 + $0x180] sm:$0xff]  ;;  %v125_v37 = vld [vmem:[#allocation3 + $0x188] sm:$0xff] }
  0x1c   :  { %228 = vmatpush.msra.mxu0 %v148_v24  ;;  %251 = vmatpush.msra.mxu1 %v149_v25  ;;  %v126_v38 = vld [vmem:[#allocation3 + $0x190] sm:$0xff]  ;;  %v127_v39 = vld [vmem:[#allocation3 + $0x198] sm:$0xff]  ;;  %v116_v40 = vld [vmem:[#allocation3 + $0x140] sm:$0xff] }
  0x1d   :  { %274 = vmatpush.msra.mxu2 %v150_v26  ;;  %297 = vmatpush.msra.mxu3 %v151_v27  ;;  %v117_v41 = vld [vmem:[#allocation3 + $0x148] sm:$0xff]  ;;  %v118_v42 = vld [vmem:[#allocation3 + $0x150] sm:$0xff]  ;;  %v119_v43 = vld [vmem:[#allocation3 + $0x158] sm:$0xff] }
  0x1e   :  { %229 = vmatpush.msra.mxu0 %v140_v28  ;;  %252 = vmatpush.msra.mxu1 %v141_v29  ;;  %v108_v44 = vld [vmem:[#allocation3 + $0x100] sm:$0xff]  ;;  %v109_v45 = vld [vmem:[#allocation3 + $0x108] sm:$0xff]  ;;  %v110_v46 = vld [vmem:[#allocation3 + $0x110] sm:$0xff] }
  0x1f   :  { %275 = vmatpush.msra.mxu2 %v142_v30  ;;  %298 = vmatpush.msra.mxu3 %v143_v31  ;;  %v111_v47 = vld [vmem:[#allocation3 + $0x118] sm:$0xff]  ;;  %v100_v48 = vld [vmem:[#allocation3 + $0xc0] sm:$0xff]  ;;  %v101_v49 = vld [vmem:[#allocation3 + $0xc8] sm:$0xff] }
  0x20   :  { %230 = vmatpush.msra.mxu0 %v132_v32  ;;  %253 = vmatpush.msra.mxu1 %v133_v33  ;;  %v102_v50 = vld [vmem:[#allocation3 + $0xd0] sm:$0xff]  ;;  %v103_v51 = vld [vmem:[#allocation3 + $0xd8] sm:$0xff]  ;;  %v92_v52 = vld [vmem:[#allocation3 + $0x80] sm:$0xff] }
  0x21   :  { %276 = vmatpush.msra.mxu2 %v134_v34  ;;  %299 = vmatpush.msra.mxu3 %v135_v35  ;;  %v93_v53 = vld [vmem:[#allocation3 + $0x88] sm:$0xff]  ;;  %v94_v54 = vld [vmem:[#allocation3 + $0x90] sm:$0xff]  ;;  %v95_v55 = vld [vmem:[#allocation3 + $0x98] sm:$0xff] }
  0x22   :  { %231 = vmatpush.msra.mxu0 %v124_v36  ;;  %254 = vmatpush.msra.mxu1 %v125_v37  ;;  %v84_v56 = vld [vmem:[#allocation3 + $0x40] sm:$0xff]  ;;  %v85_v57 = vld [vmem:[#allocation3 + $0x48] sm:$0xff]  ;;  %v86_v58 = vld [vmem:[#allocation3 + $0x50] sm:$0xff] }
  0x23   :  { %277 = vmatpush.msra.mxu2 %v126_v38  ;;  %300 = vmatpush.msra.mxu3 %v127_v39  ;;  %v87_v59 = vld [vmem:[#allocation3 + $0x58] sm:$0xff]  ;;  %v76_v60 = vld [vmem:[#allocation3] sm:$0xff]  ;;  %v77_v61 = vld [vmem:[#allocation3 + $0x8] sm:$0xff] }
  0x24   :  { %232 = vmatpush.msra.mxu0 %v116_v40  ;;  %255 = vmatpush.msra.mxu1 %v117_v41  ;;  %v78_v62 = vld [vmem:[#allocation3 + $0x10] sm:$0xff]  ;;  %v79_v63 = vld [vmem:[#allocation3 + $0x18] sm:$0xff]  ;;  %v200_v0 = vld [vmem:[#allocation3 + $0x3e0] sm:$0xff] }
  0x25   :  { %278 = vmatpush.msra.mxu2 %v118_v42  ;;  %301 = vmatpush.msra.mxu3 %v119_v43  ;;  %v201_v1 = vld [vmem:[#allocation3 + $0x3e8] sm:$0xff]  ;;  %v202_v2 = vld [vmem:[#allocation3 + $0x3f0] sm:$0xff]  ;;  %v203_v3 = vld [vmem:[#allocation3 + $0x3f8] sm:$0xff] }
  0x26   :  { %233 = vmatpush.msra.mxu0 %v108_v44  ;;  %256 = vmatpush.msra.mxu1 %v109_v45  ;;  %v192_v4 = vld [vmem:[#allocation3 + $0x3a0] sm:$0xff]  ;;  %v193_v5 = vld [vmem:[#allocation3 + $0x3a8] sm:$0xff]  ;;  %v194_v6 = vld [vmem:[#allocation3 + $0x3b0] sm:$0xff] }
  0x27   :  { %279 = vmatpush.msra.mxu2 %v110_v46  ;;  %302 = vmatpush.msra.mxu3 %v111_v47  ;;  %v195_v7 = vld [vmem:[#allocation3 + $0x3b8] sm:$0xff]  ;;  %v184_v8 = vld [vmem:[#allocation3 + $0x360] sm:$0xff]  ;;  %v185_v9 = vld [vmem:[#allocation3 + $0x368] sm:$0xff] }
  0x28   :  { %234 = vmatpush.msra.mxu0 %v100_v48  ;;  %257 = vmatpush.msra.mxu1 %v101_v49  ;;  %v186_v10 = vld [vmem:[#allocation3 + $0x370] sm:$0xff]  ;;  %v187_v11 = vld [vmem:[#allocation3 + $0x378] sm:$0xff]  ;;  %v176_v12 = vld [vmem:[#allocation3 + $0x320] sm:$0xff] }
  0x29   :  { %280 = vmatpush.msra.mxu2 %v102_v50  ;;  %303 = vmatpush.msra.mxu3 %v103_v51  ;;  %v177_v13 = vld [vmem:[#allocation3 + $0x328] sm:$0xff]  ;;  %v178_v14 = vld [vmem:[#allocation3 + $0x330] sm:$0xff]  ;;  %v179_v15 = vld [vmem:[#allocation3 + $0x338] sm:$0xff] }
  0x2a   :  { %235 = vmatpush.msra.mxu0 %v92_v52  ;;  %258 = vmatpush.msra.mxu1 %v93_v53  ;;  %v168_v16 = vld [vmem:[#allocation3 + $0x2e0] sm:$0xff]  ;;  %v169_v17 = vld [vmem:[#allocation3 + $0x2e8] sm:$0xff]  ;;  %v170_v18 = vld [vmem:[#allocation3 + $0x2f0] sm:$0xff] }
  0x2b   :  { %281 = vmatpush.msra.mxu2 %v94_v54  ;;  %304 = vmatpush.msra.mxu3 %v95_v55  ;;  %v171_v19 = vld [vmem:[#allocation3 + $0x2f8] sm:$0xff]  ;;  %v160_v20 = vld [vmem:[#allocation3 + $0x2a0] sm:$0xff]  ;;  %v161_v21 = vld [vmem:[#allocation3 + $0x2a8] sm:$0xff] }
  0x2c   :  { %236 = vmatpush.msra.mxu0 %v84_v56  ;;  %259 = vmatpush.msra.mxu1 %v85_v57  ;;  %v162_v22 = vld [vmem:[#allocation3 + $0x2b0] sm:$0xff]  ;;  %v163_v23 = vld [vmem:[#allocation3 + $0x2b8] sm:$0xff]  ;;  %v152_v24 = vld [vmem:[#allocation3 + $0x260] sm:$0xff] }
  0x2d   :  { %282 = vmatpush.msra.mxu2 %v86_v58  ;;  %305 = vmatpush.msra.mxu3 %v87_v59  ;;  %v153_v25 = vld [vmem:[#allocation3 + $0x268] sm:$0xff]  ;;  %v154_v26 = vld [vmem:[#allocation3 + $0x270] sm:$0xff]  ;;  %v155_v27 = vld [vmem:[#allocation3 + $0x278] sm:$0xff] }
  0x2e   :  { %237 = vmatpush.msra.mxu0 %v76_v60  ;;  %260 = vmatpush.msra.mxu1 %v77_v61  ;;  %v144_v28 = vld [vmem:[#allocation3 + $0x220] sm:$0xff]  ;;  %v145_v29 = vld [vmem:[#allocation3 + $0x228] sm:$0xff]  ;;  %v146_v30 = vld [vmem:[#allocation3 + $0x230] sm:$0xff] }
  0x2f   :  { %283 = vmatpush.msra.mxu2 %v78_v62  ;;  %306 = vmatpush.msra.mxu3 %v79_v63  ;;  %v147_v31 = vld [vmem:[#allocation3 + $0x238] sm:$0xff]  ;;  %v136_v32 = vld [vmem:[#allocation3 + $0x1e0] sm:$0xff]  ;;  %v137_v33 = vld [vmem:[#allocation3 + $0x1e8] sm:$0xff] }
  0x30   :  { %314 = vmatpush.msrb.mxu0 %v200_v0  ;;  %337 = vmatpush.msrb.mxu1 %v201_v1  ;;  %v138_v34 = vld [vmem:[#allocation3 + $0x1f0] sm:$0xff]  ;;  %v139_v35 = vld [vmem:[#allocation3 + $0x1f8] sm:$0xff]  ;;  %v128_v36 = vld [vmem:[#allocation3 + $0x1a0] sm:$0xff] }
  0x31   :  { %360 = vmatpush.msrb.mxu2 %v202_v2  ;;  %383 = vmatpush.msrb.mxu3 %v203_v3  ;;  %v129_v37 = vld [vmem:[#allocation3 + $0x1a8] sm:$0xff]  ;;  %v130_v38 = vld [vmem:[#allocation3 + $0x1b0] sm:$0xff]  ;;  %v131_v39 = vld [vmem:[#allocation3 + $0x1b8] sm:$0xff] }
  0x32   :  { %315 = vmatpush.msrb.mxu0 %v192_v4  ;;  %338 = vmatpush.msrb.mxu1 %v193_v5  ;;  %v120_v40 = vld [vmem:[#allocation3 + $0x160] sm:$0xff]  ;;  %v121_v41 = vld [vmem:[#allocation3 + $0x168] sm:$0xff]  ;;  %v122_v42 = vld [vmem:[#allocation3 + $0x170] sm:$0xff] }
  0x33   :  { %361 = vmatpush.msrb.mxu2 %v194_v6  ;;  %384 = vmatpush.msrb.mxu3 %v195_v7  ;;  %v123_v43 = vld [vmem:[#allocation3 + $0x178] sm:$0xff]  ;;  %v112_v44 = vld [vmem:[#allocation3 + $0x120] sm:$0xff]  ;;  %v113_v45 = vld [vmem:[#allocation3 + $0x128] sm:$0xff] }
  0x34   :  { %316 = vmatpush.msrb.mxu0 %v184_v8  ;;  %339 = vmatpush.msrb.mxu1 %v185_v9  ;;  %v114_v46 = vld [vmem:[#allocation3 + $0x130] sm:$0xff]  ;;  %v115_v47 = vld [vmem:[#allocation3 + $0x138] sm:$0xff]  ;;  %v104_v48 = vld [vmem:[#allocation3 + $0xe0] sm:$0xff] }
  0x35   :  { %362 = vmatpush.msrb.mxu2 %v186_v10  ;;  %385 = vmatpush.msrb.mxu3 %v187_v11  ;;  %v105_v49 = vld [vmem:[#allocation3 + $0xe8] sm:$0xff]  ;;  %v106_v50 = vld [vmem:[#allocation3 + $0xf0] sm:$0xff]  ;;  %v107_v51 = vld [vmem:[#allocation3 + $0xf8] sm:$0xff] }
  0x36   :  { %317 = vmatpush.msrb.mxu0 %v176_v12  ;;  %340 = vmatpush.msrb.mxu1 %v177_v13  ;;  %v96_v52 = vld [vmem:[#allocation3 + $0xa0] sm:$0xff]  ;;  %v97_v53 = vld [vmem:[#allocation3 + $0xa8] sm:$0xff]  ;;  %v98_v54 = vld [vmem:[#allocation3 + $0xb0] sm:$0xff] }
  0x37   :  { %363 = vmatpush.msrb.mxu2 %v178_v14  ;;  %386 = vmatpush.msrb.mxu3 %v179_v15  ;;  %v99_v55 = vld [vmem:[#allocation3 + $0xb8] sm:$0xff]  ;;  %v88_v56 = vld [vmem:[#allocation3 + $0x60] sm:$0xff]  ;;  %v89_v57 = vld [vmem:[#allocation3 + $0x68] sm:$0xff] }
  0x38   :  { %318 = vmatpush.msrb.mxu0 %v168_v16  ;;  %341 = vmatpush.msrb.mxu1 %v169_v17  ;;  %v90_v58 = vld [vmem:[#allocation3 + $0x70] sm:$0xff]  ;;  %v91_v59 = vld [vmem:[#allocation3 + $0x78] sm:$0xff]  ;;  %v4150_v60 = vld [vmem:[%s6644_s0] sm:$0xff] }
  0x39   :  { %364 = vmatpush.msrb.mxu2 %v170_v18  ;;  %387 = vmatpush.msrb.mxu3 %v171_v19  ;;  %v80_v61 = vld [vmem:[#allocation3 + $0x20] sm:$0xff]  ;;  %v81_v62 = vld [vmem:[#allocation3 + $0x28] sm:$0xff]  ;;  %v82_v63 = vld [vmem:[#allocation3 + $0x30] sm:$0xff] }
  0x3a   :  { %319 = vmatpush.msrb.mxu0 %v160_v20  ;;  %342 = vmatpush.msrb.mxu1 %v161_v21  ;;  %v83_v0 = vld [vmem:[#allocation3 + $0x38] sm:$0xff]  ;;  %v4156_v1 = vld [vmem:[#allocation6 + $0x1e0] sm:$0xff]  ;;  %v4158_v2 = vld [vmem:[#allocation6 + $0x1e8] sm:$0xff] }
  0x3b   :  { %365 = vmatpush.msrb.mxu2 %v162_v22  ;;  %388 = vmatpush.msrb.mxu3 %v163_v23  ;;  %v4160_v3 = vld [vmem:[#allocation6 + $0x1f0] sm:$0xff]  ;;  %v4162_v4 = vld [vmem:[#allocation6 + $0x1f8] sm:$0xff]  ;;  %v4164_v5 = vld [vmem:[#allocation6 + $0x1c0] sm:$0xff] }
  0x3c   :  { %320 = vmatpush.msrb.mxu0 %v152_v24  ;;  %343 = vmatpush.msrb.mxu1 %v153_v25  ;;  %v4166_v6 = vld [vmem:[#allocation6 + $0x1c8] sm:$0xff]  ;;  %v4170_v7 = vld [vmem:[#allocation6 + $0x1d0] sm:$0xff]  ;;  %v4172_v8 = vld [vmem:[#allocation6 + $0x1d8] sm:$0xff] }
  0x3d   :  { %366 = vmatpush.msrb.mxu2 %v154_v26  ;;  %389 = vmatpush.msrb.mxu3 %v155_v27  ;;  %v4176_v9 = vld [vmem:[#allocation6 + $0x1a0] sm:$0xff]  ;;  %v4178_v10 = vld [vmem:[#allocation6 + $0x1a8] sm:$0xff]  ;;  %v4182_v11 = vld [vmem:[#allocation6 + $0x1b0] sm:$0xff] }
  0x3e   :  { %321 = vmatpush.msrb.mxu0 %v144_v28  ;;  %344 = vmatpush.msrb.mxu1 %v145_v29  ;;  %v4184_v12 = vld [vmem:[#allocation6 + $0x1b8] sm:$0xff]  ;;  %v4188_v13 = vld [vmem:[#allocation6 + $0x180] sm:$0xff]  ;;  %v4190_v14 = vld [vmem:[#allocation6 + $0x188] sm:$0xff] }
  0x3f   :  { %367 = vmatpush.msrb.mxu2 %v146_v30  ;;  %390 = vmatpush.msrb.mxu3 %v147_v31  ;;  %v4194_v15 = vld [vmem:[#allocation6 + $0x190] sm:$0xff]  ;;  %v4196_v16 = vld [vmem:[#allocation6 + $0x198] sm:$0xff]  ;;  %v4203_v17 = vld [vmem:[%s6644_s0 + $0x8] sm:$0xff] }
  0x40   :  { %322 = vmatpush.msrb.mxu0 %v136_v32  ;;  %345 = vmatpush.msrb.mxu1 %v137_v33  ;;  %v4209_v18 = vld [vmem:[#allocation6 + $0x160] sm:$0xff]  ;;  %v4211_v19 = vld [vmem:[#allocation6 + $0x168] sm:$0xff]  ;;  %v4215_v20 = vld [vmem:[#allocation6 + $0x170] sm:$0xff] }
  0x41   :  { %368 = vmatpush.msrb.mxu2 %v138_v34  ;;  %391 = vmatpush.msrb.mxu3 %v139_v35  ;;  %v4217_v21 = vld [vmem:[#allocation6 + $0x178] sm:$0xff]  ;;  %v4221_v22 = vld [vmem:[#allocation6 + $0x140] sm:$0xff]  ;;  %v4223_v23 = vld [vmem:[#allocation6 + $0x148] sm:$0xff] }
  0x42   :  { %323 = vmatpush.msrb.mxu0 %v128_v36  ;;  %346 = vmatpush.msrb.mxu1 %v129_v37  ;;  %v4227_v24 = vld [vmem:[#allocation6 + $0x150] sm:$0xff]  ;;  %v4229_v25 = vld [vmem:[#allocation6 + $0x158] sm:$0xff]  ;;  %v4233_v26 = vld [vmem:[#allocation6 + $0x120] sm:$0xff] }
  0x43   :  { %369 = vmatpush.msrb.mxu2 %v130_v38  ;;  %392 = vmatpush.msrb.mxu3 %v131_v39  ;;  %v4235_v27 = vld [vmem:[#allocation6 + $0x128] sm:$0xff]  ;;  %v4239_v28 = vld [vmem:[#allocation6 + $0x130] sm:$0xff]  ;;  %v4241_v29 = vld [vmem:[#allocation6 + $0x138] sm:$0xff] }
  0x44   :  { %324 = vmatpush.msrb.mxu0 %v120_v40  ;;  %347 = vmatpush.msrb.mxu1 %v121_v41  ;;  %v4245_v30 = vld [vmem:[#allocation6 + $0x100] sm:$0xff]  ;;  %v4247_v31 = vld [vmem:[#allocation6 + $0x108] sm:$0xff]  ;;  %v4251_v32 = vld [vmem:[#allocation6 + $0x110] sm:$0xff] }
  0x45   :  { %370 = vmatpush.msrb.mxu2 %v122_v42  ;;  %393 = vmatpush.msrb.mxu3 %v123_v43  ;;  %v4253_v33 = vld [vmem:[#allocation6 + $0x118] sm:$0xff]  ;;  %v4261_v34 = vld [vmem:[#allocation6 + $0xe0] sm:$0xff]  ;;  %v4263_v35 = vld [vmem:[#allocation6 + $0xe8] sm:$0xff] }
  0x46   :  { %325 = vmatpush.msrb.mxu0 %v112_v44  ;;  %348 = vmatpush.msrb.mxu1 %v113_v45  ;;  %v4267_v36 = vld [vmem:[#allocation6 + $0xf0] sm:$0xff]  ;;  %v4269_v37 = vld [vmem:[#allocation6 + $0xf8] sm:$0xff]  ;;  %v4273_v38 = vld [vmem:[#allocation6 + $0xc0] sm:$0xff] }
  0x47   :  { %371 = vmatpush.msrb.mxu2 %v114_v46  ;;  %394 = vmatpush.msrb.mxu3 %v115_v47  ;;  %v4275_v39 = vld [vmem:[#allocation6 + $0xc8] sm:$0xff]  ;;  %v4279_v40 = vld [vmem:[#allocation6 + $0xd0] sm:$0xff]  ;;  %v4281_v41 = vld [vmem:[#allocation6 + $0xd8] sm:$0xff] }
  0x48   :  { %326 = vmatpush.msrb.mxu0 %v104_v48  ;;  %349 = vmatpush.msrb.mxu1 %v105_v49  ;;  %v4285_v42 = vld [vmem:[#allocation6 + $0xa0] sm:$0xff]  ;;  %v4287_v43 = vld [vmem:[#allocation6 + $0xa8] sm:$0xff]  ;;  %v4291_v44 = vld [vmem:[#allocation6 + $0xb0] sm:$0xff] }
  0x49   :  { %372 = vmatpush.msrb.mxu2 %v106_v50  ;;  %395 = vmatpush.msrb.mxu3 %v107_v51  ;;  %v4293_v45 = vld [vmem:[#allocation6 + $0xb8] sm:$0xff]  ;;  %v4297_v46 = vld [vmem:[#allocation6 + $0x80] sm:$0xff]  ;;  %v4299_v47 = vld [vmem:[#allocation6 + $0x88] sm:$0xff] }
  0x4a   :  { %327 = vmatpush.msrb.mxu0 %v96_v52  ;;  %350 = vmatpush.msrb.mxu1 %v97_v53  ;;  %v4303_v48 = vld [vmem:[#allocation6 + $0x90] sm:$0xff]  ;;  %v4305_v49 = vld [vmem:[#allocation6 + $0x98] sm:$0xff]  ;;  %v4313_v50 = vld [vmem:[#allocation6 + $0x60] sm:$0xff] }
  0x4b   :  { %373 = vmatpush.msrb.mxu2 %v98_v54  ;;  %396 = vmatpush.msrb.mxu3 %v99_v55  ;;  %v4315_v51 = vld [vmem:[#allocation6 + $0x68] sm:$0xff]  ;;  %v4319_v52 = vld [vmem:[#allocation6 + $0x70] sm:$0xff]  ;;  %v4321_v53 = vld [vmem:[#allocation6 + $0x78] sm:$0xff] }
  0x4c   :  { %328 = vmatpush.msrb.mxu0 %v88_v56  ;;  %351 = vmatpush.msrb.mxu1 %v89_v57  ;;  %v4325_v54 = vld [vmem:[#allocation6 + $0x40] sm:$0xff]  ;;  %v4327_v55 = vld [vmem:[#allocation6 + $0x48] sm:$0xff]  ;;  %v4331_v56 = vld [vmem:[#allocation6 + $0x50] sm:$0xff] }
  0x4d   :  { %374 = vmatpush.msrb.mxu2 %v90_v58  ;;  %397 = vmatpush.msrb.mxu3 %v91_v59  ;;  %6941 = vst [vmem:[#allocation13_spill] sm:$0xff] %v4325_v54  ;;  %v4333_v57 = vld [vmem:[#allocation6 + $0x58] sm:$0xff]  ;;  %v4337_v58 = vld [vmem:[#allocation6 + $0x20] sm:$0xff]  ;;  %v4339_v59 = vld [vmem:[#allocation6 + $0x28] sm:$0xff] }
  0x4e   :  { %238 = vmatmul.f32.vlgmr.msra.gmra.mxu0 %v4150_v60  ;;  %261 = vmatmul.f32.vlgmr.msra.gmra.mxu1 %v4150_v60  ;;  %6942 = vst [vmem:[#allocation14_spill] sm:$0xff] %v4327_v55 }
  0x4f   :  { %284 = vmatmul.f32.vlgmr.msra.gmra.mxu2 %v4150_v60  ;;  %307 = vmatmul.f32.vlgmr.msra.gmra.mxu3 %v4150_v60  ;;  %6943 = vst [vmem:[#allocation15_spill] sm:$0xff] %v4331_v56 }
  0x50   :  { %329 = vmatpush.msrb.mxu0 %v80_v61  ;;  %352 = vmatpush.msrb.mxu1 %v81_v62  ;;  %6944 = vst [vmem:[#allocation16_spill] sm:$0xff] %v4333_v57  ;;  %v4345_v61 = vld [vmem:[#allocation6 + $0x38] sm:$0xff]  ;;  %v4349_v62 = vld [vmem:[#allocation6] sm:$0xff] }
  0x51   :  { %375 = vmatpush.msrb.mxu2 %v82_v63  ;;  %398 = vmatpush.msrb.mxu3 %v83_v0  ;;  %6945 = vst [vmem:[#allocation17_spill] sm:$0xff] %v4337_v58  ;;  %v4351_v63 = vld [vmem:[#allocation6 + $0x8] sm:$0xff]  ;;  %v4355_v0 = vld [vmem:[#allocation6 + $0x10] sm:$0xff] }
  0x52   :  { %558 = vmatpush.msra.mxu0 %v4156_v1  ;;  %578 = vmatpush.msra.mxu1 %v4158_v2  ;;  %6946 = vst [vmem:[#allocation18_spill] sm:$0xff] %v4339_v59 }
  0x53   :  { %598 = vmatpush.msra.mxu2 %v4160_v3  ;;  %618 = vmatpush.msra.mxu3 %v4162_v4  ;;  %6948 = vst [vmem:[#allocation20_spill] sm:$0xff] %v4345_v61 }
  0x54   :  { %559 = vmatpush.msra.mxu0 %v4164_v5  ;;  %579 = vmatpush.msra.mxu1 %v4166_v6  ;;  %6949 = vst [vmem:[#allocation21_spill] sm:$0xff] %v4349_v62 }
  0x55   :  { %599 = vmatpush.msra.mxu2 %v4170_v7  ;;  %619 = vmatpush.msra.mxu3 %v4172_v8  ;;  %6950 = vst [vmem:[#allocation22_spill] sm:$0xff] %v4351_v63 }
  0x56   :  { %560 = vmatpush.msra.mxu0 %v4176_v9  ;;  %580 = vmatpush.msra.mxu1 %v4178_v10  ;;  %6951 = vst [vmem:[#allocation23_spill] sm:$0xff] %v4355_v0 }
  0x57   :  { %600 = vmatpush.msra.mxu2 %v4182_v11  ;;  %620 = vmatpush.msra.mxu3 %v4184_v12 }
  0x58   :  { %561 = vmatpush.msra.mxu0 %v4188_v13  ;;  %581 = vmatpush.msra.mxu1 %v4190_v14 }
  0x59   :  { %601 = vmatpush.msra.mxu2 %v4194_v15  ;;  %621 = vmatpush.msra.mxu3 %v4196_v16 }
  0x5a   :  { %241 = vmatmul.f32.gmra.mxu0 %v4203_v17  ;;  %264 = vmatmul.f32.gmra.mxu1 %v4203_v17 }
  0x5b   :  { %287 = vmatmul.f32.gmra.mxu2 %v4203_v17  ;;  %310 = vmatmul.f32.gmra.mxu3 %v4203_v17 }
  0x5c   :  { %562 = vmatpush.msra.mxu0 %v4209_v18  ;;  %582 = vmatpush.msra.mxu1 %v4211_v19 }
  0x5d   :  { %602 = vmatpush.msra.mxu2 %v4215_v20  ;;  %622 = vmatpush.msra.mxu3 %v4217_v21 }
  0x5e   :  { %563 = vmatpush.msra.mxu0 %v4221_v22  ;;  %583 = vmatpush.msra.mxu1 %v4223_v23 }
  0x5f   :  { %603 = vmatpush.msra.mxu2 %v4227_v24  ;;  %623 = vmatpush.msra.mxu3 %v4229_v25 }
  0x60   :  { %564 = vmatpush.msra.mxu0 %v4233_v26  ;;  %584 = vmatpush.msra.mxu1 %v4235_v27 }
  0x61   :  { %604 = vmatpush.msra.mxu2 %v4239_v28  ;;  %624 = vmatpush.msra.mxu3 %v4241_v29 }
  0x62   :  { %565 = vmatpush.msra.mxu0 %v4245_v30  ;;  %585 = vmatpush.msra.mxu1 %v4247_v31 }
  0x63   :  { %605 = vmatpush.msra.mxu2 %v4251_v32  ;;  %625 = vmatpush.msra.mxu3 %v4253_v33 }
  0x64   :  { %330 = vmatmul.f32.vlgmr.msrb.gmra.mxu0 %v4150_v60  ;;  %353 = vmatmul.f32.vlgmr.msrb.gmra.mxu1 %v4150_v60 }
  0x65   :  { %376 = vmatmul.f32.vlgmr.msrb.gmra.mxu2 %v4150_v60  ;;  %399 = vmatmul.f32.vlgmr.msrb.gmra.mxu3 %v4150_v60  ;;  %v4343_v60 = vld [vmem:[#allocation6 + $0x30] sm:$0xff] }
  0x66   :  { %566 = vmatpush.msra.mxu0 %v4261_v34  ;;  %586 = vmatpush.msra.mxu1 %v4263_v35  ;;  %6947 = vst [vmem:[#allocation19_spill] sm:$0xff] %v4343_v60 }
  0x67   :  { %606 = vmatpush.msra.mxu2 %v4267_v36  ;;  %626 = vmatpush.msra.mxu3 %v4269_v37 }
  0x68   :  { %567 = vmatpush.msra.mxu0 %v4273_v38  ;;  %587 = vmatpush.msra.mxu1 %v4275_v39 }
  0x69   :  { %607 = vmatpush.msra.mxu2 %v4279_v40  ;;  %627 = vmatpush.msra.mxu3 %v4281_v41 }
  0x6a   :  { %568 = vmatpush.msra.mxu0 %v4285_v42  ;;  %588 = vmatpush.msra.mxu1 %v4287_v43 }
  0x6b   :  { %608 = vmatpush.msra.mxu2 %v4291_v44  ;;  %628 = vmatpush.msra.mxu3 %v4293_v45 }
  0x6c   :  { %569 = vmatpush.msra.mxu0 %v4297_v46  ;;  %589 = vmatpush.msra.mxu1 %v4299_v47 }
  0x6d   :  { %609 = vmatpush.msra.mxu2 %v4303_v48  ;;  %629 = vmatpush.msra.mxu3 %v4305_v49 }
  0x6e   :  { %333 = vmatmul.f32.gmra.mxu0 %v4203_v17  ;;  %356 = vmatmul.f32.gmra.mxu1 %v4203_v17 }
  0x6f   :  { %379 = vmatmul.f32.gmra.mxu2 %v4203_v17  ;;  %402 = vmatmul.f32.gmra.mxu3 %v4203_v17  ;;  %v4357_v17 = vld [vmem:[#allocation6 + $0x18] sm:$0xff] }
  0x70   :  { %570 = vmatpush.msra.mxu0 %v4313_v50  ;;  %590 = vmatpush.msra.mxu1 %v4315_v51  ;;  %6952 = vst [vmem:[#allocation24_spill] sm:$0xff] %v4357_v17 }
  0x71   :  { %610 = vmatpush.msra.mxu2 %v4319_v52  ;;  %630 = vmatpush.msra.mxu3 %v4321_v53 }
  0x72   :  { %571 = vmatpush.msra.mxu0 %v4325_v54  ;;  %591 = vmatpush.msra.mxu1 %v4327_v55  ;;  %v4390_v55 = vld [vmem:[#allocation8 + $0x1a8] sm:$0xff] }
  0x73   :  { %611 = vmatpush.msra.mxu2 %v4331_v56  ;;  %631 = vmatpush.msra.mxu3 %v4333_v57  ;;  %v4365_v57 = vld [vmem:[#allocation8 + $0x1e0] sm:$0xff]  ;;  %6962 = vst [vmem:[#allocation34_spill] sm:$0xff] %v4390_v55  ;;  %v4402_v54 = vld [vmem:[#allocation8 + $0x188] sm:$0xff] }
  0x74   :  { %572 = vmatpush.msra.mxu0 %v4337_v58  ;;  %592 = vmatpush.msra.mxu1 %v4339_v59  ;;  %6953 = vst [vmem:[#allocation25_spill] sm:$0xff] %v4365_v57  ;;  %v4367_v58 = vld [vmem:[#allocation8 + $0x1e8] sm:$0xff]  ;;  %v6663_v59 = vmov 0.0   ;;  %v4388_v56 = vld [vmem:[#allocation8 + $0x1a0] sm:$0xff] }
  0x75   :  { %612 = vmatpush.msra.mxu2 %v4343_v60  ;;  %632 = vmatpush.msra.mxu3 %v4345_v61  ;;  %6954 = vst [vmem:[#allocation26_spill] sm:$0xff] %v4367_v58  ;;  %v4371_v60 = vld [vmem:[#allocation8 + $0x1f8] sm:$0xff]  ;;  %v4373_v61 = vld [vmem:[#allocation8 + $0x1f0] sm:$0xff] }
  0x76   :  { %573 = vmatpush.msra.mxu0 %v4349_v62  ;;  %593 = vmatpush.msra.mxu1 %v4351_v63  ;;  %6955 = vst [vmem:[#allocation27_spill] sm:$0xff] %v4371_v60  ;;  %v4383_v63 = vld [vmem:[#allocation8 + $0x1d8] sm:$0xff]  ;;  %v4385_v62 = vld [vmem:[#allocation8 + $0x1d0] sm:$0xff] }
  0x77   :  { %613 = vmatpush.msra.mxu2 %v4355_v0  ;;  %633 = vmatpush.msra.mxu3 %v4357_v17  ;;  %6956 = vst [vmem:[#allocation28_spill] sm:$0xff] %v4373_v61  ;;  %v4377_v0 = vld [vmem:[#allocation8 + $0x1c0] sm:$0xff]  ;;  %v4379_v17 = vld [vmem:[#allocation8 + $0x1c8] sm:$0xff] }
  0x78   :  { %574 = vmatmul.f32.vlgmr.msra.gmra.mxu0 %v6663_v59  ;;  %594 = vmatmul.f32.vlgmr.msra.gmra.mxu1 %v6663_v59  ;;  %6957 = vst [vmem:[#allocation29_spill] sm:$0xff] %v4377_v0 }
  0x79   :  { %614 = vmatmul.f32.vlgmr.msra.gmra.mxu2 %v6663_v59  ;;  %634 = vmatmul.f32.vlgmr.msra.gmra.mxu3 %v6663_v59  ;;  %6958 = vst [vmem:[#allocation30_spill] sm:$0xff] %v4379_v17  ;;  %v4395_v59 = vld [vmem:[#allocation8 + $0x1b8] sm:$0xff] }
  0x7a   :  { %705 = vmatpush.msrb.mxu0 %v4365_v57  ;;  %725 = vmatpush.msrb.mxu1 %v4367_v58  ;;  %6959 = vst [vmem:[#allocation31_spill] sm:$0xff] %v4383_v63  ;;  %v4397_v57 = vld [vmem:[#allocation8 + $0x1b0] sm:$0xff]  ;;  %v4400_v58 = vld [vmem:[#allocation8 + $0x180] sm:$0xff] }
  0x7b   :  { %6960 = vst [vmem:[#allocation32_spill] sm:$0xff] %v4385_v62  ;;  %765 = vmatpush.msrb.mxu3 %v4371_v60  ;;  %745 = vmatpush.msrb.mxu2 %v4373_v61  ;;  %v4407_v60 = vld [vmem:[#allocation8 + $0x198] sm:$0xff]  ;;  %v4414_v61 = vld [vmem:[#allocation8 + $0x168] sm:$0xff] }
  0x7c   :  { %6961 = vst [vmem:[#allocation33_spill] sm:$0xff] %v4388_v56  ;;  %706 = vmatpush.msrb.mxu0 %v4377_v0  ;;  %726 = vmatpush.msrb.mxu1 %v4379_v17  ;;  %v4409_v0 = vld [vmem:[#allocation8 + $0x190] sm:$0xff]  ;;  %v4412_v17 = vld [vmem:[#allocation8 + $0x160] sm:$0xff] }
  0x7d   :  { %6963 = vst [vmem:[#allocation35_spill] sm:$0xff] %v4395_v59  ;;  %766 = vmatpush.msrb.mxu3 %v4383_v63  ;;  %746 = vmatpush.msrb.mxu2 %v4385_v62  ;;  %v4419_v63 = vld [vmem:[#allocation8 + $0x178] sm:$0xff]  ;;  %v4426_v62 = vld [vmem:[#allocation8 + $0x148] sm:$0xff] }
  0x7e   :  { %6964 = vst [vmem:[#allocation36_spill] sm:$0xff] %v4397_v57  ;;  %707 = vmatpush.msrb.mxu0 %v4388_v56  ;;  %727 = vmatpush.msrb.mxu1 %v4390_v55  ;;  %v4421_v56 = vld [vmem:[#allocation8 + $0x170] sm:$0xff]  ;;  %v4424_v55 = vld [vmem:[#allocation8 + $0x140] sm:$0xff] }
  0x7f   :  { %6965 = vst [vmem:[#allocation37_spill] sm:$0xff] %v4400_v58  ;;  %767 = vmatpush.msrb.mxu3 %v4395_v59  ;;  %747 = vmatpush.msrb.mxu2 %v4397_v57  ;;  %v4431_v59 = vld [vmem:[#allocation8 + $0x158] sm:$0xff]  ;;  %v4438_v57 = vld [vmem:[#allocation8 + $0x128] sm:$0xff] }
  0x80   :  { %6966 = vst [vmem:[#allocation38_spill] sm:$0xff] %v4402_v54  ;;  %708 = vmatpush.msrb.mxu0 %v4400_v58  ;;  %728 = vmatpush.msrb.mxu1 %v4402_v54  ;;  %v4433_v58 = vld [vmem:[#allocation8 + $0x150] sm:$0xff]  ;;  %v4436_v54 = vld [vmem:[#allocation8 + $0x120] sm:$0xff] }
  0x81   :  { %6967 = vst [vmem:[#allocation39_spill] sm:$0xff] %v4407_v60  ;;  %768 = vmatpush.msrb.mxu3 %v4407_v60  ;;  %748 = vmatpush.msrb.mxu2 %v4409_v0  ;;  %v4443_v60 = vld [vmem:[#allocation8 + $0x138] sm:$0xff] }
  0x82   :  { %6968 = vst [vmem:[#allocation40_spill] sm:$0xff] %v4409_v0  ;;  %709 = vmatpush.msrb.mxu0 %v4412_v17  ;;  %729 = vmatpush.msrb.mxu1 %v4414_v61  ;;  %v4450_v0 = vld [vmem:[#allocation8 + $0x108] sm:$0xff] }
  0x83   :  { %6969 = vst [vmem:[#allocation41_spill] sm:$0xff] %v4412_v17  ;;  %769 = vmatpush.msrb.mxu3 %v4419_v63  ;;  %749 = vmatpush.msrb.mxu2 %v4421_v56  ;;  %v4445_v17 = vld [vmem:[#allocation8 + $0x130] sm:$0xff] }
  0x84   :  { %6970 = vst [vmem:[#allocation42_spill] sm:$0xff] %v4414_v61  ;;  %710 = vmatpush.msrb.mxu0 %v4424_v55  ;;  %730 = vmatpush.msrb.mxu1 %v4426_v62  ;;  %v4448_v61 = vld [vmem:[#allocation8 + $0x100] sm:$0xff] }
  0x85   :  { %6971 = vst [vmem:[#allocation43_spill] sm:$0xff] %v4419_v63  ;;  %770 = vmatpush.msrb.mxu3 %v4431_v59  ;;  %750 = vmatpush.msrb.mxu2 %v4433_v58  ;;  %v4455_v63 = vld [vmem:[#allocation8 + $0x118] sm:$0xff] }
  0x86   :  { %6972 = vst [vmem:[#allocation44_spill] sm:$0xff] %v4421_v56  ;;  %711 = vmatpush.msrb.mxu0 %v4436_v54  ;;  %731 = vmatpush.msrb.mxu1 %v4438_v57  ;;  %v4462_v56 = vld [vmem:[#allocation8 + $0xe8] sm:$0xff] }
  0x87   :  { %6973 = vst [vmem:[#allocation45_spill] sm:$0xff] %v4424_v55  ;;  %v4457_v55 = vld [vmem:[#allocation8 + $0x110] sm:$0xff]  ;;  %771 = vmatpush.msrb.mxu3 %v4443_v60  ;;  %751 = vmatpush.msrb.mxu2 %v4445_v17 }
  0x88   :  { %6974 = vst [vmem:[#allocation46_spill] sm:$0xff] %v4426_v62  ;;  %v4460_v62 = vld [vmem:[#allocation8 + $0xe0] sm:$0xff]  ;;  %712 = vmatpush.msrb.mxu0 %v4448_v61  ;;  %732 = vmatpush.msrb.mxu1 %v4450_v0 }
  0x89   :  { %6975 = vst [vmem:[#allocation47_spill] sm:$0xff] %v4431_v59  ;;  %v4467_v59 = vld [vmem:[#allocation8 + $0xf8] sm:$0xff]  ;;  %772 = vmatpush.msrb.mxu3 %v4455_v63  ;;  %752 = vmatpush.msrb.mxu2 %v4457_v55 }
  0x8a   :  { %6976 = vst [vmem:[#allocation48_spill] sm:$0xff] %v4433_v58  ;;  %v4474_v58 = vld [vmem:[#allocation8 + $0xc8] sm:$0xff]  ;;  %713 = vmatpush.msrb.mxu0 %v4460_v62  ;;  %733 = vmatpush.msrb.mxu1 %v4462_v56 }
  0x8b   :  { %6977 = vst [vmem:[#allocation49_spill] sm:$0xff] %v4436_v54  ;;  %v4469_v54 = vld [vmem:[#allocation8 + $0xf0] sm:$0xff]  ;;  %773 = vmatpush.msrb.mxu3 %v4467_v59 }
  0x8c   :  { %6978 = vst [vmem:[#allocation50_spill] sm:$0xff] %v4438_v57  ;;  %v4472_v57 = vld [vmem:[#allocation8 + $0xc0] sm:$0xff]  ;;  %753 = vmatpush.msrb.mxu2 %v4469_v54  ;;  %734 = vmatpush.msrb.mxu1 %v4474_v58 }
  0x8d   :  { %6979 = vst [vmem:[#allocation51_spill] sm:$0xff] %v4443_v60  ;;  %v4479_v60 = vld [vmem:[#allocation8 + $0xd8] sm:$0xff]  ;;  %714 = vmatpush.msrb.mxu0 %v4472_v57 }
  0x8e   :  { %6980 = vst [vmem:[#allocation52_spill] sm:$0xff] %v4445_v17  ;;  %v4486_v17 = vld [vmem:[#allocation8 + $0xa8] sm:$0xff]  ;;  %774 = vmatpush.msrb.mxu3 %v4479_v60 }
  0x8f   :  { %6981 = vst [vmem:[#allocation53_spill] sm:$0xff] %v4448_v61  ;;  %v4481_v61 = vld [vmem:[#allocation8 + $0xd0] sm:$0xff]  ;;  %735 = vmatpush.msrb.mxu1 %v4486_v17 }
  0x90   :  { %6982 = vst [vmem:[#allocation54_spill] sm:$0xff] %v4450_v0  ;;  %v4484_v0 = vld [vmem:[#allocation8 + $0xa0] sm:$0xff]  ;;  %754 = vmatpush.msrb.mxu2 %v4481_v61 }
  0x91   :  { %6983 = vst [vmem:[#allocation55_spill] sm:$0xff] %v4455_v63  ;;  %v4491_v63 = vld [vmem:[#allocation8 + $0xb8] sm:$0xff]  ;;  %715 = vmatpush.msrb.mxu0 %v4484_v0 }
  0x92   :  { %6984 = vst [vmem:[#allocation56_spill] sm:$0xff] %v4457_v55  ;;  %v4498_v55 = vld [vmem:[#allocation8 + $0x88] sm:$0xff]  ;;  %775 = vmatpush.msrb.mxu3 %v4491_v63 }
  0x93   :  { %6985 = vst [vmem:[#allocation57_spill] sm:$0xff] %v4460_v62  ;;  %v4493_v62 = vld [vmem:[#allocation8 + $0xb0] sm:$0xff]  ;;  %736 = vmatpush.msrb.mxu1 %v4498_v55 }
  0x94   :  { %6986 = vst [vmem:[#allocation58_spill] sm:$0xff] %v4462_v56  ;;  %v4496_v56 = vld [vmem:[#allocation8 + $0x80] sm:$0xff]  ;;  %755 = vmatpush.msrb.mxu2 %v4493_v62 }
  0x95   :  { %6987 = vst [vmem:[#allocation59_spill] sm:$0xff] %v4467_v59  ;;  %v4503_v59 = vld [vmem:[#allocation8 + $0x98] sm:$0xff]  ;;  %716 = vmatpush.msrb.mxu0 %v4496_v56 }
  0x96   :  { %6988 = vst [vmem:[#allocation60_spill] sm:$0xff] %v4469_v54  ;;  %v4510_v54 = vld [vmem:[#allocation8 + $0x68] sm:$0xff]  ;;  %776 = vmatpush.msrb.mxu3 %v4503_v59 }
  0x97   :  { %6989 = vst [vmem:[#allocation61_spill] sm:$0xff] %v4472_v57  ;;  %v4505_v57 = vld [vmem:[#allocation8 + $0x90] sm:$0xff]  ;;  %737 = vmatpush.msrb.mxu1 %v4510_v54 }
  0x98   :  { %6990 = vst [vmem:[#allocation62_spill] sm:$0xff] %v4474_v58  ;;  %v4508_v58 = vld [vmem:[#allocation8 + $0x60] sm:$0xff]  ;;  %756 = vmatpush.msrb.mxu2 %v4505_v57 }
  0x99   :  { %6991 = vst [vmem:[#allocation63_spill] sm:$0xff] %v4479_v60  ;;  %v4515_v60 = vld [vmem:[#allocation8 + $0x78] sm:$0xff]  ;;  %717 = vmatpush.msrb.mxu0 %v4508_v58 }
  0x9a   :  { %6992 = vst [vmem:[#allocation64_spill] sm:$0xff] %v4481_v61  ;;  %v4522_v61 = vld [vmem:[#allocation8 + $0x48] sm:$0xff]  ;;  %777 = vmatpush.msrb.mxu3 %v4515_v60 }
  0x9b   :  { %6993 = vst [vmem:[#allocation65_spill] sm:$0xff] %v4484_v0  ;;  %v4517_v0 = vld [vmem:[#allocation8 + $0x70] sm:$0xff]  ;;  %738 = vmatpush.msrb.mxu1 %v4522_v61 }
  0x9c   :  { %6994 = vst [vmem:[#allocation66_spill] sm:$0xff] %v4486_v17  ;;  %v4520_v17 = vld [vmem:[#allocation8 + $0x40] sm:$0xff]  ;;  %757 = vmatpush.msrb.mxu2 %v4517_v0 }
  0x9d   :  { %6995 = vst [vmem:[#allocation67_spill] sm:$0xff] %v4491_v63  ;;  %v4527_v63 = vld [vmem:[#allocation8 + $0x58] sm:$0xff]  ;;  %718 = vmatpush.msrb.mxu0 %v4520_v17 }
  0x9e   :  { %6996 = vst [vmem:[#allocation68_spill] sm:$0xff] %v4493_v62  ;;  %v4534_v62 = vld [vmem:[#allocation8 + $0x28] sm:$0xff]  ;;  %778 = vmatpush.msrb.mxu3 %v4527_v63 }
  0x9f   :  { %6997 = vst [vmem:[#allocation69_spill] sm:$0xff] %v4496_v56  ;;  %v4529_v56 = vld [vmem:[#allocation8 + $0x50] sm:$0xff]  ;;  %739 = vmatpush.msrb.mxu1 %v4534_v62 }
  0xa0   :  { %6998 = vst [vmem:[#allocation70_spill] sm:$0xff] %v4498_v55  ;;  %v4532_v55 = vld [vmem:[#allocation8 + $0x20] sm:$0xff]  ;;  %758 = vmatpush.msrb.mxu2 %v4529_v56 }
  0xa1   :  { %6999 = vst [vmem:[#allocation71_spill] sm:$0xff] %v4503_v59  ;;  %v4539_v59 = vld [vmem:[#allocation8 + $0x38] sm:$0xff]  ;;  %719 = vmatpush.msrb.mxu0 %v4532_v55 }
  0xa2   :  { %7000 = vst [vmem:[#allocation72_spill] sm:$0xff] %v4505_v57  ;;  %v4546_v57 = vld [vmem:[#allocation8 + $0x8] sm:$0xff]  ;;  %779 = vmatpush.msrb.mxu3 %v4539_v59 }
  0xa3   :  { %7001 = vst [vmem:[#allocation73_spill] sm:$0xff] %v4508_v58  ;;  %v4541_v58 = vld [vmem:[#allocation8 + $0x30] sm:$0xff]  ;;  %740 = vmatpush.msrb.mxu1 %v4546_v57 }
  0xa4   :  { %7002 = vst [vmem:[#allocation74_spill] sm:$0xff] %v4510_v54  ;;  %v4544_v54 = vld [vmem:[#allocation8] sm:$0xff]  ;;  %759 = vmatpush.msrb.mxu2 %v4541_v58 }
  0xa5   :  { %7003 = vst [vmem:[#allocation75_spill] sm:$0xff] %v4515_v60  ;;  %v4551_v60 = vld [vmem:[#allocation8 + $0x18] sm:$0xff]  ;;  %720 = vmatpush.msrb.mxu0 %v4544_v54  ;;  %892 = vmatpush.msra.mxu1 %v4158_v2  ;;  %v7008_v2 = vld [vmem:[#allocation14_spill] sm:$0xff] }
  0xa6   :  { %7004 = vst [vmem:[#allocation76_spill] sm:$0xff] %v4522_v61  ;;  %780 = vmatpush.msrb.mxu3 %v4551_v60  ;;  %v7006_v61 = vmov 0.0  }
  0xa7   :  { %7005 = vst [vmem:[#allocation77_spill] sm:$0xff] %v4527_v63  ;;  %v4557_v63 = vld [vmem:[#allocation8 + $0x10] sm:$0xff]  ;;  %721 = vmatmul.f32.vlgmr.msrb.gmra.mxu0 %v7006_v61  ;;  %741 = vmatmul.f32.vlgmr.msrb.gmra.mxu1 %v7006_v61 }
  0xa8   :  { %781 = vmatmul.f32.vlgmr.msrb.gmra.mxu3 %v7006_v61  ;;  %760 = vmatpush.msrb.mxu2 %v4557_v63 }
  0xa9   :  { %872 = vmatpush.msra.mxu0 %v4156_v1  ;;  %761 = vmatmul.f32.vlgmr.msrb.gmra.mxu2 %v7006_v61  ;;  %v7007_v1 = vld [vmem:[#allocation13_spill] sm:$0xff]  ;;  %v7052_v61 = vld [vmem:[#allocation58_spill] sm:$0xff] }
  0xaa   :  { %912 = vmatpush.msra.mxu2 %v4160_v3  ;;  %932 = vmatpush.msra.mxu3 %v4162_v4  ;;  %v7009_v3 = vld [vmem:[#allocation15_spill] sm:$0xff]  ;;  %v7010_v4 = vld [vmem:[#allocation16_spill] sm:$0xff] }
  0xab   :  { %873 = vmatpush.msra.mxu0 %v4164_v5  ;;  %893 = vmatpush.msra.mxu1 %v4166_v6  ;;  %v7011_v5 = vld [vmem:[#allocation17_spill] sm:$0xff]  ;;  %v7012_v6 = vld [vmem:[#allocation18_spill] sm:$0xff] }
  0xac   :  { %913 = vmatpush.msra.mxu2 %v4170_v7  ;;  %933 = vmatpush.msra.mxu3 %v4172_v8  ;;  %v7013_v7 = vld [vmem:[#allocation19_spill] sm:$0xff]  ;;  %v7014_v8 = vld [vmem:[#allocation20_spill] sm:$0xff] }
  0xad   :  { %874 = vmatpush.msra.mxu0 %v4176_v9  ;;  %894 = vmatpush.msra.mxu1 %v4178_v10  ;;  %v7015_v9 = vld [vmem:[#allocation21_spill] sm:$0xff]  ;;  %v7016_v10 = vld [vmem:[#allocation22_spill] sm:$0xff] }
  0xae   :  { %914 = vmatpush.msra.mxu2 %v4182_v11  ;;  %934 = vmatpush.msra.mxu3 %v4184_v12  ;;  %v7017_v11 = vld [vmem:[#allocation23_spill] sm:$0xff]  ;;  %v7018_v12 = vld [vmem:[#allocation24_spill] sm:$0xff] }
  0xaf   :  { %875 = vmatpush.msra.mxu0 %v4188_v13  ;;  %895 = vmatpush.msra.mxu1 %v4190_v14  ;;  %v7019_v13 = vld [vmem:[#allocation25_spill] sm:$0xff]  ;;  %v7020_v14 = vld [vmem:[#allocation26_spill] sm:$0xff] }
  0xb0   :  { %915 = vmatpush.msra.mxu2 %v4194_v15  ;;  %935 = vmatpush.msra.mxu3 %v4196_v16  ;;  %v7021_v15 = vld [vmem:[#allocation28_spill] sm:$0xff]  ;;  %v7022_v16 = vld [vmem:[#allocation27_spill] sm:$0xff] }
  0xb1   :  { %876 = vmatpush.msra.mxu0 %v4209_v18  ;;  %896 = vmatpush.msra.mxu1 %v4211_v19  ;;  %v7023_v18 = vld [vmem:[#allocation29_spill] sm:$0xff]  ;;  %v7024_v19 = vld [vmem:[#allocation30_spill] sm:$0xff] }
  0xb2   :  { %916 = vmatpush.msra.mxu2 %v4215_v20  ;;  %936 = vmatpush.msra.mxu3 %v4217_v21  ;;  %v7025_v20 = vld [vmem:[#allocation32_spill] sm:$0xff]  ;;  %v7026_v21 = vld [vmem:[#allocation31_spill] sm:$0xff] }
  0xb3   :  { %877 = vmatpush.msra.mxu0 %v4221_v22  ;;  %897 = vmatpush.msra.mxu1 %v4223_v23  ;;  %v7027_v22 = vld [vmem:[#allocation33_spill] sm:$0xff]  ;;  %v7028_v23 = vld [vmem:[#allocation34_spill] sm:$0xff] }
  0xb4   :  { %917 = vmatpush.msra.mxu2 %v4227_v24  ;;  %937 = vmatpush.msra.mxu3 %v4229_v25  ;;  %v7029_v24 = vld [vmem:[#allocation36_spill] sm:$0xff]  ;;  %v7030_v25 = vld [vmem:[#allocation35_spill] sm:$0xff] }
  0xb5   :  { %878 = vmatpush.msra.mxu0 %v4233_v26  ;;  %898 = vmatpush.msra.mxu1 %v4235_v27  ;;  %v7031_v26 = vld [vmem:[#allocation37_spill] sm:$0xff]  ;;  %v7032_v27 = vld [vmem:[#allocation38_spill] sm:$0xff] }
  0xb6   :  { %918 = vmatpush.msra.mxu2 %v4239_v28  ;;  %938 = vmatpush.msra.mxu3 %v4241_v29  ;;  %v7033_v28 = vld [vmem:[#allocation40_spill] sm:$0xff]  ;;  %v7034_v29 = vld [vmem:[#allocation39_spill] sm:$0xff] }
  0xb7   :  { %879 = vmatpush.msra.mxu0 %v4245_v30  ;;  %899 = vmatpush.msra.mxu1 %v4247_v31  ;;  %v7035_v30 = vld [vmem:[#allocation41_spill] sm:$0xff]  ;;  %v7036_v31 = vld [vmem:[#allocation42_spill] sm:$0xff] }
  0xb8   :  { %919 = vmatpush.msra.mxu2 %v4251_v32  ;;  %939 = vmatpush.msra.mxu3 %v4253_v33  ;;  %v4650_v32 = vld [vmem:[%s6646_s2] sm:$0xff] }
  0xb9   :  { %880 = vmatpush.msra.mxu0 %v4261_v34  ;;  %900 = vmatpush.msra.mxu1 %v4263_v35  ;;  %v7037_v33 = vld [vmem:[#allocation44_spill] sm:$0xff]  ;;  %v7038_v34 = vld [vmem:[#allocation43_spill] sm:$0xff]  ;;  %v7039_v35 = vld [vmem:[#allocation45_spill] sm:$0xff] }
  0xba   :  { %920 = vmatpush.msra.mxu2 %v4267_v36  ;;  %940 = vmatpush.msra.mxu3 %v4269_v37  ;;  %v7040_v36 = vld [vmem:[#allocation46_spill] sm:$0xff]  ;;  %v7041_v37 = vld [vmem:[#allocation48_spill] sm:$0xff] }
  0xbb   :  { %881 = vmatpush.msra.mxu0 %v4273_v38  ;;  %901 = vmatpush.msra.mxu1 %v4275_v39  ;;  %v7042_v38 = vld [vmem:[#allocation47_spill] sm:$0xff]  ;;  %v206_v39 = vperm.slane %v4650_v32, 0 }
  0xbc   :  { %921 = vmatpush.msra.mxu2 %v4279_v40  ;;  %941 = vmatpush.msra.mxu3 %v4281_v41  ;;  %v207_v40 = vperm.slane %v4650_v32, 1  ;;  %v7043_v41 = vld [vmem:[#allocation49_spill] sm:$0xff] }
  0xbd   :  { %882 = vmatpush.msra.mxu0 %v4285_v42  ;;  %902 = vmatpush.msra.mxu1 %v4287_v43  ;;  %v7044_v42 = vld [vmem:[#allocation50_spill] sm:$0xff]  ;;  %v7045_v43 = vld [vmem:[#allocation52_spill] sm:$0xff] }
  0xbe   :  { %922 = vmatpush.msra.mxu2 %v4291_v44  ;;  %942 = vmatpush.msra.mxu3 %v4293_v45  ;;  %v7046_v44 = vld [vmem:[#allocation51_spill] sm:$0xff]  ;;  %v7047_v45 = vld [vmem:[#allocation53_spill] sm:$0xff] }
  0xbf   :  { %883 = vmatpush.msra.mxu0 %v4297_v46  ;;  %903 = vmatpush.msra.mxu1 %v4299_v47  ;;  %v7048_v46 = vld [vmem:[#allocation54_spill] sm:$0xff] }
  0xc0   :  { %923 = vmatpush.msra.mxu2 %v4303_v48  ;;  %943 = vmatpush.msra.mxu3 %v4305_v49  ;;  %v7049_v49 = vld [vmem:[#allocation56_spill] sm:$0xff] }
  0xc1   :  { %884 = vmatpush.msra.mxu0 %v4313_v50  ;;  %904 = vmatpush.msra.mxu1 %v4315_v51  ;;  %v7050_v50 = vld [vmem:[#allocation55_spill] sm:$0xff] }
  0xc2   :  { %924 = vmatpush.msra.mxu2 %v4319_v52  ;;  %944 = vmatpush.msra.mxu3 %v4321_v53  ;;  %v7051_v53 = vld [vmem:[#allocation57_spill] sm:$0xff] }
  0xc3   :  { %885 = vmatpush.msra.mxu0 %v7007_v1  ;;  %905 = vmatpush.msra.mxu1 %v7008_v2  ;;  %v7053_v1 = vld [vmem:[#allocation60_spill] sm:$0xff]  ;;  %v7054_v2 = vld [vmem:[#allocation59_spill] sm:$0xff] }
  0xc4   :  { %925 = vmatpush.msra.mxu2 %v7009_v3  ;;  %945 = vmatpush.msra.mxu3 %v7010_v4  ;;  %v7055_v3 = vld [vmem:[#allocation61_spill] sm:$0xff]  ;;  %v7056_v4 = vld [vmem:[#allocation62_spill] sm:$0xff] }
  0xc5   :  { %886 = vmatpush.msra.mxu0 %v7011_v5  ;;  %906 = vmatpush.msra.mxu1 %v7012_v6  ;;  %v208_v5 = vperm.slane %v4650_v32, 2  ;;  %v209_v6 = vperm.slane %v4650_v32, 3 }
  0xc6   :  { %926 = vmatpush.msra.mxu2 %v7013_v7  ;;  %946 = vmatpush.msra.mxu3 %v7014_v8  ;;  %v7057_v7 = vld [vmem:[#allocation64_spill] sm:$0xff]  ;;  %v7058_v8 = vld [vmem:[#allocation63_spill] sm:$0xff] }
  0xc7   :  { %887 = vmatpush.msra.mxu0 %v7015_v9  ;;  %907 = vmatpush.msra.mxu1 %v7016_v10  ;;  %v7059_v9 = vld [vmem:[#allocation65_spill] sm:$0xff]  ;;  %v7060_v10 = vld [vmem:[#allocation66_spill] sm:$0xff] }
  0xc8   :  { %927 = vmatpush.msra.mxu2 %v7017_v11  ;;  %947 = vmatpush.msra.mxu3 %v7018_v12  ;;  %v7061_v11 = vld [vmem:[#allocation68_spill] sm:$0xff]  ;;  %v7062_v12 = vld [vmem:[#allocation67_spill] sm:$0xff] }
  0xc9   :  { %1037 = vmatpush.msrb.mxu0 %v7019_v13  ;;  %1057 = vmatpush.msrb.mxu1 %v7020_v14 }
  0xca   :  { %1077 = vmatpush.msrb.mxu2 %v7021_v15  ;;  %1097 = vmatpush.msrb.mxu3 %v7022_v16  ;;  %v7063_v15 = vld [vmem:[#allocation69_spill] sm:$0xff]  ;;  %v7064_v16 = vld [vmem:[#allocation70_spill] sm:$0xff] }
  0xcb   :  { %1038 = vmatpush.msrb.mxu0 %v7023_v18  ;;  %1058 = vmatpush.msrb.mxu1 %v7024_v19  ;;  %v239_v47 = vpop.f32.mrf.mxu0  ;;  %v262_v48 = vpop.f32.mrf.mxu1 }
  0xcc   :  { %1078 = vmatpush.msrb.mxu2 %v7025_v20  ;;  %1098 = vmatpush.msrb.mxu3 %v7026_v21  ;;  %v240_v51 = vadd.f32 %v239_v47, %v206_v39  ;;  %v263_v52 = vadd.f32 %v262_v48, %v207_v40  ;;  %v7065_v20 = vld [vmem:[#allocation72_spill] sm:$0xff]  ;;  %v7066_v21 = vld [vmem:[#allocation71_spill] sm:$0xff] }
  0xcd   :  { %1039 = vmatpush.msrb.mxu0 %v7027_v22  ;;  %1059 = vmatpush.msrb.mxu1 %v7028_v23  ;;  %v7067_v22 = vld [vmem:[#allocation73_spill] sm:$0xff]  ;;  %v7068_v23 = vld [vmem:[#allocation74_spill] sm:$0xff] }
  0xce   :  { %1079 = vmatpush.msrb.mxu2 %v7029_v24  ;;  %1099 = vmatpush.msrb.mxu3 %v7030_v25  ;;  %406 = vst [vmem:[#allocation2 + $0x30] sm:$0xff] %v240_v51  ;;  %v7069_v24 = vld [vmem:[#allocation75_spill] sm:$0xff]  ;;  %v7070_v25 = vld [vmem:[#allocation76_spill] sm:$0xff] }
  0xcf   :  { %1040 = vmatpush.msrb.mxu0 %v7031_v26  ;;  %1060 = vmatpush.msrb.mxu1 %v7032_v27  ;;  %407 = vst [vmem:[#allocation2] sm:$0xff] %v263_v52 }
  0xd0   :  { %1080 = vmatpush.msrb.mxu2 %v7033_v28  ;;  %1100 = vmatpush.msrb.mxu3 %v7034_v29  ;;  %v7071_v28 = vld [vmem:[#allocation77_spill] sm:$0xff] }
  0xd1   :  { %1041 = vmatpush.msrb.mxu0 %v7035_v30  ;;  %1061 = vmatpush.msrb.mxu1 %v7036_v31 }
  0xd2   :  { %1081 = vmatpush.msrb.mxu2 %v7037_v33  ;;  %1101 = vmatpush.msrb.mxu3 %v7038_v34  ;;  %v285_v13 = vpop.f32.mrf.mxu2  ;;  %v308_v14 = vpop.f32.mrf.mxu3  ;;  %v210_v34 = vperm.slane %v4650_v32, 4 }
  0xd3   :  { %1042 = vmatpush.msrb.mxu0 %v7039_v35  ;;  %1062 = vmatpush.msrb.mxu1 %v7040_v36  ;;  %v286_v18 = vadd.f32 %v285_v13, %v208_v5  ;;  %v309_v19 = vadd.f32 %v308_v14, %v209_v6  ;;  %v211_v35 = vperm.slane %v4650_v32, 5 }
  0xd4   :  { %1082 = vmatpush.msrb.mxu2 %v7041_v37  ;;  %1102 = vmatpush.msrb.mxu3 %v7042_v38 }
  0xd5   :  { %1043 = vmatpush.msrb.mxu0 %v7043_v41  ;;  %1063 = vmatpush.msrb.mxu1 %v7044_v42  ;;  %408 = vst [vmem:[#allocation2 + $0x58] sm:$0xff] %v286_v18  ;;  %v212_v42 = vperm.slane %v4650_v32, 6 }
  0xd6   :  { %1083 = vmatpush.msrb.mxu2 %v7045_v43  ;;  %1103 = vmatpush.msrb.mxu3 %v7046_v44  ;;  %409 = vst [vmem:[#allocation2 + $0x18] sm:$0xff] %v309_v19  ;;  %v213_v43 = vperm.slane %v4650_v32, 7  ;;  %v551_v32 = vld [vmem:[#allocation2] sm:$0x3] }
  0xd7   :  { %1044 = vmatpush.msrb.mxu0 %v7047_v45  ;;  %1064 = vmatpush.msrb.mxu1 %v7048_v46  ;;  %v242_v26 = vpop.f32.mrf.mxu0  ;;  %v265_v27 = vpop.f32.mrf.mxu1 }
  0xd8   :  { %1084 = vmatpush.msrb.mxu2 %v7049_v49  ;;  %1104 = vmatpush.msrb.mxu3 %v7050_v50  ;;  %v243_v29 = vadd.f32 %v242_v26, %v206_v39  ;;  %v266_v30 = vadd.f32 %v265_v27, %v207_v40 }
  0xd9   :  { %1045 = vmatpush.msrb.mxu0 %v7051_v53  ;;  %1065 = vmatpush.msrb.mxu1 %v7052_v61 }
  0xda   :  { %1085 = vmatpush.msrb.mxu2 %v7053_v1  ;;  %1105 = vmatpush.msrb.mxu3 %v7054_v2  ;;  %414 = vst [vmem:[#allocation2 + $0x40] sm:$0xff] %v243_v29  ;;  %v550_v2 = vld [vmem:[#allocation2 + $0x30] sm:$0x3] }
  0xdb   :  { %1046 = vmatpush.msrb.mxu0 %v7055_v3  ;;  %1066 = vmatpush.msrb.mxu1 %v7056_v4  ;;  %415 = vst [vmem:[#allocation2 + $0x20] sm:$0xff] %v266_v30 }
  0xdc   :  { %1086 = vmatpush.msrb.mxu2 %v7057_v7  ;;  %1106 = vmatpush.msrb.mxu3 %v7058_v8 }
  0xdd   :  { %1047 = vmatpush.msrb.mxu0 %v7059_v9  ;;  %1067 = vmatpush.msrb.mxu1 %v7060_v10  ;;  %v553_v9 = vld [vmem:[#allocation2 + $0x18] sm:$0x3] }
  0xde   :  { %1087 = vmatpush.msrb.mxu2 %v7061_v11  ;;  %1107 = vmatpush.msrb.mxu3 %v7062_v12  ;;  %v288_v31 = vpop.f32.mrf.mxu2  ;;  %v311_v33 = vpop.f32.mrf.mxu3 }
  0xdf   :  { %1048 = vmatpush.msrb.mxu0 %v7063_v15  ;;  %1068 = vmatpush.msrb.mxu1 %v7064_v16  ;;  %v289_v36 = vadd.f32 %v288_v31, %v208_v5  ;;  %v312_v37 = vadd.f32 %v311_v33, %v209_v6  ;;  %v552_v31 = vld [vmem:[#allocation2 + $0x58] sm:$0x3] }
  0xe0   :  { %1088 = vmatpush.msrb.mxu2 %v7065_v20  ;;  %1108 = vmatpush.msrb.mxu3 %v7066_v21 }
  0xe1   :  { %1049 = vmatpush.msrb.mxu0 %v7067_v22  ;;  %1069 = vmatpush.msrb.mxu1 %v7068_v23  ;;  %416 = vst [vmem:[#allocation2 + $0x10] sm:$0xff] %v289_v36  ;;  %v331_v38 = vpop.f32.mrf.mxu0  ;;  %v354_v39 = vpop.f32.mrf.mxu1 }
  0xe2   :  { %1089 = vmatpush.msrb.mxu2 %v4517_v0  ;;  %1109 = vmatpush.msrb.mxu3 %v7069_v24  ;;  %417 = vst [vmem:[#allocation2 + $0x38] sm:$0xff] %v312_v37  ;;  %v332_v40 = vadd.f32 %v331_v38, %v210_v34  ;;  %v355_v41 = vadd.f32 %v354_v39, %v211_v35 }
  0xe3   :  { %1050 = vmatpush.msrb.mxu0 %v4520_v17  ;;  %1070 = vmatpush.msrb.mxu1 %v7070_v25 }
  0xe4   :  { %1090 = vmatpush.msrb.mxu2 %v4529_v56  ;;  %1110 = vmatpush.msrb.mxu3 %v7071_v28  ;;  %410 = vst [vmem:[#allocation2 + $0x50] sm:$0xff] %v332_v40 }
  0xe5   :  { %1051 = vmatpush.msrb.mxu0 %v4532_v55  ;;  %1071 = vmatpush.msrb.mxu1 %v4534_v62  ;;  %411 = vst [vmem:[#allocation2 + $0x68] sm:$0xff] %v355_v41 }
  0xe6   :  { %1091 = vmatpush.msrb.mxu2 %v4541_v58  ;;  %1111 = vmatpush.msrb.mxu3 %v4539_v59 }
  0xe7   :  { %1052 = vmatpush.msrb.mxu0 %v4544_v54  ;;  %1072 = vmatpush.msrb.mxu1 %v4546_v57 }
  0xe8   :  { %1092 = vmatpush.msrb.mxu2 %v4557_v63  ;;  %1112 = vmatpush.msrb.mxu3 %v4551_v60  ;;  %v377_v44 = vpop.f32.mrf.mxu2  ;;  %v400_v45 = vpop.f32.mrf.mxu3 }
  0xe9   :  { %v378_v46 = vadd.f32 %v377_v44, %v212_v42  ;;  %v401_v47 = vadd.f32 %v400_v45, %v213_v43 }
  0xeb   :  { %412 = vst [vmem:[#allocation2 + $0x8] sm:$0xff] %v378_v46  ;;  %v334_v48 = vpop.f32.mrf.mxu0  ;;  %v357_v49 = vpop.f32.mrf.mxu1 }
  0xec   :  { %413 = vst [vmem:[#allocation2 + $0x48] sm:$0xff] %v401_v47  ;;  %v335_v50 = vadd.f32 %v334_v48, %v210_v34  ;;  %v358_v51 = vadd.f32 %v357_v49, %v211_v35 }
  0xee   :  { %418 = vst [vmem:[#allocation2 + $0x60] sm:$0xff] %v335_v50 }
  0xef   :  { %419 = vst [vmem:[#allocation2 + $0x70] sm:$0xff] %v358_v51 }
  0xf2   :  { %v380_v52 = vpop.f32.mrf.mxu2  ;;  %v403_v53 = vpop.f32.mrf.mxu3 }
  0xf3   :  { %v381_v61 = vadd.f32 %v380_v52, %v212_v42  ;;  %v404_v1 = vadd.f32 %v403_v53, %v213_v43 }
  0xf5   :  { %420 = vst [vmem:[#allocation2 + $0x78] sm:$0xff] %v381_v61  ;;  %v575_v3 = vpop.f32.mrf.mxu0  ;;  %v595_v4 = vpop.f32.mrf.mxu1 }
  0xf6   :  { %421 = vst [vmem:[#allocation2 + $0x28] sm:$0xff] %v404_v1  ;;  %v638_v5 = vadd.f32 %v575_v3, %v550_v2  ;;  %v639_v6 = vadd.f32 %v595_v4, %v551_v32 }
  0xf8   :  { %v3288_v7 = vmul.f32 -1.442695, %v638_v5  ;;  %v3289_v8 = vmul.f32 -1.442695, %v639_v6 }
  0xfa   :  { %3347 = vpow2.f32 %v3288_v7 }
  0xfb   :  { %3349 = vpow2.f32 %v3289_v8 }
  0xfc   :  { %v635_v10 = vpop.f32.mrf.mxu3  ;;  %v615_v29 = vpop.f32.mrf.mxu2 }
  0xfd   :  { %v641_v13 = vadd.f32 %v635_v10, %v553_v9  ;;  %v640_v35 = vadd.f32 %v615_v29, %v552_v31 }
  0xff   :  { %v3290_v14 = vmul.f32 -1.442695, %v641_v13  ;;  %v554_v13 = vld [vmem:[#allocation2 + $0x60] sm:$0xc0] }
 0x100   :  { %v3348_v18 = vpop.eup %3347 }
 0x101   :  { %v3350_v19 = vpop.eup %3349  ;;  %v645_v26 = vadd.f32 1.0, %v3348_v18  ;;  %3351 = vpow2.f32 %v3290_v14 }
 0x102   :  { %v664_v27 = vadd.f32 1.0, %v3350_v19 }
 0x103   :  { %3353 = vrcp.f32 %v645_v26  ;;  %v657_v41 = vand.u32 2147483648, %v645_v26  ;;  %v655_v44 = vand.u32 2147483647, %v645_v26  ;;  %vm651_vm2 = vweird.f32 %v645_v26 }
 0x104   :  { %3355 = vrcp.f32 %v664_v27  ;;  %v676_v42 = vand.u32 2147483648, %v664_v27  ;;  %v674_v46 = vand.u32 2147483647, %v664_v27  ;;  %vm670_vm3 = vweird.f32 %v664_v27 }
 0x105   :  { %v658_v49 = vor.u32 1.1754944e-38, %v657_v41  ;;  %vm656_vm5 = vcmp.eq.f32.partialorder %v655_v44, 8.507059e+37 }
 0x106   :  { %v677_v52 = vor.u32 1.1754944e-38, %v676_v42  ;;  %vm675_vm7 = vcmp.eq.f32.partialorder %v674_v46, 8.507059e+37 }
 0x107   :  { %v3352_v30 = vpop.eup %3351 }
 0x108   :  { %v4706_v33 = vadd.f32 1.0, %v3352_v30 }
 0x109   :  { %v3354_v34 = vpop.eup %3353 }
 0x10a   :  { %v3356_v36 = vpop.eup %3355  ;;  %v647_v37 = vmul.f32 %v3354_v34, %v645_v26  ;;  %3357 = vrcp.f32 %v4706_v33  ;;  %vm652_vm0 = vweird.f32 %v3354_v34  ;;  %v555_v26 = vld [vmem:[#allocation2 + $0x70] sm:$0xc0]  ;;  %vm690_vm9 = vweird.f32 %v4706_v33 }
 0x10b   :  { %v666_v38 = vmul.f32 %v3356_v36, %v664_v27  ;;  %3359 = vtanh.f32 %v640_v35  ;;  %vm671_vm1 = vweird.f32 %v3356_v36  ;;  %vm653_vm4 = vmor %vm651_vm2, %vm652_vm0  ;;  %v696_v27 = vand.u32 2147483648, %v4706_v33 }
 0x10c   :  { %v648_v39 = vsub.f32 1.0, %v647_v37  ;;  %vm672_vm6 = vmor %vm670_vm3, %vm671_vm1  ;;  %v694_v30 = vand.u32 2147483647, %v4706_v33 }
 0x10d   :  { %v667_v40 = vsub.f32 1.0, %v666_v38  ;;  %v697_v37 = vor.u32 1.1754944e-38, %v696_v27 }
 0x10e   :  { %v649_v43 = vmul.f32 %v3354_v34, %v648_v39  ;;  %vm695_vm11 = vcmp.eq.f32.partialorder %v694_v30, 8.507059e+37  ;;  %v4777_v30 = vld [vmem:[#allocation6 + $0x168] sm:$0xff] }
 0x10f   :  { %v668_v45 = vmul.f32 %v3356_v36, %v667_v40  ;;  %v557_v40 = vld [vmem:[#allocation2 + $0x28] sm:$0xc0] }
 0x110   :  { %v3358_v47 = vpop.eup %3357  ;;  %v650_v48 = vadd.f32 %v3354_v34, %v649_v43 }
 0x111   :  { %v669_v50 = vadd.f32 %v3356_v36, %v668_v45  ;;  %v686_v51 = vmul.f32 %v3358_v47, %v4706_v33  ;;  %v3360_v61 = vpop.eup %3359  ;;  %vm691_vm8 = vweird.f32 %v3358_v47 }
 0x112   :  { %v654_v53 = vsel %vm653_vm4, %v3354_v34, %v650_v48  ;;  %vm692_vm10 = vmor %vm690_vm9, %vm691_vm8  ;;  %v4721_v48 = vld [vmem:[#allocation6 + $0x1e8] sm:$0xff] }
 0x113   :  { %v659_v1 = vsel %vm656_vm5, %v658_v49, %v654_v53  ;;  %v673_v2 = vsel %vm672_vm6, %v3356_v36, %v669_v50  ;;  %v687_v3 = vsub.f32 1.0, %v686_v51  ;;  %v4726_v51 = vld [vmem:[#allocation6 + $0x1f0] sm:$0xff]  ;;  %v4733_v53 = vld [vmem:[#allocation6 + $0x1c0] sm:$0xff] }
 0x114   :  { %v678_v32 = vsel %vm675_vm7, %v677_v52, %v673_v2  ;;  %v701_v4 = vmul.f32 %v3360_v61, %v659_v1  ;;  %v4729_v52 = vld [vmem:[#allocation6 + $0x1f8] sm:$0xff]  ;;  %v4736_v61 = vld [vmem:[#allocation6 + $0x1c8] sm:$0xff]  ;;  %v4740_v1 = vld [vmem:[#allocation6 + $0x1d0] sm:$0xff] }
 0x115   :  { %v700_v5 = vmul.f32 0.0, %v678_v32  ;;  %v688_v6 = vmul.f32 %v3358_v47, %v687_v3  ;;  %v4743_v2 = vld [vmem:[#allocation6 + $0x1d8] sm:$0xff]  ;;  %v4746_v32 = vld [vmem:[#allocation6 + $0x1a0] sm:$0xff] }
 0x117   :  { %v4710_v8 = vadd.f32 %v701_v4, %v700_v5  ;;  %v689_v18 = vadd.f32 %v3358_v47, %v688_v6  ;;  %v4749_v4 = vld [vmem:[#allocation6 + $0x1a8] sm:$0xff]  ;;  %v556_v5 = vld [vmem:[#allocation2 + $0x78] sm:$0xc0]  ;;  %v4752_v6 = vld [vmem:[#allocation6 + $0x1b0] sm:$0xff] }
 0x119   :  { %3361 = vtanh.f32 %v4710_v8  ;;  %v693_v35 = vsel %vm692_vm10, %v3358_v47, %v689_v18  ;;  %v4718_v47 = vld [vmem:[#allocation6 + $0x1e0] sm:$0xff]  ;;  %v4766_v18 = vld [vmem:[#allocation6 + $0x190] sm:$0xff] }
 0x11a   :  { %v698_v41 = vsel %vm695_vm11, %v697_v37, %v693_v35  ;;  %v4785_v35 = vld [vmem:[#allocation6 + $0x170] sm:$0xff] }
 0x11f   :  { %v3362_v39 = vpop.eup %3361 }
 0x120   :  { %v704_v43 = vmul.f32 %v3362_v39, %v698_v41  ;;  %v4796_v39 = vld [vmem:[#allocation6 + $0x148] sm:$0xff]  ;;  %v4799_v41 = vld [vmem:[#allocation6 + $0x150] sm:$0xff] }
 0x121   :  { %7072 = vst [vmem:[#allocation13_spill] sm:$0xff] %v4799_v41 }
 0x122   :  { %888 = vmatmul.f32.vlgmr.msra.gmra.mxu0 %v704_v43  ;;  %908 = vmatmul.f32.vlgmr.msra.gmra.mxu1 %v704_v43 }
 0x123   :  { %928 = vmatmul.f32.vlgmr.msra.gmra.mxu2 %v704_v43  ;;  %948 = vmatmul.f32.vlgmr.msra.gmra.mxu3 %v704_v43 }
 0x124   :  { %v722_v7 = vpop.f32.mrf.mxu0  ;;  %v742_v10 = vpop.f32.mrf.mxu1  ;;  %1210 = vmatpush.msra.mxu0 %v4718_v47  ;;  %1230 = vmatpush.msra.mxu1 %v4721_v48 }
 0x125   :  { %v789_v9 = vrot.slane %v722_v7, 2  ;;  %v790_v14 = vrot.slane %v742_v10, 2  ;;  %1250 = vmatpush.msra.mxu2 %v4726_v51  ;;  %1270 = vmatpush.msra.mxu3 %v4729_v52  ;;  %v4755_v7 = vld [vmem:[#allocation6 + $0x1b8] sm:$0xff]  ;;  %v4758_v10 = vld [vmem:[#allocation6 + $0x180] sm:$0xff] }
 0x126   :  { %1211 = vmatpush.msra.mxu0 %v4733_v53  ;;  %1231 = vmatpush.msra.mxu1 %v4736_v61 }
 0x127   :  { %v797_v19 = vadd.f32 %v789_v9, %v554_v13  ;;  %v798_v29 = vadd.f32 %v790_v14, %v555_v26  ;;  %1251 = vmatpush.msra.mxu2 %v4740_v1  ;;  %1271 = vmatpush.msra.mxu3 %v4743_v2  ;;  %v4761_v13 = vld [vmem:[#allocation6 + $0x188] sm:$0xff] }
 0x128   :  { %1212 = vmatpush.msra.mxu0 %v4746_v32  ;;  %1232 = vmatpush.msra.mxu1 %v4749_v4 }
 0x129   :  { %v3291_v31 = vmul.f32 -1.442695, %v797_v19  ;;  %v3292_v34 = vmul.f32 -1.442695, %v798_v29  ;;  %1252 = vmatpush.msra.mxu2 %v4752_v6  ;;  %1272 = vmatpush.msra.mxu3 %v4755_v7  ;;  %v4769_v19 = vld [vmem:[#allocation6 + $0x198] sm:$0xff]  ;;  %v4774_v29 = vld [vmem:[#allocation6 + $0x160] sm:$0xff] }
 0x12a   :  { %1213 = vmatpush.msra.mxu0 %v4758_v10  ;;  %1233 = vmatpush.msra.mxu1 %v4761_v13 }
 0x12b   :  { %3363 = vpow2.f32 %v3291_v31  ;;  %v782_v36 = vpop.f32.mrf.mxu3  ;;  %1253 = vmatpush.msra.mxu2 %v4766_v18  ;;  %1273 = vmatpush.msra.mxu3 %v4769_v19 }
 0x12c   :  { %3365 = vpow2.f32 %v3292_v34  ;;  %v792_v38 = vrot.slane %v782_v36, 2  ;;  %v762_v50 = vpop.f32.mrf.mxu2  ;;  %1214 = vmatpush.msra.mxu0 %v4774_v29  ;;  %1234 = vmatpush.msra.mxu1 %v4777_v30  ;;  %v4788_v36 = vld [vmem:[#allocation6 + $0x178] sm:$0xff] }
 0x12d   :  { %v791_v3 = vrot.slane %v762_v50, 2  ;;  %1254 = vmatpush.msra.mxu2 %v4785_v35  ;;  %1274 = vmatpush.msra.mxu3 %v4788_v36 }
 0x12e   :  { %v800_v42 = vadd.f32 %v792_v38, %v557_v40  ;;  %v4793_v38 = vld [vmem:[#allocation6 + $0x140] sm:$0xff]  ;;  %1235 = vmatpush.msra.mxu1 %v4796_v39 }
 0x12f   :  { %v799_v27 = vadd.f32 %v791_v3, %v556_v5  ;;  %1215 = vmatpush.msra.mxu0 %v4793_v38  ;;  %1255 = vmatpush.msra.mxu2 %v4799_v41 }
 0x130   :  { %v3293_v44 = vmul.f32 -1.442695, %v800_v42  ;;  %v4802_v42 = vld [vmem:[#allocation6 + $0x158] sm:$0xff] }
 0x131   :  { %v3364_v45 = vpop.eup %3363  ;;  %7073 = vst [vmem:[#allocation14_spill] sm:$0xff] %v4802_v42  ;;  %1275 = vmatpush.msra.mxu3 %v4802_v42  ;;  %v4851_v42 = vld [vmem:[#allocation6 + $0xe0] sm:$0xff] }
 0x132   :  { %v3366_v33 = vpop.eup %3365  ;;  %v4716_v46 = vadd.f32 1.0, %v3364_v45  ;;  %3367 = vpow2.f32 %v3293_v44  ;;  %v4806_v45 = vld [vmem:[#allocation6 + $0x120] sm:$0xff]  ;;  %7084 = vst [vmem:[#allocation23_spill] sm:$0xff] %v4851_v42 }
 0x133   :  { %v4724_v49 = vadd.f32 1.0, %v3366_v33  ;;  %7074 = vst [vmem:[#allocation15_spill] sm:$0xff] %v4806_v45  ;;  %1216 = vmatpush.msra.mxu0 %v4806_v45  ;;  %v4809_v33 = vld [vmem:[#allocation6 + $0x128] sm:$0xff] }
 0x134   :  { %3369 = vrcp.f32 %v4716_v46  ;;  %v816_v44 = vand.u32 2147483648, %v4716_v46  ;;  %7075 = vst [vmem:[#allocation16_spill] sm:$0xff] %v4809_v33  ;;  %1236 = vmatpush.msra.mxu1 %v4809_v33  ;;  %v814_v5 = vand.u32 2147483647, %v4716_v46  ;;  %v4825_v33 = vld [vmem:[#allocation6 + $0x100] sm:$0xff]  ;;  %vm810_vm14 = vweird.f32 %v4716_v46 }
 0x135   :  { %3371 = vrcp.f32 %v4724_v49  ;;  %v835_v50 = vand.u32 2147483648, %v4724_v49  ;;  %7078 = vst [vmem:[#allocation19_spill] sm:$0xff] %v4825_v33  ;;  %1217 = vmatpush.msra.mxu0 %v4825_v33  ;;  %vm829_vm15 = vweird.f32 %v4724_v49 }
 0x136   :  { %vm815_vm1 = vcmp.eq.f32.partialorder %v814_v5, 8.507059e+37 }
 0x137   :  { %1218 = vmatpush.msra.mxu0 %v4851_v42 }
 0x138   :  { %v3368_v9 = vpop.eup %3367 }
 0x139   :  { %v4764_v14 = vadd.f32 1.0, %v3368_v9  ;;  %v4816_v9 = vld [vmem:[#allocation6 + $0x130] sm:$0xff] }
 0x13a   :  { %v4772_v26 = vpop.eup %3369  ;;  %7076 = vst [vmem:[#allocation17_spill] sm:$0xff] %v4816_v9  ;;  %1256 = vmatpush.msra.mxu2 %v4816_v9 }
 0x13b   :  { %v4780_v31 = vpop.eup %3371  ;;  %v806_v34 = vmul.f32 %v4772_v26, %v4716_v46  ;;  %3373 = vrcp.f32 %v4764_v14  ;;  %vm811_vm12 = vweird.f32 %v4772_v26  ;;  %v817_v46 = vor.u32 1.1754944e-38, %v816_v44  ;;  %v4862_v44 = vld [vmem:[#allocation6 + $0xf0] sm:$0xff] }
 0x13c   :  { %v825_v37 = vmul.f32 %v4780_v31, %v4724_v49  ;;  %3375 = vtanh.f32 %v799_v27  ;;  %v4819_v27 = vld [vmem:[#allocation6 + $0x138] sm:$0xff]  ;;  %vm830_vm13 = vweird.f32 %v4780_v31  ;;  %vm4846_vm0 = vmor %vm810_vm14, %vm811_vm12  ;;  %7086 = vst [vmem:[#allocation25_spill] sm:$0xff] %v4862_v44  ;;  %vm849_vm5 = vweird.f32 %v4764_v14 }
 0x13d   :  { %v807_v40 = vsub.f32 1.0, %v806_v34  ;;  %7077 = vst [vmem:[#allocation18_spill] sm:$0xff] %v4819_v27  ;;  %1276 = vmatpush.msra.mxu3 %v4819_v27  ;;  %v4835_v27 = vld [vmem:[#allocation6 + $0x110] sm:$0xff]  ;;  %vm831_vm2 = vmor %vm829_vm15, %vm830_vm13 }
 0x13e   :  { %v826_v43 = vsub.f32 1.0, %v825_v37  ;;  %v833_v37 = vand.u32 2147483647, %v4724_v49  ;;  %7080 = vst [vmem:[#allocation21_spill] sm:$0xff] %v4835_v27  ;;  %1257 = vmatpush.msra.mxu2 %v4835_v27  ;;  %v4854_v27 = vld [vmem:[#allocation6 + $0xe8] sm:$0xff]  ;;  %v836_v49 = vor.u32 1.1754944e-38, %v835_v50 }
 0x13f   :  { %v808_v3 = vmul.f32 %v4772_v26, %v807_v40  ;;  %v4828_v40 = vld [vmem:[#allocation6 + $0x108] sm:$0xff]  ;;  %7085 = vst [vmem:[#allocation24_spill] sm:$0xff] %v4854_v27 }
 0x140   :  { %v827_v34 = vmul.f32 %v4780_v31, %v826_v43  ;;  %7079 = vst [vmem:[#allocation20_spill] sm:$0xff] %v4828_v40  ;;  %1237 = vmatpush.msra.mxu1 %v4828_v40  ;;  %v4838_v43 = vld [vmem:[#allocation6 + $0x118] sm:$0xff]  ;;  %1258 = vmatpush.msra.mxu2 %v4862_v44  ;;  %vm834_vm3 = vcmp.eq.f32.partialorder %v833_v37, 8.507059e+37  ;;  %v4869_v40 = vld [vmem:[#allocation6 + $0xc0] sm:$0xff]  ;;  %v4875_v44 = vld [vmem:[#allocation6 + $0xd0] sm:$0xff] }
 0x141   :  { %v4831_v45 = vpop.eup %3373  ;;  %v809_v9 = vadd.f32 %v4772_v26, %v808_v3  ;;  %7081 = vst [vmem:[#allocation22_spill] sm:$0xff] %v4838_v43  ;;  %1277 = vmatpush.msra.mxu3 %v4838_v43  ;;  %1219 = vmatpush.msra.mxu0 %v4869_v40  ;;  %v4882_v37 = vld [vmem:[#allocation6 + $0xa0] sm:$0xff] }
 0x142   :  { %v845_v33 = vmul.f32 %v4831_v45, %v4764_v14  ;;  %v828_v3 = vadd.f32 %v4780_v31, %v827_v34  ;;  %1238 = vmatpush.msra.mxu1 %v4854_v27  ;;  %v4865_v34 = vld [vmem:[#allocation6 + $0xf8] sm:$0xff]  ;;  %v3376_v42 = vpop.eup %3375  ;;  %1259 = vmatpush.msra.mxu2 %v4875_v44  ;;  %vm850_vm4 = vweird.f32 %v4831_v45 }
 0x143   :  { %v813_v43 = vsel %vm4846_vm0, %v4772_v26, %v809_v9  ;;  %7087 = vst [vmem:[#allocation26_spill] sm:$0xff] %v4865_v34  ;;  %1278 = vmatpush.msra.mxu3 %v4865_v34  ;;  %v4872_v26 = vld [vmem:[#allocation6 + $0xc8] sm:$0xff]  ;;  %v4878_v34 = vld [vmem:[#allocation6 + $0xd8] sm:$0xff]  ;;  %1220 = vmatpush.msra.mxu0 %v4882_v37  ;;  %vm4928_vm6 = vmor %vm849_vm5, %vm850_vm4 }
 0x144   :  { %v846_v41 = vsub.f32 1.0, %v845_v33  ;;  %v818_v27 = vsel %vm815_vm1, %v817_v46, %v813_v43  ;;  %v832_v50 = vsel %vm831_vm2, %v4780_v31, %v828_v3  ;;  %1239 = vmatpush.msra.mxu1 %v4872_v26  ;;  %v4885_v43 = vld [vmem:[#allocation6 + $0xa8] sm:$0xff]  ;;  %v4896_v3 = vld [vmem:[#allocation6 + $0x80] sm:$0xff] }
 0x145   :  { %v837_v5 = vsel %vm834_vm3, %v836_v49, %v832_v50  ;;  %v860_v9 = vmul.f32 %v3376_v42, %v818_v27  ;;  %1279 = vmatpush.msra.mxu3 %v4878_v34  ;;  %v4888_v42 = vld [vmem:[#allocation6 + $0xb0] sm:$0xff]  ;;  %v4891_v27 = vld [vmem:[#allocation6 + $0xb8] sm:$0xff]  ;;  %7090 = vst [vmem:[#allocation29_spill] sm:$0xff] %v4896_v3  ;;  %1221 = vmatpush.msra.mxu0 %v4896_v3  ;;  %v4932_v3 = vld [vmem:[#allocation6 + $0x40] sm:$0xff] }
 0x146   :  { %v859_v31 = vmul.f32 0.0, %v837_v5  ;;  %v847_v33 = vmul.f32 %v4831_v45, %v846_v41  ;;  %1240 = vmatpush.msra.mxu1 %v4885_v43  ;;  %7088 = vst [vmem:[#allocation28_spill] sm:$0xff] %v4888_v42  ;;  %1260 = vmatpush.msra.mxu2 %v4888_v42  ;;  %v4899_v41 = vld [vmem:[#allocation6 + $0x88] sm:$0xff]  ;;  %v4904_v50 = vld [vmem:[#allocation6 + $0x90] sm:$0xff]  ;;  %v4907_v5 = vld [vmem:[#allocation6 + $0x98] sm:$0xff] }
 0x147   :  { %7089 = vst [vmem:[#allocation27_spill] sm:$0xff] %v4891_v27  ;;  %1280 = vmatpush.msra.mxu3 %v4891_v27  ;;  %v4947_v42 = vld [vmem:[#allocation6 + $0x20] sm:$0xff] }
 0x148   :  { %v4894_v46 = vadd.f32 %v860_v9, %v859_v31  ;;  %7091 = vst [vmem:[#allocation30_spill] sm:$0xff] %v4899_v41  ;;  %1241 = vmatpush.msra.mxu1 %v4899_v41  ;;  %v848_v49 = vadd.f32 %v4831_v45, %v847_v33  ;;  %1261 = vmatpush.msra.mxu2 %v4904_v50  ;;  %v855_v9 = vand.u32 2147483648, %v4764_v14  ;;  %v4912_v31 = vld [vmem:[#allocation6 + $0x60] sm:$0xff]  ;;  %v4915_v41 = vld [vmem:[#allocation6 + $0x68] sm:$0xff]  ;;  %v853_v33 = vand.u32 2147483647, %v4764_v14 }
 0x149   :  { %7092 = vst [vmem:[#allocation32_spill] sm:$0xff] %v4904_v50  ;;  %1281 = vmatpush.msra.mxu3 %v4907_v5  ;;  %1222 = vmatpush.msra.mxu0 %v4912_v31  ;;  %v4920_v50 = vld [vmem:[#allocation6 + $0x70] sm:$0xff] }
 0x14a   :  { %7093 = vst [vmem:[#allocation31_spill] sm:$0xff] %v4907_v5  ;;  %3377 = vtanh.f32 %v4894_v46  ;;  %1242 = vmatpush.msra.mxu1 %v4915_v41  ;;  %1262 = vmatpush.msra.mxu2 %v4920_v50  ;;  %v4923_v5 = vld [vmem:[#allocation6 + $0x78] sm:$0xff]  ;;  %v852_v14 = vsel %vm4928_vm6, %v4831_v45, %v848_v49  ;;  %v856_v27 = vor.u32 1.1754944e-38, %v855_v9  ;;  %vm854_vm7 = vcmp.eq.f32.partialorder %v853_v33, 8.507059e+37  ;;  %v4959_v9 = vld [vmem:[#allocation6] sm:$0xff]  ;;  %v4965_v33 = vld [vmem:[#allocation6 + $0x10] sm:$0xff] }
 0x14b   :  { %7094 = vst [vmem:[#allocation33_spill] sm:$0xff] %v4912_v31  ;;  %1282 = vmatpush.msra.mxu3 %v4923_v5  ;;  %1223 = vmatpush.msra.mxu0 %v4932_v3  ;;  %v4953_v31 = vld [vmem:[#allocation6 + $0x30] sm:$0xff]  ;;  %v4956_v45 = vld [vmem:[#allocation6 + $0x38] sm:$0xff] }
 0x14c   :  { %7095 = vst [vmem:[#allocation34_spill] sm:$0xff] %v4915_v41  ;;  %v4935_v41 = vld [vmem:[#allocation6 + $0x48] sm:$0xff] }
 0x14d   :  { %7096 = vst [vmem:[#allocation36_spill] sm:$0xff] %v4920_v50  ;;  %1243 = vmatpush.msra.mxu1 %v4935_v41  ;;  %v4941_v50 = vld [vmem:[#allocation6 + $0x50] sm:$0xff]  ;;  %1224 = vmatpush.msra.mxu0 %v4947_v42 }
 0x14e   :  { %7097 = vst [vmem:[#allocation35_spill] sm:$0xff] %v4923_v5  ;;  %1263 = vmatpush.msra.mxu2 %v4941_v50  ;;  %v4944_v5 = vld [vmem:[#allocation6 + $0x58] sm:$0xff] }
 0x14f   :  { %7100 = vst [vmem:[#allocation37_spill] sm:$0xff] %v4932_v3  ;;  %1283 = vmatpush.msra.mxu3 %v4944_v5  ;;  %v4950_v3 = vld [vmem:[#allocation6 + $0x28] sm:$0xff]  ;;  %1225 = vmatpush.msra.mxu0 %v4959_v9 }
 0x150   :  { %7101 = vst [vmem:[#allocation38_spill] sm:$0xff] %v4944_v5  ;;  %1244 = vmatpush.msra.mxu1 %v4950_v3  ;;  %1264 = vmatpush.msra.mxu2 %v4953_v31  ;;  %v3378_v49 = vpop.eup %3377  ;;  %v857_v5 = vsel %vm854_vm7, %v856_v27, %v852_v14  ;;  %v4971_v27 = vld [vmem:[#allocation8 + $0x1e0] sm:$0xff]  ;;  %v4974_v14 = vld [vmem:[#allocation8 + $0x1e8] sm:$0xff] }
 0x151   :  { %7102 = vst [vmem:[#allocation40_spill] sm:$0xff] %v4947_v42  ;;  %1284 = vmatpush.msra.mxu3 %v4956_v45  ;;  %v4962_v42 = vld [vmem:[#allocation6 + $0x8] sm:$0xff] }
 0x152   :  { %7103 = vst [vmem:[#allocation39_spill] sm:$0xff] %v4950_v3  ;;  %1245 = vmatpush.msra.mxu1 %v4962_v42  ;;  %v863_v3 = vmul.f32 %v3378_v49, %v857_v5  ;;  %1265 = vmatpush.msra.mxu2 %v4965_v33  ;;  %v4977_v5 = vld [vmem:[#allocation8 + $0x1f0] sm:$0xff]  ;;  %v4980_v49 = vld [vmem:[#allocation8 + $0x1f8] sm:$0xff] }
 0x153   :  { %7104 = vst [vmem:[#allocation41_spill] sm:$0xff] %v4953_v31  ;;  %v4968_v31 = vld [vmem:[#allocation6 + $0x18] sm:$0xff] }
 0x154   :  { %7105 = vst [vmem:[#allocation42_spill] sm:$0xff] %v4956_v45  ;;  %1285 = vmatpush.msra.mxu3 %v4968_v31  ;;  %v1035_v45 = vrot.slane %v863_v3, 6  ;;  %v4983_v3 = vld [vmem:[#allocation8 + $0x1c0] sm:$0xff] }
 0x155   :  { %7106 = vst [vmem:[#allocation44_spill] sm:$0xff] %v4971_v27 }
 0x156   :  { %1053 = vmatmul.f32.vlgmr.msrb.gmra.mxu0 %v1035_v45  ;;  %1073 = vmatmul.f32.vlgmr.msrb.gmra.mxu1 %v1035_v45  ;;  %7107 = vst [vmem:[#allocation43_spill] sm:$0xff] %v4974_v14 }
 0x157   :  { %1093 = vmatmul.f32.vlgmr.msrb.gmra.mxu2 %v1035_v45  ;;  %1113 = vmatmul.f32.vlgmr.msrb.gmra.mxu3 %v1035_v45  ;;  %7108 = vst [vmem:[#allocation45_spill] sm:$0xff] %v4977_v5  ;;  %v4986_v45 = vld [vmem:[#allocation8 + $0x1c8] sm:$0xff] }
 0x158   :  { %1375 = vmatpush.msrb.mxu0 %v4971_v27  ;;  %1395 = vmatpush.msrb.mxu1 %v4974_v14  ;;  %7109 = vst [vmem:[#allocation46_spill] sm:$0xff] %v4980_v49  ;;  %v4989_v27 = vld [vmem:[#allocation8 + $0x1d0] sm:$0xff]  ;;  %v4992_v14 = vld [vmem:[#allocation8 + $0x1d8] sm:$0xff] }
 0x159   :  { %1415 = vmatpush.msrb.mxu2 %v4977_v5  ;;  %1435 = vmatpush.msrb.mxu3 %v4980_v49  ;;  %7110 = vst [vmem:[#allocation48_spill] sm:$0xff] %v4983_v3  ;;  %v4995_v5 = vld [vmem:[#allocation8 + $0x1a0] sm:$0xff]  ;;  %v4998_v49 = vld [vmem:[#allocation8 + $0x1a8] sm:$0xff] }
 0x15a   :  { %1376 = vmatpush.msrb.mxu0 %v4983_v3  ;;  %7111 = vst [vmem:[#allocation47_spill] sm:$0xff] %v4986_v45  ;;  %1396 = vmatpush.msrb.mxu1 %v4986_v45  ;;  %v5001_v3 = vld [vmem:[#allocation8 + $0x1b0] sm:$0xff]  ;;  %v5004_v45 = vld [vmem:[#allocation8 + $0x1b8] sm:$0xff] }
 0x15b   :  { %7112 = vst [vmem:[#allocation49_spill] sm:$0xff] %v4989_v27  ;;  %1416 = vmatpush.msrb.mxu2 %v4989_v27  ;;  %1436 = vmatpush.msrb.mxu3 %v4992_v14  ;;  %v5007_v27 = vld [vmem:[#allocation8 + $0x180] sm:$0xff] }
 0x15c   :  { %7113 = vst [vmem:[#allocation50_spill] sm:$0xff] %v4992_v14  ;;  %1377 = vmatpush.msrb.mxu0 %v4995_v5  ;;  %1397 = vmatpush.msrb.mxu1 %v4998_v49  ;;  %v5010_v14 = vld [vmem:[#allocation8 + $0x188] sm:$0xff] }
 0x15d   :  { %7114 = vst [vmem:[#allocation52_spill] sm:$0xff] %v4995_v5  ;;  %1417 = vmatpush.msrb.mxu2 %v5001_v3  ;;  %1437 = vmatpush.msrb.mxu3 %v5004_v45  ;;  %v5013_v5 = vld [vmem:[#allocation8 + $0x190] sm:$0xff] }
 0x15e   :  { %7115 = vst [vmem:[#allocation51_spill] sm:$0xff] %v4998_v49  ;;  %1378 = vmatpush.msrb.mxu0 %v5007_v27  ;;  %1398 = vmatpush.msrb.mxu1 %v5010_v14  ;;  %v5016_v49 = vld [vmem:[#allocation8 + $0x198] sm:$0xff] }
 0x15f   :  { %7116 = vst [vmem:[#allocation53_spill] sm:$0xff] %v5001_v3  ;;  %1418 = vmatpush.msrb.mxu2 %v5013_v5  ;;  %1438 = vmatpush.msrb.mxu3 %v5016_v49  ;;  %v5019_v3 = vld [vmem:[#allocation8 + $0x160] sm:$0xff] }
 0x160   :  { %7117 = vst [vmem:[#allocation54_spill] sm:$0xff] %v5004_v45  ;;  %1379 = vmatpush.msrb.mxu0 %v5019_v3  ;;  %v5022_v45 = vld [vmem:[#allocation8 + $0x168] sm:$0xff] }
 0x161   :  { %7118 = vst [vmem:[#allocation56_spill] sm:$0xff] %v5007_v27  ;;  %1399 = vmatpush.msrb.mxu1 %v5022_v45  ;;  %v5025_v27 = vld [vmem:[#allocation8 + $0x170] sm:$0xff] }
 0x162   :  { %7119 = vst [vmem:[#allocation55_spill] sm:$0xff] %v5010_v14  ;;  %1419 = vmatpush.msrb.mxu2 %v5025_v27  ;;  %v5028_v14 = vld [vmem:[#allocation8 + $0x178] sm:$0xff] }
 0x163   :  { %7120 = vst [vmem:[#allocation57_spill] sm:$0xff] %v5013_v5  ;;  %1439 = vmatpush.msrb.mxu3 %v5028_v14  ;;  %v5031_v5 = vld [vmem:[#allocation8 + $0x140] sm:$0xff] }
 0x164   :  { %7121 = vst [vmem:[#allocation58_spill] sm:$0xff] %v5016_v49  ;;  %1380 = vmatpush.msrb.mxu0 %v5031_v5  ;;  %v5034_v49 = vld [vmem:[#allocation8 + $0x148] sm:$0xff] }
 0x165   :  { %7122 = vst [vmem:[#allocation60_spill] sm:$0xff] %v5019_v3  ;;  %1400 = vmatpush.msrb.mxu1 %v5034_v49  ;;  %v5037_v3 = vld [vmem:[#allocation8 + $0x150] sm:$0xff] }
 0x166   :  { %7123 = vst [vmem:[#allocation59_spill] sm:$0xff] %v5022_v45  ;;  %1420 = vmatpush.msrb.mxu2 %v5037_v3  ;;  %v5040_v45 = vld [vmem:[#allocation8 + $0x158] sm:$0xff] }
 0x167   :  { %7124 = vst [vmem:[#allocation61_spill] sm:$0xff] %v5025_v27  ;;  %1440 = vmatpush.msrb.mxu3 %v5040_v45  ;;  %v5043_v27 = vld [vmem:[#allocation8 + $0x120] sm:$0xff] }
 0x168   :  { %7125 = vst [vmem:[#allocation62_spill] sm:$0xff] %v5028_v14  ;;  %1381 = vmatpush.msrb.mxu0 %v5043_v27  ;;  %v5046_v14 = vld [vmem:[#allocation8 + $0x128] sm:$0xff] }
 0x169   :  { %7126 = vst [vmem:[#allocation64_spill] sm:$0xff] %v5031_v5  ;;  %1401 = vmatpush.msrb.mxu1 %v5046_v14  ;;  %v5049_v5 = vld [vmem:[#allocation8 + $0x130] sm:$0xff] }
 0x16a   :  { %7127 = vst [vmem:[#allocation63_spill] sm:$0xff] %v5034_v49  ;;  %1421 = vmatpush.msrb.mxu2 %v5049_v5  ;;  %v5052_v49 = vld [vmem:[#allocation8 + $0x138] sm:$0xff] }
 0x16b   :  { %7128 = vst [vmem:[#allocation65_spill] sm:$0xff] %v5037_v3  ;;  %1441 = vmatpush.msrb.mxu3 %v5052_v49  ;;  %v5055_v3 = vld [vmem:[#allocation8 + $0x100] sm:$0xff] }
 0x16c   :  { %7129 = vst [vmem:[#allocation66_spill] sm:$0xff] %v5040_v45  ;;  %1382 = vmatpush.msrb.mxu0 %v5055_v3  ;;  %v5058_v45 = vld [vmem:[#allocation8 + $0x108] sm:$0xff] }
 0x16d   :  { %7130 = vst [vmem:[#allocation68_spill] sm:$0xff] %v5043_v27  ;;  %1402 = vmatpush.msrb.mxu1 %v5058_v45  ;;  %v5061_v27 = vld [vmem:[#allocation8 + $0x110] sm:$0xff] }
 0x16e   :  { %7131 = vst [vmem:[#allocation67_spill] sm:$0xff] %v5046_v14  ;;  %1422 = vmatpush.msrb.mxu2 %v5061_v27  ;;  %v5064_v14 = vld [vmem:[#allocation8 + $0x118] sm:$0xff] }
 0x16f   :  { %7132 = vst [vmem:[#allocation69_spill] sm:$0xff] %v5049_v5  ;;  %1442 = vmatpush.msrb.mxu3 %v5064_v14  ;;  %v5067_v5 = vld [vmem:[#allocation8 + $0xe0] sm:$0xff] }
 0x170   :  { %7133 = vst [vmem:[#allocation70_spill] sm:$0xff] %v5052_v49  ;;  %1383 = vmatpush.msrb.mxu0 %v5067_v5  ;;  %v5070_v49 = vld [vmem:[#allocation8 + $0xe8] sm:$0xff] }
 0x171   :  { %7134 = vst [vmem:[#allocation72_spill] sm:$0xff] %v5055_v3  ;;  %1403 = vmatpush.msrb.mxu1 %v5070_v49  ;;  %v5073_v3 = vld [vmem:[#allocation8 + $0xf0] sm:$0xff] }
 0x172   :  { %7135 = vst [vmem:[#allocation71_spill] sm:$0xff] %v5058_v45  ;;  %1423 = vmatpush.msrb.mxu2 %v5073_v3  ;;  %v5076_v45 = vld [vmem:[#allocation8 + $0xf8] sm:$0xff] }
 0x173   :  { %7136 = vst [vmem:[#allocation73_spill] sm:$0xff] %v5061_v27  ;;  %1443 = vmatpush.msrb.mxu3 %v5076_v45  ;;  %v5079_v27 = vld [vmem:[#allocation8 + $0xc0] sm:$0xff] }
 0x174   :  { %7137 = vst [vmem:[#allocation74_spill] sm:$0xff] %v5064_v14  ;;  %1384 = vmatpush.msrb.mxu0 %v5079_v27  ;;  %v5082_v14 = vld [vmem:[#allocation8 + $0xc8] sm:$0xff] }
 0x175   :  { %7138 = vst [vmem:[#allocation75_spill] sm:$0xff] %v5067_v5  ;;  %1404 = vmatpush.msrb.mxu1 %v5082_v14  ;;  %v5085_v5 = vld [vmem:[#allocation8 + $0xd0] sm:$0xff] }
 0x176   :  { %7139 = vst [vmem:[#allocation76_spill] sm:$0xff] %v5070_v49  ;;  %1424 = vmatpush.msrb.mxu2 %v5085_v5  ;;  %v5088_v49 = vld [vmem:[#allocation8 + $0xd8] sm:$0xff] }
 0x177   :  { %7140 = vst [vmem:[#allocation77_spill] sm:$0xff] %v5073_v3  ;;  %1444 = vmatpush.msrb.mxu3 %v5088_v49  ;;  %v5091_v3 = vld [vmem:[#allocation8 + $0xa0] sm:$0xff] }
 0x178   :  { %7141 = vst [vmem:[#allocation78_spill] sm:$0xff] %v5076_v45  ;;  %1385 = vmatpush.msrb.mxu0 %v5091_v3  ;;  %v5094_v45 = vld [vmem:[#allocation8 + $0xa8] sm:$0xff]  ;;  %1425 = vmatpush.msrb.mxu2 %v7061_v11 }
 0x179   :  { %7142 = vst [vmem:[#allocation79_spill] sm:$0xff] %v5085_v5  ;;  %1405 = vmatpush.msrb.mxu1 %v5094_v45  ;;  %1445 = vmatpush.msrb.mxu3 %v7062_v12  ;;  %v864_v12 = vld [vmem:[#allocation2 + $0x30] sm:$0xc] }
 0x17a   :  { %7143 = vst [vmem:[#allocation80_spill] sm:$0xff] %v5088_v49  ;;  %1386 = vmatpush.msrb.mxu0 %v7063_v15  ;;  %1426 = vmatpush.msrb.mxu2 %v7065_v20  ;;  %v867_v20 = vld [vmem:[#allocation2 + $0x18] sm:$0xc] }
 0x17b   :  { %7144 = vst [vmem:[#allocation81_spill] sm:$0xff] %v5091_v3  ;;  %1406 = vmatpush.msrb.mxu1 %v7064_v16  ;;  %1446 = vmatpush.msrb.mxu3 %v7066_v21 }
 0x17c   :  { %7145 = vst [vmem:[#allocation82_spill] sm:$0xff] %v5094_v45  ;;  %1387 = vmatpush.msrb.mxu0 %v7067_v22  ;;  %1427 = vmatpush.msrb.mxu2 %v4517_v0 }
 0x17d   :  { %1407 = vmatpush.msrb.mxu1 %v7068_v23  ;;  %1447 = vmatpush.msrb.mxu3 %v7069_v24 }
 0x17e   :  { %1388 = vmatpush.msrb.mxu0 %v4520_v17  ;;  %1428 = vmatpush.msrb.mxu2 %v4529_v56 }
 0x17f   :  { %1408 = vmatpush.msrb.mxu1 %v7070_v25  ;;  %1448 = vmatpush.msrb.mxu3 %v7071_v28 }
 0x180   :  { %1389 = vmatpush.msrb.mxu0 %v4532_v55  ;;  %1429 = vmatpush.msrb.mxu2 %v4541_v58  ;;  %v865_v55 = vld [vmem:[#allocation2] sm:$0xc] }
 0x181   :  { %1409 = vmatpush.msrb.mxu1 %v4534_v62  ;;  %1449 = vmatpush.msrb.mxu3 %v4539_v59 }
 0x182   :  { %1390 = vmatpush.msrb.mxu0 %v4544_v54  ;;  %1430 = vmatpush.msrb.mxu2 %v4557_v63 }
 0x183   :  { %1410 = vmatpush.msrb.mxu1 %v4546_v57  ;;  %1450 = vmatpush.msrb.mxu3 %v4551_v60 }
 0x19f   :  { %v889_v0 = vpop.f32.mrf.mxu0  ;;  %v909_v56 = vpop.f32.mrf.mxu1 }
 0x1a0   :  { %v956_v17 = vrot.slane %v889_v0, 6  ;;  %v957_v11 = vrot.slane %v909_v56, 6  ;;  %v866_v0 = vld [vmem:[#allocation2 + $0x58] sm:$0xc] }
 0x1a2   :  { %v964_v15 = vadd.f32 %v956_v17, %v864_v12  ;;  %v965_v62 = vadd.f32 %v957_v11, %v865_v55 }
 0x1a4   :  { %v3294_v16 = vmul.f32 -1.442695, %v964_v15  ;;  %v3295_v58 = vmul.f32 -1.442695, %v965_v62 }
 0x1a6   :  { %3379 = vpow2.f32 %v3294_v16  ;;  %v949_v59 = vpop.f32.mrf.mxu3  ;;  %v929_v24 = vpop.f32.mrf.mxu2 }
 0x1a7   :  { %3381 = vpow2.f32 %v3295_v58  ;;  %v959_v54 = vrot.slane %v949_v59, 6  ;;  %v958_v25 = vrot.slane %v929_v24, 6 }
 0x1a9   :  { %v967_v57 = vadd.f32 %v959_v54, %v867_v20  ;;  %v966_v11 = vadd.f32 %v958_v25, %v866_v0  ;;  %v1027_v0 = vrot.slane %v4710_v8, 6 }
 0x1ab   :  { %v3296_v21 = vmul.f32 -1.442695, %v967_v57 }
 0x1ac   :  { %v3380_v63 = vpop.eup %3379 }
 0x1ad   :  { %v3382_v22 = vpop.eup %3381  ;;  %v971_v60 = vadd.f32 1.0, %v3380_v63  ;;  %3383 = vpow2.f32 %v3296_v21 }
 0x1ae   :  { %v990_v23 = vadd.f32 1.0, %v3382_v22 }
 0x1af   :  { %3385 = vrcp.f32 %v971_v60  ;;  %v983_v58 = vand.u32 2147483648, %v971_v60  ;;  %v981_v20 = vand.u32 2147483647, %v971_v60  ;;  %vm977_vm10 = vweird.f32 %v971_v60 }
 0x1b0   :  { %3387 = vrcp.f32 %v990_v23  ;;  %v1002_v59 = vand.u32 2147483648, %v990_v23  ;;  %v1000_v21 = vand.u32 2147483647, %v990_v23  ;;  %vm996_vm11 = vweird.f32 %v990_v23 }
 0x1b1   :  { %v984_v24 = vor.u32 1.1754944e-38, %v983_v58  ;;  %vm982_vm14 = vcmp.eq.f32.partialorder %v981_v20, 8.507059e+37  ;;  %v868_v20 = vld [vmem:[#allocation2 + $0x60] sm:$0x30] }
 0x1b2   :  { %vm1001_vm15 = vcmp.eq.f32.partialorder %v1000_v21, 8.507059e+37 }
 0x1b3   :  { %v3384_v28 = vpop.eup %3383 }
 0x1b4   :  { %v1010_v56 = vadd.f32 1.0, %v3384_v28 }
 0x1b5   :  { %v3386_v17 = vpop.eup %3385 }
 0x1b6   :  { %v3388_v12 = vpop.eup %3387  ;;  %v973_v55 = vmul.f32 %v3386_v17, %v971_v60  ;;  %3389 = vrcp.f32 %v1010_v56  ;;  %vm978_vm8 = vweird.f32 %v3386_v17  ;;  %vm1016_vm1 = vweird.f32 %v1010_v56 }
 0x1b7   :  { %v992_v15 = vmul.f32 %v3388_v12, %v990_v23  ;;  %3391 = vtanh.f32 %v966_v11  ;;  %vm997_vm9 = vweird.f32 %v3388_v12  ;;  %vm979_vm12 = vmor %vm977_vm10, %vm978_vm8 }
 0x1b8   :  { %v974_v62 = vsub.f32 1.0, %v973_v55  ;;  %vm998_vm13 = vmor %vm996_vm11, %vm997_vm9  ;;  %v1003_v55 = vor.u32 1.1754944e-38, %v1002_v59  ;;  %v1022_v59 = vand.u32 2147483648, %v1010_v56 }
 0x1b9   :  { %v993_v16 = vsub.f32 1.0, %v992_v15 }
 0x1ba   :  { %v975_v54 = vmul.f32 %v3386_v17, %v974_v62 }
 0x1bb   :  { %v994_v57 = vmul.f32 %v3388_v12, %v993_v16 }
 0x1bc   :  { %v3390_v63 = vpop.eup %3389  ;;  %v976_v22 = vadd.f32 %v3386_v17, %v975_v54 }
 0x1bd   :  { %v995_v25 = vadd.f32 %v3388_v12, %v994_v57  ;;  %v1012_v28 = vmul.f32 %v3390_v63, %v1010_v56  ;;  %v3392_v15 = vpop.eup %3391  ;;  %vm1017_vm0 = vweird.f32 %v3390_v63 }
 0x1be   :  { %v980_v11 = vsel %vm979_vm12, %v3386_v17, %v976_v22  ;;  %v869_v22 = vld [vmem:[#allocation2 + $0x70] sm:$0x30]  ;;  %vm1018_vm2 = vmor %vm1016_vm1, %vm1017_vm0 }
 0x1bf   :  { %v985_v62 = vsel %vm982_vm14, %v984_v24, %v980_v11  ;;  %v999_v45 = vsel %vm998_vm13, %v3388_v12, %v995_v25  ;;  %v1013_v16 = vsub.f32 1.0, %v1012_v28  ;;  %v1020_v12 = vand.u32 2147483647, %v1010_v56 }
 0x1c0   :  { %v1004_v3 = vsel %vm1001_vm15, %v1003_v55, %v999_v45  ;;  %v1030_v49 = vmul.f32 %v3392_v15, %v985_v62  ;;  %v1023_v25 = vor.u32 1.1754944e-38, %v1022_v59  ;;  %v871_v62 = vld [vmem:[#allocation2 + $0x28] sm:$0x30]  ;;  %v7153_v59 = vld [vmem:[#allocation20_spill] sm:$0xff] }
 0x1c1   :  { %v1029_v54 = vmul.f32 %v1027_v0, %v1004_v3  ;;  %v1014_v60 = vmul.f32 %v3390_v63, %v1013_v16  ;;  %vm1021_vm3 = vcmp.eq.f32.partialorder %v1020_v12, 8.507059e+37  ;;  %v7154_v12 = vld [vmem:[#allocation21_spill] sm:$0xff] }
 0x1c3   :  { %v5120_v23 = vadd.f32 %v1030_v49, %v1029_v54  ;;  %v1015_v5 = vadd.f32 %v3390_v63, %v1014_v60 }
 0x1c5   :  { %3393 = vtanh.f32 %v5120_v23  ;;  %v1019_v3 = vsel %vm1018_vm2, %v3390_v63, %v1015_v5 }
 0x1c6   :  { %v1024_v55 = vsel %vm1021_vm3, %v1023_v25, %v1019_v3  ;;  %v7157_v25 = vld [vmem:[#allocation24_spill] sm:$0xff] }
 0x1cb   :  { %v3394_v28 = vpop.eup %3393 }
 0x1cc   :  { %v1033_v15 = vmul.f32 %v3394_v28, %v1024_v55  ;;  %v1192_v28 = vrot.slane %v4894_v46, 2 }
 0x1ce   :  { %v1208_v54 = vrot.slane %v1033_v15, 2  ;;  %v7159_v15 = vld [vmem:[#allocation26_spill] sm:$0xff] }
 0x1d0   :  { %1226 = vmatmul.f32.vlgmr.msra.gmra.mxu0 %v1208_v54  ;;  %1246 = vmatmul.f32.vlgmr.msra.gmra.mxu1 %v1208_v54 }
 0x1d1   :  { %1266 = vmatmul.f32.vlgmr.msra.gmra.mxu2 %v1208_v54  ;;  %1286 = vmatmul.f32.vlgmr.msra.gmra.mxu3 %v1208_v54 }
 0x1d2   :  { %1548 = vmatpush.msra.mxu0 %v4718_v47  ;;  %1568 = vmatpush.msra.mxu1 %v4721_v48 }
 0x1d3   :  { %v1054_v58 = vpop.f32.mrf.mxu0  ;;  %v1074_v57 = vpop.f32.mrf.mxu1  ;;  %1588 = vmatpush.msra.mxu2 %v4726_v51  ;;  %1608 = vmatpush.msra.mxu3 %v4729_v52  ;;  %v870_v51 = vld [vmem:[#allocation2 + $0x78] sm:$0x30] }
 0x1d4   :  { %v1121_v8 = vrot.slane %v1054_v58, 4  ;;  %v1122_v17 = vrot.slane %v1074_v57, 4  ;;  %1549 = vmatpush.msra.mxu0 %v4733_v53  ;;  %1569 = vmatpush.msra.mxu1 %v4736_v61 }
 0x1d5   :  { %1589 = vmatpush.msra.mxu2 %v4740_v1  ;;  %1609 = vmatpush.msra.mxu3 %v4743_v2 }
 0x1d6   :  { %v1129_v21 = vadd.f32 %v1121_v8, %v868_v20  ;;  %v1130_v45 = vadd.f32 %v1122_v17, %v869_v22  ;;  %1550 = vmatpush.msra.mxu0 %v4746_v32  ;;  %1570 = vmatpush.msra.mxu1 %v4749_v4  ;;  %v7152_v17 = vld [vmem:[#allocation19_spill] sm:$0xff] }
 0x1d7   :  { %1590 = vmatpush.msra.mxu2 %v4752_v6  ;;  %1610 = vmatpush.msra.mxu3 %v4755_v7  ;;  %v7146_v6 = vld [vmem:[#allocation13_spill] sm:$0xff]  ;;  %v7147_v7 = vld [vmem:[#allocation14_spill] sm:$0xff] }
 0x1d8   :  { %v3297_v24 = vmul.f32 -1.442695, %v1129_v21  ;;  %v3298_v49 = vmul.f32 -1.442695, %v1130_v45  ;;  %1551 = vmatpush.msra.mxu0 %v4758_v10  ;;  %1571 = vmatpush.msra.mxu1 %v4761_v13  ;;  %v7155_v21 = vld [vmem:[#allocation22_spill] sm:$0xff] }
 0x1d9   :  { %1591 = vmatpush.msra.mxu2 %v4766_v18  ;;  %1611 = vmatpush.msra.mxu3 %v4769_v19  ;;  %v7148_v18 = vld [vmem:[#allocation15_spill] sm:$0xff]  ;;  %v7149_v19 = vld [vmem:[#allocation16_spill] sm:$0xff] }
 0x1da   :  { %3395 = vpow2.f32 %v3297_v24  ;;  %v1114_v0 = vpop.f32.mrf.mxu3  ;;  %v1094_v57 = vpop.f32.mrf.mxu2  ;;  %1552 = vmatpush.msra.mxu0 %v4774_v29  ;;  %1572 = vmatpush.msra.mxu1 %v4777_v30 }
 0x1db   :  { %3397 = vpow2.f32 %v3298_v49  ;;  %v1124_v11 = vrot.slane %v1114_v0, 4  ;;  %v1123_v47 = vrot.slane %v1094_v57, 4  ;;  %1592 = vmatpush.msra.mxu2 %v4785_v35  ;;  %1612 = vmatpush.msra.mxu3 %v4788_v36  ;;  %v7150_v36 = vld [vmem:[#allocation17_spill] sm:$0xff]  ;;  %v7156_v49 = vld [vmem:[#allocation23_spill] sm:$0xff] }
 0x1dc   :  { %1553 = vmatpush.msra.mxu0 %v4793_v38  ;;  %1573 = vmatpush.msra.mxu1 %v4796_v39  ;;  %v7151_v38 = vld [vmem:[#allocation18_spill] sm:$0xff]  ;;  %v7161_v57 = vld [vmem:[#allocation27_spill] sm:$0xff] }
 0x1dd   :  { %v1132_v16 = vadd.f32 %v1124_v11, %v871_v62  ;;  %v1131_v61 = vadd.f32 %v1123_v47, %v870_v51  ;;  %1593 = vmatpush.msra.mxu2 %v7146_v6  ;;  %1613 = vmatpush.msra.mxu3 %v7147_v7  ;;  %v7158_v11 = vld [vmem:[#allocation25_spill] sm:$0xff]  ;;  %v7163_v47 = vld [vmem:[#allocation30_spill] sm:$0xff]  ;;  %v7172_v7 = vld [vmem:[#allocation40_spill] sm:$0xff] }
 0x1de   :  { %1554 = vmatpush.msra.mxu0 %v7148_v18  ;;  %1574 = vmatpush.msra.mxu1 %v7149_v19  ;;  %v7167_v51 = vld [vmem:[#allocation34_spill] sm:$0xff] }
 0x1df   :  { %v3299_v60 = vmul.f32 -1.442695, %v1132_v16  ;;  %1594 = vmatpush.msra.mxu2 %v7150_v36  ;;  %1614 = vmatpush.msra.mxu3 %v7151_v38  ;;  %v7179_v36 = vld [vmem:[#allocation46_spill] sm:$0xff]  ;;  %v7184_v38 = vld [vmem:[#allocation52_spill] sm:$0xff] }
 0x1e0   :  { %v3396_v56 = vpop.eup %3395  ;;  %1555 = vmatpush.msra.mxu0 %v7152_v17  ;;  %1575 = vmatpush.msra.mxu1 %v7153_v59  ;;  %v7187_v17 = vld [vmem:[#allocation54_spill] sm:$0xff]  ;;  %v7188_v59 = vld [vmem:[#allocation56_spill] sm:$0xff] }
 0x1e1   :  { %v3398_v5 = vpop.eup %3397  ;;  %v5123_v63 = vadd.f32 1.0, %v3396_v56  ;;  %3399 = vpow2.f32 %v3299_v60  ;;  %1595 = vmatpush.msra.mxu2 %v7154_v12  ;;  %1615 = vmatpush.msra.mxu3 %v7155_v21  ;;  %v7191_v12 = vld [vmem:[#allocation58_spill] sm:$0xff]  ;;  %v7192_v21 = vld [vmem:[#allocation60_spill] sm:$0xff] }
 0x1e2   :  { %v5127_v58 = vadd.f32 1.0, %v3398_v5  ;;  %1556 = vmatpush.msra.mxu0 %v7156_v49  ;;  %1576 = vmatpush.msra.mxu1 %v7157_v25  ;;  %v7196_v49 = vld [vmem:[#allocation64_spill] sm:$0xff]  ;;  %v7197_v25 = vld [vmem:[#allocation63_spill] sm:$0xff] }
 0x1e3   :  { %3401 = vrcp.f32 %v5123_v63  ;;  %v1148_v13 = vand.u32 2147483648, %v5123_v63  ;;  %v1146_v35 = vand.u32 2147483647, %v5123_v63  ;;  %vm1142_vm6 = vweird.f32 %v5123_v63  ;;  %1596 = vmatpush.msra.mxu2 %v7158_v11  ;;  %1616 = vmatpush.msra.mxu3 %v7159_v15  ;;  %v7201_v11 = vld [vmem:[#allocation67_spill] sm:$0xff]  ;;  %v7202_v15 = vld [vmem:[#allocation69_spill] sm:$0xff] }
 0x1e4   :  { %3403 = vrcp.f32 %v5127_v58  ;;  %v1167_v29 = vand.u32 2147483648, %v5127_v58  ;;  %v1165_v8 = vand.u32 2147483647, %v5127_v58  ;;  %vm1161_vm7 = vweird.f32 %v5127_v58  ;;  %1557 = vmatpush.msra.mxu0 %v4869_v40  ;;  %1577 = vmatpush.msra.mxu1 %v4872_v26  ;;  %v7162_v26 = vld [vmem:[#allocation29_spill] sm:$0xff] }
 0x1e5   :  { %v1149_v45 = vor.u32 1.1754944e-38, %v1148_v13  ;;  %vm1147_vm10 = vcmp.eq.f32.partialorder %v1146_v35, 8.507059e+37  ;;  %1597 = vmatpush.msra.mxu2 %v4875_v44  ;;  %1617 = vmatpush.msra.mxu3 %v4878_v34  ;;  %v7164_v34 = vld [vmem:[#allocation32_spill] sm:$0xff]  ;;  %v7175_v13 = vld [vmem:[#allocation42_spill] sm:$0xff]  ;;  %v7178_v35 = vld [vmem:[#allocation45_spill] sm:$0xff] }
 0x1e6   :  { %v1168_v0 = vor.u32 1.1754944e-38, %v1167_v29  ;;  %vm1166_vm11 = vcmp.eq.f32.partialorder %v1165_v8, 8.507059e+37  ;;  %1558 = vmatpush.msra.mxu0 %v4882_v37  ;;  %1578 = vmatpush.msra.mxu1 %v4885_v43  ;;  %v7166_v43 = vld [vmem:[#allocation33_spill] sm:$0xff]  ;;  %v7176_v29 = vld [vmem:[#allocation44_spill] sm:$0xff] }
 0x1e7   :  { %v3400_v48 = vpop.eup %3399  ;;  %1618 = vmatpush.msra.mxu3 %v7161_v57  ;;  %v7186_v8 = vld [vmem:[#allocation53_spill] sm:$0xff]  ;;  %v7212_v57 = vld [vmem:[#allocation79_spill] sm:$0xff] }
 0x1e8   :  { %v5143_v52 = vadd.f32 1.0, %v3400_v48  ;;  %1559 = vmatpush.msra.mxu0 %v7162_v26  ;;  %1579 = vmatpush.msra.mxu1 %v7163_v47  ;;  %v7165_v48 = vld [vmem:[#allocation31_spill] sm:$0xff]  ;;  %v7213_v26 = vld [vmem:[#allocation80_spill] sm:$0xff]  ;;  %v7214_v47 = vld [vmem:[#allocation81_spill] sm:$0xff] }
 0x1e9   :  { %v3402_v53 = vpop.eup %3401  ;;  %1619 = vmatpush.msra.mxu3 %v7165_v48  ;;  %v5266_v48 = vld [vmem:[#allocation8 + $0xb8] sm:$0xff] }
 0x1ea   :  { %v3404_v1 = vpop.eup %3403  ;;  %v1138_v2 = vmul.f32 %v3402_v53, %v5123_v63  ;;  %3405 = vrcp.f32 %v5143_v52  ;;  %vm1143_vm4 = vweird.f32 %v3402_v53  ;;  %v1187_v37 = vand.u32 2147483648, %v5143_v52  ;;  %1560 = vmatpush.msra.mxu0 %v7166_v43  ;;  %1580 = vmatpush.msra.mxu1 %v7167_v51  ;;  %v5278_v43 = vld [vmem:[#allocation8 + $0x98] sm:$0xff]  ;;  %v5281_v51 = vld [vmem:[#allocation8 + $0x60] sm:$0xff] }
 0x1eb   :  { %v1157_v32 = vmul.f32 %v3404_v1, %v5127_v58  ;;  %3407 = vtanh.f32 %v1131_v61  ;;  %vm1162_vm5 = vweird.f32 %v3404_v1  ;;  %vm1144_vm8 = vmor %vm1142_vm6, %vm1143_vm4  ;;  %v7160_v58 = vld [vmem:[#allocation28_spill] sm:$0xff]  ;;  %vm1181_vm13 = vweird.f32 %v5143_v52 }
 0x1ec   :  { %v1139_v4 = vsub.f32 1.0, %v1138_v2  ;;  %vm1163_vm9 = vmor %vm1161_vm7, %vm1162_vm5  ;;  %1598 = vmatpush.msra.mxu2 %v7160_v58  ;;  %v7168_v61 = vld [vmem:[#allocation36_spill] sm:$0xff]  ;;  %v7170_v2 = vld [vmem:[#allocation37_spill] sm:$0xff]  ;;  %1581 = vmatpush.msra.mxu1 %v4935_v41  ;;  %v1188_v6 = vor.u32 1.1754944e-38, %v1187_v37 }
 0x1ed   :  { %v1158_v10 = vsub.f32 1.0, %v1157_v32  ;;  %1561 = vmatpush.msra.mxu0 %v7170_v2  ;;  %v7211_v58 = vld [vmem:[#allocation78_spill] sm:$0xff]  ;;  %v5269_v37 = vld [vmem:[#allocation8 + $0x80] sm:$0xff] }
 0x1ee   :  { %v1140_v30 = vmul.f32 %v3402_v53, %v1139_v4  ;;  %1599 = vmatpush.msra.mxu2 %v7164_v34  ;;  %v7171_v4 = vld [vmem:[#allocation38_spill] sm:$0xff]  ;;  %v5293_v2 = vld [vmem:[#allocation8 + $0x40] sm:$0xff] }
 0x1ef   :  { %v1159_v39 = vmul.f32 %v3404_v1, %v1158_v10  ;;  %1562 = vmatpush.msra.mxu0 %v7172_v7  ;;  %v7173_v10 = vld [vmem:[#allocation39_spill] sm:$0xff]  ;;  %v5305_v7 = vld [vmem:[#allocation8 + $0x20] sm:$0xff] }
 0x1f0   :  { %v5168_v20 = vpop.eup %3405  ;;  %v1141_v22 = vadd.f32 %v3402_v53, %v1140_v30  ;;  %1600 = vmatpush.msra.mxu2 %v7168_v61  ;;  %1582 = vmatpush.msra.mxu1 %v7173_v10  ;;  %v7177_v30 = vld [vmem:[#allocation43_spill] sm:$0xff]  ;;  %v5308_v10 = vld [vmem:[#allocation8 + $0x28] sm:$0xff] }
 0x1f1   :  { %v1160_v3 = vadd.f32 %v3404_v1, %v1159_v39  ;;  %v1177_v24 = vmul.f32 %v5168_v20, %v5143_v52  ;;  %v3408_v62 = vpop.eup %3407  ;;  %vm1182_vm12 = vweird.f32 %v5168_v20  ;;  %1563 = vmatpush.msra.mxu0 %v4959_v9  ;;  %v7180_v9 = vld [vmem:[#allocation48_spill] sm:$0xff]  ;;  %v7185_v39 = vld [vmem:[#allocation51_spill] sm:$0xff] }
 0x1f2   :  { %v1145_v55 = vsel %vm1144_vm8, %v3402_v53, %v1141_v22  ;;  %v1185_v53 = vand.u32 2147483647, %v5143_v52  ;;  %vm1183_vm14 = vmor %vm1181_vm13, %vm1182_vm12  ;;  %1601 = vmatpush.msra.mxu2 %v4941_v50  ;;  %v7174_v52 = vld [vmem:[#allocation41_spill] sm:$0xff]  ;;  %1583 = vmatpush.msra.mxu1 %v4962_v42  ;;  %v7181_v42 = vld [vmem:[#allocation47_spill] sm:$0xff] }
 0x1f3   :  { %v1150_v16 = vsel %vm1147_vm10, %v1149_v45, %v1145_v55  ;;  %v1164_v54 = vsel %vm1163_vm9, %v3404_v1, %v1160_v3  ;;  %v1178_v60 = vsub.f32 1.0, %v1177_v24  ;;  %v7169_v1 = vld [vmem:[#allocation35_spill] sm:$0xff]  ;;  %v7190_v22 = vld [vmem:[#allocation57_spill] sm:$0xff]  ;;  %v7195_v24 = vld [vmem:[#allocation62_spill] sm:$0xff] }
 0x1f4   :  { %v1169_v56 = vsel %vm1166_vm11, %v1168_v0, %v1164_v54  ;;  %v1195_v46 = vmul.f32 %v3408_v62, %v1150_v16  ;;  %1620 = vmatpush.msra.mxu3 %v7169_v1  ;;  %vm1186_vm15 = vcmp.eq.f32.partialorder %v1185_v53, 8.507059e+37  ;;  %1602 = vmatpush.msra.mxu2 %v7174_v52  ;;  %v7193_v45 = vld [vmem:[#allocation59_spill] sm:$0xff]  ;;  %v7194_v3 = vld [vmem:[#allocation61_spill] sm:$0xff]  ;;  %v7199_v0 = vld [vmem:[#allocation66_spill] sm:$0xff] }
 0x1f5   :  { %v1194_v5 = vmul.f32 %v1192_v28, %v1169_v56  ;;  %v1179_v63 = vmul.f32 %v5168_v20, %v1178_v60  ;;  %v7198_v28 = vld [vmem:[#allocation65_spill] sm:$0xff]  ;;  %v7200_v55 = vld [vmem:[#allocation68_spill] sm:$0xff]  ;;  %v7203_v62 = vld [vmem:[#allocation70_spill] sm:$0xff] }
 0x1f6   :  { %1621 = vmatpush.msra.mxu3 %v7171_v4  ;;  %1603 = vmatpush.msra.mxu2 %v4965_v33  ;;  %v7182_v33 = vld [vmem:[#allocation49_spill] sm:$0xff]  ;;  %v7204_v16 = vld [vmem:[#allocation72_spill] sm:$0xff]  ;;  %v7205_v54 = vld [vmem:[#allocation71_spill] sm:$0xff] }
 0x1f7   :  { %v5192_v40 = vadd.f32 %v1195_v46, %v1194_v5  ;;  %v1180_v44 = vadd.f32 %v5168_v20, %v1179_v63  ;;  %v7206_v60 = vld [vmem:[#allocation73_spill] sm:$0xff]  ;;  %v7207_v56 = vld [vmem:[#allocation74_spill] sm:$0xff]  ;;  %v7208_v46 = vld [vmem:[#allocation75_spill] sm:$0xff] }
 0x1f8   :  { %1622 = vmatpush.msra.mxu3 %v7175_v13  ;;  %v7209_v5 = vld [vmem:[#allocation76_spill] sm:$0xff]  ;;  %v7210_v63 = vld [vmem:[#allocation77_spill] sm:$0xff]  ;;  %v5263_v34 = vld [vmem:[#allocation8 + $0xb0] sm:$0xff] }
 0x1f9   :  { %3409 = vtanh.f32 %v5192_v40  ;;  %v1184_v32 = vsel %vm1183_vm14, %v5168_v20, %v1180_v44  ;;  %v7189_v20 = vld [vmem:[#allocation55_spill] sm:$0xff]  ;;  %v7215_v44 = vld [vmem:[#allocation82_spill] sm:$0xff] }
 0x1fa   :  { %v1189_v19 = vsel %vm1186_vm15, %v1188_v6, %v1184_v32  ;;  %1623 = vmatpush.msra.mxu3 %v4968_v31  ;;  %v7183_v31 = vld [vmem:[#allocation50_spill] sm:$0xff]  ;;  %v5290_v1 = vld [vmem:[#allocation8 + $0x78] sm:$0xff] }
 0x1fb   :  { %v5284_v53 = vld [vmem:[#allocation8 + $0x68] sm:$0xff]  ;;  %v5287_v61 = vld [vmem:[#allocation8 + $0x70] sm:$0xff]  ;;  %v5302_v6 = vld [vmem:[#allocation8 + $0x58] sm:$0xff] }
 0x1fc   :  { %v5296_v32 = vld [vmem:[#allocation8 + $0x48] sm:$0xff]  ;;  %v5299_v4 = vld [vmem:[#allocation8 + $0x50] sm:$0xff]  ;;  %v5314_v13 = vld [vmem:[#allocation8 + $0x38] sm:$0xff] }
 0x1fd   :  { %v5311_v52 = vld [vmem:[#allocation8 + $0x30] sm:$0xff] }
 0x1ff   :  { %v3410_v18 = vpop.eup %3409 }
 0x200   :  { %v1198_v41 = vmul.f32 %v3410_v18, %v1189_v19  ;;  %v5317_v18 = vld [vmem:[#allocation8] sm:$0xff]  ;;  %v5320_v19 = vld [vmem:[#allocation8 + $0x8] sm:$0xff] }
 0x202   :  { %v1373_v50 = vrot.slane %v1198_v41, 4  ;;  %v5323_v41 = vld [vmem:[#allocation8 + $0x10] sm:$0xff] }
 0x204   :  { %1391 = vmatmul.f32.vlgmr.msrb.gmra.mxu0 %v1373_v50  ;;  %1411 = vmatmul.f32.vlgmr.msrb.gmra.mxu1 %v1373_v50 }
 0x205   :  { %1431 = vmatmul.f32.vlgmr.msrb.gmra.mxu2 %v1373_v50  ;;  %1451 = vmatmul.f32.vlgmr.msrb.gmra.mxu3 %v1373_v50  ;;  %v5326_v50 = vld [vmem:[#allocation8 + $0x18] sm:$0xff] }
 0x206   :  { %1713 = vmatpush.msrb.mxu0 %v7176_v29  ;;  %1733 = vmatpush.msrb.mxu1 %v7177_v30 }
 0x207   :  { %1753 = vmatpush.msrb.mxu2 %v7178_v35  ;;  %1773 = vmatpush.msrb.mxu3 %v7179_v36 }
 0x208   :  { %1714 = vmatpush.msrb.mxu0 %v7180_v9  ;;  %1734 = vmatpush.msrb.mxu1 %v7181_v42  ;;  %v1199_v9 = vld [vmem:[#allocation2 + $0x30] sm:$0x30]  ;;  %v1200_v42 = vld [vmem:[#allocation2] sm:$0x30] }
 0x209   :  { %1754 = vmatpush.msrb.mxu2 %v7182_v33  ;;  %1774 = vmatpush.msrb.mxu3 %v7183_v31 }
 0x20a   :  { %1715 = vmatpush.msrb.mxu0 %v7184_v38  ;;  %1735 = vmatpush.msrb.mxu1 %v7185_v39 }
 0x20b   :  { %1755 = vmatpush.msrb.mxu2 %v7186_v8  ;;  %1775 = vmatpush.msrb.mxu3 %v7187_v17 }
 0x20c   :  { %1716 = vmatpush.msrb.mxu0 %v7188_v59  ;;  %1736 = vmatpush.msrb.mxu1 %v7189_v20  ;;  %v1202_v59 = vld [vmem:[#allocation2 + $0x18] sm:$0x30] }
 0x20d   :  { %1756 = vmatpush.msrb.mxu2 %v7190_v22  ;;  %1776 = vmatpush.msrb.mxu3 %v7191_v12 }
 0x20e   :  { %1717 = vmatpush.msrb.mxu0 %v7192_v21  ;;  %1737 = vmatpush.msrb.mxu1 %v7193_v45 }
 0x20f   :  { %1757 = vmatpush.msrb.mxu2 %v7194_v3  ;;  %1777 = vmatpush.msrb.mxu3 %v7195_v24 }
 0x210   :  { %1718 = vmatpush.msrb.mxu0 %v7196_v49  ;;  %1738 = vmatpush.msrb.mxu1 %v7197_v25 }
 0x211   :  { %1758 = vmatpush.msrb.mxu2 %v7198_v28  ;;  %1778 = vmatpush.msrb.mxu3 %v7199_v0  ;;  %v1201_v28 = vld [vmem:[#allocation2 + $0x58] sm:$0x30] }
 0x212   :  { %1719 = vmatpush.msrb.mxu0 %v7200_v55  ;;  %1739 = vmatpush.msrb.mxu1 %v7201_v11 }
 0x213   :  { %1759 = vmatpush.msrb.mxu2 %v7202_v15  ;;  %1779 = vmatpush.msrb.mxu3 %v7203_v62 }
 0x214   :  { %1720 = vmatpush.msrb.mxu0 %v7204_v16  ;;  %1740 = vmatpush.msrb.mxu1 %v7205_v54 }
 0x215   :  { %1760 = vmatpush.msrb.mxu2 %v7206_v60  ;;  %1780 = vmatpush.msrb.mxu3 %v7207_v56 }
 0x216   :  { %1721 = vmatpush.msrb.mxu0 %v7208_v46  ;;  %1741 = vmatpush.msrb.mxu1 %v7209_v5 }
 0x217   :  { %1761 = vmatpush.msrb.mxu2 %v7210_v63  ;;  %1781 = vmatpush.msrb.mxu3 %v7211_v58 }
 0x218   :  { %1722 = vmatpush.msrb.mxu0 %v5079_v27  ;;  %1742 = vmatpush.msrb.mxu1 %v5082_v14  ;;  %v5272_v27 = vld [vmem:[#allocation8 + $0x88] sm:$0xff]  ;;  %v5275_v14 = vld [vmem:[#allocation8 + $0x90] sm:$0xff] }
 0x219   :  { %1762 = vmatpush.msrb.mxu2 %v7212_v57  ;;  %1782 = vmatpush.msrb.mxu3 %v7213_v26 }
 0x21a   :  { %1723 = vmatpush.msrb.mxu0 %v7214_v47  ;;  %1743 = vmatpush.msrb.mxu1 %v7215_v44 }
 0x21b   :  { %1763 = vmatpush.msrb.mxu2 %v5263_v34  ;;  %1783 = vmatpush.msrb.mxu3 %v5266_v48 }
 0x21c   :  { %1724 = vmatpush.msrb.mxu0 %v5269_v37  ;;  %1744 = vmatpush.msrb.mxu1 %v5272_v27 }
 0x21d   :  { %1764 = vmatpush.msrb.mxu2 %v5275_v14  ;;  %1784 = vmatpush.msrb.mxu3 %v5278_v43 }
 0x21e   :  { %1725 = vmatpush.msrb.mxu0 %v5281_v51  ;;  %1745 = vmatpush.msrb.mxu1 %v5284_v53 }
 0x21f   :  { %1765 = vmatpush.msrb.mxu2 %v5287_v61  ;;  %1785 = vmatpush.msrb.mxu3 %v5290_v1 }
 0x220   :  { %1726 = vmatpush.msrb.mxu0 %v5293_v2  ;;  %1746 = vmatpush.msrb.mxu1 %v5296_v32 }
 0x221   :  { %1766 = vmatpush.msrb.mxu2 %v5299_v4  ;;  %1786 = vmatpush.msrb.mxu3 %v5302_v6 }
 0x222   :  { %1727 = vmatpush.msrb.mxu0 %v5305_v7  ;;  %1747 = vmatpush.msrb.mxu1 %v5308_v10 }
 0x223   :  { %1767 = vmatpush.msrb.mxu2 %v5311_v52  ;;  %1787 = vmatpush.msrb.mxu3 %v5314_v13 }
 0x224   :  { %1728 = vmatpush.msrb.mxu0 %v5317_v18  ;;  %1748 = vmatpush.msrb.mxu1 %v5320_v19 }
 0x225   :  { %1768 = vmatpush.msrb.mxu2 %v5323_v41  ;;  %1788 = vmatpush.msrb.mxu3 %v5326_v50 }
 0x24d   :  { %v1227_v29 = vpop.f32.mrf.mxu0  ;;  %v1247_v30 = vpop.f32.mrf.mxu1 }
 0x24e   :  { %v1294_v35 = vrot.slane %v1227_v29, 4  ;;  %v1295_v36 = vrot.slane %v1247_v30, 4 }
 0x250   :  { %v1302_v33 = vadd.f32 %v1294_v35, %v1199_v9  ;;  %v1303_v31 = vadd.f32 %v1295_v36, %v1200_v42  ;;  %v1365_v35 = vrot.slane %v5120_v23, 6 }
 0x252   :  { %v3300_v38 = vmul.f32 -1.442695, %v1302_v33  ;;  %v3301_v39 = vmul.f32 -1.442695, %v1303_v31 }
 0x254   :  { %3411 = vpow2.f32 %v3300_v38  ;;  %v1287_v8 = vpop.f32.mrf.mxu3  ;;  %v1267_v24 = vpop.f32.mrf.mxu2 }
 0x255   :  { %3413 = vpow2.f32 %v3301_v39  ;;  %v1297_v17 = vrot.slane %v1287_v8, 4  ;;  %v1296_v49 = vrot.slane %v1267_v24, 4  ;;  %v1203_v24 = vld [vmem:[#allocation2 + $0x60] sm:$0xc] }
 0x257   :  { %v1305_v20 = vadd.f32 %v1297_v17, %v1202_v59  ;;  %v1304_v11 = vadd.f32 %v1296_v49, %v1201_v28  ;;  %v1204_v49 = vld [vmem:[#allocation2 + $0x70] sm:$0xc] }
 0x259   :  { %v3302_v22 = vmul.f32 -1.442695, %v1305_v20 }
 0x25a   :  { %v3412_v12 = vpop.eup %3411 }
 0x25b   :  { %v3414_v21 = vpop.eup %3413  ;;  %v1309_v45 = vadd.f32 1.0, %v3412_v12  ;;  %3415 = vpow2.f32 %v3302_v22 }
 0x25c   :  { %v1328_v3 = vadd.f32 1.0, %v3414_v21 }
 0x25d   :  { %3417 = vrcp.f32 %v1309_v45  ;;  %v1321_v56 = vand.u32 2147483648, %v1309_v45  ;;  %v1319_v63 = vand.u32 2147483647, %v1309_v45  ;;  %vm1315_vm2 = vweird.f32 %v1309_v45 }
 0x25e   :  { %3419 = vrcp.f32 %v1328_v3  ;;  %v1340_v46 = vand.u32 2147483648, %v1328_v3  ;;  %v1338_v57 = vand.u32 2147483647, %v1328_v3  ;;  %vm1334_vm3 = vweird.f32 %v1328_v3 }
 0x25f   :  { %v1322_v44 = vor.u32 1.1754944e-38, %v1321_v56  ;;  %vm1320_vm6 = vcmp.eq.f32.partialorder %v1319_v63, 8.507059e+37  ;;  %v1206_v63 = vld [vmem:[#allocation2 + $0x28] sm:$0xc] }
 0x260   :  { %v1341_v36 = vor.u32 1.1754944e-38, %v1340_v46  ;;  %vm1339_vm7 = vcmp.eq.f32.partialorder %v1338_v57, 8.507059e+37 }
 0x261   :  { %v3416_v25 = vpop.eup %3415 }
 0x262   :  { %v1348_v0 = vadd.f32 1.0, %v3416_v25 }
 0x263   :  { %v3418_v55 = vpop.eup %3417 }
 0x264   :  { %v3420_v15 = vpop.eup %3419  ;;  %v1311_v62 = vmul.f32 %v3418_v55, %v1309_v45  ;;  %3421 = vrcp.f32 %v1348_v0  ;;  %vm1316_vm0 = vweird.f32 %v3418_v55  ;;  %vm1354_vm9 = vweird.f32 %v1348_v0 }
 0x265   :  { %v1330_v16 = vmul.f32 %v3420_v15, %v1328_v3  ;;  %3423 = vtanh.f32 %v1304_v11  ;;  %vm1335_vm1 = vweird.f32 %v3420_v15  ;;  %vm1317_vm4 = vmor %vm1315_vm2, %vm1316_vm0  ;;  %v1360_v3 = vand.u32 2147483648, %v1348_v0 }
 0x266   :  { %v1312_v54 = vsub.f32 1.0, %v1311_v62  ;;  %vm1336_vm5 = vmor %vm1334_vm3, %vm1335_vm1  ;;  %v1358_v25 = vand.u32 2147483647, %v1348_v0 }
 0x267   :  { %v1331_v60 = vsub.f32 1.0, %v1330_v16  ;;  %v1361_v16 = vor.u32 1.1754944e-38, %v1360_v3  ;;  %v1205_v3 = vld [vmem:[#allocation2 + $0x78] sm:$0xc] }
 0x268   :  { %v1313_v5 = vmul.f32 %v3418_v55, %v1312_v54  ;;  %vm1359_vm11 = vcmp.eq.f32.partialorder %v1358_v25, 8.507059e+37  ;;  %v5386_v25 = vld [vmem:[#allocation6 + $0x198] sm:$0xff] }
 0x269   :  { %v1332_v58 = vmul.f32 %v3420_v15, %v1331_v60 }
 0x26a   :  { %v3422_v26 = vpop.eup %3421  ;;  %v1314_v47 = vadd.f32 %v3418_v55, %v1313_v5 }
 0x26b   :  { %v1333_v29 = vadd.f32 %v3420_v15, %v1332_v58  ;;  %v1350_v30 = vmul.f32 %v3422_v26, %v1348_v0  ;;  %v3424_v42 = vpop.eup %3423  ;;  %vm1355_vm8 = vweird.f32 %v3422_v26 }
 0x26c   :  { %v1318_v9 = vsel %vm1317_vm4, %v3418_v55, %v1314_v47  ;;  %vm1356_vm10 = vmor %vm1354_vm9, %vm1355_vm8 }
 0x26d   :  { %v1323_v33 = vsel %vm1320_vm6, %v1322_v44, %v1318_v9  ;;  %v1337_v31 = vsel %vm1336_vm5, %v3420_v15, %v1333_v29  ;;  %v1351_v38 = vsub.f32 1.0, %v1350_v30  ;;  %v5335_v29 = vld [vmem:[#allocation6 + $0x1e0] sm:$0xff]  ;;  %v5338_v30 = vld [vmem:[#allocation6 + $0x1e8] sm:$0xff]  ;;  %v5343_v9 = vld [vmem:[#allocation6 + $0x1f0] sm:$0xff] }
 0x26e   :  { %v1342_v39 = vsel %vm1339_vm7, %v1341_v36, %v1337_v31  ;;  %v1368_v8 = vmul.f32 %v3424_v42, %v1323_v33  ;;  %v5346_v42 = vld [vmem:[#allocation6 + $0x1f8] sm:$0xff]  ;;  %v5350_v33 = vld [vmem:[#allocation6 + $0x1c0] sm:$0xff]  ;;  %v5353_v31 = vld [vmem:[#allocation6 + $0x1c8] sm:$0xff] }
 0x26f   :  { %v1367_v17 = vmul.f32 %v1365_v35, %v1342_v39  ;;  %v1352_v59 = vmul.f32 %v3422_v26, %v1351_v38  ;;  %v5357_v38 = vld [vmem:[#allocation6 + $0x1d0] sm:$0xff]  ;;  %v5360_v39 = vld [vmem:[#allocation6 + $0x1d8] sm:$0xff] }
 0x271   :  { %v5330_v20 = vadd.f32 %v1368_v8, %v1367_v17  ;;  %v1353_v21 = vadd.f32 %v3422_v26, %v1352_v59  ;;  %v5363_v17 = vld [vmem:[#allocation6 + $0x1a0] sm:$0xff]  ;;  %v5366_v59 = vld [vmem:[#allocation6 + $0x1a8] sm:$0xff] }
 0x273   :  { %3425 = vtanh.f32 %v5330_v20  ;;  %v1357_v11 = vsel %vm1356_vm10, %v3422_v26, %v1353_v21 }
 0x274   :  { %v1362_v56 = vsel %vm1359_vm11, %v1361_v16, %v1357_v11  ;;  %v5391_v11 = vld [vmem:[#allocation6 + $0x160] sm:$0xff] }
 0x279   :  { %v3426_v54 = vpop.eup %3425 }
 0x27a   :  { %v1371_v5 = vmul.f32 %v3426_v54, %v1362_v56  ;;  %v5402_v54 = vld [vmem:[#allocation6 + $0x170] sm:$0xff] }
 0x27c   :  { %v1546_v57 = vrot.slane %v1371_v5, 4  ;;  %v5413_v5 = vld [vmem:[#allocation6 + $0x148] sm:$0xff] }
 0x27d   :  { %7218 = vst [vmem:[#allocation15_spill] sm:$0xff] %v5413_v5 }
 0x27e   :  { %1564 = vmatmul.f32.vlgmr.msra.gmra.mxu0 %v1546_v57  ;;  %1584 = vmatmul.f32.vlgmr.msra.gmra.mxu1 %v1546_v57 }
 0x27f   :  { %1604 = vmatmul.f32.vlgmr.msra.gmra.mxu2 %v1546_v57  ;;  %1624 = vmatmul.f32.vlgmr.msra.gmra.mxu3 %v1546_v57  ;;  %v5419_v57 = vld [vmem:[#allocation6 + $0x158] sm:$0xff] }
 0x280   :  { %1874 = vmatpush.msra.mxu0 %v5335_v29  ;;  %1894 = vmatpush.msra.mxu1 %v5338_v30  ;;  %7220 = vst [vmem:[#allocation17_spill] sm:$0xff] %v5419_v57 }
 0x281   :  { %v1392_v22 = vpop.f32.mrf.mxu0  ;;  %v1412_v12 = vpop.f32.mrf.mxu1  ;;  %1914 = vmatpush.msra.mxu2 %v5343_v9  ;;  %1934 = vmatpush.msra.mxu3 %v5346_v42 }
 0x282   :  { %v1459_v23 = vrot.slane %v1392_v22, 6  ;;  %v1460_v45 = vrot.slane %v1412_v12, 6  ;;  %1875 = vmatpush.msra.mxu0 %v5350_v33  ;;  %1895 = vmatpush.msra.mxu1 %v5353_v31  ;;  %v5369_v22 = vld [vmem:[#allocation6 + $0x1b0] sm:$0xff]  ;;  %v5372_v12 = vld [vmem:[#allocation6 + $0x1b8] sm:$0xff] }
 0x283   :  { %1915 = vmatpush.msra.mxu2 %v5357_v38  ;;  %1935 = vmatpush.msra.mxu3 %v5360_v39 }
 0x284   :  { %v1467_v28 = vadd.f32 %v1459_v23, %v1203_v24  ;;  %v1468_v55 = vadd.f32 %v1460_v45, %v1204_v49  ;;  %1876 = vmatpush.msra.mxu0 %v5363_v17  ;;  %1896 = vmatpush.msra.mxu1 %v5366_v59  ;;  %v5375_v23 = vld [vmem:[#allocation6 + $0x180] sm:$0xff]  ;;  %v5378_v45 = vld [vmem:[#allocation6 + $0x188] sm:$0xff]  ;;  %v5383_v49 = vld [vmem:[#allocation6 + $0x190] sm:$0xff] }
 0x285   :  { %1916 = vmatpush.msra.mxu2 %v5369_v22  ;;  %1936 = vmatpush.msra.mxu3 %v5372_v12 }
 0x286   :  { %v3303_v15 = vmul.f32 -1.442695, %v1467_v28  ;;  %v3304_v62 = vmul.f32 -1.442695, %v1468_v55  ;;  %1877 = vmatpush.msra.mxu0 %v5375_v23  ;;  %1897 = vmatpush.msra.mxu1 %v5378_v45 }
 0x287   :  { %1917 = vmatpush.msra.mxu2 %v5383_v49  ;;  %1937 = vmatpush.msra.mxu3 %v5386_v25 }
 0x288   :  { %3427 = vpow2.f32 %v3303_v15  ;;  %v1452_v60 = vpop.f32.mrf.mxu3  ;;  %v1432_v36 = vpop.f32.mrf.mxu2  ;;  %1878 = vmatpush.msra.mxu0 %v5391_v11  ;;  %v5394_v15 = vld [vmem:[#allocation6 + $0x168] sm:$0xff] }
 0x289   :  { %3429 = vpow2.f32 %v3304_v62  ;;  %v1462_v46 = vrot.slane %v1452_v60, 6  ;;  %v1461_v8 = vrot.slane %v1432_v36, 6  ;;  %1898 = vmatpush.msra.mxu1 %v5394_v15  ;;  %1918 = vmatpush.msra.mxu2 %v5402_v54  ;;  %v5405_v60 = vld [vmem:[#allocation6 + $0x178] sm:$0xff]  ;;  %v5426_v36 = vld [vmem:[#allocation6 + $0x128] sm:$0xff] }
 0x28a   :  { %7216 = vst [vmem:[#allocation13_spill] sm:$0xff] %v5405_v60  ;;  %1938 = vmatpush.msra.mxu3 %v5405_v60  ;;  %v5493_v60 = vld [vmem:[#allocation6 + $0xc0] sm:$0xff] }
 0x28b   :  { %v1470_v58 = vadd.f32 %v1462_v46, %v1206_v63  ;;  %v1469_v55 = vadd.f32 %v1461_v8, %v1205_v3  ;;  %v5410_v46 = vld [vmem:[#allocation6 + $0x140] sm:$0xff]  ;;  %1899 = vmatpush.msra.mxu1 %v5413_v5  ;;  %7222 = vst [vmem:[#allocation19_spill] sm:$0xff] %v5426_v36  ;;  %v5484_v5 = vld [vmem:[#allocation6 + $0xf0] sm:$0xff] }
 0x28c   :  { %7217 = vst [vmem:[#allocation14_spill] sm:$0xff] %v5410_v46  ;;  %1879 = vmatpush.msra.mxu0 %v5410_v46  ;;  %1939 = vmatpush.msra.mxu3 %v5419_v57 }
 0x28d   :  { %v3305_v47 = vmul.f32 -1.442695, %v1470_v58  ;;  %v5416_v58 = vld [vmem:[#allocation6 + $0x150] sm:$0xff]  ;;  %1900 = vmatpush.msra.mxu1 %v5426_v36 }
 0x28e   :  { %v3428_v0 = vpop.eup %3427  ;;  %7219 = vst [vmem:[#allocation16_spill] sm:$0xff] %v5416_v58  ;;  %1919 = vmatpush.msra.mxu2 %v5416_v58  ;;  %v5468_v58 = vld [vmem:[#allocation6 + $0xe0] sm:$0xff] }
 0x28f   :  { %v3430_v26 = vpop.eup %3429  ;;  %v5333_v44 = vadd.f32 1.0, %v3428_v0  ;;  %3431 = vpow2.f32 %v3305_v47  ;;  %7231 = vst [vmem:[#allocation26_spill] sm:$0xff] %v5468_v58 }
 0x290   :  { %v5341_v35 = vadd.f32 1.0, %v3430_v26  ;;  %v5423_v26 = vld [vmem:[#allocation6 + $0x120] sm:$0xff] }
 0x291   :  { %3433 = vrcp.f32 %v5333_v44  ;;  %v1486_v0 = vand.u32 2147483648, %v5333_v44  ;;  %7221 = vst [vmem:[#allocation18_spill] sm:$0xff] %v5423_v26  ;;  %1880 = vmatpush.msra.mxu0 %v5423_v26  ;;  %v1484_v3 = vand.u32 2147483647, %v5333_v44  ;;  %v5442_v26 = vld [vmem:[#allocation6 + $0x100] sm:$0xff]  ;;  %vm1480_vm14 = vweird.f32 %v5333_v44 }
 0x292   :  { %3435 = vrcp.f32 %v5341_v35  ;;  %v1505_v8 = vand.u32 2147483648, %v5341_v35  ;;  %v1503_v36 = vand.u32 2147483647, %v5341_v35  ;;  %7225 = vst [vmem:[#allocation22_spill] sm:$0xff] %v5442_v26  ;;  %vm1499_vm15 = vweird.f32 %v5341_v35 }
 0x293   :  { %1881 = vmatpush.msra.mxu0 %v5442_v26  ;;  %v1487_v26 = vor.u32 1.1754944e-38, %v1486_v0  ;;  %vm1485_vm2 = vcmp.eq.f32.partialorder %v1484_v3, 8.507059e+37 }
 0x294   :  { %v1506_v0 = vor.u32 1.1754944e-38, %v1505_v8  ;;  %vm1504_vm3 = vcmp.eq.f32.partialorder %v1503_v36, 8.507059e+37 }
 0x295   :  { %v3432_v21 = vpop.eup %3431  ;;  %1882 = vmatpush.msra.mxu0 %v5468_v58  ;;  %v5487_v58 = vld [vmem:[#allocation6 + $0xf8] sm:$0xff] }
 0x296   :  { %v5381_v24 = vadd.f32 1.0, %v3432_v21 }
 0x297   :  { %v5389_v28 = vpop.eup %3433  ;;  %1883 = vmatpush.msra.mxu0 %v5493_v60 }
 0x298   :  { %v5397_v62 = vpop.eup %3435  ;;  %v1476_v16 = vmul.f32 %v5389_v28, %v5333_v44  ;;  %3437 = vrcp.f32 %v5381_v24  ;;  %vm1481_vm12 = vweird.f32 %v5389_v28  ;;  %vm1519_vm5 = vweird.f32 %v5381_v24 }
 0x299   :  { %v1495_v56 = vmul.f32 %v5397_v62, %v5341_v35  ;;  %3439 = vtanh.f32 %v1469_v55  ;;  %v5436_v55 = vld [vmem:[#allocation6 + $0x138] sm:$0xff]  ;;  %vm1500_vm13 = vweird.f32 %v5397_v62  ;;  %vm5461_vm0 = vmor %vm1480_vm14, %vm1481_vm12  ;;  %v1530_v35 = vrot.slane %v5192_v40, 2 }
 0x29a   :  { %v1477_v63 = vsub.f32 1.0, %v1476_v16  ;;  %v5433_v16 = vld [vmem:[#allocation6 + $0x130] sm:$0xff]  ;;  %7224 = vst [vmem:[#allocation21_spill] sm:$0xff] %v5436_v55  ;;  %1940 = vmatpush.msra.mxu3 %v5436_v55  ;;  %vm5477_vm1 = vmor %vm1499_vm15, %vm1500_vm13 }
 0x29b   :  { %v1496_v47 = vsub.f32 1.0, %v1495_v56  ;;  %7223 = vst [vmem:[#allocation20_spill] sm:$0xff] %v5433_v16  ;;  %1920 = vmatpush.msra.mxu2 %v5433_v16  ;;  %v5452_v55 = vld [vmem:[#allocation6 + $0x110] sm:$0xff] }
 0x29c   :  { %v1478_v21 = vmul.f32 %v5389_v28, %v1477_v63  ;;  %v5445_v63 = vld [vmem:[#allocation6 + $0x108] sm:$0xff]  ;;  %7227 = vst [vmem:[#allocation24_spill] sm:$0xff] %v5452_v55 }
 0x29d   :  { %v1497_v56 = vmul.f32 %v5397_v62, %v1496_v47  ;;  %7226 = vst [vmem:[#allocation23_spill] sm:$0xff] %v5445_v63  ;;  %1901 = vmatpush.msra.mxu1 %v5445_v63  ;;  %1921 = vmatpush.msra.mxu2 %v5452_v55  ;;  %v5455_v47 = vld [vmem:[#allocation6 + $0x118] sm:$0xff]  ;;  %v5471_v55 = vld [vmem:[#allocation6 + $0xe8] sm:$0xff]  ;;  %v5499_v63 = vld [vmem:[#allocation6 + $0xd0] sm:$0xff] }
 0x29e   :  { %v5448_v57 = vpop.eup %3437  ;;  %v1479_v16 = vadd.f32 %v5389_v28, %v1478_v21  ;;  %7228 = vst [vmem:[#allocation25_spill] sm:$0xff] %v5455_v47  ;;  %1941 = vmatpush.msra.mxu3 %v5455_v47  ;;  %v5506_v47 = vld [vmem:[#allocation6 + $0xa0] sm:$0xff] }
 0x29f   :  { %v1498_v21 = vadd.f32 %v5397_v62, %v1497_v56  ;;  %v1515_v44 = vmul.f32 %v5448_v57, %v5381_v24  ;;  %7232 = vst [vmem:[#allocation28_spill] sm:$0xff] %v5471_v55  ;;  %1902 = vmatpush.msra.mxu1 %v5471_v55  ;;  %1922 = vmatpush.msra.mxu2 %v5484_v5  ;;  %v3440_v40 = vpop.eup %3439  ;;  %vm1520_vm4 = vweird.f32 %v5448_v57 }
 0x2a0   :  { %v1483_v56 = vsel %vm5461_vm0, %v5389_v28, %v1479_v16  ;;  %1942 = vmatpush.msra.mxu3 %v5487_v58  ;;  %v5496_v28 = vld [vmem:[#allocation6 + $0xc8] sm:$0xff]  ;;  %1884 = vmatpush.msra.mxu0 %v5506_v47  ;;  %vm5552_vm6 = vmor %vm1519_vm5, %vm1520_vm4 }
 0x2a1   :  { %v1488_v55 = vsel %vm1485_vm2, %v1487_v26, %v1483_v56  ;;  %v1502_v46 = vsel %vm5477_vm1, %v5397_v62, %v1498_v21  ;;  %v1516_v8 = vsub.f32 1.0, %v1515_v44  ;;  %1903 = vmatpush.msra.mxu1 %v5496_v28  ;;  %1923 = vmatpush.msra.mxu2 %v5499_v63  ;;  %v5502_v26 = vld [vmem:[#allocation6 + $0xd8] sm:$0xff]  ;;  %v5509_v21 = vld [vmem:[#allocation6 + $0xa8] sm:$0xff] }
 0x2a2   :  { %v1507_v3 = vsel %vm1504_vm3, %v1506_v0, %v1502_v46  ;;  %v1533_v16 = vmul.f32 %v3440_v40, %v1488_v55  ;;  %1943 = vmatpush.msra.mxu3 %v5502_v26  ;;  %v5512_v46 = vld [vmem:[#allocation6 + $0xb0] sm:$0xff]  ;;  %v5515_v55 = vld [vmem:[#allocation6 + $0xb8] sm:$0xff]  ;;  %v5523_v0 = vld [vmem:[#allocation6 + $0x88] sm:$0xff] }
 0x2a3   :  { %v1532_v62 = vmul.f32 %v1530_v35, %v1507_v3  ;;  %v1517_v36 = vmul.f32 %v5448_v57, %v1516_v8  ;;  %1904 = vmatpush.msra.mxu1 %v5509_v21  ;;  %1924 = vmatpush.msra.mxu2 %v5512_v46  ;;  %7235 = vst [vmem:[#allocation27_spill] sm:$0xff] %v5515_v55  ;;  %v5520_v35 = vld [vmem:[#allocation6 + $0x80] sm:$0xff]  ;;  %v5528_v40 = vld [vmem:[#allocation6 + $0x90] sm:$0xff]  ;;  %v5531_v8 = vld [vmem:[#allocation6 + $0x98] sm:$0xff]  ;;  %v1525_v3 = vand.u32 2147483648, %v5381_v24 }
 0x2a4   :  { %1944 = vmatpush.msra.mxu3 %v5515_v55  ;;  %7236 = vst [vmem:[#allocation29_spill] sm:$0xff] %v5520_v35  ;;  %1885 = vmatpush.msra.mxu0 %v5520_v35  ;;  %v5571_v55 = vld [vmem:[#allocation6 + $0x20] sm:$0xff] }
 0x2a5   :  { %v5518_v44 = vadd.f32 %v1533_v16, %v1532_v62  ;;  %7237 = vst [vmem:[#allocation30_spill] sm:$0xff] %v5523_v0  ;;  %1905 = vmatpush.msra.mxu1 %v5523_v0  ;;  %v1518_v56 = vadd.f32 %v5448_v57, %v1517_v36  ;;  %1925 = vmatpush.msra.mxu2 %v5528_v40  ;;  %v5536_v16 = vld [vmem:[#allocation6 + $0x60] sm:$0xff]  ;;  %v5539_v62 = vld [vmem:[#allocation6 + $0x68] sm:$0xff]  ;;  %v1523_v36 = vand.u32 2147483647, %v5381_v24  ;;  %v1526_v35 = vor.u32 1.1754944e-38, %v1525_v3 }
 0x2a6   :  { %7238 = vst [vmem:[#allocation32_spill] sm:$0xff] %v5528_v40  ;;  %1945 = vmatpush.msra.mxu3 %v5531_v8  ;;  %1886 = vmatpush.msra.mxu0 %v5536_v16  ;;  %v5544_v40 = vld [vmem:[#allocation6 + $0x70] sm:$0xff]  ;;  %v5556_v0 = vld [vmem:[#allocation6 + $0x40] sm:$0xff] }
 0x2a7   :  { %7239 = vst [vmem:[#allocation31_spill] sm:$0xff] %v5531_v8  ;;  %3441 = vtanh.f32 %v5518_v44  ;;  %1906 = vmatpush.msra.mxu1 %v5539_v62  ;;  %1926 = vmatpush.msra.mxu2 %v5544_v40  ;;  %v5547_v8 = vld [vmem:[#allocation6 + $0x78] sm:$0xff]  ;;  %v1522_v24 = vsel %vm5552_vm6, %v5448_v57, %v1518_v56  ;;  %vm1524_vm7 = vcmp.eq.f32.partialorder %v1523_v36, 8.507059e+37  ;;  %v5583_v3 = vld [vmem:[#allocation6] sm:$0xff]  ;;  %v5589_v36 = vld [vmem:[#allocation6 + $0x10] sm:$0xff] }
 0x2a8   :  { %7240 = vst [vmem:[#allocation33_spill] sm:$0xff] %v5536_v16  ;;  %1946 = vmatpush.msra.mxu3 %v5547_v8  ;;  %1887 = vmatpush.msra.mxu0 %v5556_v0  ;;  %v5577_v16 = vld [vmem:[#allocation6 + $0x30] sm:$0xff]  ;;  %v5580_v57 = vld [vmem:[#allocation6 + $0x38] sm:$0xff] }
 0x2a9   :  { %7241 = vst [vmem:[#allocation34_spill] sm:$0xff] %v5539_v62  ;;  %v5559_v62 = vld [vmem:[#allocation6 + $0x48] sm:$0xff] }
 0x2aa   :  { %7242 = vst [vmem:[#allocation36_spill] sm:$0xff] %v5544_v40  ;;  %1907 = vmatpush.msra.mxu1 %v5559_v62  ;;  %v5565_v40 = vld [vmem:[#allocation6 + $0x50] sm:$0xff]  ;;  %1888 = vmatpush.msra.mxu0 %v5571_v55 }
 0x2ab   :  { %7243 = vst [vmem:[#allocation35_spill] sm:$0xff] %v5547_v8  ;;  %1927 = vmatpush.msra.mxu2 %v5565_v40  ;;  %v5568_v8 = vld [vmem:[#allocation6 + $0x58] sm:$0xff] }
 0x2ac   :  { %7246 = vst [vmem:[#allocation37_spill] sm:$0xff] %v5556_v0  ;;  %1947 = vmatpush.msra.mxu3 %v5568_v8  ;;  %v5574_v0 = vld [vmem:[#allocation6 + $0x28] sm:$0xff]  ;;  %1889 = vmatpush.msra.mxu0 %v5583_v3 }
 0x2ad   :  { %7247 = vst [vmem:[#allocation38_spill] sm:$0xff] %v5568_v8  ;;  %1908 = vmatpush.msra.mxu1 %v5574_v0  ;;  %1928 = vmatpush.msra.mxu2 %v5577_v16  ;;  %v3442_v56 = vpop.eup %3441  ;;  %v1527_v8 = vsel %vm1524_vm7, %v1526_v35, %v1522_v24  ;;  %v5595_v35 = vld [vmem:[#allocation8 + $0x1e0] sm:$0xff]  ;;  %v5598_v24 = vld [vmem:[#allocation8 + $0x1e8] sm:$0xff] }
 0x2ae   :  { %7248 = vst [vmem:[#allocation40_spill] sm:$0xff] %v5571_v55  ;;  %1948 = vmatpush.msra.mxu3 %v5580_v57  ;;  %v5586_v55 = vld [vmem:[#allocation6 + $0x8] sm:$0xff] }
 0x2af   :  { %7249 = vst [vmem:[#allocation39_spill] sm:$0xff] %v5574_v0  ;;  %1909 = vmatpush.msra.mxu1 %v5586_v55  ;;  %v1536_v0 = vmul.f32 %v3442_v56, %v1527_v8  ;;  %1929 = vmatpush.msra.mxu2 %v5589_v36  ;;  %v5601_v8 = vld [vmem:[#allocation8 + $0x1f0] sm:$0xff]  ;;  %v5604_v56 = vld [vmem:[#allocation8 + $0x1f8] sm:$0xff] }
 0x2b0   :  { %7250 = vst [vmem:[#allocation41_spill] sm:$0xff] %v5577_v16  ;;  %v5592_v16 = vld [vmem:[#allocation6 + $0x18] sm:$0xff] }
 0x2b1   :  { %7251 = vst [vmem:[#allocation42_spill] sm:$0xff] %v5580_v57  ;;  %1949 = vmatpush.msra.mxu3 %v5592_v16  ;;  %v1711_v57 = vrot.slane %v1536_v0, 2  ;;  %v5607_v0 = vld [vmem:[#allocation8 + $0x1c0] sm:$0xff] }
 0x2b2   :  { %7252 = vst [vmem:[#allocation44_spill] sm:$0xff] %v5595_v35 }
 0x2b3   :  { %1729 = vmatmul.f32.vlgmr.msrb.gmra.mxu0 %v1711_v57  ;;  %1749 = vmatmul.f32.vlgmr.msrb.gmra.mxu1 %v1711_v57  ;;  %7253 = vst [vmem:[#allocation43_spill] sm:$0xff] %v5598_v24 }
 0x2b4   :  { %1769 = vmatmul.f32.vlgmr.msrb.gmra.mxu2 %v1711_v57  ;;  %1789 = vmatmul.f32.vlgmr.msrb.gmra.mxu3 %v1711_v57  ;;  %7254 = vst [vmem:[#allocation45_spill] sm:$0xff] %v5601_v8  ;;  %v5610_v57 = vld [vmem:[#allocation8 + $0x1c8] sm:$0xff] }
 0x2b5   :  { %2024 = vmatpush.msrb.mxu0 %v5595_v35  ;;  %2044 = vmatpush.msrb.mxu1 %v5598_v24  ;;  %7255 = vst [vmem:[#allocation46_spill] sm:$0xff] %v5604_v56  ;;  %v5613_v35 = vld [vmem:[#allocation8 + $0x1d0] sm:$0xff]  ;;  %v5616_v24 = vld [vmem:[#allocation8 + $0x1d8] sm:$0xff] }
 0x2b6   :  { %2064 = vmatpush.msrb.mxu2 %v5601_v8  ;;  %2084 = vmatpush.msrb.mxu3 %v5604_v56  ;;  %7256 = vst [vmem:[#allocation48_spill] sm:$0xff] %v5607_v0  ;;  %v5619_v8 = vld [vmem:[#allocation8 + $0x1a0] sm:$0xff]  ;;  %v5622_v56 = vld [vmem:[#allocation8 + $0x1a8] sm:$0xff] }
 0x2b7   :  { %2025 = vmatpush.msrb.mxu0 %v5607_v0  ;;  %7257 = vst [vmem:[#allocation47_spill] sm:$0xff] %v5610_v57  ;;  %2045 = vmatpush.msrb.mxu1 %v5610_v57  ;;  %v5625_v0 = vld [vmem:[#allocation8 + $0x1b0] sm:$0xff]  ;;  %v5628_v57 = vld [vmem:[#allocation8 + $0x1b8] sm:$0xff] }
 0x2b8   :  { %7258 = vst [vmem:[#allocation49_spill] sm:$0xff] %v5613_v35  ;;  %2065 = vmatpush.msrb.mxu2 %v5613_v35  ;;  %2085 = vmatpush.msrb.mxu3 %v5616_v24  ;;  %v5631_v35 = vld [vmem:[#allocation8 + $0x180] sm:$0xff] }
 0x2b9   :  { %7259 = vst [vmem:[#allocation50_spill] sm:$0xff] %v5616_v24  ;;  %2026 = vmatpush.msrb.mxu0 %v5619_v8  ;;  %2046 = vmatpush.msrb.mxu1 %v5622_v56  ;;  %v5634_v24 = vld [vmem:[#allocation8 + $0x188] sm:$0xff] }
 0x2ba   :  { %7260 = vst [vmem:[#allocation52_spill] sm:$0xff] %v5619_v8  ;;  %2066 = vmatpush.msrb.mxu2 %v5625_v0  ;;  %2086 = vmatpush.msrb.mxu3 %v5628_v57  ;;  %v5637_v8 = vld [vmem:[#allocation8 + $0x190] sm:$0xff] }
 0x2bb   :  { %7261 = vst [vmem:[#allocation51_spill] sm:$0xff] %v5622_v56  ;;  %2027 = vmatpush.msrb.mxu0 %v5631_v35  ;;  %2047 = vmatpush.msrb.mxu1 %v5634_v24  ;;  %v5640_v56 = vld [vmem:[#allocation8 + $0x198] sm:$0xff] }
 0x2bc   :  { %7262 = vst [vmem:[#allocation53_spill] sm:$0xff] %v5625_v0  ;;  %2067 = vmatpush.msrb.mxu2 %v5637_v8  ;;  %2087 = vmatpush.msrb.mxu3 %v5640_v56  ;;  %v5643_v0 = vld [vmem:[#allocation8 + $0x160] sm:$0xff] }
 0x2bd   :  { %7263 = vst [vmem:[#allocation54_spill] sm:$0xff] %v5628_v57  ;;  %2028 = vmatpush.msrb.mxu0 %v5643_v0  ;;  %v5646_v57 = vld [vmem:[#allocation8 + $0x168] sm:$0xff] }
 0x2be   :  { %7264 = vst [vmem:[#allocation56_spill] sm:$0xff] %v5631_v35  ;;  %2048 = vmatpush.msrb.mxu1 %v5646_v57  ;;  %v5649_v35 = vld [vmem:[#allocation8 + $0x170] sm:$0xff] }
 0x2bf   :  { %7265 = vst [vmem:[#allocation55_spill] sm:$0xff] %v5634_v24  ;;  %2068 = vmatpush.msrb.mxu2 %v5649_v35  ;;  %v5652_v24 = vld [vmem:[#allocation8 + $0x178] sm:$0xff] }
 0x2c0   :  { %7266 = vst [vmem:[#allocation57_spill] sm:$0xff] %v5637_v8  ;;  %2088 = vmatpush.msrb.mxu3 %v5652_v24  ;;  %v5655_v8 = vld [vmem:[#allocation8 + $0x140] sm:$0xff] }
 0x2c1   :  { %7267 = vst [vmem:[#allocation58_spill] sm:$0xff] %v5640_v56  ;;  %2029 = vmatpush.msrb.mxu0 %v5655_v8  ;;  %v5658_v56 = vld [vmem:[#allocation8 + $0x148] sm:$0xff] }
 0x2c2   :  { %7268 = vst [vmem:[#allocation60_spill] sm:$0xff] %v5643_v0  ;;  %2049 = vmatpush.msrb.mxu1 %v5658_v56  ;;  %v5661_v0 = vld [vmem:[#allocation8 + $0x150] sm:$0xff] }
 0x2c3   :  { %7269 = vst [vmem:[#allocation59_spill] sm:$0xff] %v5646_v57  ;;  %2069 = vmatpush.msrb.mxu2 %v5661_v0  ;;  %v5664_v57 = vld [vmem:[#allocation8 + $0x158] sm:$0xff] }
 0x2c4   :  { %7270 = vst [vmem:[#allocation61_spill] sm:$0xff] %v5649_v35  ;;  %2089 = vmatpush.msrb.mxu3 %v5664_v57  ;;  %v5667_v35 = vld [vmem:[#allocation8 + $0x120] sm:$0xff] }
 0x2c5   :  { %7271 = vst [vmem:[#allocation62_spill] sm:$0xff] %v5652_v24  ;;  %2030 = vmatpush.msrb.mxu0 %v5667_v35  ;;  %v5670_v24 = vld [vmem:[#allocation8 + $0x128] sm:$0xff] }
 0x2c6   :  { %7272 = vst [vmem:[#allocation64_spill] sm:$0xff] %v5655_v8  ;;  %2050 = vmatpush.msrb.mxu1 %v5670_v24  ;;  %v5673_v8 = vld [vmem:[#allocation8 + $0x130] sm:$0xff] }
 0x2c7   :  { %7273 = vst [vmem:[#allocation63_spill] sm:$0xff] %v5658_v56  ;;  %2070 = vmatpush.msrb.mxu2 %v5673_v8  ;;  %v5676_v56 = vld [vmem:[#allocation8 + $0x138] sm:$0xff] }
 0x2c8   :  { %7274 = vst [vmem:[#allocation65_spill] sm:$0xff] %v5661_v0  ;;  %2090 = vmatpush.msrb.mxu3 %v5676_v56  ;;  %v5679_v0 = vld [vmem:[#allocation8 + $0x100] sm:$0xff] }
 0x2c9   :  { %7275 = vst [vmem:[#allocation66_spill] sm:$0xff] %v5664_v57  ;;  %2031 = vmatpush.msrb.mxu0 %v5679_v0  ;;  %v5682_v57 = vld [vmem:[#allocation8 + $0x108] sm:$0xff] }
 0x2ca   :  { %7276 = vst [vmem:[#allocation68_spill] sm:$0xff] %v5667_v35  ;;  %2051 = vmatpush.msrb.mxu1 %v5682_v57  ;;  %v5685_v35 = vld [vmem:[#allocation8 + $0x110] sm:$0xff] }
 0x2cb   :  { %7277 = vst [vmem:[#allocation67_spill] sm:$0xff] %v5670_v24  ;;  %2071 = vmatpush.msrb.mxu2 %v5685_v35  ;;  %v5688_v24 = vld [vmem:[#allocation8 + $0x118] sm:$0xff] }
 0x2cc   :  { %7278 = vst [vmem:[#allocation69_spill] sm:$0xff] %v5673_v8  ;;  %2091 = vmatpush.msrb.mxu3 %v5688_v24  ;;  %v5691_v8 = vld [vmem:[#allocation8 + $0xe0] sm:$0xff] }
 0x2cd   :  { %7279 = vst [vmem:[#allocation70_spill] sm:$0xff] %v5676_v56  ;;  %2032 = vmatpush.msrb.mxu0 %v5691_v8  ;;  %v5694_v56 = vld [vmem:[#allocation8 + $0xe8] sm:$0xff] }
 0x2ce   :  { %7280 = vst [vmem:[#allocation72_spill] sm:$0xff] %v5679_v0  ;;  %2052 = vmatpush.msrb.mxu1 %v5694_v56  ;;  %v5697_v0 = vld [vmem:[#allocation8 + $0xf0] sm:$0xff] }
 0x2cf   :  { %7281 = vst [vmem:[#allocation71_spill] sm:$0xff] %v5682_v57  ;;  %2072 = vmatpush.msrb.mxu2 %v5697_v0  ;;  %v5700_v57 = vld [vmem:[#allocation8 + $0xf8] sm:$0xff] }
 0x2d0   :  { %7282 = vst [vmem:[#allocation73_spill] sm:$0xff] %v5685_v35  ;;  %2092 = vmatpush.msrb.mxu3 %v5700_v57  ;;  %v5703_v35 = vld [vmem:[#allocation8 + $0xc0] sm:$0xff] }
 0x2d1   :  { %7283 = vst [vmem:[#allocation74_spill] sm:$0xff] %v5688_v24  ;;  %2033 = vmatpush.msrb.mxu0 %v5703_v35  ;;  %v5706_v24 = vld [vmem:[#allocation8 + $0xc8] sm:$0xff] }
 0x2d2   :  { %7284 = vst [vmem:[#allocation75_spill] sm:$0xff] %v5691_v8  ;;  %2053 = vmatpush.msrb.mxu1 %v5706_v24  ;;  %v5709_v8 = vld [vmem:[#allocation8 + $0xd0] sm:$0xff] }
 0x2d3   :  { %7285 = vst [vmem:[#allocation76_spill] sm:$0xff] %v5694_v56  ;;  %2073 = vmatpush.msrb.mxu2 %v5709_v8  ;;  %v5712_v56 = vld [vmem:[#allocation8 + $0xd8] sm:$0xff] }
 0x2d4   :  { %7286 = vst [vmem:[#allocation77_spill] sm:$0xff] %v5697_v0  ;;  %2093 = vmatpush.msrb.mxu3 %v5712_v56  ;;  %v5715_v0 = vld [vmem:[#allocation8 + $0xa0] sm:$0xff] }
 0x2d5   :  { %7287 = vst [vmem:[#allocation78_spill] sm:$0xff] %v5700_v57  ;;  %2034 = vmatpush.msrb.mxu0 %v5715_v0  ;;  %v5718_v57 = vld [vmem:[#allocation8 + $0xa8] sm:$0xff]  ;;  %2074 = vmatpush.msrb.mxu2 %v5263_v34 }
 0x2d6   :  { %7288 = vst [vmem:[#allocation79_spill] sm:$0xff] %v5706_v24  ;;  %2054 = vmatpush.msrb.mxu1 %v5718_v57  ;;  %2094 = vmatpush.msrb.mxu3 %v5266_v48 }
 0x2d7   :  { %7289 = vst [vmem:[#allocation80_spill] sm:$0xff] %v5709_v8  ;;  %2035 = vmatpush.msrb.mxu0 %v5269_v37  ;;  %2075 = vmatpush.msrb.mxu2 %v5275_v14  ;;  %v1537_v14 = vld [vmem:[#allocation2 + $0x30] sm:$0xc0]  ;;  %v1542_v8 = vld [vmem:[#allocation2 + $0x70] sm:$0x3] }
 0x2d8   :  { %7290 = vst [vmem:[#allocation81_spill] sm:$0xff] %v5712_v56  ;;  %2055 = vmatpush.msrb.mxu1 %v5272_v27  ;;  %2095 = vmatpush.msrb.mxu3 %v5278_v43  ;;  %v1538_v43 = vld [vmem:[#allocation2] sm:$0xc0] }
 0x2d9   :  { %7291 = vst [vmem:[#allocation82_spill] sm:$0xff] %v5715_v0  ;;  %2036 = vmatpush.msrb.mxu0 %v5281_v51  ;;  %2076 = vmatpush.msrb.mxu2 %v5287_v61 }
 0x2da   :  { %7292 = vst [vmem:[#allocation83_spill] sm:$0xff] %v5718_v57  ;;  %2056 = vmatpush.msrb.mxu1 %v5284_v53  ;;  %2096 = vmatpush.msrb.mxu3 %v5290_v1 }
 0x2db   :  { %2037 = vmatpush.msrb.mxu0 %v5293_v2  ;;  %2077 = vmatpush.msrb.mxu2 %v5299_v4  ;;  %v1540_v4 = vld [vmem:[#allocation2 + $0x18] sm:$0xc0] }
 0x2dc   :  { %2057 = vmatpush.msrb.mxu1 %v5296_v32  ;;  %2097 = vmatpush.msrb.mxu3 %v5302_v6 }
 0x2dd   :  { %2038 = vmatpush.msrb.mxu0 %v5305_v7  ;;  %2078 = vmatpush.msrb.mxu2 %v5311_v52 }
 0x2de   :  { %2058 = vmatpush.msrb.mxu1 %v5308_v10  ;;  %2098 = vmatpush.msrb.mxu3 %v5314_v13 }
 0x2df   :  { %2039 = vmatpush.msrb.mxu0 %v5317_v18  ;;  %2079 = vmatpush.msrb.mxu2 %v5323_v41 }
 0x2e0   :  { %2059 = vmatpush.msrb.mxu1 %v5320_v19  ;;  %2099 = vmatpush.msrb.mxu3 %v5326_v50 }
 0x2fb   :  { %v1565_v34 = vpop.f32.mrf.mxu0  ;;  %v1585_v48 = vpop.f32.mrf.mxu1 }
 0x2fc   :  { %v1632_v37 = vrot.slane %v1565_v34, 2  ;;  %v1633_v27 = vrot.slane %v1585_v48, 2  ;;  %v1539_v34 = vld [vmem:[#allocation2 + $0x58] sm:$0xc0] }
 0x2fe   :  { %v1640_v51 = vadd.f32 %v1632_v37, %v1537_v14  ;;  %v1641_v53 = vadd.f32 %v1633_v27, %v1538_v43 }
 0x300   :  { %v3306_v61 = vmul.f32 -1.442695, %v1640_v51  ;;  %v3307_v1 = vmul.f32 -1.442695, %v1641_v53 }
 0x302   :  { %3443 = vpow2.f32 %v3306_v61  ;;  %v1625_v2 = vpop.f32.mrf.mxu3  ;;  %v1605_v19 = vpop.f32.mrf.mxu2 }
 0x303   :  { %3445 = vpow2.f32 %v3307_v1  ;;  %v1635_v32 = vrot.slane %v1625_v2, 2  ;;  %v1634_v41 = vrot.slane %v1605_v19, 2 }
 0x305   :  { %v1643_v6 = vadd.f32 %v1635_v32, %v1540_v4  ;;  %v1642_v27 = vadd.f32 %v1634_v41, %v1539_v34  ;;  %v1703_v34 = vrot.slane %v5330_v20, 6 }
 0x307   :  { %v3308_v7 = vmul.f32 -1.442695, %v1643_v6 }
 0x308   :  { %v3444_v10 = vpop.eup %3443 }
 0x309   :  { %v3446_v52 = vpop.eup %3445  ;;  %v1647_v13 = vadd.f32 1.0, %v3444_v10  ;;  %3447 = vpow2.f32 %v3308_v7 }
 0x30a   :  { %v1666_v18 = vadd.f32 1.0, %v3446_v52 }
 0x30b   :  { %3449 = vrcp.f32 %v1647_v13  ;;  %v1659_v1 = vand.u32 2147483648, %v1647_v13  ;;  %v1657_v4 = vand.u32 2147483647, %v1647_v13  ;;  %vm1653_vm10 = vweird.f32 %v1647_v13 }
 0x30c   :  { %3451 = vrcp.f32 %v1666_v18  ;;  %v1678_v2 = vand.u32 2147483648, %v1666_v18  ;;  %v1676_v7 = vand.u32 2147483647, %v1666_v18  ;;  %vm1672_vm11 = vweird.f32 %v1666_v18 }
 0x30d   :  { %v1660_v19 = vor.u32 1.1754944e-38, %v1659_v1  ;;  %vm1658_vm14 = vcmp.eq.f32.partialorder %v1657_v4, 8.507059e+37  ;;  %v1541_v1 = vld [vmem:[#allocation2 + $0x60] sm:$0x3] }
 0x30e   :  { %vm1677_vm15 = vcmp.eq.f32.partialorder %v1676_v7, 8.507059e+37 }
 0x30f   :  { %v3448_v50 = vpop.eup %3447 }
 0x310   :  { %v1686_v48 = vadd.f32 1.0, %v3448_v50 }
 0x311   :  { %v3450_v37 = vpop.eup %3449 }
 0x312   :  { %v3452_v14 = vpop.eup %3451  ;;  %v1649_v43 = vmul.f32 %v3450_v37, %v1647_v13  ;;  %3453 = vrcp.f32 %v1686_v48  ;;  %vm1654_vm8 = vweird.f32 %v3450_v37  ;;  %v1698_v4 = vand.u32 2147483648, %v1686_v48 }
 0x313   :  { %v1668_v51 = vmul.f32 %v3452_v14, %v1666_v18  ;;  %3455 = vtanh.f32 %v1642_v27  ;;  %vm1673_vm9 = vweird.f32 %v3452_v14  ;;  %vm1655_vm12 = vmor %vm1653_vm10, %vm1654_vm8  ;;  %vm1692_vm1 = vweird.f32 %v1686_v48 }
 0x314   :  { %v1650_v53 = vsub.f32 1.0, %v1649_v43  ;;  %vm1674_vm13 = vmor %vm1672_vm11, %vm1673_vm9  ;;  %v1679_v43 = vor.u32 1.1754944e-38, %v1678_v2 }
 0x315   :  { %v1669_v61 = vsub.f32 1.0, %v1668_v51 }
 0x316   :  { %v1651_v32 = vmul.f32 %v3450_v37, %v1650_v53 }
 0x317   :  { %v1670_v6 = vmul.f32 %v3452_v14, %v1669_v61 }
 0x318   :  { %v3454_v10 = vpop.eup %3453  ;;  %v1652_v52 = vadd.f32 %v3450_v37, %v1651_v32 }
 0x319   :  { %v1671_v41 = vadd.f32 %v3452_v14, %v1670_v6  ;;  %v1688_v50 = vmul.f32 %v3454_v10, %v1686_v48  ;;  %v3456_v51 = vpop.eup %3455  ;;  %vm1693_vm0 = vweird.f32 %v3454_v10 }
 0x31a   :  { %v1656_v27 = vsel %vm1655_vm12, %v3450_v37, %v1652_v52  ;;  %vm1694_vm2 = vmor %vm1692_vm1, %vm1693_vm0 }
 0x31b   :  { %v1661_v53 = vsel %vm1658_vm14, %v1660_v19, %v1656_v27  ;;  %v1675_v57 = vsel %vm1674_vm13, %v3452_v14, %v1671_v41  ;;  %v1689_v61 = vsub.f32 1.0, %v1688_v50  ;;  %v1696_v14 = vand.u32 2147483647, %v1686_v48  ;;  %v1544_v19 = vld [vmem:[#allocation2 + $0x28] sm:$0x3] }
 0x31c   :  { %v1680_v0 = vsel %vm1677_vm15, %v1679_v43, %v1675_v57  ;;  %v1706_v56 = vmul.f32 %v3456_v51, %v1661_v53 }
 0x31d   :  { %v1705_v32 = vmul.f32 %v1703_v34, %v1680_v0  ;;  %v1690_v13 = vmul.f32 %v3454_v10, %v1689_v61  ;;  %vm1697_vm3 = vcmp.eq.f32.partialorder %v1696_v14, 8.507059e+37 }
 0x31f   :  { %v5744_v18 = vadd.f32 %v1706_v56, %v1705_v32  ;;  %v1691_v20 = vadd.f32 %v3454_v10, %v1690_v13  ;;  %v1699_v56 = vor.u32 1.1754944e-38, %v1698_v4  ;;  %v7298_v13 = vld [vmem:[#allocation18_spill] sm:$0xff] }
 0x321   :  { %3457 = vtanh.f32 %v5744_v18  ;;  %v1695_v0 = vsel %vm1694_vm2, %v3454_v10, %v1691_v20 }
 0x322   :  { %v1700_v50 = vsel %vm1697_vm3, %v1699_v56, %v1695_v0  ;;  %v7303_v0 = vld [vmem:[#allocation23_spill] sm:$0xff] }
 0x327   :  { %v3458_v52 = vpop.eup %3457 }
 0x328   :  { %v1709_v43 = vmul.f32 %v3458_v52, %v1700_v50  ;;  %v7305_v50 = vld [vmem:[#allocation25_spill] sm:$0xff] }
 0x32a   :  { %v1872_v51 = vrot.slane %v1709_v43, 6 }
 0x32c   :  { %1890 = vmatmul.f32.vlgmr.msra.gmra.mxu0 %v1872_v51  ;;  %1910 = vmatmul.f32.vlgmr.msra.gmra.mxu1 %v1872_v51 }
 0x32d   :  { %1930 = vmatmul.f32.vlgmr.msra.gmra.mxu2 %v1872_v51  ;;  %1950 = vmatmul.f32.vlgmr.msra.gmra.mxu3 %v1872_v51 }
 0x32e   :  { %2194 = vmatpush.msra.mxu0 %v5335_v29  ;;  %2214 = vmatpush.msra.mxu1 %v5338_v30  ;;  %v1543_v29 = vld [vmem:[#allocation2 + $0x78] sm:$0x3] }
 0x32f   :  { %2234 = vmatpush.msra.mxu2 %v5343_v9  ;;  %2254 = vmatpush.msra.mxu3 %v5346_v42 }
 0x330   :  { %v1730_v6 = vpop.f32.mrf.mxu0  ;;  %v1750_v24 = vpop.f32.mrf.mxu1  ;;  %2195 = vmatpush.msra.mxu0 %v5350_v33  ;;  %2215 = vmatpush.msra.mxu1 %v5353_v31 }
 0x331   :  { %v1793_v37 = vadd.f32 %v1730_v6, %v1541_v1  ;;  %v1794_v2 = vadd.f32 %v1750_v24, %v1542_v8  ;;  %2235 = vmatpush.msra.mxu2 %v5357_v38  ;;  %2255 = vmatpush.msra.mxu3 %v5360_v39  ;;  %v7299_v1 = vld [vmem:[#allocation19_spill] sm:$0xff] }
 0x332   :  { %2196 = vmatpush.msra.mxu0 %v5363_v17  ;;  %2216 = vmatpush.msra.mxu1 %v5366_v59  ;;  %v7293_v17 = vld [vmem:[#allocation13_spill] sm:$0xff] }
 0x333   :  { %v3309_v7 = vmul.f32 -1.442695, %v1793_v37  ;;  %v3310_v57 = vmul.f32 -1.442695, %v1794_v2  ;;  %2236 = vmatpush.msra.mxu2 %v5369_v22  ;;  %2256 = vmatpush.msra.mxu3 %v5372_v12  ;;  %v7294_v12 = vld [vmem:[#allocation14_spill] sm:$0xff]  ;;  %v7300_v37 = vld [vmem:[#allocation20_spill] sm:$0xff] }
 0x334   :  { %2197 = vmatpush.msra.mxu0 %v5375_v23  ;;  %2217 = vmatpush.msra.mxu1 %v5378_v45  ;;  %v7295_v23 = vld [vmem:[#allocation15_spill] sm:$0xff]  ;;  %v7301_v2 = vld [vmem:[#allocation21_spill] sm:$0xff] }
 0x335   :  { %3459 = vpow2.f32 %v3309_v7  ;;  %2237 = vmatpush.msra.mxu2 %v5383_v49  ;;  %2257 = vmatpush.msra.mxu3 %v5386_v25 }
 0x336   :  { %3461 = vpow2.f32 %v3310_v57  ;;  %2198 = vmatpush.msra.mxu0 %v5391_v11  ;;  %2218 = vmatpush.msra.mxu1 %v5394_v15  ;;  %v7296_v11 = vld [vmem:[#allocation16_spill] sm:$0xff]  ;;  %v7297_v15 = vld [vmem:[#allocation17_spill] sm:$0xff]  ;;  %v7302_v57 = vld [vmem:[#allocation22_spill] sm:$0xff] }
 0x337   :  { %v1790_v41 = vpop.f32.mrf.mxu3  ;;  %v1770_v10 = vpop.f32.mrf.mxu2  ;;  %2238 = vmatpush.msra.mxu2 %v5402_v54  ;;  %2258 = vmatpush.msra.mxu3 %v7293_v17 }
 0x338   :  { %v1796_v34 = vadd.f32 %v1790_v41, %v1544_v19  ;;  %v1795_v42 = vadd.f32 %v1770_v10, %v1543_v29  ;;  %2199 = vmatpush.msra.mxu0 %v7294_v12  ;;  %2219 = vmatpush.msra.mxu1 %v7295_v23  ;;  %v1856_v19 = vrot.slane %v5518_v44, 2  ;;  %v7304_v41 = vld [vmem:[#allocation24_spill] sm:$0xff]  ;;  %v7314_v29 = vld [vmem:[#allocation34_spill] sm:$0xff]  ;;  %v7321_v23 = vld [vmem:[#allocation41_spill] sm:$0xff] }
 0x339   :  { %2239 = vmatpush.msra.mxu2 %v7296_v11  ;;  %2259 = vmatpush.msra.mxu3 %v7297_v15  ;;  %v7327_v11 = vld [vmem:[#allocation48_spill] sm:$0xff]  ;;  %v7330_v15 = vld [vmem:[#allocation50_spill] sm:$0xff] }
 0x33a   :  { %v3311_v27 = vmul.f32 -1.442695, %v1796_v34  ;;  %2200 = vmatpush.msra.mxu0 %v7298_v13  ;;  %2220 = vmatpush.msra.mxu1 %v7299_v1  ;;  %v7335_v13 = vld [vmem:[#allocation56_spill] sm:$0xff]  ;;  %v7336_v1 = vld [vmem:[#allocation55_spill] sm:$0xff] }
 0x33b   :  { %v3460_v24 = vpop.eup %3459  ;;  %2240 = vmatpush.msra.mxu2 %v7300_v37  ;;  %2260 = vmatpush.msra.mxu3 %v7301_v2  ;;  %v7339_v37 = vld [vmem:[#allocation60_spill] sm:$0xff]  ;;  %v7340_v2 = vld [vmem:[#allocation59_spill] sm:$0xff] }
 0x33c   :  { %v3462_v8 = vpop.eup %3461  ;;  %v5747_v53 = vadd.f32 1.0, %v3460_v24  ;;  %3463 = vpow2.f32 %v3311_v27  ;;  %2201 = vmatpush.msra.mxu0 %v7302_v57  ;;  %2221 = vmatpush.msra.mxu1 %v7303_v0  ;;  %v7306_v24 = vld [vmem:[#allocation26_spill] sm:$0xff]  ;;  %v7344_v57 = vld [vmem:[#allocation63_spill] sm:$0xff]  ;;  %v7345_v0 = vld [vmem:[#allocation65_spill] sm:$0xff] }
 0x33d   :  { %v5749_v48 = vadd.f32 1.0, %v3462_v8  ;;  %2241 = vmatpush.msra.mxu2 %v7304_v41  ;;  %2261 = vmatpush.msra.mxu3 %v7305_v50  ;;  %v7307_v8 = vld [vmem:[#allocation28_spill] sm:$0xff]  ;;  %v7349_v41 = vld [vmem:[#allocation69_spill] sm:$0xff]  ;;  %v7350_v50 = vld [vmem:[#allocation70_spill] sm:$0xff] }
 0x33e   :  { %3465 = vrcp.f32 %v5747_v53  ;;  %v1812_v22 = vand.u32 2147483648, %v5747_v53  ;;  %v1810_v25 = vand.u32 2147483647, %v5747_v53  ;;  %vm1806_vm6 = vweird.f32 %v5747_v53  ;;  %2202 = vmatpush.msra.mxu0 %v7306_v24  ;;  %2222 = vmatpush.msra.mxu1 %v7307_v8  ;;  %v7355_v24 = vld [vmem:[#allocation75_spill] sm:$0xff]  ;;  %v7356_v8 = vld [vmem:[#allocation76_spill] sm:$0xff] }
 0x33f   :  { %3467 = vrcp.f32 %v5749_v48  ;;  %v1831_v45 = vand.u32 2147483648, %v5749_v48  ;;  %v1829_v32 = vand.u32 2147483647, %v5749_v48  ;;  %vm1825_vm7 = vweird.f32 %v5749_v48  ;;  %2242 = vmatpush.msra.mxu2 %v5484_v5  ;;  %2262 = vmatpush.msra.mxu3 %v5487_v58  ;;  %v7308_v58 = vld [vmem:[#allocation27_spill] sm:$0xff] }
 0x340   :  { %v1813_v4 = vor.u32 1.1754944e-38, %v1812_v22  ;;  %vm1811_vm10 = vcmp.eq.f32.partialorder %v1810_v25, 8.507059e+37  ;;  %2203 = vmatpush.msra.mxu0 %v5493_v60  ;;  %2223 = vmatpush.msra.mxu1 %v5496_v28  ;;  %v7309_v28 = vld [vmem:[#allocation29_spill] sm:$0xff]  ;;  %v7320_v22 = vld [vmem:[#allocation39_spill] sm:$0xff]  ;;  %v7326_v25 = vld [vmem:[#allocation46_spill] sm:$0xff] }
 0x341   :  { %v1832_v56 = vor.u32 1.1754944e-38, %v1831_v45  ;;  %vm1830_vm11 = vcmp.eq.f32.partialorder %v1829_v32, 8.507059e+37  ;;  %2243 = vmatpush.msra.mxu2 %v5499_v63  ;;  %2263 = vmatpush.msra.mxu3 %v5502_v26  ;;  %v7310_v63 = vld [vmem:[#allocation30_spill] sm:$0xff] }
 0x342   :  { %v3464_v61 = vpop.eup %3463  ;;  %2204 = vmatpush.msra.mxu0 %v5506_v47  ;;  %2224 = vmatpush.msra.mxu1 %v5509_v21  ;;  %v7311_v47 = vld [vmem:[#allocation32_spill] sm:$0xff]  ;;  %v7312_v21 = vld [vmem:[#allocation31_spill] sm:$0xff]  ;;  %v7322_v45 = vld [vmem:[#allocation42_spill] sm:$0xff] }
 0x343   :  { %v5763_v30 = vadd.f32 1.0, %v3464_v61  ;;  %2244 = vmatpush.msra.mxu2 %v5512_v46  ;;  %2264 = vmatpush.msra.mxu3 %v7308_v58  ;;  %v7313_v46 = vld [vmem:[#allocation33_spill] sm:$0xff]  ;;  %v7334_v32 = vld [vmem:[#allocation54_spill] sm:$0xff] }
 0x344   :  { %v3466_v9 = vpop.eup %3465  ;;  %2205 = vmatpush.msra.mxu0 %v7309_v28  ;;  %2225 = vmatpush.msra.mxu1 %v7310_v63  ;;  %v7362_v58 = vld [vmem:[#allocation82_spill] sm:$0xff]  ;;  %v5890_v63 = vld [vmem:[#allocation8 + $0xb8] sm:$0xff] }
 0x345   :  { %v3468_v33 = vpop.eup %3467  ;;  %v1802_v31 = vmul.f32 %v3466_v9, %v5747_v53  ;;  %3469 = vrcp.f32 %v5763_v30  ;;  %vm1807_vm4 = vweird.f32 %v3466_v9  ;;  %v1851_v60 = vand.u32 2147483648, %v5763_v30  ;;  %2245 = vmatpush.msra.mxu2 %v7311_v47  ;;  %2265 = vmatpush.msra.mxu3 %v7312_v21  ;;  %v5887_v28 = vld [vmem:[#allocation8 + $0xb0] sm:$0xff]  ;;  %v5902_v21 = vld [vmem:[#allocation8 + $0x98] sm:$0xff] }
 0x346   :  { %v1821_v38 = vmul.f32 %v3468_v33, %v5749_v48  ;;  %3471 = vtanh.f32 %v1795_v42  ;;  %vm1826_vm5 = vweird.f32 %v3468_v33  ;;  %vm1808_vm8 = vmor %vm1806_vm6, %vm1807_vm4  ;;  %vm1845_vm13 = vweird.f32 %v5763_v30  ;;  %2206 = vmatpush.msra.mxu0 %v7313_v46  ;;  %2226 = vmatpush.msra.mxu1 %v7314_v29  ;;  %v7315_v42 = vld [vmem:[#allocation36_spill] sm:$0xff]  ;;  %v5899_v47 = vld [vmem:[#allocation8 + $0x90] sm:$0xff] }
 0x347   :  { %v1803_v39 = vsub.f32 1.0, %v1802_v31  ;;  %vm1827_vm9 = vmor %vm1825_vm7, %vm1826_vm5  ;;  %v1849_v26 = vand.u32 2147483647, %v5763_v30  ;;  %2246 = vmatpush.msra.mxu2 %v7315_v42  ;;  %v1852_v31 = vor.u32 1.1754944e-38, %v1851_v60  ;;  %v7363_v60 = vld [vmem:[#allocation83_spill] sm:$0xff]  ;;  %v5905_v46 = vld [vmem:[#allocation8 + $0x60] sm:$0xff] }
 0x348   :  { %v1822_v59 = vsub.f32 1.0, %v1821_v38  ;;  %v7317_v38 = vld [vmem:[#allocation37_spill] sm:$0xff]  ;;  %2227 = vmatpush.msra.mxu1 %v5559_v62  ;;  %v7324_v62 = vld [vmem:[#allocation43_spill] sm:$0xff] }
 0x349   :  { %v1804_v49 = vmul.f32 %v3466_v9, %v1803_v39  ;;  %2207 = vmatpush.msra.mxu0 %v7317_v38  ;;  %vm1850_vm15 = vcmp.eq.f32.partialorder %v1849_v26, 8.507059e+37  ;;  %2247 = vmatpush.msra.mxu2 %v5565_v40  ;;  %v7323_v40 = vld [vmem:[#allocation44_spill] sm:$0xff]  ;;  %v5908_v29 = vld [vmem:[#allocation8 + $0x68] sm:$0xff]  ;;  %v5923_v38 = vld [vmem:[#allocation8 + $0x50] sm:$0xff] }
 0x34a   :  { %v1823_v54 = vmul.f32 %v3468_v33, %v1822_v59  ;;  %v7319_v59 = vld [vmem:[#allocation40_spill] sm:$0xff]  ;;  %2228 = vmatpush.msra.mxu1 %v7320_v22 }
 0x34b   :  { %v5788_v6 = vpop.eup %3469  ;;  %v1805_v20 = vadd.f32 %v3466_v9, %v1804_v49  ;;  %2208 = vmatpush.msra.mxu0 %v7319_v59  ;;  %2248 = vmatpush.msra.mxu2 %v7321_v23  ;;  %v7325_v49 = vld [vmem:[#allocation45_spill] sm:$0xff]  ;;  %v5914_v42 = vld [vmem:[#allocation8 + $0x78] sm:$0xff]  ;;  %v5935_v59 = vld [vmem:[#allocation8 + $0x30] sm:$0xff] }
 0x34c   :  { %v1824_v14 = vadd.f32 %v3468_v33, %v1823_v54  ;;  %v1841_v7 = vmul.f32 %v5788_v6, %v5763_v30  ;;  %v3472_v34 = vpop.eup %3471  ;;  %vm1846_vm12 = vweird.f32 %v5788_v6  ;;  %v7318_v30 = vld [vmem:[#allocation38_spill] sm:$0xff]  ;;  %2229 = vmatpush.msra.mxu1 %v5586_v55  ;;  %v7329_v55 = vld [vmem:[#allocation49_spill] sm:$0xff]  ;;  %v7331_v54 = vld [vmem:[#allocation52_spill] sm:$0xff] }
 0x34d   :  { %v1809_v52 = vsel %vm1808_vm8, %v3466_v9, %v1805_v20  ;;  %vm1847_vm14 = vmor %vm1845_vm13, %vm1846_vm12  ;;  %2209 = vmatpush.msra.mxu0 %v5583_v3  ;;  %2249 = vmatpush.msra.mxu2 %v5589_v36  ;;  %v7328_v3 = vld [vmem:[#allocation47_spill] sm:$0xff]  ;;  %v7338_v20 = vld [vmem:[#allocation58_spill] sm:$0xff] }
 0x34e   :  { %v1814_v43 = vsel %vm1811_vm10, %v1813_v4, %v1809_v52  ;;  %v1828_v27 = vsel %vm1827_vm9, %v3468_v33, %v1824_v14  ;;  %v1842_v51 = vsub.f32 1.0, %v1841_v7  ;;  %v7316_v33 = vld [vmem:[#allocation35_spill] sm:$0xff]  ;;  %v7341_v4 = vld [vmem:[#allocation61_spill] sm:$0xff]  ;;  %v7342_v14 = vld [vmem:[#allocation62_spill] sm:$0xff] }
 0x34f   :  { %v1833_v53 = vsel %vm1830_vm11, %v1832_v56, %v1828_v27  ;;  %v1859_v48 = vmul.f32 %v3472_v34, %v1814_v43  ;;  %2266 = vmatpush.msra.mxu3 %v7316_v33  ;;  %v7332_v36 = vld [vmem:[#allocation51_spill] sm:$0xff]  ;;  %v7343_v7 = vld [vmem:[#allocation64_spill] sm:$0xff]  ;;  %v7346_v56 = vld [vmem:[#allocation66_spill] sm:$0xff] }
 0x350   :  { %v1858_v44 = vmul.f32 %v1856_v19, %v1833_v53  ;;  %v1843_v10 = vmul.f32 %v5788_v6, %v1842_v51  ;;  %v7347_v52 = vld [vmem:[#allocation68_spill] sm:$0xff]  ;;  %v7348_v19 = vld [vmem:[#allocation67_spill] sm:$0xff]  ;;  %v7353_v27 = vld [vmem:[#allocation73_spill] sm:$0xff] }
 0x351   :  { %2267 = vmatpush.msra.mxu3 %v7318_v30  ;;  %v7351_v34 = vld [vmem:[#allocation72_spill] sm:$0xff]  ;;  %v7352_v43 = vld [vmem:[#allocation71_spill] sm:$0xff]  ;;  %v7354_v51 = vld [vmem:[#allocation74_spill] sm:$0xff] }
 0x352   :  { %v5812_v61 = vadd.f32 %v1859_v48, %v1858_v44  ;;  %v1844_v5 = vadd.f32 %v5788_v6, %v1843_v10  ;;  %v7357_v53 = vld [vmem:[#allocation77_spill] sm:$0xff]  ;;  %v7358_v48 = vld [vmem:[#allocation78_spill] sm:$0xff]  ;;  %v7359_v44 = vld [vmem:[#allocation79_spill] sm:$0xff] }
 0x353   :  { %2268 = vmatpush.msra.mxu3 %v7322_v45  ;;  %v7360_v10 = vld [vmem:[#allocation80_spill] sm:$0xff]  ;;  %v5944_v23 = vld [vmem:[#allocation8 + $0x8] sm:$0xff]  ;;  %v5947_v45 = vld [vmem:[#allocation8 + $0x10] sm:$0xff] }
 0x354   :  { %3473 = vtanh.f32 %v5812_v61  ;;  %v1848_v9 = vsel %vm1847_vm14, %v5788_v6, %v1844_v5  ;;  %v7337_v6 = vld [vmem:[#allocation57_spill] sm:$0xff]  ;;  %v5926_v30 = vld [vmem:[#allocation8 + $0x58] sm:$0xff] }
 0x355   :  { %v1853_v17 = vsel %vm1850_vm15, %v1852_v31, %v1848_v9  ;;  %2269 = vmatpush.msra.mxu3 %v5592_v16  ;;  %v7333_v16 = vld [vmem:[#allocation53_spill] sm:$0xff]  ;;  %v5911_v9 = vld [vmem:[#allocation8 + $0x70] sm:$0xff]  ;;  %v5938_v22 = vld [vmem:[#allocation8 + $0x38] sm:$0xff] }
 0x356   :  { %v7361_v5 = vld [vmem:[#allocation81_spill] sm:$0xff] }
 0x357   :  { %v5893_v26 = vld [vmem:[#allocation8 + $0x80] sm:$0xff]  ;;  %v5920_v31 = vld [vmem:[#allocation8 + $0x48] sm:$0xff] }
 0x358   :  { %v5917_v33 = vld [vmem:[#allocation8 + $0x40] sm:$0xff] }
 0x35a   :  { %v3474_v39 = vpop.eup %3473 }
 0x35b   :  { %v1862_v12 = vmul.f32 %v3474_v39, %v1853_v17  ;;  %v5929_v39 = vld [vmem:[#allocation8 + $0x20] sm:$0xff]  ;;  %v5932_v17 = vld [vmem:[#allocation8 + $0x28] sm:$0xff] }
 0x35d   :  { %2040 = vmatmul.f32.vlgmr.msrb.gmra.mxu0 %v1862_v12  ;;  %2060 = vmatmul.f32.vlgmr.msrb.gmra.mxu1 %v1862_v12 }
 0x35e   :  { %2080 = vmatmul.f32.vlgmr.msrb.gmra.mxu2 %v1862_v12  ;;  %2100 = vmatmul.f32.vlgmr.msrb.gmra.mxu3 %v1862_v12  ;;  %v5941_v12 = vld [vmem:[#allocation8] sm:$0xff] }
 0x35f   :  { %2359 = vmatpush.msrb.mxu0 %v7323_v40  ;;  %2379 = vmatpush.msrb.mxu1 %v7324_v62  ;;  %v5950_v40 = vld [vmem:[#allocation8 + $0x18] sm:$0xff]  ;;  %v1863_v62 = vld [vmem:[#allocation2 + $0x40] sm:$0x3] }
 0x360   :  { %2399 = vmatpush.msrb.mxu2 %v7325_v49  ;;  %2419 = vmatpush.msrb.mxu3 %v7326_v25  ;;  %v1864_v25 = vld [vmem:[#allocation2 + $0x20] sm:$0x3] }
 0x361   :  { %2360 = vmatpush.msrb.mxu0 %v7327_v11  ;;  %2380 = vmatpush.msrb.mxu1 %v7328_v3 }
 0x362   :  { %2400 = vmatpush.msrb.mxu2 %v7329_v55  ;;  %2420 = vmatpush.msrb.mxu3 %v7330_v15 }
 0x363   :  { %2361 = vmatpush.msrb.mxu0 %v7331_v54  ;;  %2381 = vmatpush.msrb.mxu1 %v7332_v36  ;;  %v1866_v36 = vld [vmem:[#allocation2 + $0x38] sm:$0x3] }
 0x364   :  { %2401 = vmatpush.msrb.mxu2 %v7333_v16  ;;  %2421 = vmatpush.msrb.mxu3 %v7334_v32 }
 0x365   :  { %2362 = vmatpush.msrb.mxu0 %v7335_v13  ;;  %2382 = vmatpush.msrb.mxu1 %v7336_v1 }
 0x366   :  { %2402 = vmatpush.msrb.mxu2 %v7337_v6  ;;  %2422 = vmatpush.msrb.mxu3 %v7338_v20 }
 0x367   :  { %2363 = vmatpush.msrb.mxu0 %v7339_v37  ;;  %2383 = vmatpush.msrb.mxu1 %v7340_v2 }
 0x368   :  { %2403 = vmatpush.msrb.mxu2 %v7341_v4  ;;  %2423 = vmatpush.msrb.mxu3 %v7342_v14  ;;  %v1865_v14 = vld [vmem:[#allocation2 + $0x10] sm:$0x3] }
 0x369   :  { %2364 = vmatpush.msrb.mxu0 %v7343_v7  ;;  %2384 = vmatpush.msrb.mxu1 %v7344_v57 }
 0x36a   :  { %2404 = vmatpush.msrb.mxu2 %v7345_v0  ;;  %2424 = vmatpush.msrb.mxu3 %v7346_v56 }
 0x36b   :  { %2365 = vmatpush.msrb.mxu0 %v7347_v52  ;;  %2385 = vmatpush.msrb.mxu1 %v7348_v19 }
 0x36c   :  { %2405 = vmatpush.msrb.mxu2 %v7349_v41  ;;  %2425 = vmatpush.msrb.mxu3 %v7350_v50 }
 0x36d   :  { %2366 = vmatpush.msrb.mxu0 %v7351_v34  ;;  %2386 = vmatpush.msrb.mxu1 %v7352_v43 }
 0x36e   :  { %2406 = vmatpush.msrb.mxu2 %v7353_v27  ;;  %2426 = vmatpush.msrb.mxu3 %v7354_v51 }
 0x36f   :  { %2367 = vmatpush.msrb.mxu0 %v7355_v24  ;;  %2387 = vmatpush.msrb.mxu1 %v7356_v8 }
 0x370   :  { %2407 = vmatpush.msrb.mxu2 %v7357_v53  ;;  %2427 = vmatpush.msrb.mxu3 %v7358_v48 }
 0x371   :  { %2368 = vmatpush.msrb.mxu0 %v5703_v35  ;;  %2388 = vmatpush.msrb.mxu1 %v7359_v44  ;;  %v5896_v35 = vld [vmem:[#allocation8 + $0x88] sm:$0xff] }
 0x372   :  { %2408 = vmatpush.msrb.mxu2 %v7360_v10  ;;  %2428 = vmatpush.msrb.mxu3 %v7361_v5 }
 0x373   :  { %2369 = vmatpush.msrb.mxu0 %v7362_v58  ;;  %2389 = vmatpush.msrb.mxu1 %v7363_v60 }
 0x374   :  { %2409 = vmatpush.msrb.mxu2 %v5887_v28  ;;  %2429 = vmatpush.msrb.mxu3 %v5890_v63 }
 0x375   :  { %2370 = vmatpush.msrb.mxu0 %v5893_v26  ;;  %2390 = vmatpush.msrb.mxu1 %v5896_v35 }
 0x376   :  { %2410 = vmatpush.msrb.mxu2 %v5899_v47  ;;  %2430 = vmatpush.msrb.mxu3 %v5902_v21 }
 0x377   :  { %2371 = vmatpush.msrb.mxu0 %v5905_v46  ;;  %2391 = vmatpush.msrb.mxu1 %v5908_v29 }
 0x378   :  { %2411 = vmatpush.msrb.mxu2 %v5911_v9  ;;  %2431 = vmatpush.msrb.mxu3 %v5914_v42 }
 0x379   :  { %2372 = vmatpush.msrb.mxu0 %v5917_v33  ;;  %2392 = vmatpush.msrb.mxu1 %v5920_v31 }
 0x37a   :  { %2412 = vmatpush.msrb.mxu2 %v5923_v38  ;;  %2432 = vmatpush.msrb.mxu3 %v5926_v30 }
 0x37b   :  { %2373 = vmatpush.msrb.mxu0 %v5929_v39  ;;  %2393 = vmatpush.msrb.mxu1 %v5932_v17 }
 0x37c   :  { %2413 = vmatpush.msrb.mxu2 %v5935_v59  ;;  %2433 = vmatpush.msrb.mxu3 %v5938_v22 }
 0x37d   :  { %2374 = vmatpush.msrb.mxu0 %v5941_v12  ;;  %2394 = vmatpush.msrb.mxu1 %v5944_v23 }
 0x37e   :  { %2414 = vmatpush.msrb.mxu2 %v5947_v45  ;;  %2434 = vmatpush.msrb.mxu3 %v5950_v40 }
 0x3a9   :  { %v1891_v49 = vpop.f32.mrf.mxu0  ;;  %v1911_v11 = vpop.f32.mrf.mxu1 }
 0x3aa   :  { %v1954_v3 = vadd.f32 %v1891_v49, %v1863_v62  ;;  %v1955_v55 = vadd.f32 %v1911_v11, %v1864_v25  ;;  %v2017_v62 = vrot.slane %v5744_v18, 6 }
 0x3ac   :  { %v3312_v15 = vmul.f32 -1.442695, %v1954_v3  ;;  %v3313_v54 = vmul.f32 -1.442695, %v1955_v55 }
 0x3ae   :  { %3475 = vpow2.f32 %v3312_v15 }
 0x3af   :  { %3477 = vpow2.f32 %v3313_v54 }
 0x3b0   :  { %v1951_v16 = vpop.f32.mrf.mxu3  ;;  %v1931_v2 = vpop.f32.mrf.mxu2 }
 0x3b1   :  { %v1957_v32 = vadd.f32 %v1951_v16, %v1866_v36  ;;  %v1956_v0 = vadd.f32 %v1931_v2, %v1865_v14 }
 0x3b3   :  { %v3314_v13 = vmul.f32 -1.442695, %v1957_v32 }
 0x3b4   :  { %v3476_v1 = vpop.eup %3475 }
 0x3b5   :  { %v3478_v6 = vpop.eup %3477  ;;  %v1961_v20 = vadd.f32 1.0, %v3476_v1  ;;  %3479 = vpow2.f32 %v3314_v13 }
 0x3b6   :  { %v1980_v37 = vadd.f32 1.0, %v3478_v6 }
 0x3b7   :  { %3481 = vrcp.f32 %v1961_v20  ;;  %v1973_v34 = vand.u32 2147483648, %v1961_v20  ;;  %v1971_v51 = vand.u32 2147483647, %v1961_v20  ;;  %vm1967_vm2 = vweird.f32 %v1961_v20 }
 0x3b8   :  { %3483 = vrcp.f32 %v1980_v37  ;;  %v1992_v43 = vand.u32 2147483648, %v1980_v37  ;;  %v1990_v8 = vand.u32 2147483647, %v1980_v37  ;;  %vm1986_vm3 = vweird.f32 %v1980_v37 }
 0x3b9   :  { %v1974_v44 = vor.u32 1.1754944e-38, %v1973_v34  ;;  %vm1972_vm6 = vcmp.eq.f32.partialorder %v1971_v51, 8.507059e+37 }
 0x3ba   :  { %v1993_v58 = vor.u32 1.1754944e-38, %v1992_v43  ;;  %vm1991_vm7 = vcmp.eq.f32.partialorder %v1990_v8, 8.507059e+37  ;;  %v1870_v43 = vld [vmem:[#allocation2 + $0x48] sm:$0xc0] }
 0x3bb   :  { %v3480_v4 = vpop.eup %3479 }
 0x3bc   :  { %v5953_v7 = vadd.f32 1.0, %v3480_v4 }
 0x3bd   :  { %v3482_v57 = vpop.eup %3481 }
 0x3be   :  { %v3484_v56 = vpop.eup %3483  ;;  %v1963_v52 = vmul.f32 %v3482_v57, %v1961_v20  ;;  %3485 = vrcp.f32 %v5953_v7  ;;  %vm1968_vm0 = vweird.f32 %v3482_v57  ;;  %v1867_v20 = vld [vmem:[#allocation2 + $0x50] sm:$0xc0]  ;;  %v2012_v14 = vand.u32 2147483648, %v5953_v7 }
 0x3bf   :  { %v1982_v19 = vmul.f32 %v3484_v56, %v1980_v37  ;;  %3487 = vtanh.f32 %v1956_v0  ;;  %vm1987_vm1 = vweird.f32 %v3484_v56  ;;  %vm1969_vm4 = vmor %vm1967_vm2, %vm1968_vm0  ;;  %v1868_v37 = vld [vmem:[#allocation2 + $0x68] sm:$0xc0]  ;;  %vm2006_vm9 = vweird.f32 %v5953_v7 }
 0x3c0   :  { %v1964_v41 = vsub.f32 1.0, %v1963_v52  ;;  %vm1988_vm5 = vmor %vm1986_vm3, %vm1987_vm1 }
 0x3c1   :  { %v1983_v50 = vsub.f32 1.0, %v1982_v19 }
 0x3c2   :  { %v1965_v27 = vmul.f32 %v3482_v57, %v1964_v41  ;;  %v2013_v41 = vor.u32 1.1754944e-38, %v2012_v14 }
 0x3c3   :  { %v1984_v24 = vmul.f32 %v3484_v56, %v1983_v50 }
 0x3c4   :  { %v3486_v53 = vpop.eup %3485  ;;  %v1966_v48 = vadd.f32 %v3482_v57, %v1965_v27 }
 0x3c5   :  { %v1985_v10 = vadd.f32 %v3484_v56, %v1984_v24  ;;  %v2002_v5 = vmul.f32 %v3486_v53, %v5953_v7  ;;  %v3488_v49 = vpop.eup %3487  ;;  %vm2007_vm8 = vweird.f32 %v3486_v53 }
 0x3c6   :  { %v1970_v60 = vsel %vm1969_vm4, %v3482_v57, %v1966_v48  ;;  %v2010_v57 = vand.u32 2147483647, %v5953_v7  ;;  %vm2008_vm10 = vmor %vm2006_vm9, %vm2007_vm8 }
 0x3c7   :  { %v1975_v25 = vsel %vm1972_vm6, %v1974_v44, %v1970_v60  ;;  %v1989_v11 = vsel %vm1988_vm5, %v3484_v56, %v1985_v10  ;;  %v2003_v3 = vsub.f32 1.0, %v2002_v5  ;;  %v5969_v10 = vld [vmem:[#allocation6 + $0x1e8] sm:$0xff]  ;;  %v5974_v60 = vld [vmem:[#allocation6 + $0x1f0] sm:$0xff] }
 0x3c8   :  { %v1994_v55 = vsel %vm1991_vm7, %v1993_v58, %v1989_v11  ;;  %v2020_v15 = vmul.f32 %v3488_v49, %v1975_v25  ;;  %vm2011_vm11 = vcmp.eq.f32.partialorder %v2010_v57, 8.507059e+37  ;;  %v5981_v49 = vld [vmem:[#allocation6 + $0x1c0] sm:$0xff]  ;;  %v5984_v25 = vld [vmem:[#allocation6 + $0x1c8] sm:$0xff]  ;;  %v5988_v11 = vld [vmem:[#allocation6 + $0x1d0] sm:$0xff] }
 0x3c9   :  { %v2019_v54 = vmul.f32 %v2017_v62, %v1994_v55  ;;  %v2004_v36 = vmul.f32 %v3486_v53, %v2003_v3  ;;  %v5977_v62 = vld [vmem:[#allocation6 + $0x1f8] sm:$0xff]  ;;  %v6022_v57 = vld [vmem:[#allocation6 + $0x160] sm:$0xff] }
 0x3ca   :  { %v5991_v3 = vld [vmem:[#allocation6 + $0x1d8] sm:$0xff] }
 0x3cb   :  { %v5958_v13 = vadd.f32 %v2020_v15, %v2019_v54  ;;  %v2005_v2 = vadd.f32 %v3486_v53, %v2004_v36  ;;  %v5994_v15 = vld [vmem:[#allocation6 + $0x1a0] sm:$0xff]  ;;  %v5997_v54 = vld [vmem:[#allocation6 + $0x1a8] sm:$0xff]  ;;  %v6000_v36 = vld [vmem:[#allocation6 + $0x1b0] sm:$0xff] }
 0x3cd   :  { %3489 = vtanh.f32 %v5958_v13  ;;  %v2009_v52 = vsel %vm2008_vm10, %v3486_v53, %v2005_v2  ;;  %v5966_v53 = vld [vmem:[#allocation6 + $0x1e0] sm:$0xff]  ;;  %v6014_v2 = vld [vmem:[#allocation6 + $0x190] sm:$0xff] }
 0x3ce   :  { %v2014_v27 = vsel %vm2011_vm11, %v2013_v41, %v2009_v52  ;;  %v6036_v41 = vld [vmem:[#allocation6 + $0x178] sm:$0xff] }
 0x3cf   :  { %7364 = vst [vmem:[#allocation13_spill] sm:$0xff] %v6036_v41 }
 0x3d3   :  { %v3490_v34 = vpop.eup %3489 }
 0x3d4   :  { %v2023_v24 = vmul.f32 %v3490_v34, %v2014_v27  ;;  %v6041_v34 = vld [vmem:[#allocation6 + $0x140] sm:$0xff] }
 0x3d5   :  { %7365 = vst [vmem:[#allocation14_spill] sm:$0xff] %v6041_v34 }
 0x3d6   :  { %2210 = vmatmul.f32.vlgmr.msra.gmra.mxu0 %v2023_v24  ;;  %2230 = vmatmul.f32.vlgmr.msra.gmra.mxu1 %v2023_v24 }
 0x3d7   :  { %2250 = vmatmul.f32.vlgmr.msra.gmra.mxu2 %v2023_v24  ;;  %2270 = vmatmul.f32.vlgmr.msra.gmra.mxu3 %v2023_v24  ;;  %v6050_v24 = vld [vmem:[#allocation6 + $0x158] sm:$0xff] }
 0x3d8   :  { %2532 = vmatpush.msra.mxu0 %v5966_v53  ;;  %2552 = vmatpush.msra.mxu1 %v5969_v10  ;;  %7368 = vst [vmem:[#allocation17_spill] sm:$0xff] %v6050_v24 }
 0x3d9   :  { %2572 = vmatpush.msra.mxu2 %v5974_v60  ;;  %2592 = vmatpush.msra.mxu3 %v5977_v62 }
 0x3da   :  { %v2041_v16 = vpop.f32.mrf.mxu0  ;;  %v2061_v32 = vpop.f32.mrf.mxu1  ;;  %2533 = vmatpush.msra.mxu0 %v5981_v49  ;;  %2553 = vmatpush.msra.mxu1 %v5984_v25 }
 0x3db   :  { %v2108_v1 = vrot.slane %v2041_v16, 2  ;;  %v2109_v6 = vrot.slane %v2061_v32, 2  ;;  %2573 = vmatpush.msra.mxu2 %v5988_v11  ;;  %2593 = vmatpush.msra.mxu3 %v5991_v3  ;;  %v6003_v16 = vld [vmem:[#allocation6 + $0x1b8] sm:$0xff] }
 0x3dc   :  { %2534 = vmatpush.msra.mxu0 %v5994_v15  ;;  %2554 = vmatpush.msra.mxu1 %v5997_v54 }
 0x3dd   :  { %v2116_v18 = vadd.f32 %v2108_v1, %v1867_v20  ;;  %v2117_v4 = vadd.f32 %v2109_v6, %v1868_v37  ;;  %2574 = vmatpush.msra.mxu2 %v6000_v36  ;;  %2594 = vmatpush.msra.mxu3 %v6003_v16  ;;  %v6006_v1 = vld [vmem:[#allocation6 + $0x180] sm:$0xff]  ;;  %v6009_v6 = vld [vmem:[#allocation6 + $0x188] sm:$0xff] }
 0x3de   :  { %2535 = vmatpush.msra.mxu0 %v6006_v1  ;;  %2555 = vmatpush.msra.mxu1 %v6009_v6  ;;  %v1869_v20 = vld [vmem:[#allocation2 + $0x8] sm:$0xc0] }
 0x3df   :  { %v3315_v0 = vmul.f32 -1.442695, %v2116_v18  ;;  %v3316_v56 = vmul.f32 -1.442695, %v2117_v4  ;;  %2575 = vmatpush.msra.mxu2 %v6014_v2  ;;  %v6017_v18 = vld [vmem:[#allocation6 + $0x198] sm:$0xff] }
 0x3e0   :  { %2595 = vmatpush.msra.mxu3 %v6017_v18  ;;  %2536 = vmatpush.msra.mxu0 %v6022_v57 }
 0x3e1   :  { %3491 = vpow2.f32 %v3315_v0  ;;  %v2101_v19 = vpop.f32.mrf.mxu3  ;;  %v2081_v58 = vpop.f32.mrf.mxu2  ;;  %v6025_v0 = vld [vmem:[#allocation6 + $0x168] sm:$0xff] }
 0x3e2   :  { %3493 = vpow2.f32 %v3316_v56  ;;  %v2111_v50 = vrot.slane %v2101_v19, 2  ;;  %v2110_v55 = vrot.slane %v2081_v58, 2  ;;  %2556 = vmatpush.msra.mxu1 %v6025_v0  ;;  %v6033_v19 = vld [vmem:[#allocation6 + $0x170] sm:$0xff]  ;;  %2596 = vmatpush.msra.mxu3 %v6036_v41  ;;  %v6057_v58 = vld [vmem:[#allocation6 + $0x128] sm:$0xff]  ;;  %v6124_v41 = vld [vmem:[#allocation6 + $0xc0] sm:$0xff] }
 0x3e3   :  { %2576 = vmatpush.msra.mxu2 %v6033_v19  ;;  %2537 = vmatpush.msra.mxu0 %v6041_v34  ;;  %7370 = vst [vmem:[#allocation19_spill] sm:$0xff] %v6057_v58 }
 0x3e4   :  { %v2119_v51 = vadd.f32 %v2111_v50, %v1870_v43  ;;  %v2118_v14 = vadd.f32 %v2110_v55, %v1869_v20  ;;  %v6044_v43 = vld [vmem:[#allocation6 + $0x148] sm:$0xff]  ;;  %2597 = vmatpush.msra.mxu3 %v6050_v24 }
 0x3e5   :  { %7366 = vst [vmem:[#allocation15_spill] sm:$0xff] %v6044_v43  ;;  %2557 = vmatpush.msra.mxu1 %v6044_v43  ;;  %v6115_v43 = vld [vmem:[#allocation6 + $0xf0] sm:$0xff] }
 0x3e6   :  { %v3317_v8 = vmul.f32 -1.442695, %v2119_v51  ;;  %v6047_v51 = vld [vmem:[#allocation6 + $0x150] sm:$0xff] }
 0x3e7   :  { %v3492_v48 = vpop.eup %3491  ;;  %7367 = vst [vmem:[#allocation16_spill] sm:$0xff] %v6047_v51  ;;  %2577 = vmatpush.msra.mxu2 %v6047_v51  ;;  %2558 = vmatpush.msra.mxu1 %v6057_v58  ;;  %v6099_v51 = vld [vmem:[#allocation6 + $0xe0] sm:$0xff] }
 0x3e8   :  { %v3494_v7 = vpop.eup %3493  ;;  %v5964_v44 = vadd.f32 1.0, %v3492_v48  ;;  %3495 = vpow2.f32 %v3317_v8  ;;  %7379 = vst [vmem:[#allocation26_spill] sm:$0xff] %v6099_v51 }
 0x3e9   :  { %v5972_v5 = vadd.f32 1.0, %v3494_v7  ;;  %v6054_v7 = vld [vmem:[#allocation6 + $0x120] sm:$0xff] }
 0x3ea   :  { %3497 = vrcp.f32 %v5964_v44  ;;  %v2135_v48 = vand.u32 2147483648, %v5964_v44  ;;  %7369 = vst [vmem:[#allocation18_spill] sm:$0xff] %v6054_v7  ;;  %2538 = vmatpush.msra.mxu0 %v6054_v7  ;;  %v2133_v20 = vand.u32 2147483647, %v5964_v44  ;;  %v6073_v7 = vld [vmem:[#allocation6 + $0x100] sm:$0xff]  ;;  %vm2129_vm14 = vweird.f32 %v5964_v44 }
 0x3eb   :  { %3499 = vrcp.f32 %v5972_v5  ;;  %v2154_v55 = vand.u32 2147483648, %v5972_v5  ;;  %v2152_v58 = vand.u32 2147483647, %v5972_v5  ;;  %7373 = vst [vmem:[#allocation22_spill] sm:$0xff] %v6073_v7  ;;  %vm2148_vm15 = vweird.f32 %v5972_v5 }
 0x3ec   :  { %2539 = vmatpush.msra.mxu0 %v6073_v7  ;;  %v2136_v7 = vor.u32 1.1754944e-38, %v2135_v48  ;;  %vm2134_vm2 = vcmp.eq.f32.partialorder %v2133_v20, 8.507059e+37 }
 0x3ed   :  { %v2155_v48 = vor.u32 1.1754944e-38, %v2154_v55  ;;  %vm2153_vm3 = vcmp.eq.f32.partialorder %v2152_v58, 8.507059e+37 }
 0x3ee   :  { %v3496_v32 = vpop.eup %3495  ;;  %2540 = vmatpush.msra.mxu0 %v6099_v51  ;;  %v6118_v51 = vld [vmem:[#allocation6 + $0xf8] sm:$0xff] }
 0x3ef   :  { %v6012_v37 = vadd.f32 1.0, %v3496_v32 }
 0x3f0   :  { %v6020_v4 = vpop.eup %3497  ;;  %2541 = vmatpush.msra.mxu0 %v6124_v41 }
 0x3f1   :  { %v6028_v56 = vpop.eup %3499  ;;  %v2125_v52 = vmul.f32 %v6020_v4, %v5964_v44  ;;  %3501 = vrcp.f32 %v6012_v37  ;;  %vm2130_vm12 = vweird.f32 %v6020_v4  ;;  %vm2168_vm5 = vweird.f32 %v6012_v37 }
 0x3f2   :  { %v2144_v50 = vmul.f32 %v6028_v56, %v5972_v5  ;;  %3503 = vtanh.f32 %v2118_v14  ;;  %v6067_v14 = vld [vmem:[#allocation6 + $0x138] sm:$0xff]  ;;  %vm2149_vm13 = vweird.f32 %v6028_v56  ;;  %vm6092_vm0 = vmor %vm2129_vm14, %vm2130_vm12  ;;  %v2179_v5 = vrot.slane %v5812_v61, 2 }
 0x3f3   :  { %v2126_v27 = vsub.f32 1.0, %v2125_v52  ;;  %v6064_v52 = vld [vmem:[#allocation6 + $0x130] sm:$0xff]  ;;  %7372 = vst [vmem:[#allocation21_spill] sm:$0xff] %v6067_v14  ;;  %2598 = vmatpush.msra.mxu3 %v6067_v14  ;;  %vm6108_vm1 = vmor %vm2148_vm15, %vm2149_vm13 }
 0x3f4   :  { %v2145_v8 = vsub.f32 1.0, %v2144_v50  ;;  %7371 = vst [vmem:[#allocation20_spill] sm:$0xff] %v6064_v52  ;;  %2578 = vmatpush.msra.mxu2 %v6064_v52  ;;  %v6083_v14 = vld [vmem:[#allocation6 + $0x110] sm:$0xff] }
 0x3f5   :  { %v2127_v32 = vmul.f32 %v6020_v4, %v2126_v27  ;;  %v6076_v27 = vld [vmem:[#allocation6 + $0x108] sm:$0xff]  ;;  %7375 = vst [vmem:[#allocation24_spill] sm:$0xff] %v6083_v14 }
 0x3f6   :  { %v2146_v50 = vmul.f32 %v6028_v56, %v2145_v8  ;;  %7374 = vst [vmem:[#allocation23_spill] sm:$0xff] %v6076_v27  ;;  %2559 = vmatpush.msra.mxu1 %v6076_v27  ;;  %2579 = vmatpush.msra.mxu2 %v6083_v14  ;;  %v6086_v8 = vld [vmem:[#allocation6 + $0x118] sm:$0xff]  ;;  %v6102_v14 = vld [vmem:[#allocation6 + $0xe8] sm:$0xff]  ;;  %v6130_v27 = vld [vmem:[#allocation6 + $0xd0] sm:$0xff] }
 0x3f7   :  { %v6079_v24 = vpop.eup %3501  ;;  %v2128_v52 = vadd.f32 %v6020_v4, %v2127_v32  ;;  %7376 = vst [vmem:[#allocation25_spill] sm:$0xff] %v6086_v8  ;;  %2599 = vmatpush.msra.mxu3 %v6086_v8  ;;  %v6137_v8 = vld [vmem:[#allocation6 + $0xa0] sm:$0xff] }
 0x3f8   :  { %v2147_v32 = vadd.f32 %v6028_v56, %v2146_v50  ;;  %v2164_v44 = vmul.f32 %v6079_v24, %v6012_v37  ;;  %7380 = vst [vmem:[#allocation28_spill] sm:$0xff] %v6102_v14  ;;  %2560 = vmatpush.msra.mxu1 %v6102_v14  ;;  %2580 = vmatpush.msra.mxu2 %v6115_v43  ;;  %v3504_v61 = vpop.eup %3503  ;;  %vm2169_vm4 = vweird.f32 %v6079_v24 }
 0x3f9   :  { %v2132_v50 = vsel %vm6092_vm0, %v6020_v4, %v2128_v52  ;;  %2600 = vmatpush.msra.mxu3 %v6118_v51  ;;  %v6127_v4 = vld [vmem:[#allocation6 + $0xc8] sm:$0xff]  ;;  %2542 = vmatpush.msra.mxu0 %v6137_v8  ;;  %vm6183_vm6 = vmor %vm2168_vm5, %vm2169_vm4 }
 0x3fa   :  { %v2137_v14 = vsel %vm2134_vm2, %v2136_v7, %v2132_v50  ;;  %v2151_v34 = vsel %vm6108_vm1, %v6028_v56, %v2147_v32  ;;  %v2165_v55 = vsub.f32 1.0, %v2164_v44  ;;  %2561 = vmatpush.msra.mxu1 %v6127_v4  ;;  %2581 = vmatpush.msra.mxu2 %v6130_v27  ;;  %v6133_v7 = vld [vmem:[#allocation6 + $0xd8] sm:$0xff]  ;;  %v6140_v32 = vld [vmem:[#allocation6 + $0xa8] sm:$0xff] }
 0x3fb   :  { %v2156_v20 = vsel %vm2153_vm3, %v2155_v48, %v2151_v34  ;;  %v2182_v52 = vmul.f32 %v3504_v61, %v2137_v14  ;;  %2601 = vmatpush.msra.mxu3 %v6133_v7  ;;  %v6143_v34 = vld [vmem:[#allocation6 + $0xb0] sm:$0xff]  ;;  %v6146_v14 = vld [vmem:[#allocation6 + $0xb8] sm:$0xff]  ;;  %v6154_v48 = vld [vmem:[#allocation6 + $0x88] sm:$0xff] }
 0x3fc   :  { %v2181_v56 = vmul.f32 %v2179_v5, %v2156_v20  ;;  %v2166_v58 = vmul.f32 %v6079_v24, %v2165_v55  ;;  %2562 = vmatpush.msra.mxu1 %v6140_v32  ;;  %2582 = vmatpush.msra.mxu2 %v6143_v34  ;;  %7383 = vst [vmem:[#allocation27_spill] sm:$0xff] %v6146_v14  ;;  %v6151_v5 = vld [vmem:[#allocation6 + $0x80] sm:$0xff]  ;;  %v6159_v61 = vld [vmem:[#allocation6 + $0x90] sm:$0xff]  ;;  %v6162_v55 = vld [vmem:[#allocation6 + $0x98] sm:$0xff]  ;;  %v2174_v20 = vand.u32 2147483648, %v6012_v37 }
 0x3fd   :  { %2602 = vmatpush.msra.mxu3 %v6146_v14  ;;  %7384 = vst [vmem:[#allocation29_spill] sm:$0xff] %v6151_v5  ;;  %2543 = vmatpush.msra.mxu0 %v6151_v5  ;;  %v6202_v14 = vld [vmem:[#allocation6 + $0x20] sm:$0xff] }
 0x3fe   :  { %v6149_v44 = vadd.f32 %v2182_v52, %v2181_v56  ;;  %7385 = vst [vmem:[#allocation30_spill] sm:$0xff] %v6154_v48  ;;  %2563 = vmatpush.msra.mxu1 %v6154_v48  ;;  %v2167_v50 = vadd.f32 %v6079_v24, %v2166_v58  ;;  %2583 = vmatpush.msra.mxu2 %v6159_v61  ;;  %v6167_v52 = vld [vmem:[#allocation6 + $0x60] sm:$0xff]  ;;  %v6170_v56 = vld [vmem:[#allocation6 + $0x68] sm:$0xff]  ;;  %v2172_v58 = vand.u32 2147483647, %v6012_v37  ;;  %v2175_v5 = vor.u32 1.1754944e-38, %v2174_v20 }
 0x3ff   :  { %7386 = vst [vmem:[#allocation32_spill] sm:$0xff] %v6159_v61  ;;  %2603 = vmatpush.msra.mxu3 %v6162_v55  ;;  %2544 = vmatpush.msra.mxu0 %v6167_v52  ;;  %v6175_v61 = vld [vmem:[#allocation6 + $0x70] sm:$0xff]  ;;  %v6187_v48 = vld [vmem:[#allocation6 + $0x40] sm:$0xff] }
 0x400   :  { %7387 = vst [vmem:[#allocation31_spill] sm:$0xff] %v6162_v55  ;;  %3505 = vtanh.f32 %v6149_v44  ;;  %2564 = vmatpush.msra.mxu1 %v6170_v56  ;;  %2584 = vmatpush.msra.mxu2 %v6175_v61  ;;  %v6178_v55 = vld [vmem:[#allocation6 + $0x78] sm:$0xff]  ;;  %v2171_v37 = vsel %vm6183_vm6, %v6079_v24, %v2167_v50  ;;  %vm2173_vm7 = vcmp.eq.f32.partialorder %v2172_v58, 8.507059e+37  ;;  %v6214_v20 = vld [vmem:[#allocation6] sm:$0xff]  ;;  %v6220_v58 = vld [vmem:[#allocation6 + $0x10] sm:$0xff] }
 0x401   :  { %7388 = vst [vmem:[#allocation33_spill] sm:$0xff] %v6167_v52  ;;  %2604 = vmatpush.msra.mxu3 %v6178_v55  ;;  %2545 = vmatpush.msra.mxu0 %v6187_v48  ;;  %v6208_v52 = vld [vmem:[#allocation6 + $0x30] sm:$0xff]  ;;  %v6211_v24 = vld [vmem:[#allocation6 + $0x38] sm:$0xff] }
 0x402   :  { %7389 = vst [vmem:[#allocation34_spill] sm:$0xff] %v6170_v56  ;;  %v6190_v56 = vld [vmem:[#allocation6 + $0x48] sm:$0xff] }
 0x403   :  { %7390 = vst [vmem:[#allocation36_spill] sm:$0xff] %v6175_v61  ;;  %2565 = vmatpush.msra.mxu1 %v6190_v56  ;;  %v6196_v61 = vld [vmem:[#allocation6 + $0x50] sm:$0xff]  ;;  %2546 = vmatpush.msra.mxu0 %v6202_v14 }
 0x404   :  { %7391 = vst [vmem:[#allocation35_spill] sm:$0xff] %v6178_v55  ;;  %2585 = vmatpush.msra.mxu2 %v6196_v61  ;;  %v6199_v55 = vld [vmem:[#allocation6 + $0x58] sm:$0xff] }
 0x405   :  { %7394 = vst [vmem:[#allocation37_spill] sm:$0xff] %v6187_v48  ;;  %2605 = vmatpush.msra.mxu3 %v6199_v55  ;;  %v6205_v48 = vld [vmem:[#allocation6 + $0x28] sm:$0xff]  ;;  %2547 = vmatpush.msra.mxu0 %v6214_v20 }
 0x406   :  { %7395 = vst [vmem:[#allocation38_spill] sm:$0xff] %v6199_v55  ;;  %2566 = vmatpush.msra.mxu1 %v6205_v48  ;;  %2586 = vmatpush.msra.mxu2 %v6208_v52  ;;  %v3506_v50 = vpop.eup %3505  ;;  %v2176_v55 = vsel %vm2173_vm7, %v2175_v5, %v2171_v37  ;;  %v6226_v5 = vld [vmem:[#allocation8 + $0x1e0] sm:$0xff]  ;;  %v6229_v37 = vld [vmem:[#allocation8 + $0x1e8] sm:$0xff] }
 0x407   :  { %7396 = vst [vmem:[#allocation40_spill] sm:$0xff] %v6202_v14  ;;  %2606 = vmatpush.msra.mxu3 %v6211_v24  ;;  %v6217_v14 = vld [vmem:[#allocation6 + $0x8] sm:$0xff] }
 0x408   :  { %7397 = vst [vmem:[#allocation39_spill] sm:$0xff] %v6205_v48  ;;  %2567 = vmatpush.msra.mxu1 %v6217_v14  ;;  %v2185_v48 = vmul.f32 %v3506_v50, %v2176_v55  ;;  %2587 = vmatpush.msra.mxu2 %v6220_v58  ;;  %v6232_v55 = vld [vmem:[#allocation8 + $0x1f0] sm:$0xff]  ;;  %v6235_v50 = vld [vmem:[#allocation8 + $0x1f8] sm:$0xff] }
 0x409   :  { %7398 = vst [vmem:[#allocation41_spill] sm:$0xff] %v6208_v52  ;;  %v6223_v52 = vld [vmem:[#allocation6 + $0x18] sm:$0xff] }
 0x40a   :  { %7399 = vst [vmem:[#allocation42_spill] sm:$0xff] %v6211_v24  ;;  %2607 = vmatpush.msra.mxu3 %v6223_v52  ;;  %v2357_v24 = vrot.slane %v2185_v48, 6  ;;  %v6238_v48 = vld [vmem:[#allocation8 + $0x1c0] sm:$0xff] }
 0x40b   :  { %7400 = vst [vmem:[#allocation44_spill] sm:$0xff] %v6226_v5 }
 0x40c   :  { %2375 = vmatmul.f32.vlgmr.msrb.gmra.mxu0 %v2357_v24  ;;  %2395 = vmatmul.f32.vlgmr.msrb.gmra.mxu1 %v2357_v24  ;;  %7401 = vst [vmem:[#allocation43_spill] sm:$0xff] %v6229_v37 }
 0x40d   :  { %2415 = vmatmul.f32.vlgmr.msrb.gmra.mxu2 %v2357_v24  ;;  %2435 = vmatmul.f32.vlgmr.msrb.gmra.mxu3 %v2357_v24  ;;  %7402 = vst [vmem:[#allocation45_spill] sm:$0xff] %v6232_v55  ;;  %v6241_v24 = vld [vmem:[#allocation8 + $0x1c8] sm:$0xff] }
 0x40e   :  { %2697 = vmatpush.msrb.mxu0 %v6226_v5  ;;  %2717 = vmatpush.msrb.mxu1 %v6229_v37  ;;  %7403 = vst [vmem:[#allocation46_spill] sm:$0xff] %v6235_v50  ;;  %v6244_v5 = vld [vmem:[#allocation8 + $0x1d0] sm:$0xff]  ;;  %v6247_v37 = vld [vmem:[#allocation8 + $0x1d8] sm:$0xff] }
 0x40f   :  { %2737 = vmatpush.msrb.mxu2 %v6232_v55  ;;  %2757 = vmatpush.msrb.mxu3 %v6235_v50  ;;  %7404 = vst [vmem:[#allocation48_spill] sm:$0xff] %v6238_v48  ;;  %v6250_v55 = vld [vmem:[#allocation8 + $0x1a0] sm:$0xff]  ;;  %v6253_v50 = vld [vmem:[#allocation8 + $0x1a8] sm:$0xff] }
 0x410   :  { %2698 = vmatpush.msrb.mxu0 %v6238_v48  ;;  %7405 = vst [vmem:[#allocation47_spill] sm:$0xff] %v6241_v24  ;;  %2718 = vmatpush.msrb.mxu1 %v6241_v24  ;;  %v6256_v48 = vld [vmem:[#allocation8 + $0x1b0] sm:$0xff]  ;;  %v6259_v24 = vld [vmem:[#allocation8 + $0x1b8] sm:$0xff] }
 0x411   :  { %7406 = vst [vmem:[#allocation49_spill] sm:$0xff] %v6244_v5  ;;  %2738 = vmatpush.msrb.mxu2 %v6244_v5  ;;  %2758 = vmatpush.msrb.mxu3 %v6247_v37  ;;  %v6262_v5 = vld [vmem:[#allocation8 + $0x180] sm:$0xff] }
 0x412   :  { %7407 = vst [vmem:[#allocation50_spill] sm:$0xff] %v6247_v37  ;;  %2699 = vmatpush.msrb.mxu0 %v6250_v55  ;;  %2719 = vmatpush.msrb.mxu1 %v6253_v50  ;;  %v6265_v37 = vld [vmem:[#allocation8 + $0x188] sm:$0xff] }
 0x413   :  { %7408 = vst [vmem:[#allocation52_spill] sm:$0xff] %v6250_v55  ;;  %2739 = vmatpush.msrb.mxu2 %v6256_v48  ;;  %2759 = vmatpush.msrb.mxu3 %v6259_v24  ;;  %v6268_v55 = vld [vmem:[#allocation8 + $0x190] sm:$0xff] }
 0x414   :  { %7409 = vst [vmem:[#allocation51_spill] sm:$0xff] %v6253_v50  ;;  %2700 = vmatpush.msrb.mxu0 %v6262_v5  ;;  %2720 = vmatpush.msrb.mxu1 %v6265_v37  ;;  %v6271_v50 = vld [vmem:[#allocation8 + $0x198] sm:$0xff] }
 0x415   :  { %7410 = vst [vmem:[#allocation53_spill] sm:$0xff] %v6256_v48  ;;  %2740 = vmatpush.msrb.mxu2 %v6268_v55  ;;  %2760 = vmatpush.msrb.mxu3 %v6271_v50  ;;  %v6274_v48 = vld [vmem:[#allocation8 + $0x160] sm:$0xff] }
 0x416   :  { %7411 = vst [vmem:[#allocation54_spill] sm:$0xff] %v6259_v24  ;;  %2701 = vmatpush.msrb.mxu0 %v6274_v48  ;;  %v6277_v24 = vld [vmem:[#allocation8 + $0x168] sm:$0xff] }
 0x417   :  { %7412 = vst [vmem:[#allocation56_spill] sm:$0xff] %v6262_v5  ;;  %2721 = vmatpush.msrb.mxu1 %v6277_v24  ;;  %v6280_v5 = vld [vmem:[#allocation8 + $0x170] sm:$0xff] }
 0x418   :  { %7413 = vst [vmem:[#allocation55_spill] sm:$0xff] %v6265_v37  ;;  %2741 = vmatpush.msrb.mxu2 %v6280_v5  ;;  %v6283_v37 = vld [vmem:[#allocation8 + $0x178] sm:$0xff] }
 0x419   :  { %7414 = vst [vmem:[#allocation57_spill] sm:$0xff] %v6268_v55  ;;  %2761 = vmatpush.msrb.mxu3 %v6283_v37  ;;  %v6286_v55 = vld [vmem:[#allocation8 + $0x140] sm:$0xff] }
 0x41a   :  { %7415 = vst [vmem:[#allocation58_spill] sm:$0xff] %v6271_v50  ;;  %2702 = vmatpush.msrb.mxu0 %v6286_v55  ;;  %v6289_v50 = vld [vmem:[#allocation8 + $0x148] sm:$0xff] }
 0x41b   :  { %7416 = vst [vmem:[#allocation60_spill] sm:$0xff] %v6274_v48  ;;  %2722 = vmatpush.msrb.mxu1 %v6289_v50  ;;  %v6292_v48 = vld [vmem:[#allocation8 + $0x150] sm:$0xff] }
 0x41c   :  { %7417 = vst [vmem:[#allocation59_spill] sm:$0xff] %v6277_v24  ;;  %2742 = vmatpush.msrb.mxu2 %v6292_v48  ;;  %v6295_v24 = vld [vmem:[#allocation8 + $0x158] sm:$0xff] }
 0x41d   :  { %7418 = vst [vmem:[#allocation61_spill] sm:$0xff] %v6280_v5  ;;  %2762 = vmatpush.msrb.mxu3 %v6295_v24  ;;  %v6298_v5 = vld [vmem:[#allocation8 + $0x120] sm:$0xff] }
 0x41e   :  { %7419 = vst [vmem:[#allocation62_spill] sm:$0xff] %v6283_v37  ;;  %2703 = vmatpush.msrb.mxu0 %v6298_v5  ;;  %v6301_v37 = vld [vmem:[#allocation8 + $0x128] sm:$0xff] }
 0x41f   :  { %7420 = vst [vmem:[#allocation64_spill] sm:$0xff] %v6286_v55  ;;  %2723 = vmatpush.msrb.mxu1 %v6301_v37  ;;  %v6304_v55 = vld [vmem:[#allocation8 + $0x130] sm:$0xff] }
 0x420   :  { %7421 = vst [vmem:[#allocation63_spill] sm:$0xff] %v6289_v50  ;;  %2743 = vmatpush.msrb.mxu2 %v6304_v55  ;;  %v6307_v50 = vld [vmem:[#allocation8 + $0x138] sm:$0xff] }
 0x421   :  { %7422 = vst [vmem:[#allocation65_spill] sm:$0xff] %v6292_v48  ;;  %2763 = vmatpush.msrb.mxu3 %v6307_v50  ;;  %v6310_v48 = vld [vmem:[#allocation8 + $0x100] sm:$0xff] }
 0x422   :  { %7423 = vst [vmem:[#allocation66_spill] sm:$0xff] %v6295_v24  ;;  %2704 = vmatpush.msrb.mxu0 %v6310_v48  ;;  %v6313_v24 = vld [vmem:[#allocation8 + $0x108] sm:$0xff] }
 0x423   :  { %7424 = vst [vmem:[#allocation68_spill] sm:$0xff] %v6298_v5  ;;  %2724 = vmatpush.msrb.mxu1 %v6313_v24  ;;  %v6316_v5 = vld [vmem:[#allocation8 + $0x110] sm:$0xff] }
 0x424   :  { %7425 = vst [vmem:[#allocation67_spill] sm:$0xff] %v6301_v37  ;;  %2744 = vmatpush.msrb.mxu2 %v6316_v5  ;;  %v6319_v37 = vld [vmem:[#allocation8 + $0x118] sm:$0xff] }
 0x425   :  { %7426 = vst [vmem:[#allocation69_spill] sm:$0xff] %v6304_v55  ;;  %2764 = vmatpush.msrb.mxu3 %v6319_v37  ;;  %v6322_v55 = vld [vmem:[#allocation8 + $0xe0] sm:$0xff] }
 0x426   :  { %7427 = vst [vmem:[#allocation70_spill] sm:$0xff] %v6307_v50  ;;  %2705 = vmatpush.msrb.mxu0 %v6322_v55  ;;  %v6325_v50 = vld [vmem:[#allocation8 + $0xe8] sm:$0xff] }
 0x427   :  { %7428 = vst [vmem:[#allocation72_spill] sm:$0xff] %v6310_v48  ;;  %2725 = vmatpush.msrb.mxu1 %v6325_v50  ;;  %v6328_v48 = vld [vmem:[#allocation8 + $0xf0] sm:$0xff] }
 0x428   :  { %7429 = vst [vmem:[#allocation71_spill] sm:$0xff] %v6313_v24  ;;  %2745 = vmatpush.msrb.mxu2 %v6328_v48  ;;  %v6331_v24 = vld [vmem:[#allocation8 + $0xf8] sm:$0xff] }
 0x429   :  { %7430 = vst [vmem:[#allocation73_spill] sm:$0xff] %v6316_v5  ;;  %2765 = vmatpush.msrb.mxu3 %v6331_v24  ;;  %v6334_v5 = vld [vmem:[#allocation8 + $0xc0] sm:$0xff] }
 0x42a   :  { %7431 = vst [vmem:[#allocation74_spill] sm:$0xff] %v6319_v37  ;;  %2706 = vmatpush.msrb.mxu0 %v6334_v5  ;;  %v6337_v37 = vld [vmem:[#allocation8 + $0xc8] sm:$0xff] }
 0x42b   :  { %7432 = vst [vmem:[#allocation75_spill] sm:$0xff] %v6322_v55  ;;  %2726 = vmatpush.msrb.mxu1 %v6337_v37  ;;  %v6340_v55 = vld [vmem:[#allocation8 + $0xd0] sm:$0xff] }
 0x42c   :  { %7433 = vst [vmem:[#allocation76_spill] sm:$0xff] %v6325_v50  ;;  %2746 = vmatpush.msrb.mxu2 %v6340_v55  ;;  %v6343_v50 = vld [vmem:[#allocation8 + $0xd8] sm:$0xff] }
 0x42d   :  { %7434 = vst [vmem:[#allocation77_spill] sm:$0xff] %v6328_v48  ;;  %2766 = vmatpush.msrb.mxu3 %v6343_v50  ;;  %v6346_v48 = vld [vmem:[#allocation8 + $0xa0] sm:$0xff] }
 0x42e   :  { %7435 = vst [vmem:[#allocation78_spill] sm:$0xff] %v6331_v24  ;;  %2707 = vmatpush.msrb.mxu0 %v6346_v48  ;;  %v6349_v24 = vld [vmem:[#allocation8 + $0xa8] sm:$0xff]  ;;  %2747 = vmatpush.msrb.mxu2 %v5887_v28 }
 0x42f   :  { %7436 = vst [vmem:[#allocation79_spill] sm:$0xff] %v6340_v55  ;;  %2727 = vmatpush.msrb.mxu1 %v6349_v24  ;;  %2767 = vmatpush.msrb.mxu3 %v5890_v63 }
 0x430   :  { %7437 = vst [vmem:[#allocation80_spill] sm:$0xff] %v6343_v50  ;;  %2708 = vmatpush.msrb.mxu0 %v5893_v26  ;;  %2748 = vmatpush.msrb.mxu2 %v5899_v47  ;;  %v2186_v47 = vld [vmem:[#allocation2 + $0x40] sm:$0xc] }
 0x431   :  { %7438 = vst [vmem:[#allocation81_spill] sm:$0xff] %v6346_v48  ;;  %2728 = vmatpush.msrb.mxu1 %v5896_v35  ;;  %2768 = vmatpush.msrb.mxu3 %v5902_v21  ;;  %v2187_v21 = vld [vmem:[#allocation2 + $0x20] sm:$0xc] }
 0x432   :  { %7439 = vst [vmem:[#allocation82_spill] sm:$0xff] %v6349_v24  ;;  %2709 = vmatpush.msrb.mxu0 %v5905_v46  ;;  %2749 = vmatpush.msrb.mxu2 %v5911_v9 }
 0x433   :  { %2729 = vmatpush.msrb.mxu1 %v5908_v29  ;;  %2769 = vmatpush.msrb.mxu3 %v5914_v42 }
 0x434   :  { %2710 = vmatpush.msrb.mxu0 %v5917_v33  ;;  %2750 = vmatpush.msrb.mxu2 %v5923_v38  ;;  %v2189_v38 = vld [vmem:[#allocation2 + $0x38] sm:$0xc] }
 0x435   :  { %2730 = vmatpush.msrb.mxu1 %v5920_v31  ;;  %2770 = vmatpush.msrb.mxu3 %v5926_v30 }
 0x436   :  { %2711 = vmatpush.msrb.mxu0 %v5929_v39  ;;  %2751 = vmatpush.msrb.mxu2 %v5935_v59 }
 0x437   :  { %2731 = vmatpush.msrb.mxu1 %v5932_v17  ;;  %2771 = vmatpush.msrb.mxu3 %v5938_v22 }
 0x438   :  { %2712 = vmatpush.msrb.mxu0 %v5941_v12  ;;  %2752 = vmatpush.msrb.mxu2 %v5947_v45 }
 0x439   :  { %2732 = vmatpush.msrb.mxu1 %v5944_v23  ;;  %2772 = vmatpush.msrb.mxu3 %v5950_v40 }
 0x453   :  { %v2211_v28 = vpop.f32.mrf.mxu0  ;;  %v2231_v63 = vpop.f32.mrf.mxu1 }
 0x454   :  { %v2278_v26 = vrot.slane %v2211_v28, 6  ;;  %v2279_v35 = vrot.slane %v2231_v63, 6  ;;  %v2188_v28 = vld [vmem:[#allocation2 + $0x10] sm:$0xc] }
 0x456   :  { %v2286_v46 = vadd.f32 %v2278_v26, %v2186_v47  ;;  %v2287_v29 = vadd.f32 %v2279_v35, %v2187_v21 }
 0x458   :  { %v3318_v9 = vmul.f32 -1.442695, %v2286_v46  ;;  %v3319_v42 = vmul.f32 -1.442695, %v2287_v29 }
 0x45a   :  { %3507 = vpow2.f32 %v3318_v9  ;;  %v2271_v33 = vpop.f32.mrf.mxu3  ;;  %v2251_v23 = vpop.f32.mrf.mxu2 }
 0x45b   :  { %3509 = vpow2.f32 %v3319_v42  ;;  %v2281_v31 = vrot.slane %v2271_v33, 6  ;;  %v2280_v45 = vrot.slane %v2251_v23, 6 }
 0x45d   :  { %v2289_v30 = vadd.f32 %v2281_v31, %v2189_v38  ;;  %v2288_v35 = vadd.f32 %v2280_v45, %v2188_v28  ;;  %v2349_v28 = vrot.slane %v5958_v13, 6 }
 0x45f   :  { %v3320_v39 = vmul.f32 -1.442695, %v2289_v30 }
 0x460   :  { %v3508_v17 = vpop.eup %3507 }
 0x461   :  { %v3510_v59 = vpop.eup %3509  ;;  %v2293_v22 = vadd.f32 1.0, %v3508_v17  ;;  %3511 = vpow2.f32 %v3320_v39 }
 0x462   :  { %v2312_v12 = vadd.f32 1.0, %v3510_v59 }
 0x463   :  { %3513 = vrcp.f32 %v2293_v22  ;;  %v2305_v42 = vand.u32 2147483648, %v2293_v22  ;;  %v2303_v38 = vand.u32 2147483647, %v2293_v22  ;;  %vm2299_vm10 = vweird.f32 %v2293_v22 }
 0x464   :  { %3515 = vrcp.f32 %v2312_v12  ;;  %v2324_v33 = vand.u32 2147483648, %v2312_v12  ;;  %v2322_v39 = vand.u32 2147483647, %v2312_v12  ;;  %vm2318_vm11 = vweird.f32 %v2312_v12 }
 0x465   :  { %v2306_v23 = vor.u32 1.1754944e-38, %v2305_v42  ;;  %vm2304_vm14 = vcmp.eq.f32.partialorder %v2303_v38, 8.507059e+37  ;;  %v2190_v38 = vld [vmem:[#allocation2 + $0x50] sm:$0x30] }
 0x466   :  { %vm2323_vm15 = vcmp.eq.f32.partialorder %v2322_v39, 8.507059e+37 }
 0x467   :  { %v3512_v40 = vpop.eup %3511 }
 0x468   :  { %v2332_v63 = vadd.f32 1.0, %v3512_v40 }
 0x469   :  { %v3514_v26 = vpop.eup %3513 }
 0x46a   :  { %v3516_v47 = vpop.eup %3515  ;;  %v2295_v21 = vmul.f32 %v3514_v26, %v2293_v22  ;;  %3517 = vrcp.f32 %v2332_v63  ;;  %vm2300_vm8 = vweird.f32 %v3514_v26  ;;  %vm2338_vm1 = vweird.f32 %v2332_v63 }
 0x46b   :  { %v2314_v46 = vmul.f32 %v3516_v47, %v2312_v12  ;;  %3519 = vtanh.f32 %v2288_v35  ;;  %vm2319_vm9 = vweird.f32 %v3516_v47  ;;  %vm2301_vm12 = vmor %vm2299_vm10, %vm2300_vm8 }
 0x46c   :  { %v2296_v29 = vsub.f32 1.0, %v2295_v21  ;;  %vm2320_vm13 = vmor %vm2318_vm11, %vm2319_vm9  ;;  %v2325_v21 = vor.u32 1.1754944e-38, %v2324_v33  ;;  %v2344_v33 = vand.u32 2147483648, %v2332_v63 }
 0x46d   :  { %v2315_v9 = vsub.f32 1.0, %v2314_v46 }
 0x46e   :  { %v2297_v31 = vmul.f32 %v3514_v26, %v2296_v29 }
 0x46f   :  { %v2316_v30 = vmul.f32 %v3516_v47, %v2315_v9 }
 0x470   :  { %v3518_v17 = vpop.eup %3517  ;;  %v2298_v59 = vadd.f32 %v3514_v26, %v2297_v31 }
 0x471   :  { %v2317_v45 = vadd.f32 %v3516_v47, %v2316_v30  ;;  %v2334_v40 = vmul.f32 %v3518_v17, %v2332_v63  ;;  %v3520_v46 = vpop.eup %3519  ;;  %vm2339_vm0 = vweird.f32 %v3518_v17 }
 0x472   :  { %v2302_v35 = vsel %vm2301_vm12, %v3514_v26, %v2298_v59  ;;  %v2191_v59 = vld [vmem:[#allocation2 + $0x68] sm:$0x30]  ;;  %vm2340_vm2 = vmor %vm2338_vm1, %vm2339_vm0 }
 0x473   :  { %v2307_v29 = vsel %vm2304_vm14, %v2306_v23, %v2302_v35  ;;  %v2321_v24 = vsel %vm2320_vm13, %v3516_v47, %v2317_v45  ;;  %v2335_v9 = vsub.f32 1.0, %v2334_v40  ;;  %v2342_v47 = vand.u32 2147483647, %v2332_v63 }
 0x474   :  { %v2326_v48 = vsel %vm2323_vm15, %v2325_v21, %v2321_v24  ;;  %v2352_v50 = vmul.f32 %v3520_v46, %v2307_v29  ;;  %v2345_v45 = vor.u32 1.1754944e-38, %v2344_v33  ;;  %v2193_v29 = vld [vmem:[#allocation2 + $0x48] sm:$0x30] }
 0x475   :  { %v2351_v31 = vmul.f32 %v2349_v28, %v2326_v48  ;;  %v2336_v22 = vmul.f32 %v3518_v17, %v2335_v9  ;;  %vm2343_vm3 = vcmp.eq.f32.partialorder %v2342_v47, 8.507059e+37 }
 0x477   :  { %v6375_v12 = vadd.f32 %v2352_v50, %v2351_v31  ;;  %v2337_v55 = vadd.f32 %v3518_v17, %v2336_v22 }
 0x479   :  { %3521 = vtanh.f32 %v6375_v12  ;;  %v2341_v48 = vsel %vm2340_vm2, %v3518_v17, %v2337_v55 }
 0x47a   :  { %v2346_v21 = vsel %vm2343_vm3, %v2345_v45, %v2341_v48  ;;  %v7450_v48 = vld [vmem:[#allocation23_spill] sm:$0xff]  ;;  %v7451_v45 = vld [vmem:[#allocation24_spill] sm:$0xff] }
 0x47f   :  { %v3522_v40 = vpop.eup %3521 }
 0x480   :  { %v2355_v46 = vmul.f32 %v3522_v40, %v2346_v21  ;;  %v7452_v40 = vld [vmem:[#allocation25_spill] sm:$0xff] }
 0x482   :  { %v2530_v31 = vrot.slane %v2355_v46, 2  ;;  %v7453_v46 = vld [vmem:[#allocation26_spill] sm:$0xff] }
 0x484   :  { %2548 = vmatmul.f32.vlgmr.msra.gmra.mxu0 %v2530_v31  ;;  %2568 = vmatmul.f32.vlgmr.msra.gmra.mxu1 %v2530_v31 }
 0x485   :  { %2588 = vmatmul.f32.vlgmr.msra.gmra.mxu2 %v2530_v31  ;;  %2608 = vmatmul.f32.vlgmr.msra.gmra.mxu3 %v2530_v31 }
 0x486   :  { %2870 = vmatpush.msra.mxu0 %v5966_v53  ;;  %2890 = vmatpush.msra.mxu1 %v5969_v10 }
 0x487   :  { %2910 = vmatpush.msra.mxu2 %v5974_v60  ;;  %2930 = vmatpush.msra.mxu3 %v5977_v62  ;;  %v2192_v60 = vld [vmem:[#allocation2 + $0x8] sm:$0x30] }
 0x488   :  { %2871 = vmatpush.msra.mxu0 %v5981_v49  ;;  %2891 = vmatpush.msra.mxu1 %v5984_v25 }
 0x489   :  { %v2376_v42 = vpop.f32.mrf.mxu0  ;;  %v2396_v30 = vpop.f32.mrf.mxu1  ;;  %2911 = vmatpush.msra.mxu2 %v5988_v11  ;;  %2931 = vmatpush.msra.mxu3 %v5991_v3 }
 0x48a   :  { %v2443_v13 = vrot.slane %v2376_v42, 4  ;;  %v2444_v26 = vrot.slane %v2396_v30, 4  ;;  %2872 = vmatpush.msra.mxu0 %v5994_v15  ;;  %2892 = vmatpush.msra.mxu1 %v5997_v54  ;;  %v7440_v15 = vld [vmem:[#allocation13_spill] sm:$0xff] }
 0x48b   :  { %2912 = vmatpush.msra.mxu2 %v6000_v36  ;;  %2932 = vmatpush.msra.mxu3 %v6003_v16  ;;  %v7441_v36 = vld [vmem:[#allocation14_spill] sm:$0xff]  ;;  %v7442_v16 = vld [vmem:[#allocation15_spill] sm:$0xff] }
 0x48c   :  { %v2451_v39 = vadd.f32 %v2443_v13, %v2190_v38  ;;  %v2452_v24 = vadd.f32 %v2444_v26, %v2191_v59  ;;  %2873 = vmatpush.msra.mxu0 %v6006_v1  ;;  %2893 = vmatpush.msra.mxu1 %v6009_v6  ;;  %v7443_v6 = vld [vmem:[#allocation16_spill] sm:$0xff]  ;;  %v7448_v59 = vld [vmem:[#allocation21_spill] sm:$0xff] }
 0x48d   :  { %2913 = vmatpush.msra.mxu2 %v6014_v2  ;;  %2933 = vmatpush.msra.mxu3 %v6017_v18  ;;  %v7444_v2 = vld [vmem:[#allocation17_spill] sm:$0xff]  ;;  %v7447_v38 = vld [vmem:[#allocation20_spill] sm:$0xff] }
 0x48e   :  { %v3321_v23 = vmul.f32 -1.442695, %v2451_v39  ;;  %v3322_v50 = vmul.f32 -1.442695, %v2452_v24  ;;  %2874 = vmatpush.msra.mxu0 %v6022_v57  ;;  %2894 = vmatpush.msra.mxu1 %v6025_v0  ;;  %v7445_v0 = vld [vmem:[#allocation18_spill] sm:$0xff] }
 0x48f   :  { %2914 = vmatpush.msra.mxu2 %v6033_v19  ;;  %2934 = vmatpush.msra.mxu3 %v7440_v15  ;;  %v7446_v19 = vld [vmem:[#allocation19_spill] sm:$0xff]  ;;  %v7449_v24 = vld [vmem:[#allocation22_spill] sm:$0xff] }
 0x490   :  { %3523 = vpow2.f32 %v3321_v23  ;;  %v2436_v28 = vpop.f32.mrf.mxu3  ;;  %v2416_v30 = vpop.f32.mrf.mxu2  ;;  %2875 = vmatpush.msra.mxu0 %v7441_v36  ;;  %2895 = vmatpush.msra.mxu1 %v7442_v16  ;;  %v7466_v16 = vld [vmem:[#allocation40_spill] sm:$0xff] }
 0x491   :  { %3525 = vpow2.f32 %v3322_v50  ;;  %v2446_v35 = vrot.slane %v2436_v28, 4  ;;  %v2445_v53 = vrot.slane %v2416_v30, 4  ;;  %2915 = vmatpush.msra.mxu2 %v7443_v6  ;;  %2935 = vmatpush.msra.mxu3 %v7444_v2  ;;  %v7469_v6 = vld [vmem:[#allocation42_spill] sm:$0xff] }
 0x492   :  { %2876 = vmatpush.msra.mxu0 %v7445_v0  ;;  %2896 = vmatpush.msra.mxu1 %v7446_v19  ;;  %v7471_v0 = vld [vmem:[#allocation43_spill] sm:$0xff]  ;;  %v7472_v19 = vld [vmem:[#allocation45_spill] sm:$0xff] }
 0x493   :  { %v2454_v9 = vadd.f32 %v2446_v35, %v2193_v29  ;;  %v2453_v25 = vadd.f32 %v2445_v53, %v2192_v60  ;;  %2916 = vmatpush.msra.mxu2 %v7447_v38  ;;  %2936 = vmatpush.msra.mxu3 %v7448_v59  ;;  %v7454_v29 = vld [vmem:[#allocation28_spill] sm:$0xff]  ;;  %v7459_v60 = vld [vmem:[#allocation31_spill] sm:$0xff]  ;;  %v7480_v38 = vld [vmem:[#allocation53_spill] sm:$0xff] }
 0x494   :  { %2877 = vmatpush.msra.mxu0 %v7449_v24  ;;  %2897 = vmatpush.msra.mxu1 %v7450_v48  ;;  %v7481_v59 = vld [vmem:[#allocation54_spill] sm:$0xff]  ;;  %v7484_v24 = vld [vmem:[#allocation57_spill] sm:$0xff] }
 0x495   :  { %v3323_v22 = vmul.f32 -1.442695, %v2454_v9  ;;  %2917 = vmatpush.msra.mxu2 %v7451_v45  ;;  %2937 = vmatpush.msra.mxu3 %v7452_v40  ;;  %v2514_v9 = vrot.slane %v6149_v44, 2  ;;  %v7485_v48 = vld [vmem:[#allocation58_spill] sm:$0xff]  ;;  %v7488_v45 = vld [vmem:[#allocation61_spill] sm:$0xff] }
 0x496   :  { %v3524_v63 = vpop.eup %3523  ;;  %2878 = vmatpush.msra.mxu0 %v7453_v46  ;;  %2898 = vmatpush.msra.mxu1 %v7454_v29  ;;  %v7489_v40 = vld [vmem:[#allocation62_spill] sm:$0xff]  ;;  %v7494_v29 = vld [vmem:[#allocation68_spill] sm:$0xff] }
 0x497   :  { %v3526_v55 = vpop.eup %3525  ;;  %v6378_v17 = vadd.f32 1.0, %v3524_v63  ;;  %3527 = vpow2.f32 %v3323_v22  ;;  %2918 = vmatpush.msra.mxu2 %v6115_v43  ;;  %2938 = vmatpush.msra.mxu3 %v6118_v51  ;;  %v7455_v51 = vld [vmem:[#allocation27_spill] sm:$0xff]  ;;  %v7493_v46 = vld [vmem:[#allocation66_spill] sm:$0xff] }
 0x498   :  { %v6382_v42 = vadd.f32 1.0, %v3526_v55  ;;  %2879 = vmatpush.msra.mxu0 %v6124_v41  ;;  %2899 = vmatpush.msra.mxu1 %v6127_v4  ;;  %v7456_v4 = vld [vmem:[#allocation29_spill] sm:$0xff] }
 0x499   :  { %3529 = vrcp.f32 %v6378_v17  ;;  %v2470_v57 = vand.u32 2147483648, %v6378_v17  ;;  %v2468_v33 = vand.u32 2147483647, %v6378_v17  ;;  %vm2464_vm6 = vweird.f32 %v6378_v17  ;;  %2919 = vmatpush.msra.mxu2 %v6130_v27  ;;  %2939 = vmatpush.msra.mxu3 %v6133_v7  ;;  %v7458_v7 = vld [vmem:[#allocation32_spill] sm:$0xff] }
 0x49a   :  { %3531 = vrcp.f32 %v6382_v42  ;;  %v2489_v13 = vand.u32 2147483648, %v6382_v42  ;;  %v2487_v39 = vand.u32 2147483647, %v6382_v42  ;;  %vm2483_vm7 = vweird.f32 %v6382_v42  ;;  %2880 = vmatpush.msra.mxu0 %v6137_v8  ;;  %2900 = vmatpush.msra.mxu1 %v6140_v32  ;;  %v7460_v32 = vld [vmem:[#allocation33_spill] sm:$0xff] }
 0x49b   :  { %v2471_v28 = vor.u32 1.1754944e-38, %v2470_v57  ;;  %vm2469_vm10 = vcmp.eq.f32.partialorder %v2468_v33, 8.507059e+37  ;;  %2920 = vmatpush.msra.mxu2 %v6143_v34  ;;  %2940 = vmatpush.msra.mxu3 %v7455_v51  ;;  %v7461_v34 = vld [vmem:[#allocation34_spill] sm:$0xff]  ;;  %v7470_v57 = vld [vmem:[#allocation44_spill] sm:$0xff]  ;;  %v7479_v33 = vld [vmem:[#allocation51_spill] sm:$0xff] }
 0x49c   :  { %v2490_v31 = vor.u32 1.1754944e-38, %v2489_v13  ;;  %vm2488_vm11 = vcmp.eq.f32.partialorder %v2487_v39, 8.507059e+37  ;;  %2881 = vmatpush.msra.mxu0 %v7456_v4  ;;  %v7473_v13 = vld [vmem:[#allocation46_spill] sm:$0xff]  ;;  %v7483_v39 = vld [vmem:[#allocation55_spill] sm:$0xff]  ;;  %v7507_v4 = vld [vmem:[#allocation80_spill] sm:$0xff] }
 0x49d   :  { %v3528_v10 = vpop.eup %3527  ;;  %2921 = vmatpush.msra.mxu2 %v7458_v7  ;;  %2941 = vmatpush.msra.mxu3 %v7459_v60  ;;  %v7506_v51 = vld [vmem:[#allocation79_spill] sm:$0xff] }
 0x49e   :  { %v6398_v62 = vadd.f32 1.0, %v3528_v10  ;;  %v7457_v10 = vld [vmem:[#allocation30_spill] sm:$0xff]  ;;  %2882 = vmatpush.msra.mxu0 %v7460_v32  ;;  %v3966_v60 = vld [vmem:[#allocation8 + $0xb8] sm:$0xff] }
 0x49f   :  { %v3530_v49 = vpop.eup %3529  ;;  %2901 = vmatpush.msra.mxu1 %v7457_v10  ;;  %v7508_v10 = vld [vmem:[#allocation81_spill] sm:$0xff]  ;;  %v3965_v7 = vld [vmem:[#allocation8 + $0xb0] sm:$0xff] }
 0x4a0   :  { %v3532_v11 = vpop.eup %3531  ;;  %v2460_v3 = vmul.f32 %v3530_v49, %v6378_v17  ;;  %3533 = vrcp.f32 %v6398_v62  ;;  %vm2465_vm4 = vweird.f32 %v3530_v49  ;;  %v2509_v8 = vand.u32 2147483648, %v6398_v62  ;;  %v3968_v32 = vld [vmem:[#allocation8 + $0x88] sm:$0xff] }
 0x4a1   :  { %v2479_v54 = vmul.f32 %v3532_v11, %v6382_v42  ;;  %3535 = vtanh.f32 %v2453_v25  ;;  %vm2484_vm5 = vweird.f32 %v3532_v11  ;;  %vm2466_vm8 = vmor %vm2464_vm6, %vm2465_vm4  ;;  %2902 = vmatpush.msra.mxu1 %v7461_v34  ;;  %vm2503_vm13 = vweird.f32 %v6398_v62  ;;  %v7462_v25 = vld [vmem:[#allocation36_spill] sm:$0xff]  ;;  %v3969_v34 = vld [vmem:[#allocation8 + $0x90] sm:$0xff] }
 0x4a2   :  { %v2461_v1 = vsub.f32 1.0, %v2460_v3  ;;  %vm2485_vm9 = vmor %vm2483_vm7, %vm2484_vm5  ;;  %2922 = vmatpush.msra.mxu2 %v7462_v25  ;;  %v7464_v3 = vld [vmem:[#allocation37_spill] sm:$0xff]  ;;  %v2510_v36 = vor.u32 1.1754944e-38, %v2509_v8  ;;  %v3973_v25 = vld [vmem:[#allocation8 + $0x70] sm:$0xff] }
 0x4a3   :  { %v2480_v18 = vsub.f32 1.0, %v2479_v54  ;;  %2883 = vmatpush.msra.mxu0 %v7464_v3  ;;  %2903 = vmatpush.msra.mxu1 %v6190_v56  ;;  %v7465_v54 = vld [vmem:[#allocation38_spill] sm:$0xff]  ;;  %v3967_v8 = vld [vmem:[#allocation8 + $0x80] sm:$0xff] }
 0x4a4   :  { %v2462_v26 = vmul.f32 %v3530_v49, %v2461_v1  ;;  %2923 = vmatpush.msra.mxu2 %v6196_v61  ;;  %v7467_v1 = vld [vmem:[#allocation39_spill] sm:$0xff]  ;;  %v3975_v3 = vld [vmem:[#allocation8 + $0x40] sm:$0xff] }
 0x4a5   :  { %v2481_v47 = vmul.f32 %v3532_v11, %v2480_v18  ;;  %2884 = vmatpush.msra.mxu0 %v7466_v16  ;;  %2904 = vmatpush.msra.mxu1 %v7467_v1  ;;  %v3979_v16 = vld [vmem:[#allocation8 + $0x20] sm:$0xff]  ;;  %v3980_v1 = vld [vmem:[#allocation8 + $0x28] sm:$0xff] }
 0x4a6   :  { %v6423_v23 = vpop.eup %3533  ;;  %v2463_v50 = vadd.f32 %v3530_v49, %v2462_v26  ;;  %v7478_v26 = vld [vmem:[#allocation52_spill] sm:$0xff] }
 0x4a7   :  { %v2482_v21 = vadd.f32 %v3532_v11, %v2481_v47  ;;  %v2499_v35 = vmul.f32 %v6423_v23, %v6398_v62  ;;  %v3536_v63 = vpop.eup %3535  ;;  %vm2504_vm12 = vweird.f32 %v6423_v23  ;;  %2885 = vmatpush.msra.mxu0 %v6214_v20  ;;  %2905 = vmatpush.msra.mxu1 %v6217_v14  ;;  %v7474_v20 = vld [vmem:[#allocation48_spill] sm:$0xff]  ;;  %v7475_v14 = vld [vmem:[#allocation47_spill] sm:$0xff] }
 0x4a8   :  { %v2467_v22 = vsel %vm2466_vm8, %v3530_v49, %v2463_v50  ;;  %v2507_v49 = vand.u32 2147483647, %v6398_v62  ;;  %vm2505_vm14 = vmor %vm2503_vm13, %vm2504_vm12  ;;  %v7468_v62 = vld [vmem:[#allocation41_spill] sm:$0xff]  ;;  %v7482_v47 = vld [vmem:[#allocation56_spill] sm:$0xff] }
 0x4a9   :  { %v2472_v55 = vsel %vm2469_vm10, %v2471_v28, %v2467_v22  ;;  %v2486_v17 = vsel %vm2485_vm9, %v3532_v11, %v2482_v21  ;;  %v2500_v42 = vsub.f32 1.0, %v2499_v35  ;;  %v7463_v11 = vld [vmem:[#allocation35_spill] sm:$0xff]  ;;  %2924 = vmatpush.msra.mxu2 %v7468_v62  ;;  %v7490_v28 = vld [vmem:[#allocation64_spill] sm:$0xff]  ;;  %v7492_v35 = vld [vmem:[#allocation65_spill] sm:$0xff] }
 0x4aa   :  { %v2491_v30 = vsel %vm2488_vm11, %v2490_v31, %v2486_v17  ;;  %v2517_v44 = vmul.f32 %v3536_v63, %v2472_v55  ;;  %2942 = vmatpush.msra.mxu3 %v7463_v11  ;;  %vm2508_vm15 = vcmp.eq.f32.partialorder %v2507_v49, 8.507059e+37  ;;  %v7487_v50 = vld [vmem:[#allocation59_spill] sm:$0xff]  ;;  %v7496_v31 = vld [vmem:[#allocation69_spill] sm:$0xff]  ;;  %v7497_v22 = vld [vmem:[#allocation70_spill] sm:$0xff] }
 0x4ab   :  { %v2516_v53 = vmul.f32 %v2514_v9, %v2491_v30  ;;  %v2501_v43 = vmul.f32 %v6423_v23, %v2500_v42  ;;  %2925 = vmatpush.msra.mxu2 %v6220_v58  ;;  %v7476_v58 = vld [vmem:[#allocation49_spill] sm:$0xff]  ;;  %v7491_v21 = vld [vmem:[#allocation63_spill] sm:$0xff]  ;;  %v7498_v63 = vld [vmem:[#allocation72_spill] sm:$0xff] }
 0x4ac   :  { %2943 = vmatpush.msra.mxu3 %v7465_v54  ;;  %v7495_v9 = vld [vmem:[#allocation67_spill] sm:$0xff]  ;;  %v7500_v17 = vld [vmem:[#allocation73_spill] sm:$0xff]  ;;  %v7501_v42 = vld [vmem:[#allocation74_spill] sm:$0xff] }
 0x4ad   :  { %v6447_v41 = vadd.f32 %v2517_v44, %v2516_v53  ;;  %v2502_v27 = vadd.f32 %v6423_v23, %v2501_v43  ;;  %v7499_v55 = vld [vmem:[#allocation71_spill] sm:$0xff]  ;;  %v7503_v44 = vld [vmem:[#allocation76_spill] sm:$0xff]  ;;  %v7504_v53 = vld [vmem:[#allocation77_spill] sm:$0xff] }
 0x4ae   :  { %2944 = vmatpush.msra.mxu3 %v7469_v6  ;;  %v7502_v30 = vld [vmem:[#allocation75_spill] sm:$0xff]  ;;  %v7505_v43 = vld [vmem:[#allocation78_spill] sm:$0xff] }
 0x4af   :  { %3537 = vtanh.f32 %v6447_v41  ;;  %v2506_v15 = vsel %vm2505_vm14, %v6423_v23, %v2502_v27  ;;  %v7486_v23 = vld [vmem:[#allocation60_spill] sm:$0xff]  ;;  %v7509_v27 = vld [vmem:[#allocation82_spill] sm:$0xff] }
 0x4b0   :  { %v2511_v18 = vsel %vm2508_vm15, %v2510_v36, %v2506_v15  ;;  %2945 = vmatpush.msra.mxu3 %v6223_v52  ;;  %v7477_v52 = vld [vmem:[#allocation50_spill] sm:$0xff]  ;;  %v3974_v11 = vld [vmem:[#allocation8 + $0x78] sm:$0xff] }
 0x4b1   :  { %v3972_v49 = vld [vmem:[#allocation8 + $0x68] sm:$0xff]  ;;  %v3977_v54 = vld [vmem:[#allocation8 + $0x50] sm:$0xff]  ;;  %v3978_v36 = vld [vmem:[#allocation8 + $0x58] sm:$0xff] }
 0x4b2   :  { %v3976_v15 = vld [vmem:[#allocation8 + $0x48] sm:$0xff]  ;;  %v3981_v62 = vld [vmem:[#allocation8 + $0x30] sm:$0xff]  ;;  %v3982_v6 = vld [vmem:[#allocation8 + $0x38] sm:$0xff] }
 0x4b5   :  { %v3538_v2 = vpop.eup %3537 }
 0x4b6   :  { %v2520_v56 = vmul.f32 %v3538_v2, %v2511_v18  ;;  %v3983_v2 = vld [vmem:[#allocation8] sm:$0xff]  ;;  %v3984_v18 = vld [vmem:[#allocation8 + $0x8] sm:$0xff] }
 0x4b8   :  { %v2695_v61 = vrot.slane %v2520_v56, 4  ;;  %v3985_v56 = vld [vmem:[#allocation8 + $0x10] sm:$0xff] }
 0x4ba   :  { %2713 = vmatmul.f32.vlgmr.msrb.gmra.mxu0 %v2695_v61  ;;  %2733 = vmatmul.f32.vlgmr.msrb.gmra.mxu1 %v2695_v61 }
 0x4bb   :  { %2753 = vmatmul.f32.vlgmr.msrb.gmra.mxu2 %v2695_v61  ;;  %2773 = vmatmul.f32.vlgmr.msrb.gmra.mxu3 %v2695_v61  ;;  %v3986_v61 = vld [vmem:[#allocation8 + $0x18] sm:$0xff] }
 0x4bc   :  { %3035 = vmatpush.msrb.mxu0 %v7470_v57  ;;  %3055 = vmatpush.msrb.mxu1 %v7471_v0 }
 0x4bd   :  { %3075 = vmatpush.msrb.mxu2 %v7472_v19  ;;  %3095 = vmatpush.msrb.mxu3 %v7473_v13 }
 0x4be   :  { %3036 = vmatpush.msrb.mxu0 %v7474_v20  ;;  %3056 = vmatpush.msrb.mxu1 %v7475_v14  ;;  %v2521_v20 = vld [vmem:[#allocation2 + $0x40] sm:$0x30] }
 0x4bf   :  { %3076 = vmatpush.msrb.mxu2 %v7476_v58  ;;  %3096 = vmatpush.msrb.mxu3 %v7477_v52  ;;  %v2522_v14 = vld [vmem:[#allocation2 + $0x20] sm:$0x30] }
 0x4c0   :  { %3037 = vmatpush.msrb.mxu0 %v7478_v26  ;;  %3057 = vmatpush.msrb.mxu1 %v7479_v33 }
 0x4c1   :  { %3077 = vmatpush.msrb.mxu2 %v7480_v38  ;;  %3097 = vmatpush.msrb.mxu3 %v7481_v59 }
 0x4c2   :  { %3038 = vmatpush.msrb.mxu0 %v7482_v47  ;;  %3058 = vmatpush.msrb.mxu1 %v7483_v39  ;;  %v2524_v47 = vld [vmem:[#allocation2 + $0x38] sm:$0x30] }
 0x4c3   :  { %3078 = vmatpush.msrb.mxu2 %v7484_v24  ;;  %3098 = vmatpush.msrb.mxu3 %v7485_v48 }
 0x4c4   :  { %3039 = vmatpush.msrb.mxu0 %v7486_v23  ;;  %3059 = vmatpush.msrb.mxu1 %v7487_v50 }
 0x4c5   :  { %3079 = vmatpush.msrb.mxu2 %v7488_v45  ;;  %3099 = vmatpush.msrb.mxu3 %v7489_v40 }
 0x4c6   :  { %3040 = vmatpush.msrb.mxu0 %v7490_v28  ;;  %3060 = vmatpush.msrb.mxu1 %v7491_v21 }
 0x4c7   :  { %3080 = vmatpush.msrb.mxu2 %v7492_v35  ;;  %3100 = vmatpush.msrb.mxu3 %v7493_v46  ;;  %v2523_v35 = vld [vmem:[#allocation2 + $0x10] sm:$0x30] }
 0x4c8   :  { %3041 = vmatpush.msrb.mxu0 %v7494_v29  ;;  %3061 = vmatpush.msrb.mxu1 %v7495_v9 }
 0x4c9   :  { %3081 = vmatpush.msrb.mxu2 %v7496_v31  ;;  %3101 = vmatpush.msrb.mxu3 %v7497_v22 }
 0x4ca   :  { %3042 = vmatpush.msrb.mxu0 %v7498_v63  ;;  %3062 = vmatpush.msrb.mxu1 %v7499_v55 }
 0x4cb   :  { %3082 = vmatpush.msrb.mxu2 %v7500_v17  ;;  %3102 = vmatpush.msrb.mxu3 %v7501_v42 }
 0x4cc   :  { %3043 = vmatpush.msrb.mxu0 %v7502_v30  ;;  %3063 = vmatpush.msrb.mxu1 %v7503_v44 }
 0x4cd   :  { %3083 = vmatpush.msrb.mxu2 %v7504_v53  ;;  %3103 = vmatpush.msrb.mxu3 %v7505_v43 }
 0x4ce   :  { %3044 = vmatpush.msrb.mxu0 %v6334_v5  ;;  %3064 = vmatpush.msrb.mxu1 %v6337_v37  ;;  %v3970_v5 = vld [vmem:[#allocation8 + $0x98] sm:$0xff]  ;;  %v3971_v37 = vld [vmem:[#allocation8 + $0x60] sm:$0xff] }
 0x4cf   :  { %3084 = vmatpush.msrb.mxu2 %v7506_v51  ;;  %3104 = vmatpush.msrb.mxu3 %v7507_v4 }
 0x4d0   :  { %3045 = vmatpush.msrb.mxu0 %v7508_v10  ;;  %3065 = vmatpush.msrb.mxu1 %v7509_v27 }
 0x4d1   :  { %3085 = vmatpush.msrb.mxu2 %v3965_v7  ;;  %3105 = vmatpush.msrb.mxu3 %v3966_v60 }
 0x4d2   :  { %3046 = vmatpush.msrb.mxu0 %v3967_v8  ;;  %3066 = vmatpush.msrb.mxu1 %v3968_v32  ;;  %v2687_v8 = vrot.slane %v6375_v12, 6 }
 0x4d3   :  { %3086 = vmatpush.msrb.mxu2 %v3969_v34  ;;  %3106 = vmatpush.msrb.mxu3 %v3970_v5 }
 0x4d4   :  { %3047 = vmatpush.msrb.mxu0 %v3971_v37  ;;  %3067 = vmatpush.msrb.mxu1 %v3972_v49 }
 0x4d5   :  { %3087 = vmatpush.msrb.mxu2 %v3973_v25  ;;  %3107 = vmatpush.msrb.mxu3 %v3974_v11 }
 0x4d6   :  { %3048 = vmatpush.msrb.mxu0 %v3975_v3  ;;  %3068 = vmatpush.msrb.mxu1 %v3976_v15 }
 0x4d7   :  { %3088 = vmatpush.msrb.mxu2 %v3977_v54  ;;  %3108 = vmatpush.msrb.mxu3 %v3978_v36 }
 0x4d8   :  { %3049 = vmatpush.msrb.mxu0 %v3979_v16  ;;  %3069 = vmatpush.msrb.mxu1 %v3980_v1 }
 0x4d9   :  { %3089 = vmatpush.msrb.mxu2 %v3981_v62  ;;  %3109 = vmatpush.msrb.mxu3 %v3982_v6 }
 0x4da   :  { %3050 = vmatpush.msrb.mxu0 %v3983_v2  ;;  %3070 = vmatpush.msrb.mxu1 %v3984_v18  ;;  %v2525_v18 = vld [vmem:[#allocation2 + $0x50] sm:$0xc] }
 0x4db   :  { %3090 = vmatpush.msrb.mxu2 %v3985_v56  ;;  %3110 = vmatpush.msrb.mxu3 %v3986_v61  ;;  %v2526_v56 = vld [vmem:[#allocation2 + $0x68] sm:$0xc] }
 0x501   :  { %v2549_v57 = vpop.f32.mrf.mxu0  ;;  %v2569_v0 = vpop.f32.mrf.mxu1 }
 0x502   :  { %v2616_v19 = vrot.slane %v2549_v57, 4  ;;  %v2617_v13 = vrot.slane %v2569_v0, 4 }
 0x504   :  { %v2624_v58 = vadd.f32 %v2616_v19, %v2521_v20  ;;  %v2625_v52 = vadd.f32 %v2617_v13, %v2522_v14 }
 0x506   :  { %v3324_v26 = vmul.f32 -1.442695, %v2624_v58  ;;  %v3325_v33 = vmul.f32 -1.442695, %v2625_v52 }
 0x508   :  { %3539 = vpow2.f32 %v3324_v26  ;;  %v2609_v38 = vpop.f32.mrf.mxu3  ;;  %v2589_v40 = vpop.f32.mrf.mxu2 }
 0x509   :  { %3541 = vpow2.f32 %v3325_v33  ;;  %v2619_v59 = vrot.slane %v2609_v38, 4  ;;  %v2618_v28 = vrot.slane %v2589_v40, 4 }
 0x50b   :  { %v2627_v39 = vadd.f32 %v2619_v59, %v2524_v47  ;;  %v2626_v9 = vadd.f32 %v2618_v28, %v2523_v35  ;;  %v2528_v59 = vld [vmem:[#allocation2 + $0x48] sm:$0xc] }
 0x50c   :  { %v2527_v35 = vld [vmem:[#allocation2 + $0x8] sm:$0xc] }
 0x50d   :  { %v3326_v24 = vmul.f32 -1.442695, %v2627_v39 }
 0x50e   :  { %v3540_v48 = vpop.eup %3539 }
 0x50f   :  { %v3542_v23 = vpop.eup %3541  ;;  %v2631_v50 = vadd.f32 1.0, %v3540_v48  ;;  %3543 = vpow2.f32 %v3326_v24 }
 0x510   :  { %v2650_v45 = vadd.f32 1.0, %v3542_v23 }
 0x511   :  { %3545 = vrcp.f32 %v2631_v50  ;;  %v2643_v42 = vand.u32 2147483648, %v2631_v50  ;;  %v2641_v53 = vand.u32 2147483647, %v2631_v50  ;;  %vm2637_vm2 = vweird.f32 %v2631_v50 }
 0x512   :  { %3547 = vrcp.f32 %v2650_v45  ;;  %v2662_v30 = vand.u32 2147483648, %v2650_v45  ;;  %v2660_v51 = vand.u32 2147483647, %v2650_v45  ;;  %vm2656_vm3 = vweird.f32 %v2650_v45 }
 0x513   :  { %v2644_v27 = vor.u32 1.1754944e-38, %v2643_v42  ;;  %vm2642_vm6 = vcmp.eq.f32.partialorder %v2641_v53, 8.507059e+37 }
 0x514   :  { %v2663_v32 = vor.u32 1.1754944e-38, %v2662_v30  ;;  %vm2661_vm7 = vcmp.eq.f32.partialorder %v2660_v51, 8.507059e+37 }
 0x515   :  { %v3544_v21 = vpop.eup %3543 }
 0x516   :  { %v2670_v46 = vadd.f32 1.0, %v3544_v21 }
 0x517   :  { %v3546_v29 = vpop.eup %3545 }
 0x518   :  { %v3548_v31 = vpop.eup %3547  ;;  %v2633_v22 = vmul.f32 %v3546_v29, %v2631_v50  ;;  %3549 = vrcp.f32 %v2670_v46  ;;  %vm2638_vm0 = vweird.f32 %v3546_v29  ;;  %v2682_v2 = vand.u32 2147483648, %v2670_v46 }
 0x519   :  { %v2652_v63 = vmul.f32 %v3548_v31, %v2650_v45  ;;  %3551 = vtanh.f32 %v2626_v9  ;;  %vm2657_vm1 = vweird.f32 %v3548_v31  ;;  %vm2639_vm4 = vmor %vm2637_vm2, %vm2638_vm0  ;;  %vm2676_vm9 = vweird.f32 %v2670_v46 }
 0x51a   :  { %v2634_v55 = vsub.f32 1.0, %v2633_v22  ;;  %vm2658_vm5 = vmor %vm2656_vm3, %vm2657_vm1  ;;  %v2680_v61 = vand.u32 2147483647, %v2670_v46  ;;  %v2683_v14 = vor.u32 1.1754944e-38, %v2682_v2 }
 0x51b   :  { %v2653_v17 = vsub.f32 1.0, %v2652_v63 }
 0x51c   :  { %v2635_v44 = vmul.f32 %v3546_v29, %v2634_v55  ;;  %vm2681_vm11 = vcmp.eq.f32.partialorder %v2680_v61, 8.507059e+37 }
 0x51d   :  { %v2654_v43 = vmul.f32 %v3548_v31, %v2653_v17 }
 0x51e   :  { %v3550_v4 = vpop.eup %3549  ;;  %v2636_v10 = vadd.f32 %v3546_v29, %v2635_v44 }
 0x51f   :  { %v2655_v7 = vadd.f32 %v3548_v31, %v2654_v43  ;;  %v2672_v60 = vmul.f32 %v3550_v4, %v2670_v46  ;;  %v3552_v5 = vpop.eup %3551  ;;  %vm2677_vm8 = vweird.f32 %v3550_v4 }
 0x520   :  { %v2640_v34 = vsel %vm2639_vm4, %v3546_v29, %v2636_v10  ;;  %vm2678_vm10 = vmor %vm2676_vm9, %vm2677_vm8 }
 0x521   :  { %v2645_v37 = vsel %vm2642_vm6, %v2644_v27, %v2640_v34  ;;  %v2659_v49 = vsel %vm2658_vm5, %v3548_v31, %v2655_v7  ;;  %v2673_v25 = vsub.f32 1.0, %v2672_v60 }
 0x522   :  { %v2664_v11 = vsel %vm2661_vm7, %v2663_v32, %v2659_v49  ;;  %v2690_v3 = vmul.f32 %v3552_v5, %v2645_v37 }
 0x523   :  { %v2689_v15 = vmul.f32 %v2687_v8, %v2664_v11  ;;  %v2674_v54 = vmul.f32 %v3550_v4, %v2673_v25  ;;  %v2852_v8 = vrot.slane %v6447_v41, 2 }
 0x525   :  { %v6519_v36 = vadd.f32 %v2690_v3, %v2689_v15  ;;  %v2675_v62 = vadd.f32 %v3550_v4, %v2674_v54 }
 0x527   :  { %3553 = vtanh.f32 %v6519_v36  ;;  %v2679_v19 = vsel %vm2678_vm10, %v3550_v4, %v2675_v62 }
 0x528   :  { %v2684_v26 = vsel %vm2681_vm11, %v2683_v14, %v2679_v19  ;;  %v3200_v19 = vld [vmem:[%s6649_s5 + $0x68] sm:$0xff]  ;;  %v3197_v14 = vld [vmem:[%s6649_s5 + $0x50] sm:$0xff] }
 0x52d   :  { %v3554_v58 = vpop.eup %3553 }
 0x52e   :  { %v2693_v38 = vmul.f32 %v3554_v58, %v2684_v26  ;;  %v3196_v58 = vld [vmem:[%s6649_s5 + $0x48] sm:$0xff] }
 0x530   :  { %v2868_v39 = vrot.slane %v2693_v38, 4 }
 0x532   :  { %2886 = vmatmul.f32.vlgmr.msra.gmra.mxu0 %v2868_v39  ;;  %2906 = vmatmul.f32.vlgmr.msra.gmra.mxu1 %v2868_v39 }
 0x533   :  { %2926 = vmatmul.f32.vlgmr.msra.gmra.mxu2 %v2868_v39  ;;  %2946 = vmatmul.f32.vlgmr.msra.gmra.mxu3 %v2868_v39  ;;  %v2860_v39 = vld [vmem:[#allocation2 + $0x20] sm:$0xc0] }
 0x537   :  { %v2714_v16 = vpop.f32.mrf.mxu0  ;;  %v2734_v1 = vpop.f32.mrf.mxu1 }
 0x538   :  { %v2781_v12 = vrot.slane %v2714_v16, 6  ;;  %v2782_v6 = vrot.slane %v2734_v1, 6 }
 0x53a   :  { %v2789_v57 = vadd.f32 %v2781_v12, %v2525_v18  ;;  %v2790_v0 = vadd.f32 %v2782_v6, %v2526_v56 }
 0x53c   :  { %v3327_v13 = vmul.f32 -1.442695, %v2789_v57  ;;  %v3328_v20 = vmul.f32 -1.442695, %v2790_v0  ;;  %v3202_v57 = vld [vmem:[%s6649_s5 + $0x78] sm:$0xff]  ;;  %v3201_v0 = vld [vmem:[%s6649_s5 + $0x70] sm:$0xff] }
 0x53d   :  { %3228 = vmatpush.msra.mxu0 %v3202_v57 }
 0x53e   :  { %3555 = vpow2.f32 %v3327_v13  ;;  %v2774_v52 = vpop.f32.mrf.mxu3  ;;  %v2754_v40 = vpop.f32.mrf.mxu2  ;;  %v3199_v13 = vld [vmem:[%s6649_s5 + $0x60] sm:$0xff] }
 0x53f   :  { %3557 = vpow2.f32 %v3328_v20  ;;  %v2784_v33 = vrot.slane %v2774_v52, 6  ;;  %v2783_v28 = vrot.slane %v2754_v40, 6  ;;  %3229 = vmatpush.msra.mxu0 %v3201_v0  ;;  %v3198_v20 = vld [vmem:[%s6649_s5 + $0x58] sm:$0xff]  ;;  %v3193_v40 = vld [vmem:[%s6649_s5 + $0x30] sm:$0xff] }
 0x541   :  { %v2792_v47 = vadd.f32 %v2784_v33, %v2528_v59  ;;  %v2791_v9 = vadd.f32 %v2783_v28, %v2527_v35  ;;  %3230 = vmatpush.msra.mxu0 %v3200_v19  ;;  %v3195_v59 = vld [vmem:[%s6649_s5 + $0x40] sm:$0xff]  ;;  %v3212_v19 = vld [vmem:[%s6649_s5 + $0xc8] sm:$0xff] }
 0x543   :  { %v3329_v24 = vmul.f32 -1.442695, %v2792_v47  ;;  %3231 = vmatpush.msra.mxu0 %v3199_v13  ;;  %v2859_v47 = vld [vmem:[#allocation2 + $0x40] sm:$0xc0]  ;;  %v3025_v13 = vrot.slane %v6519_v36, 6 }
 0x544   :  { %v3556_v48 = vpop.eup %3555 }
 0x545   :  { %v3558_v23 = vpop.eup %3557  ;;  %v2796_v50 = vadd.f32 1.0, %v3556_v48  ;;  %3559 = vpow2.f32 %v3329_v24  ;;  %3232 = vmatpush.msra.mxu0 %v3198_v20 }
 0x546   :  { %v2815_v45 = vadd.f32 1.0, %v3558_v23  ;;  %v3194_v23 = vld [vmem:[%s6649_s5 + $0x38] sm:$0xff] }
 0x547   :  { %3561 = vrcp.f32 %v2796_v50  ;;  %v2808_v42 = vand.u32 2147483648, %v2796_v50  ;;  %v2806_v53 = vand.u32 2147483647, %v2796_v50  ;;  %vm2802_vm14 = vweird.f32 %v2796_v50  ;;  %3233 = vmatpush.msra.mxu0 %v3197_v14 }
 0x548   :  { %3563 = vrcp.f32 %v2815_v45  ;;  %v2827_v30 = vand.u32 2147483648, %v2815_v45  ;;  %v2825_v51 = vand.u32 2147483647, %v2815_v45  ;;  %vm2821_vm15 = vweird.f32 %v2815_v45 }
 0x549   :  { %v2809_v27 = vor.u32 1.1754944e-38, %v2808_v42  ;;  %vm2807_vm2 = vcmp.eq.f32.partialorder %v2806_v53, 8.507059e+37  ;;  %3234 = vmatpush.msra.mxu0 %v3196_v58  ;;  %v3188_v53 = vld [vmem:[%s6649_s5 + $0x8] sm:$0xff] }
 0x54a   :  { %v2828_v32 = vor.u32 1.1754944e-38, %v2827_v30  ;;  %vm2826_vm3 = vcmp.eq.f32.partialorder %v2825_v51, 8.507059e+37 }
 0x54b   :  { %v3560_v21 = vpop.eup %3559  ;;  %3235 = vmatpush.msra.mxu0 %v3195_v59 }
 0x54c   :  { %v2835_v46 = vadd.f32 1.0, %v3560_v21  ;;  %v3192_v21 = vld [vmem:[%s6649_s5 + $0x28] sm:$0xff] }
 0x54d   :  { %v3562_v29 = vpop.eup %3561  ;;  %3236 = vmatpush.msra.mxu0 %v3194_v23  ;;  %v3209_v23 = vld [vmem:[%s6649_s5 + $0xb0] sm:$0xff] }
 0x54e   :  { %v3564_v31 = vpop.eup %3563  ;;  %v2798_v22 = vmul.f32 %v3562_v29, %v2796_v50  ;;  %3565 = vrcp.f32 %v2835_v46  ;;  %vm2803_vm12 = vweird.f32 %v3562_v29  ;;  %v2847_v41 = vand.u32 2147483648, %v2835_v46 }
 0x54f   :  { %v2817_v63 = vmul.f32 %v3564_v31, %v2815_v45  ;;  %3567 = vtanh.f32 %v2791_v9  ;;  %vm2822_vm13 = vweird.f32 %v3564_v31  ;;  %vm2804_vm0 = vmor %vm2802_vm14, %vm2803_vm12  ;;  %vm2841_vm5 = vweird.f32 %v2835_v46  ;;  %3237 = vmatpush.msra.mxu0 %v3193_v40  ;;  %v2864_v40 = vld [vmem:[#allocation2 + $0x68] sm:$0x3] }
 0x550   :  { %v2799_v55 = vsub.f32 1.0, %v2798_v22  ;;  %vm2823_vm1 = vmor %vm2821_vm15, %vm2822_vm13  ;;  %v2845_v62 = vand.u32 2147483647, %v2835_v46  ;;  %v2848_v6 = vor.u32 1.1754944e-38, %v2847_v41 }
 0x551   :  { %v2818_v17 = vsub.f32 1.0, %v2817_v63  ;;  %3238 = vmatpush.msra.mxu0 %v3192_v21 }
 0x552   :  { %v2800_v44 = vmul.f32 %v3562_v29, %v2799_v55  ;;  %vm2846_vm7 = vcmp.eq.f32.partialorder %v2845_v62, 8.507059e+37  ;;  %v3189_v55 = vld [vmem:[%s6649_s5 + $0x10] sm:$0xff] }
 0x553   :  { %v2819_v43 = vmul.f32 %v3564_v31, %v2818_v17 }
 0x554   :  { %v3566_v4 = vpop.eup %3565  ;;  %v2801_v10 = vadd.f32 %v3562_v29, %v2800_v44 }
 0x555   :  { %v2820_v7 = vadd.f32 %v3564_v31, %v2819_v43  ;;  %v2837_v60 = vmul.f32 %v3566_v4, %v2835_v46  ;;  %v3568_v5 = vpop.eup %3567  ;;  %vm2842_vm4 = vweird.f32 %v3566_v4  ;;  %v2862_v46 = vld [vmem:[#allocation2 + $0x38] sm:$0xc0]  ;;  %v3187_v43 = vld [vmem:[%s6649_s5] sm:$0xff] }
 0x556   :  { %v2805_v34 = vsel %vm2804_vm0, %v3562_v29, %v2801_v10  ;;  %vm2843_vm6 = vmor %vm2841_vm5, %vm2842_vm4  ;;  %v3191_v29 = vld [vmem:[%s6649_s5 + $0x20] sm:$0xff] }
 0x557   :  { %v2810_v37 = vsel %vm2807_vm2, %v2809_v27, %v2805_v34  ;;  %v2824_v49 = vsel %vm2823_vm1, %v3564_v31, %v2820_v7  ;;  %v2838_v25 = vsub.f32 1.0, %v2837_v60  ;;  %3239 = vmatpush.msra.mxu0 %v3191_v29  ;;  %v3190_v31 = vld [vmem:[%s6649_s5 + $0x18] sm:$0xff]  ;;  %v3217_v27 = vld [vmem:[%s6649_s5 + $0xf0] sm:$0xff]  ;;  %v3216_v34 = vld [vmem:[%s6649_s5 + $0xe8] sm:$0xff] }
 0x558   :  { %v2829_v11 = vsel %vm2826_vm3, %v2828_v32, %v2824_v49  ;;  %v2855_v3 = vmul.f32 %v3568_v5, %v2810_v37  ;;  %v2861_v7 = vld [vmem:[#allocation2 + $0x10] sm:$0xc0] }
 0x559   :  { %v2854_v15 = vmul.f32 %v2852_v8, %v2829_v11  ;;  %v2839_v54 = vmul.f32 %v3566_v4, %v2838_v25  ;;  %3240 = vmatpush.msra.mxu0 %v3190_v31  ;;  %v3215_v25 = vld [vmem:[%s6649_s5 + $0xe0] sm:$0xff] }
 0x55b   :  { %v6523_v16 = vadd.f32 %v2855_v3, %v2854_v15  ;;  %v2840_v1 = vadd.f32 %v3566_v4, %v2839_v54  ;;  %3241 = vmatpush.msra.mxu0 %v3189_v55  ;;  %v3214_v54 = vld [vmem:[%s6649_s5 + $0xd8] sm:$0xff]  ;;  %v3207_v55 = vld [vmem:[%s6649_s5 + $0xa0] sm:$0xff] }
 0x55d   :  { %3569 = vtanh.f32 %v6523_v16  ;;  %v2844_v12 = vsel %vm2843_vm6, %v3566_v4, %v2840_v1  ;;  %3242 = vmatpush.msra.mxu0 %v3188_v53  ;;  %v3218_v4 = vld [vmem:[%s6649_s5 + $0xf8] sm:$0xff] }
 0x55e   :  { %v2849_v18 = vsel %vm2846_vm7, %v2848_v6, %v2844_v12  ;;  %3248 = vmatpush.msra.mxu1 %v3218_v4 }
 0x55f   :  { %3243 = vmatpush.msra.mxu0 %v3187_v43  ;;  %v2866_v43 = vld [vmem:[#allocation2 + $0x48] sm:$0x3] }
 0x560   :  { %3249 = vmatpush.msra.mxu1 %v3217_v27 }
 0x562   :  { %3250 = vmatpush.msra.mxu1 %v3216_v34 }
 0x563   :  { %v3570_v2 = vpop.eup %3569 }
 0x564   :  { %v2858_v56 = vmul.f32 %v3570_v2, %v2849_v18  ;;  %3251 = vmatpush.msra.mxu1 %v3215_v25  ;;  %v3213_v2 = vld [vmem:[%s6649_s5 + $0xd0] sm:$0xff] }
 0x566   :  { %v3033_v61 = vrot.slane %v2858_v56, 2  ;;  %3252 = vmatpush.msra.mxu1 %v3214_v54 }
 0x568   :  { %3051 = vmatmul.f32.vlgmr.msrb.gmra.mxu0 %v3033_v61  ;;  %3071 = vmatmul.f32.vlgmr.msrb.gmra.mxu1 %v3033_v61 }
 0x569   :  { %3091 = vmatmul.f32.vlgmr.msrb.gmra.mxu2 %v3033_v61  ;;  %3111 = vmatmul.f32.vlgmr.msrb.gmra.mxu3 %v3033_v61 }
 0x56a   :  { %3253 = vmatpush.msra.mxu1 %v3213_v2 }
 0x56c   :  { %3254 = vmatpush.msra.mxu1 %v3212_v19 }
 0x5af   :  { %v2887_v52 = vpop.f32.mrf.mxu0  ;;  %v2907_v26 = vpop.f32.mrf.mxu1 }
 0x5b0   :  { %v2954_v33 = vrot.slane %v2887_v52, 2  ;;  %v2955_v38 = vrot.slane %v2907_v26, 2 }
 0x5b2   :  { %v2962_v24 = vadd.f32 %v2954_v33, %v2859_v47  ;;  %v2963_v48 = vadd.f32 %v2955_v38, %v2860_v39  ;;  %v3211_v38 = vld [vmem:[%s6649_s5 + $0xc0] sm:$0xff] }
 0x5b3   :  { %3255 = vmatpush.msra.mxu1 %v3211_v38  ;;  %v3178_v38 = vrot.slane %v6523_v16, 2 }
 0x5b4   :  { %v3330_v50 = vmul.f32 -1.442695, %v2962_v24  ;;  %v3331_v45 = vmul.f32 -1.442695, %v2963_v48  ;;  %v3210_v24 = vld [vmem:[%s6649_s5 + $0xb8] sm:$0xff] }
 0x5b5   :  { %3256 = vmatpush.msra.mxu1 %v3210_v24 }
 0x5b6   :  { %3571 = vpow2.f32 %v3330_v50  ;;  %v2947_v28 = vpop.f32.mrf.mxu3  ;;  %v2927_v44 = vpop.f32.mrf.mxu2  ;;  %v2863_v50 = vld [vmem:[#allocation2 + $0x50] sm:$0x3] }
 0x5b7   :  { %3573 = vpow2.f32 %v3331_v45  ;;  %v2957_v35 = vrot.slane %v2947_v28, 2  ;;  %v2956_v51 = vrot.slane %v2927_v44, 2  ;;  %3257 = vmatpush.msra.mxu1 %v3209_v23  ;;  %v3205_v44 = vld [vmem:[%s6649_s5 + $0x90] sm:$0xff] }
 0x5b9   :  { %v2965_v9 = vadd.f32 %v2957_v35, %v2862_v46  ;;  %v2964_v32 = vadd.f32 %v2956_v51, %v2861_v7 }
 0x5bb   :  { %v3332_v22 = vmul.f32 -1.442695, %v2965_v9  ;;  %v3208_v9 = vld [vmem:[%s6649_s5 + $0xa8] sm:$0xff] }
 0x5bc   :  { %v3572_v63 = vpop.eup %3571  ;;  %3258 = vmatpush.msra.mxu1 %v3208_v9 }
 0x5bd   :  { %v3574_v17 = vpop.eup %3573  ;;  %v2969_v42 = vadd.f32 1.0, %v3572_v63  ;;  %3575 = vpow2.f32 %v3332_v22 }
 0x5be   :  { %v2988_v30 = vadd.f32 1.0, %v3574_v17  ;;  %3259 = vmatpush.msra.mxu1 %v3207_v55 }
 0x5bf   :  { %3577 = vrcp.f32 %v2969_v42  ;;  %v2981_v15 = vand.u32 2147483648, %v2969_v42  ;;  %v2979_v62 = vand.u32 2147483647, %v2969_v42  ;;  %vm2975_vm10 = vweird.f32 %v2969_v42 }
 0x5c0   :  { %3579 = vrcp.f32 %v2988_v30  ;;  %v3000_v1 = vand.u32 2147483648, %v2988_v30  ;;  %v2998_v6 = vand.u32 2147483647, %v2988_v30  ;;  %vm2994_vm11 = vweird.f32 %v2988_v30 }
 0x5c1   :  { %v2982_v61 = vor.u32 1.1754944e-38, %v2981_v15  ;;  %vm2980_vm14 = vcmp.eq.f32.partialorder %v2979_v62, 8.507059e+37 }
 0x5c2   :  { %v3001_v20 = vor.u32 1.1754944e-38, %v3000_v1  ;;  %vm2999_vm15 = vcmp.eq.f32.partialorder %v2998_v6, 8.507059e+37 }
 0x5c3   :  { %v3576_v10 = vpop.eup %3575 }
 0x5c4   :  { %v6580_v60 = vadd.f32 1.0, %v3576_v10  ;;  %v3204_v10 = vld [vmem:[%s6649_s5 + $0x88] sm:$0xff] }
 0x5c5   :  { %v3578_v8 = vpop.eup %3577 }
 0x5c6   :  { %v3580_v5 = vpop.eup %3579  ;;  %v2971_v37 = vmul.f32 %v3578_v8, %v2969_v42  ;;  %3581 = vrcp.f32 %v6580_v60  ;;  %vm2976_vm8 = vweird.f32 %v3578_v8  ;;  %v3020_v29 = vand.u32 2147483648, %v6580_v60  ;;  %v3206_v42 = vld [vmem:[%s6649_s5 + $0x98] sm:$0xff] }
 0x5c7   :  { %v2990_v49 = vmul.f32 %v3580_v5, %v2988_v30  ;;  %3583 = vtanh.f32 %v2964_v32  ;;  %vm2995_vm9 = vweird.f32 %v3580_v5  ;;  %vm2977_vm12 = vmor %vm2975_vm10, %vm2976_vm8  ;;  %vm3014_vm1 = vweird.f32 %v6580_v60  ;;  %3260 = vmatpush.msra.mxu1 %v3206_v42 }
 0x5c8   :  { %v2972_v11 = vsub.f32 1.0, %v2971_v37  ;;  %vm2996_vm13 = vmor %vm2994_vm11, %vm2995_vm9  ;;  %v3018_v31 = vand.u32 2147483647, %v6580_v60  ;;  %v3021_v30 = vor.u32 1.1754944e-38, %v3020_v29 }
 0x5c9   :  { %v2991_v3 = vsub.f32 1.0, %v2990_v49  ;;  %3261 = vmatpush.msra.mxu1 %v3205_v44 }
 0x5ca   :  { %v2973_v41 = vmul.f32 %v3578_v8, %v2972_v11  ;;  %vm3019_vm3 = vcmp.eq.f32.partialorder %v3018_v31, 8.507059e+37  ;;  %v3346_v31 = vld [vmem:[%s6650_s6] ss:$0 sm:$0xff] }
 0x5cb   :  { %v2992_v12 = vmul.f32 %v3580_v5, %v2991_v3  ;;  %3262 = vmatpush.msra.mxu1 %v3204_v10  ;;  %v2865_v3 = vld [vmem:[#allocation2 + $0x8] sm:$0x3] }
 0x5cc   :  { %v6595_v18 = vpop.eup %3581  ;;  %v2974_v56 = vadd.f32 %v3578_v8, %v2973_v41 }
 0x5cd   :  { %v2993_v57 = vadd.f32 %v3580_v5, %v2992_v12  ;;  %v3010_v0 = vmul.f32 %v6595_v18, %v6580_v60  ;;  %v3584_v58 = vpop.eup %3583  ;;  %vm3015_vm0 = vweird.f32 %v6595_v18  ;;  %v3203_v60 = vld [vmem:[%s6649_s5 + $0x80] sm:$0xff] }
 0x5ce   :  { %v2978_v14 = vsel %vm2977_vm12, %v3578_v8, %v2974_v56  ;;  %vm3016_vm2 = vmor %vm3014_vm1, %vm3015_vm0  ;;  %3263 = vmatpush.msra.mxu1 %v3203_v60  ;;  %vm3268_vm0 = vcmask 17408  }
 0x5cf   :  { %v2983_v52 = vsel %vm2980_vm14, %v2982_v61, %v2978_v14  ;;  %v2997_v26 = vsel %vm2996_vm13, %v3580_v5, %v2993_v57  ;;  %v3011_v33 = vsub.f32 1.0, %v3010_v0 }
 0x5d0   :  { %v3002_v59 = vsel %vm2999_vm15, %v3001_v20, %v2997_v26  ;;  %v3028_v47 = vmul.f32 %v3584_v58, %v2983_v52 }
 0x5d1   :  { %v3027_v39 = vmul.f32 %v3025_v13, %v3002_v59  ;;  %v3012_v36 = vmul.f32 %v6595_v18, %v3011_v33 }
 0x5d3   :  { %v3029_v48 = vadd.f32 %v3028_v47, %v3027_v39  ;;  %v3013_v21 = vadd.f32 %v6595_v18, %v3012_v36 }
 0x5d5   :  { %3585 = vtanh.f32 %v3029_v48  ;;  %v3017_v17 = vsel %vm3016_vm2, %v6595_v18, %v3013_v21 }
 0x5d6   :  { %v3022_v4 = vsel %vm3019_vm3, %v3021_v30, %v3017_v17 }
 0x5db   :  { %v3586_v53 = vpop.eup %3585 }
 0x5dc   :  { %v3031_v7 = vmul.f32 %v3586_v53, %v3022_v4 }
 0x5de   :  { %v3224_v32 = vrot.slane %v3031_v7, 6 }
 0x5e0   :  { %3244 = vmatmul.f32.vlgmr.msra.gmra.mxu0 %v3224_v32 }
 0x5e5   :  { %v3052_v45 = vpop.f32.mrf.mxu0  ;;  %v3072_v28 = vpop.f32.mrf.mxu1 }
 0x5e6   :  { %v3115_v35 = vadd.f32 %v3052_v45, %v2863_v50  ;;  %v3116_v46 = vadd.f32 %v3072_v28, %v2864_v40 }
 0x5e8   :  { %v3333_v22 = vmul.f32 -1.442695, %v3115_v35  ;;  %v3334_v63 = vmul.f32 -1.442695, %v3116_v46 }
 0x5ea   :  { %3587 = vpow2.f32 %v3333_v22 }
 0x5eb   :  { %3589 = vpow2.f32 %v3334_v63 }
 0x5ec   :  { %v3112_v51 = vpop.f32.mrf.mxu3  ;;  %v3092_v25 = vpop.f32.mrf.mxu2 }
 0x5ed   :  { %v3118_v27 = vadd.f32 %v3112_v51, %v2866_v43  ;;  %v3117_v1 = vadd.f32 %v3092_v25, %v2865_v3 }
 0x5ef   :  { %v3335_v8 = vmul.f32 -1.442695, %v3118_v27 }
 0x5f0   :  { %v3588_v34 = vpop.eup %3587 }
 0x5f1   :  { %v3590_v5 = vpop.eup %3589  ;;  %v3122_v37 = vadd.f32 1.0, %v3588_v34  ;;  %3591 = vpow2.f32 %v3335_v8 }
 0x5f2   :  { %v3141_v49 = vadd.f32 1.0, %v3590_v5 }
 0x5f3   :  { %3593 = vrcp.f32 %v3122_v37  ;;  %v3134_v18 = vand.u32 2147483648, %v3122_v37  ;;  %v3132_v57 = vand.u32 2147483647, %v3122_v37  ;;  %vm3128_vm6 = vweird.f32 %v3122_v37 }
 0x5f4   :  { %3595 = vrcp.f32 %v3141_v49  ;;  %v3153_v56 = vand.u32 2147483648, %v3141_v49  ;;  %v3151_v19 = vand.u32 2147483647, %v3141_v49  ;;  %vm3147_vm7 = vweird.f32 %v3141_v49 }
 0x5f5   :  { %v3135_v14 = vor.u32 1.1754944e-38, %v3134_v18  ;;  %vm3133_vm10 = vcmp.eq.f32.partialorder %v3132_v57, 8.507059e+37 }
 0x5f6   :  { %v3154_v26 = vor.u32 1.1754944e-38, %v3153_v56  ;;  %vm3152_vm11 = vcmp.eq.f32.partialorder %v3151_v19, 8.507059e+37 }
 0x5f7   :  { %v3592_v11 = vpop.eup %3591 }
 0x5f8   :  { %v3161_v15 = vadd.f32 1.0, %v3592_v11 }
 0x5f9   :  { %v3594_v54 = vpop.eup %3593 }
 0x5fa   :  { %v3596_v41 = vpop.eup %3595  ;;  %v3124_v62 = vmul.f32 %v3594_v54, %v3122_v37  ;;  %3597 = vrcp.f32 %v3161_v15  ;;  %vm3129_vm4 = vweird.f32 %v3594_v54  ;;  %v3173_v28 = vand.u32 2147483648, %v3161_v15 }
 0x5fb   :  { %v3143_v12 = vmul.f32 %v3596_v41, %v3141_v49  ;;  %3599 = vtanh.f32 %v3117_v1  ;;  %vm3148_vm5 = vweird.f32 %v3596_v41  ;;  %vm3130_vm8 = vmor %vm3128_vm6, %vm3129_vm4  ;;  %vm3167_vm13 = vweird.f32 %v3161_v15 }
 0x5fc   :  { %v3125_v6 = vsub.f32 1.0, %v3124_v62  ;;  %vm3149_vm9 = vmor %vm3147_vm7, %vm3148_vm5  ;;  %v3171_v21 = vand.u32 2147483647, %v3161_v15  ;;  %v3174_v46 = vor.u32 1.1754944e-38, %v3173_v28 }
 0x5fd   :  { %v3144_v2 = vsub.f32 1.0, %v3143_v12 }
 0x5fe   :  { %v3126_v61 = vmul.f32 %v3594_v54, %v3125_v6  ;;  %vm3172_vm15 = vcmp.eq.f32.partialorder %v3171_v21, 8.507059e+37 }
 0x5ff   :  { %v3145_v0 = vmul.f32 %v3596_v41, %v3144_v2 }
 0x600   :  { %v3598_v13 = vpop.eup %3597  ;;  %v3127_v20 = vadd.f32 %v3594_v54, %v3126_v61 }
 0x601   :  { %v3146_v58 = vadd.f32 %v3596_v41, %v3145_v0  ;;  %v3163_v52 = vmul.f32 %v3598_v13, %v3161_v15  ;;  %v3600_v59 = vpop.eup %3599  ;;  %vm3168_vm12 = vweird.f32 %v3598_v13 }
 0x602   :  { %v3131_v33 = vsel %vm3130_vm8, %v3594_v54, %v3127_v20  ;;  %vm3169_vm14 = vmor %vm3167_vm13, %vm3168_vm12 }
 0x603   :  { %v3136_v47 = vsel %vm3133_vm10, %v3135_v14, %v3131_v33  ;;  %v3150_v39 = vsel %vm3149_vm9, %v3596_v41, %v3146_v58  ;;  %v3164_v36 = vsub.f32 1.0, %v3163_v52 }
 0x604   :  { %v3155_v24 = vsel %vm3152_vm11, %v3154_v26, %v3150_v39  ;;  %v3181_v48 = vmul.f32 %v3600_v59, %v3136_v47 }
 0x605   :  { %v3180_v23 = vmul.f32 %v3178_v38, %v3155_v24  ;;  %v3165_v50 = vmul.f32 %v3598_v13, %v3164_v36 }
 0x607   :  { %v3182_v45 = vadd.f32 %v3181_v48, %v3180_v23  ;;  %v3166_v40 = vadd.f32 %v3598_v13, %v3165_v50 }
 0x609   :  { %3601 = vtanh.f32 %v3182_v45  ;;  %v3170_v35 = vsel %vm3169_vm14, %v3598_v13, %v3166_v40 }
 0x60a   :  { %v3175_v29 = vsel %vm3172_vm15, %v3174_v46, %v3170_v35 }
 0x60f   :  { %v3602_v16 = vpop.eup %3601 }
 0x610   :  { %v3184_v9 = vmul.f32 %v3602_v16, %v3175_v29 }
 0x612   :  { %3264 = vmatmul.f32.vlgmr.msra.gmra.mxu1 %v3184_v9 }
 0x65d   :  { %v3245_v22 = vpop.f32.mrf.mxu0 }
 0x65e   :  { %v3246_v63 = vadd.f32 %v3346_v31, %v3245_v22 }
 0x68f   :  { %v3265_v55 = vpop.f32.mrf.mxu1 }
 0x690   :  { %v3266_v17 = vadd.f32 %v3265_v55, %v3246_v63 }
 0x692   :  { %3269 = vst.msk [vmem:[#allocation9] sm:$0x3] %vm3268_vm0, %v3266_v17 }
 0x693   :  { %3280 = dma.vmem_to_hbm [thread:$0]  %s3276_s8, 32, %s3278_s11, [#allocation5]  }
 0x694   :  { %4087 = dma.done.wait [#allocation5], 32  }
 0x695   :  { %4088 = vsyncadd [#allocation5], 4294967264 }
 0x696   :  { %3285 = vsyncpa [#allocation4], 1 }
 0x697   :  { %3286 = vsyncpa [#allocation7], 1 }
 0x698   :  { %3287 = vsyncpa [#allocation5], 1 }

</bundles_post_ra>
